<compile_context>
chip_gen: v5e
topology: v5e:2x2
jax: 0.10.0
libtpu: 0.0.40
codegen_flags: <defaults>
</compile_context>

<pallas_src>
import functools

import jax
import jax.numpy as jnp
from jax.experimental import pallas as pl
from jax.experimental.pallas import tpu as pltpu


# ------------------------------------ helpers ---------------------------------------- #

def _round_up(x, m):
    return ((x + m - 1) // m) * m


@functools.lru_cache(maxsize=None)
def _vmem_limit():
    """~3/4 of physical VMEM, capped: v5e/v6e ~96MB, v7x ~48MB, fallback 48MB."""
    try:
        cap = pltpu.get_tpu_info().vmem_capacity_bytes
    except Exception:
        cap = 64 * 1024 * 1024
    return int(min(cap * 3 // 4, 100 * 1024 * 1024))


def _row_tile(m, k, buf_budget=8 << 20):
    """Fixed 16-aligned row tile sized so the double-buffered bf16 input tile fits the budget."""
    t = buf_budget // (2 * 2 * k)          # 2 buffers x 2 bytes/elem
    t = max(128, min(2048, (t // 16) * 16))
    if m <= t:
        return _round_up(m, 16)            # single full tile
    return t


# --------------------- kernel A: conv matmul + bias + ReLU + BN ----------------------- #

def _conv_bn_relu_kernel(x_ref, w_ref, b_ref, o_ref, mom_ref, *,
                         eps, tm, m_true, num_tiles, mask_rows):
    i = pl.program_id(0)

    @pl.when(i == 0)
    def _():
        mom_ref[...] = jnp.zeros_like(mom_ref)

    # MXU: bf16 x bf16 -> f32 accumulate; elementwise math stays in f32 (v5e-friendly).
    y = jnp.dot(x_ref[...], w_ref[...], preferred_element_type=jnp.float32)
    y = jnp.maximum(y + b_ref[...], 0.0)

    row0 = pl.multiple_of(i * tm, 16)
    if mask_rows:
        rows = row0 + jax.lax.broadcasted_iota(jnp.int32, (tm, 1), 0)
        y = jnp.where(rows < m_true, y, 0.0)   # padded rows must not pollute BN moments

    # per-tile moment accumulation into a tiny (2, C) f32 scratch (hidden under MXU/DMA)
    mom_ref[0:1, :] += jnp.sum(y, axis=0, keepdims=True)
    mom_ref[1:2, :] += jnp.sum(y * y, axis=0, keepdims=True)

    # resident (M_pad, C) output slab: constant out block index across the grid
    o_ref[pl.ds(row0, tm), :] = y.astype(o_ref.dtype)

    @pl.when(i == num_tiles - 1)
    def _():
        inv_m = jnp.float32(1.0 / m_true)
        mean = mom_ref[0:1, :] * inv_m
        var = mom_ref[1:2, :] * inv_m - mean * mean   # biased variance (PyTorch fwd)
        inv_std = jax.lax.rsqrt(var + eps)

        def body(t, carry):
            r0 = pl.multiple_of(t * tm, 16)
            blk = o_ref[pl.ds(r0, tm), :].astype(jnp.float32)
            o_ref[pl.ds(r0, tm), :] = ((blk - mean) * inv_std).astype(o_ref.dtype)
            return carry

        jax.lax.fori_loop(0, num_tiles, body, 0)


def conv_matmul_bn(patches, w2d, b, *, out_dtype=jnp.bfloat16, eps=1e-5):
    """y = BN(ReLU(patches @ w2d + b)).  patches:(M,K) bf16, w2d:(K,C) bf16, b:(1,C) f32."""
    m, k = patches.shape
    n = w2d.shape[1]
    tm = _row_tile(m, k)
    m_pad = _round_up(m, tm)
    if m_pad != m:
        patches = jnp.pad(patches, ((0, m_pad - m), (0, 0)))
    num_tiles = m_pad // tm

    out = pl.pallas_call(
        functools.partial(_conv_bn_relu_kernel, eps=eps, tm=tm, m_true=m,
                          num_tiles=num_tiles, mask_rows=(m_pad != m)),
        out_shape=jax.ShapeDtypeStruct((m_pad, n), out_dtype),
        grid=(num_tiles,),
        in_specs=[
            pl.BlockSpec((tm, k), lambda i: (i, 0)),   # row tile of im2col patches (pipelined)
            pl.BlockSpec((k, n), lambda i: (0, 0)),    # weights (constant block, DMA'd once)
            pl.BlockSpec((1, n), lambda i: (0, 0)),    # bias
        ],
        out_specs=pl.BlockSpec((m_pad, n), lambda i: (0, 0)),   # VMEM-resident slab
        scratch_shapes=[pltpu.VMEM((2, n), jnp.float32)],       # [sum; sum-of-squares]
        compiler_params=pltpu.CompilerParams(
            dimension_semantics=("arbitrary",),
            vmem_limit_bytes=_vmem_limit(),
        ),
    )(patches, w2d, b)
    return out[:m] if m_pad != m else out


# --------- kernel B: conv3 + both noisy heads + dueling combine + softmax ------------- #

def _tail_head_kernel(p_ref, w3_ref, b3_ref, w1_ref, b1_ref,
                      wq_ref, bq_ref, wv_ref, bv_ref, o_ref, *,
                      action_num, hidden, num_atoms):
    # conv3 (1x1 spatial output): matmul + bias + ReLU -> features (tb, 64)
    feat = jnp.dot(p_ref[...], w3_ref[...], preferred_element_type=jnp.float32)
    feat = jnp.maximum(feat + b3_ref[...], 0.0).astype(jnp.bfloat16)

    # First NoisyLinear of BOTH heads fused into one lane-dense matmul (N = 2*hidden).
    h = jnp.dot(feat, w1_ref[...], preferred_element_type=jnp.float32)
    h = jnp.maximum(h + b1_ref[...], 0.0).astype(jnp.bfloat16)
    h_q = h[:, :hidden]          # 128-aligned lane slices
    h_v = h[:, hidden:]

    # Advantage stream: ONE lane-padded matmul over all actions (tb, A*128).
    q_all = jnp.dot(h_q, wq_ref[...], preferred_element_type=jnp.float32) + bq_ref[...]
    # Value stream (padded to 128 lanes, padded lanes are zero).
    v = jnp.dot(h_v, wv_ref[...], preferred_element_type=jnp.float32) + bv_ref[...]

    # mean over actions (padded lanes stay 0 because padded weight/bias columns are 0)
    q_mean = q_all[:, 0:128]
    for a in range(1, action_num):
        q_mean = q_mean + q_all[:, a * 128:(a + 1) * 128]
    q_mean = q_mean * (1.0 / action_num)

    lane = jax.lax.broadcasted_iota(jnp.int32, (1, 128), 1)
    valid = lane < num_atoms

    # Dueling combine + softmax over atoms; lane-dense unmasked stores at 128-aligned offsets.
    for a in range(action_num):
        logits = q_all[:, a * 128:(a + 1) * 128] - q_mean + v
        logits = jnp.where(valid, logits, -1e30)          # mask padded atom lanes
        m = jnp.max(logits, axis=1, keepdims=True)
        e = jnp.exp(logits - m)
        # exact divide kept (approx reciprocal would risk the sum-to-1 tolerance)
        o_ref[:, a * 128:(a + 1) * 128] = e / jnp.sum(e, axis=1, keepdims=True)


def tail_and_head(p3, p, *, action_num, num_atoms, hidden=512):
    b, k = p3.shape
    tb = min(512, _round_up(b, 16))
    b_pad = _round_up(b, tb)
    if b_pad != b:
        p3 = jnp.pad(p3, ((0, b_pad - b), (0, 0)))
    n_out = action_num * 128

    def _const_spec(a):
        return pl.BlockSpec(a.shape, lambda i: (0, 0))

    out = pl.pallas_call(
        functools.partial(_tail_head_kernel, action_num=action_num,
                          hidden=hidden, num_atoms=num_atoms),
        out_shape=jax.ShapeDtypeStruct((b_pad, n_out), jnp.float32),
        grid=(b_pad // tb,),
        in_specs=[
            pl.BlockSpec((tb, k), lambda i: (i, 0)),
            _const_spec(p["w3"]), _const_spec(p["b3"]),
            _const_spec(p["w1"]), _const_spec(p["b1"]),
            _const_spec(p["wq"]), _const_spec(p["bq"]),
            _const_spec(p["wv"]), _const_spec(p["bv"]),
        ],
        out_specs=pl.BlockSpec((tb, n_out), lambda i: (i, 0)),
        compiler_params=pltpu.CompilerParams(
            dimension_semantics=("parallel",),      # batch tiles shard across TCs on v7x
            vmem_limit_bytes=_vmem_limit(),
        ),
    )(p3, p["w3"], p["b3"], p["w1"], p["b1"], p["wq"], p["bq"], p["wv"], p["bv"])

    # lane-dense kernel output -> (B, A, num_atoms); padded lanes carry exact zeros.
    return out[:b].reshape(b, action_num, 128)[:, :, :num_atoms]


# ----------------------------------- JAX glue ------------------------------------------ #

def _im2col_nhwc(x, kh, kw, stride):
    """x: (N,H,W,C) -> patches (N*OH*OW, KH*KW*C) in (kh, kw, c) column order."""
    n, h, w, c = x.shape
    oh = (h - kh) // stride + 1
    ow = (w - kw) // stride + 1
    ii = (jnp.arange(oh) * stride)[:, None] + jnp.arange(kh)[None, :]      # (oh, kh)
    jj = (jnp.arange(ow) * stride)[:, None] + jnp.arange(kw)[None, :]      # (ow, kw)
    patches = x[:, ii[:, None, :, None], jj[None, :, None, :], :]          # (n,oh,ow,kh,kw,c)
    return patches.reshape(n * oh * ow, kh * kw * c), oh, ow


def _conv_out(sz, k, s):
    return (sz - k) // s + 1


def feature_dims(h, w):
    h1, w1 = _conv_out(h, 16, 4), _conv_out(w, 16, 4)
    h2, w2 = _conv_out(h1, 12, 2), _conv_out(w1, 12, 2)
    h3, w3 = _conv_out(h2, 4, 1), _conv_out(w2, 4, 1)
    return 64 * h3 * w3, (h3, w3)


# ----------------------------- parameter construction ---------------------------------- #

def _f_noise(e):
    # NoisyLinear.f : sign(x) * sqrt(|x|) of gaussian noise
    return jnp.sign(e) * jnp.sqrt(jnp.abs(e))


def _noisy_linear_params(key, in_f, out_f, noisy_std=0.5):
    k_mu_w, k_mu_b, k_p, k_q = jax.random.split(key, 4)
    bound = 1.0 / (in_f ** 0.5)
    mu_w = jax.random.uniform(k_mu_w, (out_f, in_f), jnp.float32, -bound, bound)
    mu_b = jax.random.uniform(k_mu_b, (out_f,), jnp.float32, -bound, bound)
    sigma = noisy_std / (in_f ** 0.5)
    eps_p = _f_noise(jax.random.normal(k_p, (in_f,), jnp.float32))
    eps_q = _f_noise(jax.random.normal(k_q, (out_f,), jnp.float32))
    # nn.Module default: training mode -> noisy effective weights
    w = mu_w + sigma * jnp.outer(eps_q, eps_p)
    b = mu_b + sigma * eps_q
    return w.T, b                                   # (in, out), (out,)


def _conv_params(key, out_c, in_c, kh, kw):
    k_w, k_b = jax.random.split(key)
    bound = 1.0 / ((in_c * kh * kw) ** 0.5)
    w = jax.random.uniform(k_w, (out_c, in_c, kh, kw), jnp.float32, -bound, bound)
    b = jax.random.uniform(k_b, (out_c,), jnp.float32, -bound, bound)
    return w, b


def init_rainbow_params(key, c, action_num, num_atoms, feat_dim, noisy_std=0.5, hidden=512):
    ks = jax.random.split(key, 7)
    w1, b1 = _conv_params(ks[0], 32, c, 16, 16)
    w2, b2 = _conv_params(ks[1], 64, 32, 12, 12)
    w3, b3 = _conv_params(ks[2], 64, 64, 4, 4)
    wq1, bq1 = _noisy_linear_params(ks[3], feat_dim, hidden, noisy_std)          # Double_Q[0]
    wq2, bq2 = _noisy_linear_params(ks[4], hidden, action_num * num_atoms, noisy_std)
    wv1, bv1 = _noisy_linear_params(ks[5], feat_dim, hidden, noisy_std)          # Dueling[0]
    wv2, bv2 = _noisy_linear_params(ks[6], hidden, num_atoms, noisy_std)

    def conv2d_w(w):  # (O, C, KH, KW) -> (KH*KW*C, O) bf16, matching NHWC im2col column order
        o = w.shape[0]
        return w.transpose(2, 3, 1, 0).reshape(-1, o).astype(jnp.bfloat16)

    pad = 128
    # advantage second layer: (hidden, A*T) -> lane-pad atoms to 128 -> (hidden, A*128)
    wq_pad = wq2.reshape(hidden, action_num, num_atoms)
    wq_pad = jnp.pad(wq_pad, ((0, 0), (0, 0), (0, pad - num_atoms)))
    wq_pad = wq_pad.reshape(hidden, action_num * pad).astype(jnp.bfloat16)
    bq_pad = jnp.pad(bq2.reshape(action_num, num_atoms), ((0, 0), (0, pad - num_atoms)))
    bq_pad = bq_pad.reshape(1, action_num * pad)
    # value second layer lane-padded to 128
    wv_pad = jnp.pad(wv2, ((0, 0), (0, pad - num_atoms))).astype(jnp.bfloat16)
    bv_pad = jnp.pad(bv2, (0, pad - num_atoms)).reshape(1, pad)

    return {
        "conv1_w": conv2d_w(w1), "conv1_b": b1.reshape(1, -1),
        "conv2_w": conv2d_w(w2), "conv2_b": b2.reshape(1, -1),
        "w3": conv2d_w(w3), "b3": b3.reshape(1, -1),
        # fused first noisy layer of both heads: feat @ [W_dq1 | W_du1]  (N = 2*hidden, lane dense)
        "w1": jnp.concatenate([wq1, wv1], axis=1).astype(jnp.bfloat16),
        "b1": jnp.concatenate([bq1, bv1], axis=0).reshape(1, -1),
        "wq": wq_pad, "bq": bq_pad,
        "wv": wv_pad, "bv": bv_pad,
    }


# ------------------------------------ forward ------------------------------------------ #

def rainbow_forward(params, obs, *, action_num, num_atoms):
    x = obs.astype(jnp.float32)
    n = x.shape[0]
    x = jnp.transpose(x, (0, 2, 3, 1)).astype(jnp.bfloat16)   # NCHW -> NHWC once, bf16

    # conv1 (k16 s4) + ReLU + BN  -- fused matmul/BN kernel, rows stay in (N*OH*OW, C) form
    p1, oh1, ow1 = _im2col_nhwc(x, 16, 16, 4)
    y1 = conv_matmul_bn(p1, params["conv1_w"], params["conv1_b"])
    y1 = y1.reshape(n, oh1, ow1, 32)

    # conv2 (k12 s2) + ReLU + BN
    p2, oh2, ow2 = _im2col_nhwc(y1, 12, 12, 2)
    y2 = conv_matmul_bn(p2, params["conv2_w"], params["conv2_b"])
    y2 = y2.reshape(n, oh2, ow2, 64)

    # conv3 (k4 s1) produces a 1x1 spatial output -> its "im2col" is a plain reshape.
    assert _conv_out(oh2, 4, 1) == 1 and _conv_out(ow2, 4, 1) == 1, \
        "fused head assumes conv3 output is 1x1 spatial (84x84 input)"
    p3 = y2.reshape(n, -1)                                    # (kh, kw, c) order already matches

    # conv3 + Flatten + both noisy heads + dueling + softmax fused in one kernel.
    return tail_and_head(p3, params, action_num=action_num, num_atoms=num_atoms)


# -------------------------------------- main -------------------------------------------- #

if __name__ == "__main__":
    # 84x84 is the minimum spatial size supported by this conv stack (k16/s4, k12/s2, k4/s1).
    c, h, w = 4, 84, 84
    batch = 2
    action_num, num_atoms = 6, 51

    key = jax.random.PRNGKey(0)
    k_params, k_obs = jax.random.split(key)
    feat_dim, _ = feature_dims(h, w)                           # = 64 for 84x84
    params = init_rainbow_params(k_params, c, action_num, num_atoms, feat_dim)
    obs = jax.random.uniform(k_obs, (batch, c, h, w), jnp.float32)

    fwd = jax.jit(functools.partial(rainbow_forward,
                                    action_num=action_num, num_atoms=num_atoms))
    probs = jax.block_until_ready(fwd(params, obs))

    assert probs.shape == (batch, action_num, num_atoms)
    assert bool(jnp.all(jnp.isfinite(probs)))
    assert bool(jnp.allclose(jnp.sum(probs, axis=2), 1.0, atol=1e-4))
    print("KERNEL_OK")
</pallas_src>

<mosaic_0001>
module attributes {stable_mosaic.version = 11 : i64} {
  func.func @_conv_bn_relu_kernel(%arg0: i32, %arg1: memref<656x1024xbf16, #tpu.memory_space<vmem>>, %arg2: memref<1024x32xbf16, #tpu.memory_space<vmem>>, %arg3: memref<1x32xf32, #tpu.memory_space<vmem>>, %arg4: memref<656x32xbf16, #tpu.memory_space<vmem>>, %arg5: memref<2x32xf32, #tpu.memory_space<vmem>>) attributes {dimension_semantics = [#tpu.dimension_semantics<arbitrary>], iteration_bounds = array<i64: 1>, scalar_prefetch = 0 : i64, scratch_operands = 1 : i64, tpu.core_type = #tpu.core_type<tc>, window_params = [{transform_indices = @transform_0, window_bounds = array<i64: 656, 1024>}, {pipeline_mode = #tpu.pipeline_mode<synchronous>, transform_indices = @transform_1, window_bounds = array<i64: 1024, 32>}, {pipeline_mode = #tpu.pipeline_mode<synchronous>, transform_indices = @transform_2, window_bounds = array<i64: 1, 32>}, {pipeline_mode = #tpu.pipeline_mode<synchronous>, transform_indices = @transform_3, window_bounds = array<i64: 656, 32>}]} {
    %c0_i32 = arith.constant 0 : i32
    %0 = arith.cmpi eq, %arg0, %c0_i32 : i32
    %1 = arith.extui %0 : i1 to i32
    %c0_i32_0 = arith.constant 0 : i32
    %2 = arith.cmpi ne, %1, %c0_i32_0 : i32
    scf.if %2 {
      %cst_20 = arith.constant 0.000000e+00 : f32
      %39 = vector.broadcast %cst_20 : f32 to vector<2x32xf32>
      %c0_21 = arith.constant 0 : index
      %c0_22 = arith.constant 0 : index
      %40 = vector.load %arg5[%c0_21, %c0_22] : memref<2x32xf32, #tpu.memory_space<vmem>>, vector<2x32xf32>
      tpu.vector_store %arg5[%c0_21, %c0_22], %39 {strides = array<i32>} : memref<2x32xf32, #tpu.memory_space<vmem>>, vector<2x32xf32>,
    } else {
    }
    %c0 = arith.constant 0 : index
    %c0_1 = arith.constant 0 : index
    %3 = vector.load %arg1[%c0, %c0_1] : memref<656x1024xbf16, #tpu.memory_space<vmem>>, vector<656x1024xbf16>
    %c0_2 = arith.constant 0 : index
    %c0_3 = arith.constant 0 : index
    %4 = vector.load %arg2[%c0_2, %c0_3] : memref<1024x32xbf16, #tpu.memory_space<vmem>>, vector<1024x32xbf16>
    %cst = arith.constant dense<0.000000e+00> : vector<656x32xf32>
    %5 = tpu.matmul %3, %4, %cst {dimension_numbers = #tpu.dot_dimension_numbers<[1], [0], [0], [1], [0, 0, 1, 1], [], []>} : vector<656x1024xbf16>, vector<1024x32xbf16>, vector<656x32xf32> -> vector<656x32xf32>
    %c0_4 = arith.constant 0 : index
    %c0_5 = arith.constant 0 : index
    %6 = vector.load %arg3[%c0_4, %c0_5] : memref<1x32xf32, #tpu.memory_space<vmem>>, vector<1x32xf32>
    %7 = vector.broadcast %6 : vector<1x32xf32> to vector<656x32xf32>
    %8 = arith.addf %5, %7 : vector<656x32xf32>
    %cst_6 = arith.constant 0.000000e+00 : f32
    %9 = vector.broadcast %cst_6 : f32 to vector<656x32xf32>
    %10 = arith.maximumf %8, %9 : vector<656x32xf32>
    %c656_i32 = arith.constant 656 : i32
    %11 = arith.muli %arg0, %c656_i32 : i32
    %12 = tpu.assume_multiple %11, 16 : i32
    %13 = tpu.iota {dimensions = array<i32: 0>} : vector<656x1xi32>
    %14 = vector.broadcast %12 : i32 to vector<656x1xi32>
    %15 = arith.addi %14, %13 : vector<656x1xi32>
    %c648_i32 = arith.constant 648 : i32
    %16 = vector.broadcast %c648_i32 : i32 to vector<656x1xi32>
    %17 = arith.cmpi slt, %15, %16 : vector<656x1xi32>
    %cst_7 = arith.constant 0.000000e+00 : f32
    %18 = vector.shape_cast %17 : vector<656x1xi1> to vector<656x1xi1>
    %19 = vector.broadcast %18 : vector<656x1xi1> to vector<656x32xi1>
    %20 = vector.broadcast %cst_7 : f32 to vector<656x32xf32>
    %21 = arith.select %19, %10, %20 : vector<656x32xi1>, vector<656x32xf32>
    %c0_8 = arith.constant 0 : index
    %c0_9 = arith.constant 0 : index
    %22 = vector.load %arg5[%c0_8, %c0_9] : memref<2x32xf32, #tpu.memory_space<vmem>>, vector<1x32xf32>
    %cst_10 = arith.constant dense<0.000000e+00> : vector<32xf32>
    %23 = vector.multi_reduction <add>, %21, %cst_10 [0] : vector<656x32xf32> to vector<32xf32>
    %24 = vector.shape_cast %23 : vector<32xf32> to vector<1x32xf32>
    %25 = arith.addf %22, %24 : vector<1x32xf32>
    %c0_11 = arith.constant 0 : index
    %c0_12 = arith.constant 0 : index
    %26 = vector.load %arg5[%c0_11, %c0_12] : memref<2x32xf32, #tpu.memory_space<vmem>>, vector<1x32xf32>
    tpu.vector_store %arg5[%c0_11, %c0_12], %25 {strides = array<i32>} : memref<2x32xf32, #tpu.memory_space<vmem>>, vector<1x32xf32>,
    %c1 = arith.constant 1 : index
    %c0_13 = arith.constant 0 : index
    %27 = vector.load %arg5[%c1, %c0_13] : memref<2x32xf32, #tpu.memory_space<vmem>>, vector<1x32xf32>
    %28 = arith.mulf %21, %21 : vector<656x32xf32>
    %cst_14 = arith.constant dense<0.000000e+00> : vector<32xf32>
    %29 = vector.multi_reduction <add>, %28, %cst_14 [0] : vector<656x32xf32> to vector<32xf32>
    %30 = vector.shape_cast %29 : vector<32xf32> to vector<1x32xf32>
    %31 = arith.addf %27, %30 : vector<1x32xf32>
    %c1_15 = arith.constant 1 : index
    %c0_16 = arith.constant 0 : index
    %32 = vector.load %arg5[%c1_15, %c0_16] : memref<2x32xf32, #tpu.memory_space<vmem>>, vector<1x32xf32>
    tpu.vector_store %arg5[%c1_15, %c0_16], %31 {strides = array<i32>} : memref<2x32xf32, #tpu.memory_space<vmem>>, vector<1x32xf32>,
    %33 = arith.truncf %21 : vector<656x32xf32> to vector<656x32xbf16>
    %34 = arith.index_cast %12 : i32 to index
    %c0_17 = arith.constant 0 : index
    %35 = vector.load %arg4[%34, %c0_17] : memref<656x32xbf16, #tpu.memory_space<vmem>>, vector<656x32xbf16>
    tpu.vector_store %arg4[%34, %c0_17], %33 {strides = array<i32>} : memref<656x32xbf16, #tpu.memory_space<vmem>>, vector<656x32xbf16>,
    %c0_i32_18 = arith.constant 0 : i32
    %36 = arith.cmpi eq, %arg0, %c0_i32_18 : i32
    %37 = arith.extui %36 : i1 to i32
    %c0_i32_19 = arith.constant 0 : i32
    %38 = arith.cmpi ne, %37, %c0_i32_19 : i32
    scf.if %38 {
      %c0_20 = arith.constant 0 : index
      %c0_21 = arith.constant 0 : index
      %39 = vector.load %arg5[%c0_20, %c0_21] : memref<2x32xf32, #tpu.memory_space<vmem>>, vector<1x32xf32>
      %cst_22 = arith.constant 0.00154320989 : f32
      %40 = vector.broadcast %cst_22 : f32 to vector<1x32xf32>
      %41 = arith.mulf %39, %40 : vector<1x32xf32>
      %c1_23 = arith.constant 1 : index
      %c0_24 = arith.constant 0 : index
      %42 = vector.load %arg5[%c1_23, %c0_24] : memref<2x32xf32, #tpu.memory_space<vmem>>, vector<1x32xf32>
      %cst_25 = arith.constant 0.00154320989 : f32
      %43 = vector.broadcast %cst_25 : f32 to vector<1x32xf32>
      %44 = arith.mulf %42, %43 : vector<1x32xf32>
      %45 = arith.mulf %41, %41 : vector<1x32xf32>
      %46 = arith.subf %44, %45 : vector<1x32xf32>
      %cst_26 = arith.constant 9.99999974E-6 : f32
      %47 = vector.broadcast %cst_26 : f32 to vector<1x32xf32>
      %48 = arith.addf %46, %47 : vector<1x32xf32>
      %49 = math.rsqrt %48 : vector<1x32xf32>
      %c0_i32_27 = arith.constant 0 : i32
      %c656_i32_28 = arith.constant 656 : i32
      %50 = arith.muli %c0_i32_27, %c656_i32_28 : i32
      %51 = tpu.assume_multiple %50, 16 : i32
      %52 = arith.index_cast %51 : i32 to index
      %c0_29 = arith.constant 0 : index
      %53 = vector.load %arg4[%52, %c0_29] : memref<656x32xbf16, #tpu.memory_space<vmem>>, vector<656x32xbf16>
      %54 = arith.extf %53 : vector<656x32xbf16> to vector<656x32xf32>
      %55 = vector.broadcast %41 : vector<1x32xf32> to vector<656x32xf32>
      %56 = arith.subf %54, %55 : vector<656x32xf32>
      %57 = vector.broadcast %49 : vector<1x32xf32> to vector<656x32xf32>
      %58 = arith.mulf %56, %57 : vector<656x32xf32>
      %59 = arith.truncf %58 : vector<656x32xf32> to vector<656x32xbf16>
      %60 = arith.index_cast %51 : i32 to index
      %c0_30 = arith.constant 0 : index
      %61 = vector.load %arg4[%60, %c0_30] : memref<656x32xbf16, #tpu.memory_space<vmem>>, vector<656x32xbf16>
      tpu.vector_store %arg4[%60, %c0_30], %59 {strides = array<i32>} : memref<656x32xbf16, #tpu.memory_space<vmem>>, vector<656x32xbf16>,
      %c1_i32 = arith.constant 1 : i32
    } else {
    }
    return
  }
  func.func @transform_0(%arg0: i32) -> (i32, i32) {
    %c0_i32 = arith.constant 0 : i32
    %c0_i32_0 = arith.constant 0 : i32
    return %arg0, %c0_i32 : i32, i32
  }
  func.func @transform_1(%arg0: i32) -> (i32, i32) {
    %c0_i32 = arith.constant 0 : i32
    %c0_i32_0 = arith.constant 0 : i32
    %c0_i32_1 = arith.constant 0 : i32
    return %c0_i32, %c0_i32_0 : i32, i32
  }
  func.func @transform_2(%arg0: i32) -> (i32, i32) {
    %c0_i32 = arith.constant 0 : i32
    %c0_i32_0 = arith.constant 0 : i32
    %c0_i32_1 = arith.constant 0 : i32
    return %c0_i32, %c0_i32_0 : i32, i32
  }
  func.func @transform_3(%arg0: i32) -> (i32, i32) {
    %c0_i32 = arith.constant 0 : i32
    %c0_i32_0 = arith.constant 0 : i32
    %c0_i32_1 = arith.constant 0 : i32
    return %c0_i32, %c0_i32_0 : i32, i32
  }
}

module attributes {stable_mosaic.version = 11 : i64} {
  func.func @_conv_bn_relu_kernel(%arg0: i32, %arg1: memref<32x4608xbf16, #tpu.memory_space<vmem>>, %arg2: memref<4608x64xbf16, #tpu.memory_space<vmem>>, %arg3: memref<1x64xf32, #tpu.memory_space<vmem>>, %arg4: memref<32x64xbf16, #tpu.memory_space<vmem>>, %arg5: memref<2x64xf32, #tpu.memory_space<vmem>>) attributes {dimension_semantics = [#tpu.dimension_semantics<arbitrary>], iteration_bounds = array<i64: 1>, scalar_prefetch = 0 : i64, scratch_operands = 1 : i64, tpu.core_type = #tpu.core_type<tc>, window_params = [{transform_indices = @transform_0, window_bounds = array<i64: 32, 4608>}, {pipeline_mode = #tpu.pipeline_mode<synchronous>, transform_indices = @transform_1, window_bounds = array<i64: 4608, 64>}, {pipeline_mode = #tpu.pipeline_mode<synchronous>, transform_indices = @transform_2, window_bounds = array<i64: 1, 64>}, {pipeline_mode = #tpu.pipeline_mode<synchronous>, transform_indices = @transform_3, window_bounds = array<i64: 32, 64>}]} {
    %c0_i32 = arith.constant 0 : i32
    %0 = arith.cmpi eq, %arg0, %c0_i32 : i32
    %1 = arith.extui %0 : i1 to i32
    %c0_i32_0 = arith.constant 0 : i32
    %2 = arith.cmpi ne, %1, %c0_i32_0 : i32
    scf.if %2 {
      %cst_19 = arith.constant 0.000000e+00 : f32
      %30 = vector.broadcast %cst_19 : f32 to vector<2x64xf32>
      %c0_20 = arith.constant 0 : index
      %c0_21 = arith.constant 0 : index
      %31 = vector.load %arg5[%c0_20, %c0_21] : memref<2x64xf32, #tpu.memory_space<vmem>>, vector<2x64xf32>
      tpu.vector_store %arg5[%c0_20, %c0_21], %30 {strides = array<i32>} : memref<2x64xf32, #tpu.memory_space<vmem>>, vector<2x64xf32>,
    } else {
    }
    %c0 = arith.constant 0 : index
    %c0_1 = arith.constant 0 : index
    %3 = vector.load %arg1[%c0, %c0_1] : memref<32x4608xbf16, #tpu.memory_space<vmem>>, vector<32x4608xbf16>
    %c0_2 = arith.constant 0 : index
    %c0_3 = arith.constant 0 : index
    %4 = vector.load %arg2[%c0_2, %c0_3] : memref<4608x64xbf16, #tpu.memory_space<vmem>>, vector<4608x64xbf16>
    %cst = arith.constant dense<0.000000e+00> : vector<32x64xf32>
    %5 = tpu.matmul %3, %4, %cst {dimension_numbers = #tpu.dot_dimension_numbers<[1], [0], [0], [1], [0, 0, 1, 1], [], []>} : vector<32x4608xbf16>, vector<4608x64xbf16>, vector<32x64xf32> -> vector<32x64xf32>
    %c0_4 = arith.constant 0 : index
    %c0_5 = arith.constant 0 : index
    %6 = vector.load %arg3[%c0_4, %c0_5] : memref<1x64xf32, #tpu.memory_space<vmem>>, vector<1x64xf32>
    %7 = vector.broadcast %6 : vector<1x64xf32> to vector<32x64xf32>
    %8 = arith.addf %5, %7 : vector<32x64xf32>
    %cst_6 = arith.constant 0.000000e+00 : f32
    %9 = vector.broadcast %cst_6 : f32 to vector<32x64xf32>
    %10 = arith.maximumf %8, %9 : vector<32x64xf32>
    %c32_i32 = arith.constant 32 : i32
    %11 = arith.muli %arg0, %c32_i32 : i32
    %12 = tpu.assume_multiple %11, 16 : i32
    %c0_7 = arith.constant 0 : index
    %c0_8 = arith.constant 0 : index
    %13 = vector.load %arg5[%c0_7, %c0_8] : memref<2x64xf32, #tpu.memory_space<vmem>>, vector<1x64xf32>
    %cst_9 = arith.constant dense<0.000000e+00> : vector<64xf32>
    %14 = vector.multi_reduction <add>, %10, %cst_9 [0] : vector<32x64xf32> to vector<64xf32>
    %15 = vector.shape_cast %14 : vector<64xf32> to vector<1x64xf32>
    %16 = arith.addf %13, %15 : vector<1x64xf32>
    %c0_10 = arith.constant 0 : index
    %c0_11 = arith.constant 0 : index
    %17 = vector.load %arg5[%c0_10, %c0_11] : memref<2x64xf32, #tpu.memory_space<vmem>>, vector<1x64xf32>
    tpu.vector_store %arg5[%c0_10, %c0_11], %16 {strides = array<i32>} : memref<2x64xf32, #tpu.memory_space<vmem>>, vector<1x64xf32>,
    %c1 = arith.constant 1 : index
    %c0_12 = arith.constant 0 : index
    %18 = vector.load %arg5[%c1, %c0_12] : memref<2x64xf32, #tpu.memory_space<vmem>>, vector<1x64xf32>
    %19 = arith.mulf %10, %10 : vector<32x64xf32>
    %cst_13 = arith.constant dense<0.000000e+00> : vector<64xf32>
    %20 = vector.multi_reduction <add>, %19, %cst_13 [0] : vector<32x64xf32> to vector<64xf32>
    %21 = vector.shape_cast %20 : vector<64xf32> to vector<1x64xf32>
    %22 = arith.addf %18, %21 : vector<1x64xf32>
    %c1_14 = arith.constant 1 : index
    %c0_15 = arith.constant 0 : index
    %23 = vector.load %arg5[%c1_14, %c0_15] : memref<2x64xf32, #tpu.memory_space<vmem>>, vector<1x64xf32>
    tpu.vector_store %arg5[%c1_14, %c0_15], %22 {strides = array<i32>} : memref<2x64xf32, #tpu.memory_space<vmem>>, vector<1x64xf32>,
    %24 = arith.truncf %10 : vector<32x64xf32> to vector<32x64xbf16>
    %25 = arith.index_cast %12 : i32 to index
    %c0_16 = arith.constant 0 : index
    %26 = vector.load %arg4[%25, %c0_16] : memref<32x64xbf16, #tpu.memory_space<vmem>>, vector<32x64xbf16>
    tpu.vector_store %arg4[%25, %c0_16], %24 {strides = array<i32>} : memref<32x64xbf16, #tpu.memory_space<vmem>>, vector<32x64xbf16>,
    %c0_i32_17 = arith.constant 0 : i32
    %27 = arith.cmpi eq, %arg0, %c0_i32_17 : i32
    %28 = arith.extui %27 : i1 to i32
    %c0_i32_18 = arith.constant 0 : i32
    %29 = arith.cmpi ne, %28, %c0_i32_18 : i32
    scf.if %29 {
      %c0_19 = arith.constant 0 : index
      %c0_20 = arith.constant 0 : index
      %30 = vector.load %arg5[%c0_19, %c0_20] : memref<2x64xf32, #tpu.memory_space<vmem>>, vector<1x64xf32>
      %cst_21 = arith.constant 3.125000e-02 : f32
      %31 = vector.broadcast %cst_21 : f32 to vector<1x64xf32>
      %32 = arith.mulf %30, %31 : vector<1x64xf32>
      %c1_22 = arith.constant 1 : index
      %c0_23 = arith.constant 0 : index
      %33 = vector.load %arg5[%c1_22, %c0_23] : memref<2x64xf32, #tpu.memory_space<vmem>>, vector<1x64xf32>
      %cst_24 = arith.constant 3.125000e-02 : f32
      %34 = vector.broadcast %cst_24 : f32 to vector<1x64xf32>
      %35 = arith.mulf %33, %34 : vector<1x64xf32>
      %36 = arith.mulf %32, %32 : vector<1x64xf32>
      %37 = arith.subf %35, %36 : vector<1x64xf32>
      %cst_25 = arith.constant 9.99999974E-6 : f32
      %38 = vector.broadcast %cst_25 : f32 to vector<1x64xf32>
      %39 = arith.addf %37, %38 : vector<1x64xf32>
      %40 = math.rsqrt %39 : vector<1x64xf32>
      %c0_i32_26 = arith.constant 0 : i32
      %c32_i32_27 = arith.constant 32 : i32
      %41 = arith.muli %c0_i32_26, %c32_i32_27 : i32
      %42 = tpu.assume_multiple %41, 16 : i32
      %43 = arith.index_cast %42 : i32 to index
      %c0_28 = arith.constant 0 : index
      %44 = vector.load %arg4[%43, %c0_28] : memref<32x64xbf16, #tpu.memory_space<vmem>>, vector<32x64xbf16>
      %45 = arith.extf %44 : vector<32x64xbf16> to vector<32x64xf32>
      %46 = vector.broadcast %32 : vector<1x64xf32> to vector<32x64xf32>
      %47 = arith.subf %45, %46 : vector<32x64xf32>
      %48 = vector.broadcast %40 : vector<1x64xf32> to vector<32x64xf32>
      %49 = arith.mulf %47, %48 : vector<32x64xf32>
      %50 = arith.truncf %49 : vector<32x64xf32> to vector<32x64xbf16>
      %51 = arith.index_cast %42 : i32 to index
      %c0_29 = arith.constant 0 : index
      %52 = vector.load %arg4[%51, %c0_29] : memref<32x64xbf16, #tpu.memory_space<vmem>>, vector<32x64xbf16>
      tpu.vector_store %arg4[%51, %c0_29], %50 {strides = array<i32>} : memref<32x64xbf16, #tpu.memory_space<vmem>>, vector<32x64xbf16>,
      %c1_i32 = arith.constant 1 : i32
    } else {
    }
    return
  }
  func.func @transform_0(%arg0: i32) -> (i32, i32) {
    %c0_i32 = arith.constant 0 : i32
    %c0_i32_0 = arith.constant 0 : i32
    return %arg0, %c0_i32 : i32, i32
  }
  func.func @transform_1(%arg0: i32) -> (i32, i32) {
    %c0_i32 = arith.constant 0 : i32
    %c0_i32_0 = arith.constant 0 : i32
    %c0_i32_1 = arith.constant 0 : i32
    return %c0_i32, %c0_i32_0 : i32, i32
  }
  func.func @transform_2(%arg0: i32) -> (i32, i32) {
    %c0_i32 = arith.constant 0 : i32
    %c0_i32_0 = arith.constant 0 : i32
    %c0_i32_1 = arith.constant 0 : i32
    return %c0_i32, %c0_i32_0 : i32, i32
  }
  func.func @transform_3(%arg0: i32) -> (i32, i32) {
    %c0_i32 = arith.constant 0 : i32
    %c0_i32_0 = arith.constant 0 : i32
    %c0_i32_1 = arith.constant 0 : i32
    return %c0_i32, %c0_i32_0 : i32, i32
  }
}

module attributes {stable_mosaic.version = 11 : i64} {
  func.func @_tail_head_kernel(%arg0: i32, %arg1: memref<16x1024xbf16, #tpu.memory_space<vmem>>, %arg2: memref<1024x64xbf16, #tpu.memory_space<vmem>>, %arg3: memref<1x64xf32, #tpu.memory_space<vmem>>, %arg4: memref<64x1024xbf16, #tpu.memory_space<vmem>>, %arg5: memref<1x1024xf32, #tpu.memory_space<vmem>>, %arg6: memref<512x768xbf16, #tpu.memory_space<vmem>>, %arg7: memref<1x768xf32, #tpu.memory_space<vmem>>, %arg8: memref<512x128xbf16, #tpu.memory_space<vmem>>, %arg9: memref<1x128xf32, #tpu.memory_space<vmem>>, %arg10: memref<16x768xf32, #tpu.memory_space<vmem>>) attributes {dimension_semantics = [#tpu.dimension_semantics<parallel>], iteration_bounds = array<i64: 1>, scalar_prefetch = 0 : i64, scratch_operands = 0 : i64, tpu.core_type = #tpu.core_type<tc>, window_params = [{transform_indices = @transform_0, window_bounds = array<i64: 16, 1024>}, {pipeline_mode = #tpu.pipeline_mode<synchronous>, transform_indices = @transform_1, window_bounds = array<i64: 1024, 64>}, {pipeline_mode = #tpu.pipeline_mode<synchronous>, transform_indices = @transform_2, window_bounds = array<i64: 1, 64>}, {pipeline_mode = #tpu.pipeline_mode<synchronous>, transform_indices = @transform_3, window_bounds = array<i64: 64, 1024>}, {pipeline_mode = #tpu.pipeline_mode<synchronous>, transform_indices = @transform_4, window_bounds = array<i64: 1, 1024>}, {pipeline_mode = #tpu.pipeline_mode<synchronous>, transform_indices = @transform_5, window_bounds = array<i64: 512, 768>}, {pipeline_mode = #tpu.pipeline_mode<synchronous>, transform_indices = @transform_6, window_bounds = array<i64: 1, 768>}, {pipeline_mode = #tpu.pipeline_mode<synchronous>, transform_indices = @transform_7, window_bounds = array<i64: 512, 128>}, {pipeline_mode = #tpu.pipeline_mode<synchronous>, transform_indices = @transform_8, window_bounds = array<i64: 1, 128>}, {transform_indices = @transform_9, window_bounds = array<i64: 16, 768>}]} {
    %c0 = arith.constant 0 : index
    %c0_0 = arith.constant 0 : index
    %0 = vector.load %arg1[%c0, %c0_0] : memref<16x1024xbf16, #tpu.memory_space<vmem>>, vector<16x1024xbf16>
    %c0_1 = arith.constant 0 : index
    %c0_2 = arith.constant 0 : index
    %1 = vector.load %arg2[%c0_1, %c0_2] : memref<1024x64xbf16, #tpu.memory_space<vmem>>, vector<1024x64xbf16>
    %cst = arith.constant dense<0.000000e+00> : vector<16x64xf32>
    %2 = tpu.matmul %0, %1, %cst {dimension_numbers = #tpu.dot_dimension_numbers<[1], [0], [0], [1], [0, 0, 1, 1], [], []>} : vector<16x1024xbf16>, vector<1024x64xbf16>, vector<16x64xf32> -> vector<16x64xf32>
    %c0_3 = arith.constant 0 : index
    %c0_4 = arith.constant 0 : index
    %3 = vector.load %arg3[%c0_3, %c0_4] : memref<1x64xf32, #tpu.memory_space<vmem>>, vector<1x64xf32>
    %4 = vector.broadcast %3 : vector<1x64xf32> to vector<16x64xf32>
    %5 = arith.addf %2, %4 : vector<16x64xf32>
    %cst_5 = arith.constant 0.000000e+00 : f32
    %6 = vector.broadcast %cst_5 : f32 to vector<16x64xf32>
    %7 = arith.maximumf %5, %6 : vector<16x64xf32>
    %8 = arith.truncf %7 : vector<16x64xf32> to vector<16x64xbf16>
    %c0_6 = arith.constant 0 : index
    %c0_7 = arith.constant 0 : index
    %9 = vector.load %arg4[%c0_6, %c0_7] : memref<64x1024xbf16, #tpu.memory_space<vmem>>, vector<64x1024xbf16>
    %cst_8 = arith.constant dense<0.000000e+00> : vector<16x1024xf32>
    %10 = tpu.matmul %8, %9, %cst_8 {dimension_numbers = #tpu.dot_dimension_numbers<[1], [0], [0], [1], [0, 0, 1, 1], [], []>} : vector<16x64xbf16>, vector<64x1024xbf16>, vector<16x1024xf32> -> vector<16x1024xf32>
    %c0_9 = arith.constant 0 : index
    %c0_10 = arith.constant 0 : index
    %11 = vector.load %arg5[%c0_9, %c0_10] : memref<1x1024xf32, #tpu.memory_space<vmem>>, vector<1x1024xf32>
    %12 = vector.broadcast %11 : vector<1x1024xf32> to vector<16x1024xf32>
    %13 = arith.addf %10, %12 : vector<16x1024xf32>
    %cst_11 = arith.constant 0.000000e+00 : f32
    %14 = vector.broadcast %cst_11 : f32 to vector<16x1024xf32>
    %15 = arith.maximumf %13, %14 : vector<16x1024xf32>
    %16 = arith.truncf %15 : vector<16x1024xf32> to vector<16x1024xbf16>
    %17 = vector.extract_strided_slice %16 {offsets = [0, 0], sizes = [16, 512], strides = [1, 1]} : vector<16x1024xbf16> to vector<16x512xbf16>
    %18 = vector.extract_strided_slice %16 {offsets = [0, 512], sizes = [16, 512], strides = [1, 1]} : vector<16x1024xbf16> to vector<16x512xbf16>
    %c0_12 = arith.constant 0 : index
    %c0_13 = arith.constant 0 : index
    %19 = vector.load %arg6[%c0_12, %c0_13] : memref<512x768xbf16, #tpu.memory_space<vmem>>, vector<512x768xbf16>
    %cst_14 = arith.constant dense<0.000000e+00> : vector<16x768xf32>
    %20 = tpu.matmul %17, %19, %cst_14 {dimension_numbers = #tpu.dot_dimension_numbers<[1], [0], [0], [1], [0, 0, 1, 1], [], []>} : vector<16x512xbf16>, vector<512x768xbf16>, vector<16x768xf32> -> vector<16x768xf32>
    %c0_15 = arith.constant 0 : index
    %c0_16 = arith.constant 0 : index
    %21 = vector.load %arg7[%c0_15, %c0_16] : memref<1x768xf32, #tpu.memory_space<vmem>>, vector<1x768xf32>
    %22 = vector.broadcast %21 : vector<1x768xf32> to vector<16x768xf32>
    %23 = arith.addf %20, %22 : vector<16x768xf32>
    %c0_17 = arith.constant 0 : index
    %c0_18 = arith.constant 0 : index
    %24 = vector.load %arg8[%c0_17, %c0_18] : memref<512x128xbf16, #tpu.memory_space<vmem>>, vector<512x128xbf16>
    %cst_19 = arith.constant dense<0.000000e+00> : vector<16x128xf32>
    %25 = tpu.matmul %18, %24, %cst_19 {dimension_numbers = #tpu.dot_dimension_numbers<[1], [0], [0], [1], [0, 0, 1, 1], [], []>} : vector<16x512xbf16>, vector<512x128xbf16>, vector<16x128xf32> -> vector<16x128xf32>
    %c0_20 = arith.constant 0 : index
    %c0_21 = arith.constant 0 : index
    %26 = vector.load %arg9[%c0_20, %c0_21] : memref<1x128xf32, #tpu.memory_space<vmem>>, vector<1x128xf32>
    %27 = vector.broadcast %26 : vector<1x128xf32> to vector<16x128xf32>
    %28 = arith.addf %25, %27 : vector<16x128xf32>
    %29 = vector.extract_strided_slice %23 {offsets = [0, 0], sizes = [16, 128], strides = [1, 1]} : vector<16x768xf32> to vector<16x128xf32>
    %30 = vector.extract_strided_slice %23 {offsets = [0, 128], sizes = [16, 128], strides = [1, 1]} : vector<16x768xf32> to vector<16x128xf32>
    %31 = arith.addf %29, %30 : vector<16x128xf32>
    %32 = vector.extract_strided_slice %23 {offsets = [0, 256], sizes = [16, 128], strides = [1, 1]} : vector<16x768xf32> to vector<16x128xf32>
    %33 = arith.addf %31, %32 : vector<16x128xf32>
    %34 = vector.extract_strided_slice %23 {offsets = [0, 384], sizes = [16, 128], strides = [1, 1]} : vector<16x768xf32> to vector<16x128xf32>
    %35 = arith.addf %33, %34 : vector<16x128xf32>
    %36 = vector.extract_strided_slice %23 {offsets = [0, 512], sizes = [16, 128], strides = [1, 1]} : vector<16x768xf32> to vector<16x128xf32>
    %37 = arith.addf %35, %36 : vector<16x128xf32>
    %38 = vector.extract_strided_slice %23 {offsets = [0, 640], sizes = [16, 128], strides = [1, 1]} : vector<16x768xf32> to vector<16x128xf32>
    %39 = arith.addf %37, %38 : vector<16x128xf32>
    %cst_22 = arith.constant 0.166666672 : f32
    %40 = vector.broadcast %cst_22 : f32 to vector<16x128xf32>
    %41 = arith.mulf %39, %40 : vector<16x128xf32>
    %42 = tpu.iota {dimensions = array<i32: 1>} : vector<1x128xi32>
    %c51_i32 = arith.constant 51 : i32
    %43 = vector.broadcast %c51_i32 : i32 to vector<1x128xi32>
    %44 = arith.cmpi slt, %42, %43 : vector<1x128xi32>
    %45 = vector.extract_strided_slice %23 {offsets = [0, 0], sizes = [16, 128], strides = [1, 1]} : vector<16x768xf32> to vector<16x128xf32>
    %46 = arith.subf %45, %41 : vector<16x128xf32>
    %47 = arith.addf %46, %28 : vector<16x128xf32>
    %cst_23 = arith.constant -1.000000e+30 : f32
    %48 = vector.shape_cast %44 : vector<1x128xi1> to vector<1x128xi1>
    %49 = vector.broadcast %48 : vector<1x128xi1> to vector<16x128xi1>
    %50 = vector.broadcast %cst_23 : f32 to vector<16x128xf32>
    %51 = arith.select %49, %47, %50 : vector<16x128xi1>, vector<16x128xf32>
    %cst_24 = arith.constant dense<0xFF800000> : vector<16xf32>
    %52 = vector.multi_reduction <maximumf>, %51, %cst_24 [1] : vector<16x128xf32> to vector<16xf32>
    %53 = vector.shape_cast %52 : vector<16xf32> to vector<16x1xf32>
    %54 = vector.broadcast %53 : vector<16x1xf32> to vector<16x128xf32>
    %55 = arith.subf %51, %54 : vector<16x128xf32>
    %56 = math.exp %55 : vector<16x128xf32>
    %cst_25 = arith.constant dense<0.000000e+00> : vector<16xf32>
    %57 = vector.multi_reduction <add>, %56, %cst_25 [1] : vector<16x128xf32> to vector<16xf32>
    %58 = vector.shape_cast %57 : vector<16xf32> to vector<16x1xf32>
    %59 = vector.broadcast %58 : vector<16x1xf32> to vector<16x128xf32>
    %60 = arith.divf %56, %59 : vector<16x128xf32>
    %c0_26 = arith.constant 0 : index
    %c0_27 = arith.constant 0 : index
    %61 = vector.load %arg10[%c0_26, %c0_27] : memref<16x768xf32, #tpu.memory_space<vmem>>, vector<16x128xf32>
    tpu.vector_store %arg10[%c0_26, %c0_27], %60 {strides = array<i32>} : memref<16x768xf32, #tpu.memory_space<vmem>>, vector<16x128xf32>,
    %62 = vector.extract_strided_slice %23 {offsets = [0, 128], sizes = [16, 128], strides = [1, 1]} : vector<16x768xf32> to vector<16x128xf32>
    %63 = arith.subf %62, %41 : vector<16x128xf32>
    %64 = arith.addf %63, %28 : vector<16x128xf32>
    %cst_28 = arith.constant -1.000000e+30 : f32
    %65 = vector.shape_cast %44 : vector<1x128xi1> to vector<1x128xi1>
    %66 = vector.broadcast %65 : vector<1x128xi1> to vector<16x128xi1>
    %67 = vector.broadcast %cst_28 : f32 to vector<16x128xf32>
    %68 = arith.select %66, %64, %67 : vector<16x128xi1>, vector<16x128xf32>
    %cst_29 = arith.constant dense<0xFF800000> : vector<16xf32>
    %69 = vector.multi_reduction <maximumf>, %68, %cst_29 [1] : vector<16x128xf32> to vector<16xf32>
    %70 = vector.shape_cast %69 : vector<16xf32> to vector<16x1xf32>
    %71 = vector.broadcast %70 : vector<16x1xf32> to vector<16x128xf32>
    %72 = arith.subf %68, %71 : vector<16x128xf32>
    %73 = math.exp %72 : vector<16x128xf32>
    %cst_30 = arith.constant dense<0.000000e+00> : vector<16xf32>
    %74 = vector.multi_reduction <add>, %73, %cst_30 [1] : vector<16x128xf32> to vector<16xf32>
    %75 = vector.shape_cast %74 : vector<16xf32> to vector<16x1xf32>
    %76 = vector.broadcast %75 : vector<16x1xf32> to vector<16x128xf32>
    %77 = arith.divf %73, %76 : vector<16x128xf32>
    %c0_31 = arith.constant 0 : index
    %c128 = arith.constant 128 : index
    %78 = vector.load %arg10[%c0_31, %c128] : memref<16x768xf32, #tpu.memory_space<vmem>>, vector<16x128xf32>
    tpu.vector_store %arg10[%c0_31, %c128], %77 {strides = array<i32>} : memref<16x768xf32, #tpu.memory_space<vmem>>, vector<16x128xf32>,
    %79 = vector.extract_strided_slice %23 {offsets = [0, 256], sizes = [16, 128], strides = [1, 1]} : vector<16x768xf32> to vector<16x128xf32>
    %80 = arith.subf %79, %41 : vector<16x128xf32>
    %81 = arith.addf %80, %28 : vector<16x128xf32>
    %cst_32 = arith.constant -1.000000e+30 : f32
    %82 = vector.shape_cast %44 : vector<1x128xi1> to vector<1x128xi1>
    %83 = vector.broadcast %82 : vector<1x128xi1> to vector<16x128xi1>
    %84 = vector.broadcast %cst_32 : f32 to vector<16x128xf32>
    %85 = arith.select %83, %81, %84 : vector<16x128xi1>, vector<16x128xf32>
    %cst_33 = arith.constant dense<0xFF800000> : vector<16xf32>
    %86 = vector.multi_reduction <maximumf>, %85, %cst_33 [1] : vector<16x128xf32> to vector<16xf32>
    %87 = vector.shape_cast %86 : vector<16xf32> to vector<16x1xf32>
    %88 = vector.broadcast %87 : vector<16x1xf32> to vector<16x128xf32>
    %89 = arith.subf %85, %88 : vector<16x128xf32>
    %90 = math.exp %89 : vector<16x128xf32>
    %cst_34 = arith.constant dense<0.000000e+00> : vector<16xf32>
    %91 = vector.multi_reduction <add>, %90, %cst_34 [1] : vector<16x128xf32> to vector<16xf32>
    %92 = vector.shape_cast %91 : vector<16xf32> to vector<16x1xf32>
    %93 = vector.broadcast %92 : vector<16x1xf32> to vector<16x128xf32>
    %94 = arith.divf %90, %93 : vector<16x128xf32>
    %c0_35 = arith.constant 0 : index
    %c256 = arith.constant 256 : index
    %95 = vector.load %arg10[%c0_35, %c256] : memref<16x768xf32, #tpu.memory_space<vmem>>, vector<16x128xf32>
    tpu.vector_store %arg10[%c0_35, %c256], %94 {strides = array<i32>} : memref<16x768xf32, #tpu.memory_space<vmem>>, vector<16x128xf32>,
    %96 = vector.extract_strided_slice %23 {offsets = [0, 384], sizes = [16, 128], strides = [1, 1]} : vector<16x768xf32> to vector<16x128xf32>
    %97 = arith.subf %96, %41 : vector<16x128xf32>
    %98 = arith.addf %97, %28 : vector<16x128xf32>
    %cst_36 = arith.constant -1.000000e+30 : f32
    %99 = vector.shape_cast %44 : vector<1x128xi1> to vector<1x128xi1>
    %100 = vector.broadcast %99 : vector<1x128xi1> to vector<16x128xi1>
    %101 = vector.broadcast %cst_36 : f32 to vector<16x128xf32>
    %102 = arith.select %100, %98, %101 : vector<16x128xi1>, vector<16x128xf32>
    %cst_37 = arith.constant dense<0xFF800000> : vector<16xf32>
    %103 = vector.multi_reduction <maximumf>, %102, %cst_37 [1] : vector<16x128xf32> to vector<16xf32>
    %104 = vector.shape_cast %103 : vector<16xf32> to vector<16x1xf32>
    %105 = vector.broadcast %104 : vector<16x1xf32> to vector<16x128xf32>
    %106 = arith.subf %102, %105 : vector<16x128xf32>
    %107 = math.exp %106 : vector<16x128xf32>
    %cst_38 = arith.constant dense<0.000000e+00> : vector<16xf32>
    %108 = vector.multi_reduction <add>, %107, %cst_38 [1] : vector<16x128xf32> to vector<16xf32>
    %109 = vector.shape_cast %108 : vector<16xf32> to vector<16x1xf32>
    %110 = vector.broadcast %109 : vector<16x1xf32> to vector<16x128xf32>
    %111 = arith.divf %107, %110 : vector<16x128xf32>
    %c0_39 = arith.constant 0 : index
    %c384 = arith.constant 384 : index
    %112 = vector.load %arg10[%c0_39, %c384] : memref<16x768xf32, #tpu.memory_space<vmem>>, vector<16x128xf32>
    tpu.vector_store %arg10[%c0_39, %c384], %111 {strides = array<i32>} : memref<16x768xf32, #tpu.memory_space<vmem>>, vector<16x128xf32>,
    %113 = vector.extract_strided_slice %23 {offsets = [0, 512], sizes = [16, 128], strides = [1, 1]} : vector<16x768xf32> to vector<16x128xf32>
    %114 = arith.subf %113, %41 : vector<16x128xf32>
    %115 = arith.addf %114, %28 : vector<16x128xf32>
    %cst_40 = arith.constant -1.000000e+30 : f32
    %116 = vector.shape_cast %44 : vector<1x128xi1> to vector<1x128xi1>
    %117 = vector.broadcast %116 : vector<1x128xi1> to vector<16x128xi1>
    %118 = vector.broadcast %cst_40 : f32 to vector<16x128xf32>
    %119 = arith.select %117, %115, %118 : vector<16x128xi1>, vector<16x128xf32>
    %cst_41 = arith.constant dense<0xFF800000> : vector<16xf32>
    %120 = vector.multi_reduction <maximumf>, %119, %cst_41 [1] : vector<16x128xf32> to vector<16xf32>
    %121 = vector.shape_cast %120 : vector<16xf32> to vector<16x1xf32>
    %122 = vector.broadcast %121 : vector<16x1xf32> to vector<16x128xf32>
    %123 = arith.subf %119, %122 : vector<16x128xf32>
    %124 = math.exp %123 : vector<16x128xf32>
    %cst_42 = arith.constant dense<0.000000e+00> : vector<16xf32>
    %125 = vector.multi_reduction <add>, %124, %cst_42 [1] : vector<16x128xf32> to vector<16xf32>
    %126 = vector.shape_cast %125 : vector<16xf32> to vector<16x1xf32>
    %127 = vector.broadcast %126 : vector<16x1xf32> to vector<16x128xf32>
    %128 = arith.divf %124, %127 : vector<16x128xf32>
    %c0_43 = arith.constant 0 : index
    %c512 = arith.constant 512 : index
    %129 = vector.load %arg10[%c0_43, %c512] : memref<16x768xf32, #tpu.memory_space<vmem>>, vector<16x128xf32>
    tpu.vector_store %arg10[%c0_43, %c512], %128 {strides = array<i32>} : memref<16x768xf32, #tpu.memory_space<vmem>>, vector<16x128xf32>,
    %130 = vector.extract_strided_slice %23 {offsets = [0, 640], sizes = [16, 128], strides = [1, 1]} : vector<16x768xf32> to vector<16x128xf32>
    %131 = arith.subf %130, %41 : vector<16x128xf32>
    %132 = arith.addf %131, %28 : vector<16x128xf32>
    %cst_44 = arith.constant -1.000000e+30 : f32
    %133 = vector.shape_cast %44 : vector<1x128xi1> to vector<1x128xi1>
    %134 = vector.broadcast %133 : vector<1x128xi1> to vector<16x128xi1>
    %135 = vector.broadcast %cst_44 : f32 to vector<16x128xf32>
    %136 = arith.select %134, %132, %135 : vector<16x128xi1>, vector<16x128xf32>
    %cst_45 = arith.constant dense<0xFF800000> : vector<16xf32>
    %137 = vector.multi_reduction <maximumf>, %136, %cst_45 [1] : vector<16x128xf32> to vector<16xf32>
    %138 = vector.shape_cast %137 : vector<16xf32> to vector<16x1xf32>
    %139 = vector.broadcast %138 : vector<16x1xf32> to vector<16x128xf32>
    %140 = arith.subf %136, %139 : vector<16x128xf32>
    %141 = math.exp %140 : vector<16x128xf32>
    %cst_46 = arith.constant dense<0.000000e+00> : vector<16xf32>
    %142 = vector.multi_reduction <add>, %141, %cst_46 [1] : vector<16x128xf32> to vector<16xf32>
    %143 = vector.shape_cast %142 : vector<16xf32> to vector<16x1xf32>
    %144 = vector.broadcast %143 : vector<16x1xf32> to vector<16x128xf32>
    %145 = arith.divf %141, %144 : vector<16x128xf32>
    %c0_47 = arith.constant 0 : index
    %c640 = arith.constant 640 : index
    %146 = vector.load %arg10[%c0_47, %c640] : memref<16x768xf32, #tpu.memory_space<vmem>>, vector<16x128xf32>
    tpu.vector_store %arg10[%c0_47, %c640], %145 {strides = array<i32>} : memref<16x768xf32, #tpu.memory_space<vmem>>, vector<16x128xf32>,
    return
  }
  func.func @transform_0(%arg0: i32) -> (i32, i32) {
    %c0_i32 = arith.constant 0 : i32
    %c0_i32_0 = arith.constant 0 : i32
    return %arg0, %c0_i32 : i32, i32
  }
  func.func @transform_1(%arg0: i32) -> (i32, i32) {
    %c0_i32 = arith.constant 0 : i32
    %c0_i32_0 = arith.constant 0 : i32
    %c0_i32_1 = arith.constant 0 : i32
    return %c0_i32, %c0_i32_0 : i32, i32
  }
  func.func @transform_2(%arg0: i32) -> (i32, i32) {
    %c0_i32 = arith.constant 0 : i32
    %c0_i32_0 = arith.constant 0 : i32
    %c0_i32_1 = arith.constant 0 : i32
    return %c0_i32, %c0_i32_0 : i32, i32
  }
  func.func @transform_3(%arg0: i32) -> (i32, i32) {
    %c0_i32 = arith.constant 0 : i32
    %c0_i32_0 = arith.constant 0 : i32
    %c0_i32_1 = arith.constant 0 : i32
    return %c0_i32, %c0_i32_0 : i32, i32
  }
  func.func @transform_4(%arg0: i32) -> (i32, i32) {
    %c0_i32 = arith.constant 0 : i32
    %c0_i32_0 = arith.constant 0 : i32
    %c0_i32_1 = arith.constant 0 : i32
    return %c0_i32, %c0_i32_0 : i32, i32
  }
  func.func @transform_5(%arg0: i32) -> (i32, i32) {
    %c0_i32 = arith.constant 0 : i32
    %c0_i32_0 = arith.constant 0 : i32
    %c0_i32_1 = arith.constant 0 : i32
    return %c0_i32, %c0_i32_0 : i32, i32
  }
  func.func @transform_6(%arg0: i32) -> (i32, i32) {
    %c0_i32 = arith.constant 0 : i32
    %c0_i32_0 = arith.constant 0 : i32
    %c0_i32_1 = arith.constant 0 : i32
    return %c0_i32, %c0_i32_0 : i32, i32
  }
  func.func @transform_7(%arg0: i32) -> (i32, i32) {
    %c0_i32 = arith.constant 0 : i32
    %c0_i32_0 = arith.constant 0 : i32
    %c0_i32_1 = arith.constant 0 : i32
    return %c0_i32, %c0_i32_0 : i32, i32
  }
  func.func @transform_8(%arg0: i32) -> (i32, i32) {
    %c0_i32 = arith.constant 0 : i32
    %c0_i32_0 = arith.constant 0 : i32
    %c0_i32_1 = arith.constant 0 : i32
    return %c0_i32, %c0_i32_0 : i32, i32
  }
  func.func @transform_9(%arg0: i32) -> (i32, i32) {
    %c0_i32 = arith.constant 0 : i32
    %c0_i32_0 = arith.constant 0 : i32
    return %arg0, %c0_i32 : i32, i32
  }
}

</mosaic_0001>

<bundles_post_ra>
// kernel: rainbow_forward.3
= control target key start
LH: loop header
LB: loop body
LE: loop exit
PB: predicated region body
PF: predicated region fallthrough
CT: control target
= control target key end

     0   :  { %vm5307_vm0 = vcmask 257024   ;;  %vm4794_vm1 = vcmask 261120   ;;  %vm18_vm2 = vcmask 254976   ;;  %vm4965_vm3 = vcmask 253952   ;;  %s11822_s1 = inlined_call_operand.vmem [shape: bf16[1024,32], index: 1, kind: input, shape index: {}]   ;;  %s11823_s2 = inlined_call_operand.vmem [shape: f32[1,32], index: 2, kind: input, shape index: {}]   ;;  %s11824_s0 = inlined_call_operand.vmem [shape: bf16[656,1024], index: 0, kind: input, shape index: {}]   ;;  %s11825_s3 = inlined_call_operand.vmem [shape: bf16[656,32], index: 3, kind: output, shape index: {}]  }
   0x1   :  { %v7813_v0 = vld [vmem:[%s11822_s1 + $0x38] sm:$0xff]  ;;  %v7812_v4 = vld [vmem:[%s11822_s1 + $0x30] sm:$0xff]  ;;  %v7811_v8 = vld [vmem:[%s11822_s1 + $0x28] sm:$0xff] }
   0x2   :  { %v7821_v1 = vld [vmem:[%s11822_s1 + $0x78] sm:$0xff]  ;;  %2504 = vmatpush.bf16.msra.mxu0 %v7813_v0  ;;  %v7820_v5 = vld [vmem:[%s11822_s1 + $0x70] sm:$0xff]  ;;  %v7819_v9 = vld [vmem:[%s11822_s1 + $0x68] sm:$0xff] }
   0x3   :  { %v7829_v2 = vld [vmem:[%s11822_s1 + $0xb8] sm:$0xff]  ;;  %2718 = vmatpush.bf16.msra.mxu1 %v7821_v1  ;;  %v7828_v6 = vld [vmem:[%s11822_s1 + $0xb0] sm:$0xff]  ;;  %v7827_v10 = vld [vmem:[%s11822_s1 + $0xa8] sm:$0xff] }
   0x4   :  { %v7837_v3 = vld [vmem:[%s11822_s1 + $0xf8] sm:$0xff]  ;;  %2932 = vmatpush.bf16.msra.mxu2 %v7829_v2  ;;  %v7836_v7 = vld [vmem:[%s11822_s1 + $0xf0] sm:$0xff]  ;;  %v7835_v11 = vld [vmem:[%s11822_s1 + $0xe8] sm:$0xff] }
   0x5   :  { %3146 = vmatpush.bf16.msra.mxu3 %v7837_v3  ;;  %v7810_v12 = vld [vmem:[%s11822_s1 + $0x20] sm:$0xff]  ;;  %v7809_v16 = vld [vmem:[%s11822_s1 + $0x18] sm:$0xff]  ;;  %v7808_v20 = vld [vmem:[%s11822_s1 + $0x10] sm:$0xff] }
   0x6   :  { %2505 = vmatpush.bf16.msra.mxu0 %v7812_v4  ;;  %v7818_v13 = vld [vmem:[%s11822_s1 + $0x60] sm:$0xff]  ;;  %v7817_v17 = vld [vmem:[%s11822_s1 + $0x58] sm:$0xff]  ;;  %v7816_v21 = vld [vmem:[%s11822_s1 + $0x50] sm:$0xff] }
   0x7   :  { %2719 = vmatpush.bf16.msra.mxu1 %v7820_v5  ;;  %v7826_v14 = vld [vmem:[%s11822_s1 + $0xa0] sm:$0xff]  ;;  %v7825_v18 = vld [vmem:[%s11822_s1 + $0x98] sm:$0xff]  ;;  %v7824_v22 = vld [vmem:[%s11822_s1 + $0x90] sm:$0xff] }
   0x8   :  { %2933 = vmatpush.bf16.msra.mxu2 %v7828_v6  ;;  %v7834_v15 = vld [vmem:[%s11822_s1 + $0xe0] sm:$0xff]  ;;  %v7833_v19 = vld [vmem:[%s11822_s1 + $0xd8] sm:$0xff]  ;;  %v7832_v23 = vld [vmem:[%s11822_s1 + $0xd0] sm:$0xff] }
   0x9   :  { %3147 = vmatpush.bf16.msra.mxu3 %v7836_v7  ;;  %v7807_v24 = vld [vmem:[%s11822_s1 + $0x8] sm:$0xff]  ;;  %v7806_v28 = vld [vmem:[%s11822_s1] sm:$0xff]  ;;  %v7861_v40 = vld [vmem:[%s11822_s1 + $0x1b8] sm:$0xff] }
   0xa   :  { %2506 = vmatpush.bf16.msra.mxu0 %v7811_v8  ;;  %v7815_v25 = vld [vmem:[%s11822_s1 + $0x48] sm:$0xff]  ;;  %v7814_v29 = vld [vmem:[%s11822_s1 + $0x40] sm:$0xff]  ;;  %v7845_v41 = vld [vmem:[%s11822_s1 + $0x138] sm:$0xff] }
   0xb   :  { %2720 = vmatpush.bf16.msra.mxu1 %v7819_v9  ;;  %v7823_v26 = vld [vmem:[%s11822_s1 + $0x88] sm:$0xff]  ;;  %v7822_v30 = vld [vmem:[%s11822_s1 + $0x80] sm:$0xff]  ;;  %v7869_v46 = vld [vmem:[%s11822_s1 + $0x1f8] sm:$0xff] }
   0xc   :  { %2934 = vmatpush.bf16.msra.mxu2 %v7827_v10  ;;  %v7831_v27 = vld [vmem:[%s11822_s1 + $0xc8] sm:$0xff]  ;;  %v7830_v31 = vld [vmem:[%s11822_s1 + $0xc0] sm:$0xff]  ;;  %v7853_v47 = vld [vmem:[%s11822_s1 + $0x178] sm:$0xff] }
   0xd   :  { %3148 = vmatpush.bf16.msra.mxu3 %v7835_v11  ;;  %v5912_v32 = vld [vmem:[%s11824_s0] sm:$0xf]  ;;  %v7478_v34 = vld [vmem:[%s11824_s0 + $0x4] sm:$0xf]  ;;  %v5920_v36 = vld [vmem:[%s11824_s0 + $0x8] sm:$0xf] }
   0xe   :  { %2507 = vmatpush.bf16.msra.mxu0 %v7810_v12  ;;  %v7482_v33 = vld [vmem:[%s11824_s0 + $0x1c] sm:$0xf0]  ;;  %v5914_v35 = vld [vmem:[%s11824_s0 + $0x20] sm:$0xf0]  ;;  %v7483_v37 = vld [vmem:[%s11824_s0 + $0x24] sm:$0xf0] }
   0xf   :  { %2721 = vmatpush.bf16.msra.mxu1 %v7818_v13  ;;  %v7479_v38 = vld [vmem:[%s11824_s0 + $0xc] sm:$0xf]  ;;  %v5913_v42 = vor.u32 %v7482_v33, %v5912_v32  ;;  %v5917_v43 = vor.u32 %v7478_v34, %v5914_v35  ;;  %v5921_v44 = vor.u32 %v7483_v37, %v5920_v36  ;;  %v5944_v48 = vld [vmem:[%s11824_s0 + $0x40] sm:$0xf]  ;;  %v7486_v50 = vld [vmem:[%s11824_s0 + $0x44] sm:$0xf] }
  0x10   :  { %2935 = vmatpush.bf16.msra.mxu2 %v7826_v14  ;;  %v5922_v39 = vld [vmem:[%s11824_s0 + $0x28] sm:$0xf0]  ;;  %v7490_v49 = vld [vmem:[%s11824_s0 + $0x5c] sm:$0xf0]  ;;  %v5946_v51 = vld [vmem:[%s11824_s0 + $0x60] sm:$0xf0] }
  0x11   :  { %3149 = vmatpush.bf16.msra.mxu3 %v7834_v15  ;;  %v5925_v45 = vor.u32 %v7479_v38, %v5922_v39  ;;  %v5952_v52 = vld [vmem:[%s11824_s0 + $0x48] sm:$0xf]  ;;  %v7487_v54 = vld [vmem:[%s11824_s0 + $0x4c] sm:$0xf]  ;;  %v5945_v56 = vor.u32 %v7490_v49, %v5944_v48  ;;  %v5949_v57 = vor.u32 %v7486_v50, %v5946_v51  ;;  %v5976_v60 = vld [vmem:[%s11824_s0 + $0x80] sm:$0xf] }
  0x12   :  { %2508 = vmatpush.bf16.msra.mxu0 %v7809_v16  ;;  %v7491_v53 = vld [vmem:[%s11824_s0 + $0x64] sm:$0xf0]  ;;  %v5954_v55 = vld [vmem:[%s11824_s0 + $0x68] sm:$0xf0]  ;;  %v7498_v61 = vld [vmem:[%s11824_s0 + $0x9c] sm:$0xf0] }
  0x13   :  { %2722 = vmatpush.bf16.msra.mxu1 %v7817_v17  ;;  %v5953_v58 = vor.u32 %v7491_v53, %v5952_v52  ;;  %v5957_v59 = vor.u32 %v7487_v54, %v5954_v55  ;;  %v7494_v62 = vld [vmem:[%s11824_s0 + $0x84] sm:$0xf]  ;;  %v5984_v0 = vld [vmem:[%s11824_s0 + $0x88] sm:$0xf]  ;;  %v7495_v2 = vld [vmem:[%s11824_s0 + $0x8c] sm:$0xf]  ;;  %v5977_v4 = vor.u32 %v7498_v61, %v5976_v60 }
  0x14   :  { %2936 = vmatpush.bf16.msra.mxu2 %v7825_v18  ;;  %v5978_v63 = vld [vmem:[%s11824_s0 + $0xa0] sm:$0xf0]  ;;  %v7499_v1 = vld [vmem:[%s11824_s0 + $0xa4] sm:$0xf0]  ;;  %v5986_v3 = vld [vmem:[%s11824_s0 + $0xa8] sm:$0xf0] }
  0x15   :  { %3150 = vmatpush.bf16.msra.mxu3 %v7833_v19  ;;  %v5981_v5 = vor.u32 %v7494_v62, %v5978_v63  ;;  %v5985_v6 = vor.u32 %v7499_v1, %v5984_v0  ;;  %v5989_v7 = vor.u32 %v7495_v2, %v5986_v3  ;;  %v6008_v8 = vld [vmem:[%s11824_s0 + $0xc0] sm:$0xf]  ;;  %v7502_v10 = vld [vmem:[%s11824_s0 + $0xc4] sm:$0xf]  ;;  %v6016_v12 = vld [vmem:[%s11824_s0 + $0xc8] sm:$0xf] }
  0x16   :  { %2509 = vmatpush.bf16.msra.mxu0 %v7808_v20  ;;  %v7506_v9 = vld [vmem:[%s11824_s0 + $0xdc] sm:$0xf0]  ;;  %v6010_v11 = vld [vmem:[%s11824_s0 + $0xe0] sm:$0xf0]  ;;  %v7507_v13 = vld [vmem:[%s11824_s0 + $0xe4] sm:$0xf0] }
  0x17   :  { %2723 = vmatpush.bf16.msra.mxu1 %v7816_v21  ;;  %v7503_v14 = vld [vmem:[%s11824_s0 + $0xcc] sm:$0xf]  ;;  %v6009_v16 = vor.u32 %v7506_v9, %v6008_v8  ;;  %v6013_v17 = vor.u32 %v7502_v10, %v6010_v11  ;;  %v6017_v18 = vor.u32 %v7507_v13, %v6016_v12  ;;  %v7860_v20 = vld [vmem:[%s11822_s1 + $0x1b0] sm:$0xff]  ;;  %v6072_v36 = vld [vmem:[%s11824_s0 + $0x140] sm:$0xf] }
  0x18   :  { %2937 = vmatpush.bf16.msra.mxu2 %v7824_v22  ;;  %v6018_v15 = vld [vmem:[%s11824_s0 + $0xe8] sm:$0xf0]  ;;  %v7844_v21 = vld [vmem:[%s11822_s1 + $0x130] sm:$0xff]  ;;  %v7522_v37 = vld [vmem:[%s11824_s0 + $0x15c] sm:$0xf0] }
  0x19   :  { %3151 = vmatpush.bf16.msra.mxu3 %v7832_v23  ;;  %v6021_v19 = vor.u32 %v7503_v14, %v6018_v15  ;;  %v7868_v22 = vld [vmem:[%s11822_s1 + $0x1f0] sm:$0xff]  ;;  %v7518_v38 = vld [vmem:[%s11824_s0 + $0x144] sm:$0xf]  ;;  %v6104_v48 = vld [vmem:[%s11824_s0 + $0x180] sm:$0xf] }
  0x1a   :  { %2510 = vmatpush.bf16.msra.mxu0 %v7807_v24  ;;  %v7852_v23 = vld [vmem:[%s11822_s1 + $0x170] sm:$0xff]  ;;  %v6040_v24 = vld [vmem:[%s11824_s0 + $0x100] sm:$0xf]  ;;  %v6074_v39 = vld [vmem:[%s11824_s0 + $0x160] sm:$0xf0] }
  0x1b   :  { %2724 = vmatpush.bf16.msra.mxu1 %v7815_v25  ;;  %v7514_v25 = vld [vmem:[%s11824_s0 + $0x11c] sm:$0xf0]  ;;  %v7526_v50 = vld [vmem:[%s11824_s0 + $0x184] sm:$0xf]  ;;  %v6112_v52 = vld [vmem:[%s11824_s0 + $0x188] sm:$0xf] }
  0x1c   :  { %2938 = vmatpush.bf16.msra.mxu2 %v7823_v26  ;;  %v7510_v26 = vld [vmem:[%s11824_s0 + $0x104] sm:$0xf]  ;;  %v6041_v32 = vor.u32 %v7514_v25, %v6040_v24  ;;  %v7530_v49 = vld [vmem:[%s11824_s0 + $0x19c] sm:$0xf0]  ;;  %v7531_v53 = vld [vmem:[%s11824_s0 + $0x1a4] sm:$0xf0] }
  0x1d   :  { %3152 = vmatpush.bf16.msra.mxu3 %v7831_v27  ;;  %v6042_v27 = vld [vmem:[%s11824_s0 + $0x120] sm:$0xf0]  ;;  %v7527_v54 = vld [vmem:[%s11824_s0 + $0x18c] sm:$0xf]  ;;  %v6136_v60 = vld [vmem:[%s11824_s0 + $0x1c0] sm:$0xf] }
  0x1e   :  { %2511 = vmatpush.bf16.msra.mxu0 %v7806_v28  ;;  %v6048_v28 = vld [vmem:[%s11824_s0 + $0x108] sm:$0xf]  ;;  %v6045_v33 = vor.u32 %v7510_v26, %v6042_v27  ;;  %v6106_v51 = vld [vmem:[%s11824_s0 + $0x1a0] sm:$0xf0]  ;;  %v6114_v55 = vld [vmem:[%s11824_s0 + $0x1a8] sm:$0xf0] }
  0x1f   :  { %2725 = vmatpush.bf16.msra.mxu1 %v7814_v29  ;;  %v7515_v29 = vld [vmem:[%s11824_s0 + $0x124] sm:$0xf0]  ;;  %v7538_v61 = vld [vmem:[%s11824_s0 + $0x1dc] sm:$0xf0]  ;;  %v7534_v62 = vld [vmem:[%s11824_s0 + $0x1c4] sm:$0xf] }
  0x20   :  { %2939 = vmatpush.bf16.msra.mxu2 %v7822_v30  ;;  %v7511_v30 = vld [vmem:[%s11824_s0 + $0x10c] sm:$0xf]  ;;  %v6049_v34 = vor.u32 %v7515_v29, %v6048_v28  ;;  %v6138_v63 = vld [vmem:[%s11824_s0 + $0x1e0] sm:$0xf0]  ;;  %v6144_v0 = vld [vmem:[%s11824_s0 + $0x1c8] sm:$0xf] }
  0x21   :  { %3153 = vmatpush.bf16.msra.mxu3 %v7830_v31  ;;  %2512 = vmatmul.bf16.vlgmr.msra.gmra.mxu0 %v5913_v42  ;;  %v6050_v31 = vld [vmem:[%s11824_s0 + $0x128] sm:$0xf0]  ;;  %v7539_v1 = vld [vmem:[%s11824_s0 + $0x1e4] sm:$0xf0]  ;;  %v8418_v8 = vld [vmem:[%s11823_s2] ss:$0 sm:$0xff] }
  0x22   :  { %3360 = vmatpush.bf16.msrb.mxu0 %v7845_v41  ;;  %2726 = vmatmul.bf16.vlgmr.msra.gmra.mxu1 %v5917_v43  ;;  %v6053_v35 = vor.u32 %v7511_v30, %v6050_v31  ;;  %v7523_v41 = vld [vmem:[%s11824_s0 + $0x164] sm:$0xf0]  ;;  %v7519_v42 = vld [vmem:[%s11824_s0 + $0x14c] sm:$0xf]  ;;  %v6168_v9 = vld [vmem:[%s11824_s0 + $0x200] sm:$0xf] }
  0x23   :  { %2940 = vmatmul.bf16.vlgmr.msra.gmra.mxu2 %v5921_v44  ;;  %3574 = vmatpush.bf16.msrb.mxu1 %v7853_v47  ;;  %v6082_v43 = vld [vmem:[%s11824_s0 + $0x168] sm:$0xf0]  ;;  %v6073_v44 = vor.u32 %v7522_v37, %v6072_v36  ;;  %v7546_v10 = vld [vmem:[%s11824_s0 + $0x21c] sm:$0xf0]  ;;  %v7542_v11 = vld [vmem:[%s11824_s0 + $0x204] sm:$0xf] }
  0x24   :  { %3788 = vmatpush.bf16.msrb.mxu2 %v7861_v40  ;;  %3154 = vmatmul.bf16.vlgmr.msra.gmra.mxu3 %v5925_v45  ;;  %v6080_v40 = vld [vmem:[%s11824_s0 + $0x148] sm:$0xf]  ;;  %v6077_v45 = vor.u32 %v7518_v38, %v6074_v39  ;;  %v6085_v47 = vor.u32 %v7519_v42, %v6082_v43  ;;  %v7535_v2 = vld [vmem:[%s11824_s0 + $0x1cc] sm:$0xf]  ;;  %v6170_v12 = vld [vmem:[%s11824_s0 + $0x220] sm:$0xf0] }
  0x25   :  { %4002 = vmatpush.bf16.msrb.mxu3 %v7869_v46  ;;  %v6081_v46 = vor.u32 %v7523_v41, %v6080_v40  ;;  %v6146_v3 = vld [vmem:[%s11824_s0 + $0x1e8] sm:$0xf0]  ;;  %v6176_v13 = vld [vmem:[%s11824_s0 + $0x208] sm:$0xf]  ;;  %v7550_v39 = vld [vmem:[%s11824_s0 + $0x244] sm:$0xf] }
  0x26   :  { %3361 = vmatpush.bf16.msrb.mxu0 %v7844_v21  ;;  %v7547_v14 = vld [vmem:[%s11824_s0 + $0x224] sm:$0xf0]  ;;  %v7543_v15 = vld [vmem:[%s11824_s0 + $0x20c] sm:$0xf]  ;;  %v6202_v40 = vld [vmem:[%s11824_s0 + $0x260] sm:$0xf0] }
  0x27   :  { %3575 = vmatpush.bf16.msrb.mxu1 %v7852_v23  ;;  %v6177_v21 = vor.u32 %v7547_v14, %v6176_v13  ;;  %v7843_v36 = vld [vmem:[%s11822_s1 + $0x128] sm:$0xff] }
  0x28   :  { %3789 = vmatpush.bf16.msrb.mxu2 %v7860_v20  ;;  %v7867_v37 = vld [vmem:[%s11822_s1 + $0x1e8] sm:$0xff] }
  0x29   :  { %4003 = vmatpush.bf16.msrb.mxu3 %v7868_v22  ;;  %v7851_v38 = vld [vmem:[%s11822_s1 + $0x168] sm:$0xff] }
  0x2a   :  { %v6208_v41 = vld [vmem:[%s11824_s0 + $0x248] sm:$0xf]  ;;  %v7551_v43 = vld [vmem:[%s11824_s0 + $0x24c] sm:$0xf]  ;;  %3362 = vmatpush.bf16.msrb.mxu0 %v7843_v36 }
  0x2b   :  { %v7555_v42 = vld [vmem:[%s11824_s0 + $0x264] sm:$0xf0]  ;;  %3576 = vmatpush.bf16.msrb.mxu1 %v7851_v38  ;;  %v6274_v38 = vld [vmem:[%s11824_s0 + $0x2e8] sm:$0xf0] }
  0x2c   :  { %v7571_v36 = vld [vmem:[%s11824_s0 + $0x2e4] sm:$0xf0] }
  0x2d   :  { %4004 = vmatpush.bf16.msrb.mxu3 %v7867_v37  ;;  %v7567_v37 = vld [vmem:[%s11824_s0 + $0x2cc] sm:$0xf] }
  0x31   :  { %2517 = vmatmul.bf16.gmra.mxu0 %v5945_v56  ;;  %v6105_v56 = vor.u32 %v7530_v49, %v6104_v48  ;;  %v6205_v48 = vor.u32 %v7550_v39, %v6202_v40 }
  0x32   :  { %2731 = vmatmul.bf16.gmra.mxu1 %v5949_v57  ;;  %v6109_v57 = vor.u32 %v7526_v50, %v6106_v51 }
  0x33   :  { %2945 = vmatmul.bf16.gmra.mxu2 %v5953_v58  ;;  %v6113_v58 = vor.u32 %v7531_v53, %v6112_v52  ;;  %v6209_v52 = vor.u32 %v7555_v42, %v6208_v41 }
  0x34   :  { %3159 = vmatmul.bf16.gmra.mxu3 %v5957_v59  ;;  %v6117_v59 = vor.u32 %v7527_v54, %v6114_v55 }
  0x41   :  { %2522 = vmatmul.bf16.gmra.mxu0 %v5977_v4  ;;  %v6137_v4 = vor.u32 %v7538_v61, %v6136_v60 }
  0x42   :  { %2736 = vmatmul.bf16.gmra.mxu1 %v5981_v5  ;;  %v6141_v5 = vor.u32 %v7534_v62, %v6138_v63 }
  0x43   :  { %2950 = vmatmul.bf16.gmra.mxu2 %v5985_v6  ;;  %v6145_v6 = vor.u32 %v7539_v1, %v6144_v0  ;;  %v6232_v1 = vld [vmem:[%s11824_s0 + $0x280] sm:$0xf] }
  0x44   :  { %3164 = vmatmul.bf16.gmra.mxu3 %v5989_v7  ;;  %v6149_v7 = vor.u32 %v7535_v2, %v6146_v3  ;;  %v7562_v2 = vld [vmem:[%s11824_s0 + $0x29c] sm:$0xf0]  ;;  %v7558_v3 = vld [vmem:[%s11824_s0 + $0x284] sm:$0xf] }
  0x51   :  { %2527 = vmatmul.bf16.gmra.mxu0 %v6009_v16  ;;  %v6178_v16 = vld [vmem:[%s11824_s0 + $0x228] sm:$0xf0] }
  0x52   :  { %2741 = vmatmul.bf16.gmra.mxu1 %v6013_v17  ;;  %v6169_v17 = vor.u32 %v7546_v10, %v6168_v9  ;;  %v6181_v22 = vor.u32 %v7543_v15, %v6178_v16  ;;  %v6242_v9 = vld [vmem:[%s11824_s0 + $0x2a8] sm:$0xf0] }
  0x53   :  { %2955 = vmatmul.bf16.gmra.mxu2 %v6017_v18  ;;  %v6173_v18 = vor.u32 %v7542_v11, %v6170_v12  ;;  %v6233_v12 = vor.u32 %v7562_v2, %v6232_v1  ;;  %v6304_v1 = vld [vmem:[%s11824_s0 + $0x308] sm:$0xf] }
  0x54   :  { %3169 = vmatmul.bf16.gmra.mxu3 %v6021_v19  ;;  %v7579_v2 = vld [vmem:[%s11824_s0 + $0x324] sm:$0xf0] }
  0x61   :  { %2532 = vmatmul.bf16.gmra.mxu0 %v6041_v32  ;;  %v6200_v32 = vld [vmem:[%s11824_s0 + $0x240] sm:$0xf] }
  0x62   :  { %2746 = vmatmul.bf16.gmra.mxu1 %v6045_v33  ;;  %v7554_v33 = vld [vmem:[%s11824_s0 + $0x25c] sm:$0xf0] }
  0x63   :  { %2960 = vmatmul.bf16.gmra.mxu2 %v6049_v34  ;;  %v7859_v34 = vld [vmem:[%s11822_s1 + $0x1a8] sm:$0xff] }
  0x64   :  { %3174 = vmatmul.bf16.gmra.mxu3 %v6053_v35  ;;  %3790 = vmatpush.bf16.msrb.mxu2 %v7859_v34  ;;  %v6266_v34 = vld [vmem:[%s11824_s0 + $0x2e0] sm:$0xf0] }
  0x71   :  { %2537 = vmatmul.bf16.gmra.mxu0 %v6073_v44  ;;  %v6210_v44 = vld [vmem:[%s11824_s0 + $0x268] sm:$0xf0] }
  0x72   :  { %2751 = vmatmul.bf16.gmra.mxu1 %v6077_v45  ;;  %v6213_v53 = vor.u32 %v7551_v43, %v6210_v44 }
  0x73   :  { %2965 = vmatmul.bf16.gmra.mxu2 %v6081_v46 }
  0x74   :  { %3179 = vmatmul.bf16.gmra.mxu3 %v6085_v47  ;;  %v6201_v47 = vor.u32 %v7554_v33, %v6200_v32  ;;  %v7570_v32 = vld [vmem:[%s11824_s0 + $0x2dc] sm:$0xf0]  ;;  %v7566_v33 = vld [vmem:[%s11824_s0 + $0x2c4] sm:$0xf] }
  0x75   :  { %v6269_v42 = vor.u32 %v7566_v33, %v6266_v34  ;;  %v6336_v33 = vld [vmem:[%s11824_s0 + $0x348] sm:$0xf] }
  0x76   :  { %v7587_v34 = vld [vmem:[%s11824_s0 + $0x364] sm:$0xf0] }
  0x81   :  { %2542 = vmatmul.bf16.gmra.mxu0 %v6105_v56 }
  0x82   :  { %2756 = vmatmul.bf16.gmra.mxu1 %v6109_v57 }
  0x83   :  { %2970 = vmatmul.bf16.gmra.mxu2 %v6113_v58 }
  0x84   :  { %3184 = vmatmul.bf16.gmra.mxu3 %v6117_v59 }
  0x91   :  { %2547 = vmatmul.bf16.gmra.mxu0 %v6137_v4  ;;  %v6234_v4 = vld [vmem:[%s11824_s0 + $0x2a0] sm:$0xf0] }
  0x92   :  { %2761 = vmatmul.bf16.gmra.mxu1 %v6141_v5  ;;  %v6240_v5 = vld [vmem:[%s11824_s0 + $0x288] sm:$0xf]  ;;  %v6237_v13 = vor.u32 %v7558_v3, %v6234_v4  ;;  %v7575_v3 = vld [vmem:[%s11824_s0 + $0x30c] sm:$0xf] }
  0x93   :  { %2975 = vmatmul.bf16.gmra.mxu2 %v6145_v6  ;;  %v7563_v6 = vld [vmem:[%s11824_s0 + $0x2a4] sm:$0xf0]  ;;  %v6306_v4 = vld [vmem:[%s11824_s0 + $0x328] sm:$0xf0] }
  0x94   :  { %3189 = vmatmul.bf16.gmra.mxu3 %v6149_v7  ;;  %v7559_v7 = vld [vmem:[%s11824_s0 + $0x28c] sm:$0xf] }
  0x9e   :  { %v2513_v19 = vpop.f32.mrf.mxu0 }
  0x9f   :  { %v2727_v20 = vpop.f32.mrf.mxu1  ;;  %v2514_v23 = vadd.f32 %v8418_v8, %v2513_v19 }
  0xa1   :  { %v2728_v24 = vadd.f32 %v2727_v20, %v2514_v23  ;;  %2552 = vmatmul.bf16.gmra.mxu0 %v6169_v17  ;;  %v6241_v17 = vor.u32 %v7563_v6, %v6240_v5 }
  0xa2   :  { %2766 = vmatmul.bf16.gmra.mxu1 %v6173_v18  ;;  %v6245_v18 = vor.u32 %v7559_v7, %v6242_v9 }
  0xa3   :  { %2980 = vmatmul.bf16.gmra.mxu2 %v6177_v21 }
  0xa4   :  { %3194 = vmatmul.bf16.gmra.mxu3 %v6181_v22 }
  0xa6   :  { %v2941_v25 = vpop.f32.mrf.mxu2  ;;  %v2515_v28 = vpop.f32.mrf.mxu0 }
  0xa7   :  { %v3155_v26 = vpop.f32.mrf.mxu3  ;;  %v2942_v27 = vadd.f32 %v2941_v25, %v2728_v24  ;;  %v2729_v29 = vpop.f32.mrf.mxu1  ;;  %v2516_v30 = vadd.f32 %v8418_v8, %v2515_v28 }
  0xa9   :  { %v8446_v31 = vadd.f32 %v3155_v26, %v2942_v27  ;;  %v2730_v35 = vadd.f32 %v2729_v29, %v2516_v30  ;;  %v6264_v30 = vld [vmem:[%s11824_s0 + $0x2c0] sm:$0xf] }
  0xaa   :  { %v6265_v41 = vor.u32 %v7570_v32, %v6264_v30  ;;  %v7582_v30 = vld [vmem:[%s11824_s0 + $0x344] sm:$0xf] }
  0xab   :  { %v6330_v32 = vld [vmem:[%s11824_s0 + $0x360] sm:$0xf0] }
  0xae   :  { %v2943_v45 = vpop.f32.mrf.mxu2  ;;  %v2518_v50 = vpop.f32.mrf.mxu0 }
  0xaf   :  { %v3157_v46 = vpop.f32.mrf.mxu3  ;;  %v2944_v49 = vadd.f32 %v2943_v45, %v2730_v35  ;;  %v2732_v51 = vpop.f32.mrf.mxu1  ;;  %v2519_v54 = vadd.f32 %v8418_v8, %v2518_v50  ;;  %v6272_v35 = vld [vmem:[%s11824_s0 + $0x2c8] sm:$0xf] }
  0xb1   :  { %v8485_v55 = vadd.f32 %v3157_v46, %v2944_v49  ;;  %v2733_v56 = vadd.f32 %v2732_v51, %v2519_v54  ;;  %2557 = vmatmul.bf16.gmra.mxu0 %v6201_v47  ;;  %v6273_v46 = vor.u32 %v7571_v36, %v6272_v35  ;;  %v6277_v47 = vor.u32 %v7567_v37, %v6274_v38  ;;  %v7583_v35 = vld [vmem:[%s11824_s0 + $0x34c] sm:$0xf] }
  0xb2   :  { %2771 = vmatmul.bf16.gmra.mxu1 %v6205_v48  ;;  %v6338_v36 = vld [vmem:[%s11824_s0 + $0x368] sm:$0xf0] }
  0xb3   :  { %2985 = vmatmul.bf16.gmra.mxu2 %v6209_v52 }
  0xb4   :  { %3199 = vmatmul.bf16.gmra.mxu3 %v6213_v53 }
  0xb6   :  { %v2946_v57 = vpop.f32.mrf.mxu2  ;;  %v2520_v60 = vpop.f32.mrf.mxu0 }
  0xb7   :  { %v3160_v58 = vpop.f32.mrf.mxu3  ;;  %v2947_v59 = vadd.f32 %v2946_v57, %v2733_v56  ;;  %v2734_v61 = vpop.f32.mrf.mxu1  ;;  %v2521_v62 = vadd.f32 %v8418_v8, %v2520_v60  ;;  %v6296_v60 = vld [vmem:[%s11824_s0 + $0x300] sm:$0xf] }
  0xb9   :  { %v8488_v63 = vadd.f32 %v3160_v58, %v2947_v59  ;;  %v2735_v0 = vadd.f32 %v2734_v61, %v2521_v62  ;;  %v7578_v61 = vld [vmem:[%s11824_s0 + $0x31c] sm:$0xf0]  ;;  %v7574_v62 = vld [vmem:[%s11824_s0 + $0x304] sm:$0xf] }
  0xba   :  { %v6297_v7 = vor.u32 %v7578_v61, %v6296_v60  ;;  %v7594_v60 = vld [vmem:[%s11824_s0 + $0x39c] sm:$0xf0]  ;;  %v7590_v61 = vld [vmem:[%s11824_s0 + $0x384] sm:$0xf] }
  0xbe   :  { %v2948_v10 = vpop.f32.mrf.mxu2  ;;  %v2523_v15 = vpop.f32.mrf.mxu0 }
  0xbf   :  { %v3162_v11 = vpop.f32.mrf.mxu3  ;;  %v2949_v14 = vadd.f32 %v2948_v10, %v2735_v0  ;;  %v2737_v16 = vpop.f32.mrf.mxu1  ;;  %v2524_v19 = vadd.f32 %v8418_v8, %v2523_v15  ;;  %v6298_v0 = vld [vmem:[%s11824_s0 + $0x320] sm:$0xf0] }
  0xc0   :  { %v6301_v9 = vor.u32 %v7574_v62, %v6298_v0  ;;  %v7858_v0 = vld [vmem:[%s11822_s1 + $0x1a0] sm:$0xff] }
  0xc1   :  { %v8515_v20 = vadd.f32 %v3162_v11, %v2949_v14  ;;  %v2738_v21 = vadd.f32 %v2737_v16, %v2524_v19  ;;  %2562 = vmatmul.bf16.gmra.mxu0 %v6233_v12  ;;  %v6309_v14 = vor.u32 %v7575_v3, %v6306_v4  ;;  %v6362_v3 = vld [vmem:[%s11824_s0 + $0x3a0] sm:$0xf0]  ;;  %v6368_v4 = vld [vmem:[%s11824_s0 + $0x388] sm:$0xf]  ;;  %3791 = vmatpush.bf16.msrb.mxu2 %v7858_v0 }
  0xc2   :  { %2776 = vmatmul.bf16.gmra.mxu1 %v6237_v13  ;;  %v6305_v13 = vor.u32 %v7579_v2, %v6304_v1  ;;  %v7842_v1 = vld [vmem:[%s11822_s1 + $0x120] sm:$0xff] }
  0xc3   :  { %2990 = vmatmul.bf16.gmra.mxu2 %v6241_v17  ;;  %v7866_v2 = vld [vmem:[%s11822_s1 + $0x1e0] sm:$0xff]  ;;  %3363 = vmatpush.bf16.msrb.mxu0 %v7842_v1 }
  0xc4   :  { %3204 = vmatmul.bf16.gmra.mxu3 %v6245_v18 }
  0xc5   :  { %4005 = vmatpush.bf16.msrb.mxu3 %v7866_v2 }
  0xc6   :  { %v2951_v22 = vpop.f32.mrf.mxu2  ;;  %v2525_v25 = vpop.f32.mrf.mxu0 }
  0xc7   :  { %v3165_v23 = vpop.f32.mrf.mxu3  ;;  %v2952_v24 = vadd.f32 %v2951_v22, %v2738_v21  ;;  %v2739_v26 = vpop.f32.mrf.mxu1  ;;  %v2526_v27 = vadd.f32 %v8418_v8, %v2525_v25 }
  0xc9   :  { %v8518_v28 = vadd.f32 %v3165_v23, %v2952_v24  ;;  %v2740_v29 = vadd.f32 %v2739_v26, %v2526_v27  ;;  %v6328_v27 = vld [vmem:[%s11824_s0 + $0x340] sm:$0xf] }
  0xce   :  { %v2953_v39 = vpop.f32.mrf.mxu2  ;;  %v2528_v44 = vpop.f32.mrf.mxu0 }
  0xcf   :  { %v3167_v40 = vpop.f32.mrf.mxu3  ;;  %v2954_v43 = vadd.f32 %v2953_v39, %v2740_v29  ;;  %v2742_v45 = vpop.f32.mrf.mxu1  ;;  %v2529_v48 = vadd.f32 %v8418_v8, %v2528_v44  ;;  %v7586_v29 = vld [vmem:[%s11824_s0 + $0x35c] sm:$0xf0]  ;;  %v6337_v44 = vor.u32 %v7587_v34, %v6336_v33 }
  0xd0   :  { %v6329_v39 = vor.u32 %v7586_v29, %v6328_v27 }
  0xd1   :  { %v8545_v49 = vadd.f32 %v3167_v40, %v2954_v43  ;;  %v2743_v50 = vadd.f32 %v2742_v45, %v2529_v48  ;;  %2567 = vmatmul.bf16.gmra.mxu0 %v6265_v41  ;;  %v6333_v40 = vor.u32 %v7582_v30, %v6330_v32  ;;  %v6341_v45 = vor.u32 %v7583_v35, %v6338_v36  ;;  %v6392_v35 = vld [vmem:[%s11824_s0 + $0x3c0] sm:$0xf] }
  0xd2   :  { %2781 = vmatmul.bf16.gmra.mxu1 %v6269_v42  ;;  %v7602_v36 = vld [vmem:[%s11824_s0 + $0x3dc] sm:$0xf0] }
  0xd3   :  { %2995 = vmatmul.bf16.gmra.mxu2 %v6273_v46 }
  0xd4   :  { %3209 = vmatmul.bf16.gmra.mxu3 %v6277_v47 }
  0xd6   :  { %v2956_v51 = vpop.f32.mrf.mxu2  ;;  %v2530_v54 = vpop.f32.mrf.mxu0 }
  0xd7   :  { %v3170_v52 = vpop.f32.mrf.mxu3  ;;  %v2957_v53 = vadd.f32 %v2956_v51, %v2743_v50  ;;  %v2744_v56 = vpop.f32.mrf.mxu1  ;;  %v2531_v57 = vadd.f32 %v8418_v8, %v2530_v54 }
  0xd9   :  { %v8548_v58 = vadd.f32 %v3170_v52, %v2957_v53  ;;  %v2745_v59 = vadd.f32 %v2744_v56, %v2531_v57 }
  0xde   :  { %v2958_v5 = vpop.f32.mrf.mxu2  ;;  %v2533_v11 = vpop.f32.mrf.mxu0 }
  0xdf   :  { %v3172_v6 = vpop.f32.mrf.mxu3  ;;  %v2959_v10 = vadd.f32 %v2958_v5, %v2745_v59  ;;  %v2747_v12 = vpop.f32.mrf.mxu1  ;;  %v2534_v15 = vadd.f32 %v8418_v8, %v2533_v11  ;;  %v6360_v59 = vld [vmem:[%s11824_s0 + $0x380] sm:$0xf] }
  0xe0   :  { %v7850_v5 = vld [vmem:[%s11822_s1 + $0x160] sm:$0xff] }
  0xe1   :  { %v8575_v16 = vadd.f32 %v3172_v6, %v2959_v10  ;;  %v2748_v17 = vadd.f32 %v2747_v12, %v2534_v15  ;;  %2572 = vmatmul.bf16.gmra.mxu0 %v6297_v7  ;;  %v7595_v6 = vld [vmem:[%s11824_s0 + $0x3a4] sm:$0xf0]  ;;  %v7591_v7 = vld [vmem:[%s11824_s0 + $0x38c] sm:$0xf]  ;;  %3577 = vmatpush.bf16.msrb.mxu1 %v7850_v5  ;;  %v6361_v12 = vor.u32 %v7594_v60, %v6360_v59  ;;  %v6424_v5 = vld [vmem:[%s11824_s0 + $0x400] sm:$0xf] }
  0xe2   :  { %2786 = vmatmul.bf16.gmra.mxu1 %v6301_v9  ;;  %v6370_v9 = vld [vmem:[%s11824_s0 + $0x3a8] sm:$0xf0] }
  0xe3   :  { %3000 = vmatmul.bf16.gmra.mxu2 %v6305_v13  ;;  %v6365_v13 = vor.u32 %v7590_v61, %v6362_v3 }
  0xe4   :  { %3214 = vmatmul.bf16.gmra.mxu3 %v6309_v14 }
  0xe6   :  { %v2961_v18 = vpop.f32.mrf.mxu2  ;;  %v2535_v22 = vpop.f32.mrf.mxu0 }
  0xe7   :  { %v3175_v19 = vpop.f32.mrf.mxu3  ;;  %v2962_v21 = vadd.f32 %v2961_v18, %v2748_v17  ;;  %v2749_v23 = vpop.f32.mrf.mxu1  ;;  %v2536_v24 = vadd.f32 %v8418_v8, %v2535_v22  ;;  %v6369_v18 = vor.u32 %v7595_v6, %v6368_v4  ;;  %v7610_v6 = vld [vmem:[%s11824_s0 + $0x41c] sm:$0xf0] }
  0xe9   :  { %v8578_v25 = vadd.f32 %v3175_v19, %v2962_v21  ;;  %v2750_v26 = vadd.f32 %v2749_v23, %v2536_v24  ;;  %v6373_v19 = vor.u32 %v7591_v7, %v6370_v9  ;;  %v7606_v7 = vld [vmem:[%s11824_s0 + $0x404] sm:$0xf] }
  0xea   :  { %v6426_v9 = vld [vmem:[%s11824_s0 + $0x420] sm:$0xf0] }
  0xee   :  { %v2963_v37 = vpop.f32.mrf.mxu2  ;;  %v2538_v42 = vpop.f32.mrf.mxu0 }
  0xef   :  { %v3177_v38 = vpop.f32.mrf.mxu3  ;;  %v2964_v41 = vadd.f32 %v2963_v37, %v2750_v26  ;;  %v2752_v43 = vpop.f32.mrf.mxu1  ;;  %v2539_v46 = vadd.f32 %v8418_v8, %v2538_v42  ;;  %v7598_v37 = vld [vmem:[%s11824_s0 + $0x3c4] sm:$0xf]  ;;  %v6402_v42 = vld [vmem:[%s11824_s0 + $0x3e8] sm:$0xf0] }
  0xf1   :  { %v8605_v47 = vadd.f32 %v3177_v38, %v2964_v41  ;;  %v2753_v48 = vadd.f32 %v2752_v43, %v2539_v46  ;;  %2577 = vmatmul.bf16.gmra.mxu0 %v6329_v39  ;;  %v6394_v38 = vld [vmem:[%s11824_s0 + $0x3e0] sm:$0xf0]  ;;  %v6400_v39 = vld [vmem:[%s11824_s0 + $0x3c8] sm:$0xf]  ;;  %v7599_v41 = vld [vmem:[%s11824_s0 + $0x3cc] sm:$0xf] }
  0xf2   :  { %2791 = vmatmul.bf16.gmra.mxu1 %v6333_v40  ;;  %v7603_v40 = vld [vmem:[%s11824_s0 + $0x3e4] sm:$0xf0]  ;;  %v6397_v46 = vor.u32 %v7598_v37, %v6394_v38 }
  0xf3   :  { %3005 = vmatmul.bf16.gmra.mxu2 %v6337_v44 }
  0xf4   :  { %3219 = vmatmul.bf16.gmra.mxu3 %v6341_v45  ;;  %v6393_v45 = vor.u32 %v7602_v36, %v6392_v35 }
  0xf6   :  { %v2966_v50 = vpop.f32.mrf.mxu2  ;;  %v2540_v53 = vpop.f32.mrf.mxu0 }
  0xf7   :  { %v3180_v51 = vpop.f32.mrf.mxu3  ;;  %v2967_v52 = vadd.f32 %v2966_v50, %v2753_v48  ;;  %v2754_v54 = vpop.f32.mrf.mxu1  ;;  %v2541_v56 = vadd.f32 %v8418_v8, %v2540_v53  ;;  %v6405_v53 = vor.u32 %v7599_v41, %v6402_v42  ;;  %v6456_v41 = vld [vmem:[%s11824_s0 + $0x440] sm:$0xf] }
  0xf8   :  { %v7618_v42 = vld [vmem:[%s11824_s0 + $0x45c] sm:$0xf0] }
  0xf9   :  { %v8608_v57 = vadd.f32 %v3180_v51, %v2967_v52  ;;  %v2755_v62 = vadd.f32 %v2754_v54, %v2541_v56  ;;  %v6401_v52 = vor.u32 %v7603_v40, %v6400_v39 }
  0xfe   :  { %v2968_v10 = vpop.f32.mrf.mxu2  ;;  %v2543_v15 = vpop.f32.mrf.mxu0 }
  0xff   :  { %v3182_v11 = vpop.f32.mrf.mxu3  ;;  %v2969_v14 = vadd.f32 %v2968_v10, %v2755_v62  ;;  %v2757_v17 = vpop.f32.mrf.mxu1  ;;  %v2544_v21 = vadd.f32 %v8418_v8, %v2543_v15  ;;  %v6432_v10 = vld [vmem:[%s11824_s0 + $0x408] sm:$0xf] }
 0x101   :  { %v8647_v22 = vadd.f32 %v3182_v11, %v2969_v14  ;;  %v2758_v23 = vadd.f32 %v2757_v17, %v2544_v21  ;;  %2582 = vmatmul.bf16.gmra.mxu0 %v6361_v12  ;;  %v7611_v11 = vld [vmem:[%s11824_s0 + $0x424] sm:$0xf0]  ;;  %v7607_v12 = vld [vmem:[%s11824_s0 + $0x40c] sm:$0xf]  ;;  %v6425_v17 = vor.u32 %v7610_v6, %v6424_v5 }
 0x102   :  { %2796 = vmatmul.bf16.gmra.mxu1 %v6365_v13  ;;  %v6434_v13 = vld [vmem:[%s11824_s0 + $0x428] sm:$0xf0] }
 0x103   :  { %3010 = vmatmul.bf16.gmra.mxu2 %v6369_v18  ;;  %v6429_v18 = vor.u32 %v7606_v7, %v6426_v9 }
 0x104   :  { %3224 = vmatmul.bf16.gmra.mxu3 %v6373_v19 }
 0x106   :  { %v2971_v24 = vpop.f32.mrf.mxu2  ;;  %v2545_v29 = vpop.f32.mrf.mxu0 }
 0x107   :  { %v3185_v26 = vpop.f32.mrf.mxu3  ;;  %v2972_v27 = vadd.f32 %v2971_v24, %v2758_v23  ;;  %v2759_v30 = vpop.f32.mrf.mxu1  ;;  %v2546_v32 = vadd.f32 %v8418_v8, %v2545_v29  ;;  %v6433_v24 = vor.u32 %v7611_v11, %v6432_v10 }
 0x109   :  { %v8650_v33 = vadd.f32 %v3185_v26, %v2972_v27  ;;  %v2760_v34 = vadd.f32 %v2759_v30, %v2546_v32  ;;  %v6437_v26 = vor.u32 %v7607_v12, %v6434_v13 }
 0x10e   :  { %v2973_v43 = vpop.f32.mrf.mxu2  ;;  %v2548_v50 = vpop.f32.mrf.mxu0 }
 0x10f   :  { %v3187_v44 = vpop.f32.mrf.mxu3  ;;  %v2974_v48 = vadd.f32 %v2973_v43, %v2760_v34  ;;  %v2762_v51 = vpop.f32.mrf.mxu1  ;;  %v2549_v54 = vadd.f32 %v8418_v8, %v2548_v50  ;;  %v7614_v43 = vld [vmem:[%s11824_s0 + $0x444] sm:$0xf]  ;;  %v6466_v50 = vld [vmem:[%s11824_s0 + $0x468] sm:$0xf0] }
 0x111   :  { %v8677_v56 = vadd.f32 %v3187_v44, %v2974_v48  ;;  %v2763_v59 = vadd.f32 %v2762_v51, %v2549_v54  ;;  %2587 = vmatmul.bf16.gmra.mxu0 %v6393_v45  ;;  %v6458_v44 = vld [vmem:[%s11824_s0 + $0x460] sm:$0xf0]  ;;  %v6464_v45 = vld [vmem:[%s11824_s0 + $0x448] sm:$0xf]  ;;  %v7615_v48 = vld [vmem:[%s11824_s0 + $0x44c] sm:$0xf] }
 0x112   :  { %2801 = vmatmul.bf16.gmra.mxu1 %v6397_v46  ;;  %v7619_v46 = vld [vmem:[%s11824_s0 + $0x464] sm:$0xf0]  ;;  %v6461_v54 = vor.u32 %v7614_v43, %v6458_v44 }
 0x113   :  { %3015 = vmatmul.bf16.gmra.mxu2 %v6401_v52 }
 0x114   :  { %3229 = vmatmul.bf16.gmra.mxu3 %v6405_v53  ;;  %v6457_v53 = vor.u32 %v7618_v42, %v6456_v41 }
 0x116   :  { %v2976_v60 = vpop.f32.mrf.mxu2  ;;  %v2550_v0 = vpop.f32.mrf.mxu0 }
 0x117   :  { %v3190_v61 = vpop.f32.mrf.mxu3  ;;  %v2977_v62 = vadd.f32 %v2976_v60, %v2763_v59  ;;  %v2764_v1 = vpop.f32.mrf.mxu1  ;;  %v2551_v2 = vadd.f32 %v8418_v8, %v2550_v0  ;;  %v6469_v0 = vor.u32 %v7615_v48, %v6466_v50 }
 0x119   :  { %v8680_v3 = vadd.f32 %v3190_v61, %v2977_v62  ;;  %v2765_v4 = vadd.f32 %v2764_v1, %v2551_v2  ;;  %v6465_v62 = vor.u32 %v7619_v46, %v6464_v45 }
 0x11e   :  { %v2978_v14 = vpop.f32.mrf.mxu2  ;;  %v2553_v21 = vpop.f32.mrf.mxu0 }
 0x11f   :  { %v3192_v15 = vpop.f32.mrf.mxu3  ;;  %v2979_v19 = vadd.f32 %v2978_v14, %v2765_v4  ;;  %v2767_v23 = vpop.f32.mrf.mxu1  ;;  %v2554_v27 = vadd.f32 %v8418_v8, %v2553_v21  ;;  %v6488_v14 = vld [vmem:[%s11824_s0 + $0x480] sm:$0xf]  ;;  %v7627_v21 = vld [vmem:[%s11824_s0 + $0x4a4] sm:$0xf0] }
 0x121   :  { %v8707_v29 = vadd.f32 %v3192_v15, %v2979_v19  ;;  %v2768_v30 = vadd.f32 %v2767_v23, %v2554_v27  ;;  %2592 = vmatmul.bf16.gmra.mxu0 %v6425_v17  ;;  %v7626_v15 = vld [vmem:[%s11824_s0 + $0x49c] sm:$0xf0]  ;;  %v7622_v17 = vld [vmem:[%s11824_s0 + $0x484] sm:$0xf]  ;;  %v6496_v19 = vld [vmem:[%s11824_s0 + $0x488] sm:$0xf] }
 0x122   :  { %2806 = vmatmul.bf16.gmra.mxu1 %v6429_v18  ;;  %v6490_v18 = vld [vmem:[%s11824_s0 + $0x4a0] sm:$0xf0]  ;;  %v7623_v23 = vld [vmem:[%s11824_s0 + $0x48c] sm:$0xf] }
 0x123   :  { %3020 = vmatmul.bf16.gmra.mxu2 %v6433_v24  ;;  %v6498_v24 = vld [vmem:[%s11824_s0 + $0x4a8] sm:$0xf0] }
 0x124   :  { %3234 = vmatmul.bf16.gmra.mxu3 %v6437_v26 }
 0x126   :  { %v2981_v32 = vpop.f32.mrf.mxu2  ;;  %v2555_v36 = vpop.f32.mrf.mxu0 }
 0x127   :  { %v3195_v34 = vpop.f32.mrf.mxu3  ;;  %v2982_v35 = vadd.f32 %v2981_v32, %v2768_v30  ;;  %v2769_v37 = vpop.f32.mrf.mxu1  ;;  %v2556_v38 = vadd.f32 %v8418_v8, %v2555_v36  ;;  %v6489_v30 = vor.u32 %v7626_v15, %v6488_v14  ;;  %v6493_v32 = vor.u32 %v7622_v17, %v6490_v18 }
 0x129   :  { %v8710_v39 = vadd.f32 %v3195_v34, %v2982_v35  ;;  %v2770_v40 = vadd.f32 %v2769_v37, %v2556_v38  ;;  %v6497_v37 = vor.u32 %v7627_v21, %v6496_v19  ;;  %v6501_v38 = vor.u32 %v7623_v23, %v6498_v24  ;;  %v7849_v23 = vld [vmem:[%s11822_s1 + $0x158] sm:$0xff] }
 0x12a   :  { %3578 = vmatpush.bf16.msrb.mxu1 %v7849_v23  ;;  %v6586_v23 = vld [vmem:[%s11824_s0 + $0x560] sm:$0xf0] }
 0x12e   :  { %v2983_v51 = vpop.f32.mrf.mxu2  ;;  %v2558_v60 = vpop.f32.mrf.mxu0 }
 0x12f   :  { %v3197_v52 = vpop.f32.mrf.mxu3  ;;  %v2984_v59 = vadd.f32 %v2983_v51, %v2770_v40  ;;  %v2772_v61 = vpop.f32.mrf.mxu1  ;;  %v2559_v1 = vadd.f32 %v8418_v8, %v2558_v60  ;;  %v7841_v60 = vld [vmem:[%s11822_s1 + $0x118] sm:$0xff] }
 0x130   :  { %3364 = vmatpush.bf16.msrb.mxu0 %v7841_v60 }
 0x131   :  { %v8737_v2 = vadd.f32 %v3197_v52, %v2984_v59  ;;  %v2773_v4 = vadd.f32 %v2772_v61, %v2559_v1  ;;  %2597 = vmatmul.bf16.gmra.mxu0 %v6457_v53  ;;  %v6520_v52 = vld [vmem:[%s11824_s0 + $0x4c0] sm:$0xf]  ;;  %v7857_v59 = vld [vmem:[%s11822_s1 + $0x198] sm:$0xff]  ;;  %v6528_v1 = vld [vmem:[%s11824_s0 + $0x4c8] sm:$0xf] }
 0x132   :  { %2811 = vmatmul.bf16.gmra.mxu1 %v6461_v54  ;;  %v7634_v53 = vld [vmem:[%s11824_s0 + $0x4dc] sm:$0xf0]  ;;  %v7865_v61 = vld [vmem:[%s11822_s1 + $0x1d8] sm:$0xff]  ;;  %3792 = vmatpush.bf16.msrb.mxu2 %v7857_v59 }
 0x133   :  { %3025 = vmatmul.bf16.gmra.mxu2 %v6465_v62  ;;  %v7630_v62 = vld [vmem:[%s11824_s0 + $0x4c4] sm:$0xf]  ;;  %4006 = vmatpush.bf16.msrb.mxu3 %v7865_v61 }
 0x134   :  { %3239 = vmatmul.bf16.gmra.mxu3 %v6469_v0  ;;  %v6522_v0 = vld [vmem:[%s11824_s0 + $0x4e0] sm:$0xf0] }
 0x136   :  { %v2986_v5 = vpop.f32.mrf.mxu2  ;;  %v2560_v9 = vpop.f32.mrf.mxu0 }
 0x137   :  { %v3200_v6 = vpop.f32.mrf.mxu3  ;;  %v2987_v7 = vadd.f32 %v2986_v5, %v2773_v4  ;;  %v2774_v10 = vpop.f32.mrf.mxu1  ;;  %v2561_v11 = vadd.f32 %v8418_v8, %v2560_v9  ;;  %v7635_v4 = vld [vmem:[%s11824_s0 + $0x4e4] sm:$0xf0]  ;;  %v7631_v5 = vld [vmem:[%s11824_s0 + $0x4cc] sm:$0xf] }
 0x138   :  { %v6529_v17 = vor.u32 %v7635_v4, %v6528_v1 }
 0x139   :  { %v8740_v12 = vadd.f32 %v3200_v6, %v2987_v7  ;;  %v2775_v13 = vadd.f32 %v2774_v10, %v2561_v11  ;;  %v6530_v6 = vld [vmem:[%s11824_s0 + $0x4e8] sm:$0xf0]  ;;  %v6521_v10 = vor.u32 %v7634_v53, %v6520_v52  ;;  %v6525_v11 = vor.u32 %v7630_v62, %v6522_v0 }
 0x13a   :  { %v6533_v18 = vor.u32 %v7631_v5, %v6530_v6 }
 0x13e   :  { %v2988_v26 = vpop.f32.mrf.mxu2  ;;  %v2563_v35 = vpop.f32.mrf.mxu0 }
 0x13f   :  { %v3202_v27 = vpop.f32.mrf.mxu3  ;;  %v2989_v34 = vadd.f32 %v2988_v26, %v2775_v13  ;;  %v2777_v36 = vpop.f32.mrf.mxu1  ;;  %v2564_v40 = vadd.f32 %v8418_v8, %v2563_v35 }
 0x141   :  { %v8767_v41 = vadd.f32 %v3202_v27, %v2989_v34  ;;  %v2778_v42 = vadd.f32 %v2777_v36, %v2564_v40  ;;  %2602 = vmatmul.bf16.gmra.mxu0 %v6489_v30  ;;  %v7642_v40 = vld [vmem:[%s11824_s0 + $0x51c] sm:$0xf0] }
 0x142   :  { %2816 = vmatmul.bf16.gmra.mxu1 %v6493_v32 }
 0x143   :  { %3030 = vmatmul.bf16.gmra.mxu2 %v6497_v37 }
 0x144   :  { %3244 = vmatmul.bf16.gmra.mxu3 %v6501_v38  ;;  %v6552_v38 = vld [vmem:[%s11824_s0 + $0x500] sm:$0xf] }
 0x145   :  { %v6553_v53 = vor.u32 %v7642_v40, %v6552_v38 }
 0x146   :  { %v2991_v43 = vpop.f32.mrf.mxu2  ;;  %v2565_v46 = vpop.f32.mrf.mxu0 }
 0x147   :  { %v3205_v44 = vpop.f32.mrf.mxu3  ;;  %v2992_v45 = vadd.f32 %v2991_v43, %v2778_v42  ;;  %v2779_v48 = vpop.f32.mrf.mxu1  ;;  %v2566_v50 = vadd.f32 %v8418_v8, %v2565_v46  ;;  %v7638_v42 = vld [vmem:[%s11824_s0 + $0x504] sm:$0xf]  ;;  %v7639_v46 = vld [vmem:[%s11824_s0 + $0x50c] sm:$0xf] }
 0x148   :  { %v6554_v43 = vld [vmem:[%s11824_s0 + $0x520] sm:$0xf0] }
 0x149   :  { %v8770_v51 = vadd.f32 %v3205_v44, %v2992_v45  ;;  %v2780_v54 = vadd.f32 %v2779_v48, %v2566_v50  ;;  %v6560_v44 = vld [vmem:[%s11824_s0 + $0x508] sm:$0xf]  ;;  %v6562_v48 = vld [vmem:[%s11824_s0 + $0x528] sm:$0xf0] }
 0x14a   :  { %v7643_v45 = vld [vmem:[%s11824_s0 + $0x524] sm:$0xf0]  ;;  %v6565_v0 = vor.u32 %v7639_v46, %v6562_v48 }
 0x14b   :  { %v6561_v62 = vor.u32 %v7643_v45, %v6560_v44 }
 0x14e   :  { %v2993_v7 = vpop.f32.mrf.mxu2  ;;  %v2568_v14 = vpop.f32.mrf.mxu0 }
 0x14f   :  { %v3207_v9 = vpop.f32.mrf.mxu3  ;;  %v2994_v13 = vadd.f32 %v2993_v7, %v2780_v54  ;;  %v2782_v15 = vpop.f32.mrf.mxu1  ;;  %v2569_v19 = vadd.f32 %v8418_v8, %v2568_v14  ;;  %v6557_v54 = vor.u32 %v7638_v42, %v6554_v43 }
 0x151   :  { %v8806_v21 = vadd.f32 %v3207_v9, %v2994_v13  ;;  %v2783_v24 = vadd.f32 %v2782_v15, %v2569_v19  ;;  %2607 = vmatmul.bf16.gmra.mxu0 %v6521_v10  ;;  %v7646_v19 = vld [vmem:[%s11824_s0 + $0x544] sm:$0xf] }
 0x152   :  { %2821 = vmatmul.bf16.gmra.mxu1 %v6525_v11 }
 0x153   :  { %3035 = vmatmul.bf16.gmra.mxu2 %v6529_v17  ;;  %v6584_v17 = vld [vmem:[%s11824_s0 + $0x540] sm:$0xf] }
 0x154   :  { %3249 = vmatmul.bf16.gmra.mxu3 %v6533_v18  ;;  %v7650_v18 = vld [vmem:[%s11824_s0 + $0x55c] sm:$0xf0] }
 0x156   :  { %v2996_v26 = vpop.f32.mrf.mxu2  ;;  %v2570_v32 = vpop.f32.mrf.mxu0 }
 0x157   :  { %v3210_v27 = vpop.f32.mrf.mxu3  ;;  %v2997_v30 = vadd.f32 %v2996_v26, %v2783_v24  ;;  %v2784_v34 = vpop.f32.mrf.mxu1  ;;  %v2571_v35 = vadd.f32 %v8418_v8, %v2570_v32  ;;  %v6592_v24 = vld [vmem:[%s11824_s0 + $0x548] sm:$0xf] }
 0x158   :  { %v7651_v26 = vld [vmem:[%s11824_s0 + $0x564] sm:$0xf0] }
 0x159   :  { %v8812_v36 = vadd.f32 %v3210_v27, %v2997_v30  ;;  %v2785_v37 = vadd.f32 %v2784_v34, %v2571_v35  ;;  %v7647_v27 = vld [vmem:[%s11824_s0 + $0x54c] sm:$0xf]  ;;  %v6585_v35 = vor.u32 %v7650_v18, %v6584_v17  ;;  %v6593_v43 = vor.u32 %v7651_v26, %v6592_v24 }
 0x15a   :  { %v6594_v30 = vld [vmem:[%s11824_s0 + $0x568] sm:$0xf0] }
 0x15b   :  { %v6597_v44 = vor.u32 %v7647_v27, %v6594_v30 }
 0x15e   :  { %v2998_v50 = vpop.f32.mrf.mxu2  ;;  %v2573_v60 = vpop.f32.mrf.mxu0 }
 0x15f   :  { %v3212_v52 = vpop.f32.mrf.mxu3  ;;  %v2999_v59 = vadd.f32 %v2998_v50, %v2785_v37  ;;  %v2787_v61 = vpop.f32.mrf.mxu1  ;;  %v2574_v1 = vadd.f32 %v8418_v8, %v2573_v60  ;;  %v6589_v37 = vor.u32 %v7646_v19, %v6586_v23 }
 0x161   :  { %v8839_v4 = vadd.f32 %v3212_v52, %v2999_v59  ;;  %v2788_v5 = vadd.f32 %v2787_v61, %v2574_v1  ;;  %2612 = vmatmul.bf16.gmra.mxu0 %v6553_v53  ;;  %v7658_v1 = vld [vmem:[%s11824_s0 + $0x59c] sm:$0xf0] }
 0x162   :  { %2826 = vmatmul.bf16.gmra.mxu1 %v6557_v54 }
 0x163   :  { %3040 = vmatmul.bf16.gmra.mxu2 %v6561_v62 }
 0x164   :  { %3254 = vmatmul.bf16.gmra.mxu3 %v6565_v0  ;;  %v6616_v0 = vld [vmem:[%s11824_s0 + $0x580] sm:$0xf] }
 0x165   :  { %v6617_v17 = vor.u32 %v7658_v1, %v6616_v0 }
 0x166   :  { %v3001_v6 = vpop.f32.mrf.mxu2  ;;  %v2575_v10 = vpop.f32.mrf.mxu0 }
 0x167   :  { %v3215_v7 = vpop.f32.mrf.mxu3  ;;  %v3002_v9 = vadd.f32 %v3001_v6, %v2788_v5  ;;  %v2789_v11 = vpop.f32.mrf.mxu1  ;;  %v2576_v13 = vadd.f32 %v8418_v8, %v2575_v10  ;;  %v7654_v5 = vld [vmem:[%s11824_s0 + $0x584] sm:$0xf]  ;;  %v7655_v10 = vld [vmem:[%s11824_s0 + $0x58c] sm:$0xf] }
 0x168   :  { %v6618_v6 = vld [vmem:[%s11824_s0 + $0x5a0] sm:$0xf0] }
 0x169   :  { %v8842_v14 = vadd.f32 %v3215_v7, %v3002_v9  ;;  %v2790_v15 = vadd.f32 %v2789_v11, %v2576_v13  ;;  %v6624_v7 = vld [vmem:[%s11824_s0 + $0x588] sm:$0xf]  ;;  %v6626_v11 = vld [vmem:[%s11824_s0 + $0x5a8] sm:$0xf0]  ;;  %v6621_v18 = vor.u32 %v7654_v5, %v6618_v6 }
 0x16a   :  { %v7659_v9 = vld [vmem:[%s11824_s0 + $0x5a4] sm:$0xf0]  ;;  %v6629_v27 = vor.u32 %v7655_v10, %v6626_v11 }
 0x16b   :  { %v6625_v26 = vor.u32 %v7659_v9, %v6624_v7 }
 0x16e   :  { %v3003_v32 = vpop.f32.mrf.mxu2  ;;  %v2578_v40 = vpop.f32.mrf.mxu0 }
 0x16f   :  { %v3217_v34 = vpop.f32.mrf.mxu3  ;;  %v3004_v38 = vadd.f32 %v3003_v32, %v2790_v15  ;;  %v2792_v42 = vpop.f32.mrf.mxu1  ;;  %v2579_v45 = vadd.f32 %v8418_v8, %v2578_v40 }
 0x171   :  { %v8869_v46 = vadd.f32 %v3217_v34, %v3004_v38  ;;  %v2793_v48 = vadd.f32 %v2792_v42, %v2579_v45  ;;  %2617 = vmatmul.bf16.gmra.mxu0 %v6585_v35 }
 0x172   :  { %2831 = vmatmul.bf16.gmra.mxu1 %v6589_v37 }
 0x173   :  { %3045 = vmatmul.bf16.gmra.mxu2 %v6593_v43 }
 0x174   :  { %3259 = vmatmul.bf16.gmra.mxu3 %v6597_v44 }
 0x176   :  { %v3006_v50 = vpop.f32.mrf.mxu2  ;;  %v2580_v54 = vpop.f32.mrf.mxu0 }
 0x177   :  { %v3220_v52 = vpop.f32.mrf.mxu3  ;;  %v3007_v53 = vadd.f32 %v3006_v50, %v2793_v48  ;;  %v2794_v59 = vpop.f32.mrf.mxu1  ;;  %v2581_v60 = vadd.f32 %v8418_v8, %v2580_v54  ;;  %v6648_v48 = vld [vmem:[%s11824_s0 + $0x5c0] sm:$0xf]  ;;  %v7667_v54 = vld [vmem:[%s11824_s0 + $0x5e4] sm:$0xf0] }
 0x178   :  { %v7666_v50 = vld [vmem:[%s11824_s0 + $0x5dc] sm:$0xf0] }
 0x179   :  { %v8872_v61 = vadd.f32 %v3220_v52, %v3007_v53  ;;  %v2795_v62 = vadd.f32 %v2794_v59, %v2581_v60  ;;  %v7662_v52 = vld [vmem:[%s11824_s0 + $0x5c4] sm:$0xf]  ;;  %v7663_v59 = vld [vmem:[%s11824_s0 + $0x5cc] sm:$0xf]  ;;  %v6649_v1 = vor.u32 %v7666_v50, %v6648_v48  ;;  %v7675_v48 = vld [vmem:[%s11824_s0 + $0x624] sm:$0xf0] }
 0x17a   :  { %v6650_v53 = vld [vmem:[%s11824_s0 + $0x5e0] sm:$0xf0]  ;;  %v6658_v60 = vld [vmem:[%s11824_s0 + $0x5e8] sm:$0xf0] }
 0x17b   :  { %v6653_v5 = vor.u32 %v7662_v52, %v6650_v53  ;;  %v6661_v11 = vor.u32 %v7663_v59, %v6658_v60  ;;  %v7671_v50 = vld [vmem:[%s11824_s0 + $0x60c] sm:$0xf] }
 0x17c   :  { %v6690_v52 = vld [vmem:[%s11824_s0 + $0x628] sm:$0xf0] }
 0x17e   :  { %v3008_v13 = vpop.f32.mrf.mxu2  ;;  %v2583_v23 = vpop.f32.mrf.mxu0 }
 0x17f   :  { %v3222_v15 = vpop.f32.mrf.mxu3  ;;  %v3009_v19 = vadd.f32 %v3008_v13, %v2795_v62  ;;  %v2797_v24 = vpop.f32.mrf.mxu1  ;;  %v2584_v30 = vadd.f32 %v8418_v8, %v2583_v23  ;;  %v8931_v13 = vld [vmem:[%s11823_s2] ss:$0 sm:$0xff] }
 0x181   :  { %v8899_v32 = vadd.f32 %v3222_v15, %v3009_v19  ;;  %v2798_v34 = vadd.f32 %v2797_v24, %v2584_v30  ;;  %2622 = vmatmul.bf16.gmra.mxu0 %v6617_v17 }
 0x182   :  { %2836 = vmatmul.bf16.gmra.mxu1 %v6621_v18 }
 0x183   :  { %3050 = vmatmul.bf16.gmra.mxu2 %v6625_v26 }
 0x184   :  { %3264 = vmatmul.bf16.gmra.mxu3 %v6629_v27 }
 0x186   :  { %v3011_v35 = vpop.f32.mrf.mxu2  ;;  %v2585_v40 = vpop.f32.mrf.mxu0 }
 0x187   :  { %v3225_v37 = vpop.f32.mrf.mxu3  ;;  %v3012_v38 = vadd.f32 %v3011_v35, %v2798_v34  ;;  %v2799_v42 = vpop.f32.mrf.mxu1  ;;  %v2586_v43 = vadd.f32 %v8418_v8, %v2585_v40  ;;  %v6656_v8 = vld [vmem:[%s11824_s0 + $0x5c8] sm:$0xf]  ;;  %v7856_v40 = vld [vmem:[%s11822_s1 + $0x190] sm:$0xff] }
 0x188   :  { %v6657_v10 = vor.u32 %v7667_v54, %v6656_v8  ;;  %3793 = vmatpush.bf16.msrb.mxu2 %v7856_v40  ;;  %v7678_v40 = vld [vmem:[%s11824_s0 + $0x644] sm:$0xf] }
 0x189   :  { %v8902_v44 = vadd.f32 %v3225_v37, %v3012_v38  ;;  %v2800_v45 = vadd.f32 %v2799_v42, %v2586_v43  ;;  %v6680_v37 = vld [vmem:[%s11824_s0 + $0x600] sm:$0xf]  ;;  %v7670_v42 = vld [vmem:[%s11824_s0 + $0x604] sm:$0xf] }
 0x18a   :  { %v7674_v38 = vld [vmem:[%s11824_s0 + $0x61c] sm:$0xf0]  ;;  %v6682_v43 = vld [vmem:[%s11824_s0 + $0x620] sm:$0xf0] }
 0x18b   :  { %v6681_v54 = vor.u32 %v7674_v38, %v6680_v37  ;;  %v6685_v59 = vor.u32 %v7670_v42, %v6682_v43  ;;  %v6712_v37 = vld [vmem:[%s11824_s0 + $0x640] sm:$0xf]  ;;  %v6714_v42 = vld [vmem:[%s11824_s0 + $0x660] sm:$0xf0]  ;;  %v6720_v43 = vld [vmem:[%s11824_s0 + $0x648] sm:$0xf] }
 0x18c   :  { %v7682_v38 = vld [vmem:[%s11824_s0 + $0x65c] sm:$0xf0] }
 0x18e   :  { %v3013_v62 = vpop.f32.mrf.mxu2  ;;  %v2588_v7 = vpop.f32.mrf.mxu0 }
 0x18f   :  { %v3227_v0 = vpop.f32.mrf.mxu3  ;;  %v3014_v6 = vadd.f32 %v3013_v62, %v2800_v45  ;;  %v2802_v9 = vpop.f32.mrf.mxu1  ;;  %v2589_v15 = vadd.f32 %v8931_v13, %v2588_v7  ;;  %v6688_v45 = vld [vmem:[%s11824_s0 + $0x608] sm:$0xf] }
 0x191   :  { %v8934_v17 = vadd.f32 %v3227_v0, %v3014_v6  ;;  %v2803_v18 = vadd.f32 %v2802_v9, %v2589_v15  ;;  %2627 = vmatmul.bf16.gmra.mxu0 %v6649_v1  ;;  %v6689_v1 = vor.u32 %v7675_v48, %v6688_v45  ;;  %v7840_v9 = vld [vmem:[%s11822_s1 + $0x110] sm:$0xff]  ;;  %v7683_v45 = vld [vmem:[%s11824_s0 + $0x664] sm:$0xf0]  ;;  %v7679_v48 = vld [vmem:[%s11824_s0 + $0x64c] sm:$0xf] }
 0x192   :  { %2841 = vmatmul.bf16.gmra.mxu1 %v6653_v5  ;;  %v6693_v5 = vor.u32 %v7671_v50, %v6690_v52  ;;  %v7848_v15 = vld [vmem:[%s11822_s1 + $0x150] sm:$0xff]  ;;  %3365 = vmatpush.bf16.msrb.mxu0 %v7840_v9  ;;  %v6722_v50 = vld [vmem:[%s11824_s0 + $0x668] sm:$0xf0] }
 0x193   :  { %3055 = vmatmul.bf16.gmra.mxu2 %v6657_v10  ;;  %v7864_v10 = vld [vmem:[%s11822_s1 + $0x1d0] sm:$0xff]  ;;  %3579 = vmatpush.bf16.msrb.mxu1 %v7848_v15 }
 0x194   :  { %3269 = vmatmul.bf16.gmra.mxu3 %v6661_v11 }
 0x195   :  { %4007 = vmatpush.bf16.msrb.mxu3 %v7864_v10 }
 0x196   :  { %v3016_v19 = vpop.f32.mrf.mxu2  ;;  %v2590_v26 = vpop.f32.mrf.mxu0 }
 0x197   :  { %v3230_v23 = vpop.f32.mrf.mxu3  ;;  %v3017_v24 = vadd.f32 %v3016_v19, %v2803_v18  ;;  %v2804_v27 = vpop.f32.mrf.mxu1  ;;  %v2591_v30 = vadd.f32 %v8931_v13, %v2590_v26 }
 0x199   :  { %v8937_v34 = vadd.f32 %v3230_v23, %v3017_v24  ;;  %v2805_v35 = vadd.f32 %v2804_v27, %v2591_v30 }
 0x19e   :  { %v3018_v53 = vpop.f32.mrf.mxu2  ;;  %v2593_v62 = vpop.f32.mrf.mxu0 }
 0x19f   :  { %v3232_v8 = vpop.f32.mrf.mxu3  ;;  %v3019_v60 = vadd.f32 %v3018_v53, %v2805_v35  ;;  %v2807_v0 = vpop.f32.mrf.mxu1  ;;  %v2594_v6 = vadd.f32 %v8931_v13, %v2593_v62 }
 0x1a1   :  { %v8967_v7 = vadd.f32 %v3232_v8, %v3019_v60  ;;  %v2808_v11 = vadd.f32 %v2807_v0, %v2594_v6  ;;  %2632 = vmatmul.bf16.gmra.mxu0 %v6681_v54  ;;  %v6713_v8 = vor.u32 %v7682_v38, %v6712_v37  ;;  %v6717_v54 = vor.u32 %v7678_v40, %v6714_v42  ;;  %v7686_v37 = vld [vmem:[%s11824_s0 + $0x684] sm:$0xf]  ;;  %v6752_v40 = vld [vmem:[%s11824_s0 + $0x688] sm:$0xf] }
 0x1a2   :  { %2846 = vmatmul.bf16.gmra.mxu1 %v6685_v59  ;;  %v6721_v0 = vor.u32 %v7683_v45, %v6720_v43  ;;  %v6746_v38 = vld [vmem:[%s11824_s0 + $0x6a0] sm:$0xf0]  ;;  %v7691_v42 = vld [vmem:[%s11824_s0 + $0x6a4] sm:$0xf0]  ;;  %v7687_v43 = vld [vmem:[%s11824_s0 + $0x68c] sm:$0xf] }
 0x1a3   :  { %3060 = vmatmul.bf16.gmra.mxu2 %v6689_v1  ;;  %v6725_v1 = vor.u32 %v7679_v48, %v6722_v50  ;;  %v6754_v45 = vld [vmem:[%s11824_s0 + $0x6a8] sm:$0xf0] }
 0x1a4   :  { %3274 = vmatmul.bf16.gmra.mxu3 %v6693_v5 }
 0x1a6   :  { %v3021_v18 = vpop.f32.mrf.mxu2  ;;  %v2595_v24 = vpop.f32.mrf.mxu0 }
 0x1a7   :  { %v3235_v19 = vpop.f32.mrf.mxu3  ;;  %v3022_v23 = vadd.f32 %v3021_v18, %v2808_v11  ;;  %v2809_v26 = vpop.f32.mrf.mxu1  ;;  %v2596_v27 = vadd.f32 %v8931_v13, %v2595_v24 }
 0x1a9   :  { %v8979_v30 = vadd.f32 %v3235_v19, %v3022_v23  ;;  %v2810_v35 = vadd.f32 %v2809_v26, %v2596_v27  ;;  %v6744_v27 = vld [vmem:[%s11824_s0 + $0x680] sm:$0xf] }
 0x1ae   :  { %v3023_v52 = vpop.f32.mrf.mxu2  ;;  %v2598_v60 = vpop.f32.mrf.mxu0 }
 0x1af   :  { %v3237_v53 = vpop.f32.mrf.mxu3  ;;  %v3024_v59 = vadd.f32 %v3023_v52, %v2810_v35  ;;  %v2812_v62 = vpop.f32.mrf.mxu1  ;;  %v2599_v5 = vadd.f32 %v8931_v13, %v2598_v60  ;;  %v7690_v35 = vld [vmem:[%s11824_s0 + $0x69c] sm:$0xf0]  ;;  %v6753_v60 = vor.u32 %v7691_v42, %v6752_v40  ;;  %v6784_v40 = vld [vmem:[%s11824_s0 + $0x6c8] sm:$0xf] }
 0x1b0   :  { %v6745_v52 = vor.u32 %v7690_v35, %v6744_v27  ;;  %v6776_v27 = vld [vmem:[%s11824_s0 + $0x6c0] sm:$0xf]  ;;  %v7699_v42 = vld [vmem:[%s11824_s0 + $0x6e4] sm:$0xf0] }
 0x1b1   :  { %v9006_v6 = vadd.f32 %v3237_v53, %v3024_v59  ;;  %v2813_v9 = vadd.f32 %v2812_v62, %v2599_v5  ;;  %2637 = vmatmul.bf16.gmra.mxu0 %v6713_v8  ;;  %v6749_v53 = vor.u32 %v7686_v37, %v6746_v38  ;;  %v6757_v62 = vor.u32 %v7687_v43, %v6754_v45  ;;  %v7698_v35 = vld [vmem:[%s11824_s0 + $0x6dc] sm:$0xf0]  ;;  %v7694_v37 = vld [vmem:[%s11824_s0 + $0x6c4] sm:$0xf]  ;;  %v7695_v43 = vld [vmem:[%s11824_s0 + $0x6cc] sm:$0xf] }
 0x1b2   :  { %2851 = vmatmul.bf16.gmra.mxu1 %v6717_v54  ;;  %v6778_v38 = vld [vmem:[%s11824_s0 + $0x6e0] sm:$0xf0]  ;;  %v6786_v45 = vld [vmem:[%s11824_s0 + $0x6e8] sm:$0xf0] }
 0x1b3   :  { %3065 = vmatmul.bf16.gmra.mxu2 %v6721_v0 }
 0x1b4   :  { %3279 = vmatmul.bf16.gmra.mxu3 %v6725_v1 }
 0x1b6   :  { %v3026_v10 = vpop.f32.mrf.mxu2  ;;  %v2600_v18 = vpop.f32.mrf.mxu0 }
 0x1b7   :  { %v3240_v11 = vpop.f32.mrf.mxu3  ;;  %v3027_v15 = vadd.f32 %v3026_v10, %v2813_v9  ;;  %v2814_v19 = vpop.f32.mrf.mxu1  ;;  %v2601_v23 = vadd.f32 %v8931_v13, %v2600_v18 }
 0x1b9   :  { %v9009_v24 = vadd.f32 %v3240_v11, %v3027_v15  ;;  %v2815_v26 = vadd.f32 %v2814_v19, %v2601_v23 }
 0x1be   :  { %v3028_v48 = vpop.f32.mrf.mxu2  ;;  %v2603_v54 = vpop.f32.mrf.mxu0 }
 0x1bf   :  { %v3242_v50 = vpop.f32.mrf.mxu3  ;;  %v3029_v8 = vadd.f32 %v3028_v48, %v2815_v26  ;;  %v2817_v59 = vpop.f32.mrf.mxu1  ;;  %v2604_v0 = vadd.f32 %v8931_v13, %v2603_v54 }
 0x1c1   :  { %v9036_v1 = vadd.f32 %v3242_v50, %v3029_v8  ;;  %v2818_v5 = vadd.f32 %v2817_v59, %v2604_v0  ;;  %2642 = vmatmul.bf16.gmra.mxu0 %v6745_v52  ;;  %v6777_v52 = vor.u32 %v7698_v35, %v6776_v27 }
 0x1c2   :  { %2856 = vmatmul.bf16.gmra.mxu1 %v6749_v53  ;;  %v6781_v53 = vor.u32 %v7694_v37, %v6778_v38  ;;  %v6808_v37 = vld [vmem:[%s11824_s0 + $0x700] sm:$0xf] }
 0x1c3   :  { %3070 = vmatmul.bf16.gmra.mxu2 %v6753_v60  ;;  %v6785_v60 = vor.u32 %v7699_v42, %v6784_v40  ;;  %v7706_v38 = vld [vmem:[%s11824_s0 + $0x71c] sm:$0xf0]  ;;  %v7702_v40 = vld [vmem:[%s11824_s0 + $0x704] sm:$0xf] }
 0x1c4   :  { %3284 = vmatmul.bf16.gmra.mxu3 %v6757_v62  ;;  %v6789_v62 = vor.u32 %v7695_v43, %v6786_v45  ;;  %v6810_v42 = vld [vmem:[%s11824_s0 + $0x720] sm:$0xf0]  ;;  %v6816_v43 = vld [vmem:[%s11824_s0 + $0x708] sm:$0xf] }
 0x1c5   :  { %v7707_v45 = vld [vmem:[%s11824_s0 + $0x724] sm:$0xf0] }
 0x1c6   :  { %v3031_v9 = vpop.f32.mrf.mxu2  ;;  %v2605_v15 = vpop.f32.mrf.mxu0 }
 0x1c7   :  { %v3245_v10 = vpop.f32.mrf.mxu3  ;;  %v3032_v11 = vadd.f32 %v3031_v9, %v2818_v5  ;;  %v2819_v18 = vpop.f32.mrf.mxu1  ;;  %v2606_v19 = vadd.f32 %v8931_v13, %v2605_v15 }
 0x1c9   :  { %v9039_v23 = vadd.f32 %v3245_v10, %v3032_v11  ;;  %v2820_v26 = vadd.f32 %v2819_v18, %v2606_v19 }
 0x1ce   :  { %v3033_v48 = vpop.f32.mrf.mxu2  ;;  %v2608_v54 = vpop.f32.mrf.mxu0 }
 0x1cf   :  { %v3247_v50 = vpop.f32.mrf.mxu3  ;;  %v3034_v8 = vadd.f32 %v3033_v48, %v2820_v26  ;;  %v2822_v59 = vpop.f32.mrf.mxu1  ;;  %v2609_v0 = vadd.f32 %v8931_v13, %v2608_v54  ;;  %v7703_v48 = vld [vmem:[%s11824_s0 + $0x70c] sm:$0xf]  ;;  %v6813_v54 = vor.u32 %v7702_v40, %v6810_v42  ;;  %v6840_v42 = vld [vmem:[%s11824_s0 + $0x740] sm:$0xf] }
 0x1d1   :  { %v9066_v5 = vadd.f32 %v3247_v50, %v3034_v8  ;;  %v2823_v9 = vadd.f32 %v2822_v59, %v2609_v0  ;;  %2647 = vmatmul.bf16.gmra.mxu0 %v6777_v52  ;;  %v6818_v50 = vld [vmem:[%s11824_s0 + $0x728] sm:$0xf0]  ;;  %v6809_v8 = vor.u32 %v7706_v38, %v6808_v37  ;;  %v6817_v0 = vor.u32 %v7707_v45, %v6816_v43  ;;  %v7714_v43 = vld [vmem:[%s11824_s0 + $0x75c] sm:$0xf0]  ;;  %v7710_v45 = vld [vmem:[%s11824_s0 + $0x744] sm:$0xf] }
 0x1d2   :  { %2861 = vmatmul.bf16.gmra.mxu1 %v6781_v53 }
 0x1d3   :  { %3075 = vmatmul.bf16.gmra.mxu2 %v6785_v60 }
 0x1d4   :  { %3289 = vmatmul.bf16.gmra.mxu3 %v6789_v62 }
 0x1d6   :  { %v3036_v10 = vpop.f32.mrf.mxu2  ;;  %v2610_v18 = vpop.f32.mrf.mxu0 }
 0x1d7   :  { %v3250_v11 = vpop.f32.mrf.mxu3  ;;  %v3037_v15 = vadd.f32 %v3036_v10, %v2823_v9  ;;  %v2824_v19 = vpop.f32.mrf.mxu1  ;;  %v2611_v26 = vadd.f32 %v8931_v13, %v2610_v18  ;;  %v6821_v9 = vor.u32 %v7703_v48, %v6818_v50  ;;  %v6842_v48 = vld [vmem:[%s11824_s0 + $0x760] sm:$0xf0]  ;;  %v7715_v50 = vld [vmem:[%s11824_s0 + $0x764] sm:$0xf0] }
 0x1d9   :  { %v9069_v27 = vadd.f32 %v3250_v11, %v3037_v15  ;;  %v2825_v35 = vadd.f32 %v2824_v19, %v2611_v26 }
 0x1db   :  { %11826 = vst [vmem:[#allocation3_spill] sm:$0xff] %v9069_v27 }
 0x1de   :  { %v3038_v52 = vpop.f32.mrf.mxu2  ;;  %v2613_v60 = vpop.f32.mrf.mxu0 }
 0x1df   :  { %v3252_v53 = vpop.f32.mrf.mxu3  ;;  %v3039_v59 = vadd.f32 %v3038_v52, %v2825_v35  ;;  %v2827_v62 = vpop.f32.mrf.mxu1  ;;  %v2614_v10 = vadd.f32 %v8931_v13, %v2613_v60  ;;  %v7711_v52 = vld [vmem:[%s11824_s0 + $0x74c] sm:$0xf]  ;;  %v6845_v60 = vor.u32 %v7710_v45, %v6842_v48 }
 0x1e1   :  { %v9096_v11 = vadd.f32 %v3252_v53, %v3039_v59  ;;  %v2828_v15 = vadd.f32 %v2827_v62, %v2614_v10  ;;  %2652 = vmatmul.bf16.gmra.mxu0 %v6809_v8  ;;  %v6850_v53 = vld [vmem:[%s11824_s0 + $0x768] sm:$0xf0]  ;;  %v6841_v59 = vor.u32 %v7714_v43, %v6840_v42 }
 0x1e2   :  { %2866 = vmatmul.bf16.gmra.mxu1 %v6813_v54  ;;  %v7847_v42 = vld [vmem:[%s11822_s1 + $0x148] sm:$0xff] }
 0x1e3   :  { %11827 = vst [vmem:[#allocation4_spill] sm:$0xff] %v9096_v11  ;;  %3080 = vmatmul.bf16.gmra.mxu2 %v6817_v0  ;;  %3580 = vmatpush.bf16.msrb.mxu1 %v7847_v42 }
 0x1e4   :  { %3294 = vmatmul.bf16.gmra.mxu3 %v6821_v9 }
 0x1e6   :  { %v3041_v18 = vpop.f32.mrf.mxu2  ;;  %v2615_v27 = vpop.f32.mrf.mxu0 }
 0x1e7   :  { %v3255_v19 = vpop.f32.mrf.mxu3  ;;  %v3042_v26 = vadd.f32 %v3041_v18, %v2828_v15  ;;  %v2829_v37 = vpop.f32.mrf.mxu1  ;;  %v2616_v35 = vadd.f32 %v8931_v13, %v2615_v27  ;;  %v6848_v27 = vld [vmem:[%s11824_s0 + $0x748] sm:$0xf]  ;;  %v6853_v15 = vor.u32 %v7711_v52, %v6850_v53 }
 0x1e8   :  { %v6849_v10 = vor.u32 %v7715_v50, %v6848_v27 }
 0x1e9   :  { %v9099_v38 = vadd.f32 %v3255_v19, %v3042_v26  ;;  %v2830_v40 = vadd.f32 %v2829_v37, %v2616_v35  ;;  %v7855_v26 = vld [vmem:[%s11822_s1 + $0x188] sm:$0xff] }
 0x1ea   :  { %v7839_v35 = vld [vmem:[%s11822_s1 + $0x108] sm:$0xff]  ;;  %3794 = vmatpush.bf16.msrb.mxu2 %v7855_v26 }
 0x1eb   :  { %11828 = vst [vmem:[#allocation5_spill] sm:$0xff] %v9099_v38  ;;  %3366 = vmatpush.bf16.msrb.mxu0 %v7839_v35 }
 0x1ee   :  { %v3043_v8 = vpop.f32.mrf.mxu2  ;;  %v2618_v0 = vpop.f32.mrf.mxu0 }
 0x1ef   :  { %v3257_v54 = vpop.f32.mrf.mxu3  ;;  %v3044_v62 = vadd.f32 %v3043_v8, %v2830_v40  ;;  %v2832_v9 = vpop.f32.mrf.mxu1  ;;  %v2619_v18 = vadd.f32 %v8931_v13, %v2618_v0  ;;  %v7863_v40 = vld [vmem:[%s11822_s1 + $0x1c8] sm:$0xff] }
 0x1f0   :  { %4008 = vmatpush.bf16.msrb.mxu3 %v7863_v40  ;;  %v6880_v0 = vld [vmem:[%s11824_s0 + $0x788] sm:$0xf] }
 0x1f1   :  { %v9126_v19 = vadd.f32 %v3257_v54, %v3044_v62  ;;  %v2833_v37 = vadd.f32 %v2832_v9, %v2619_v18  ;;  %2657 = vmatmul.bf16.gmra.mxu0 %v6841_v59  ;;  %v6872_v54 = vld [vmem:[%s11824_s0 + $0x780] sm:$0xf]  ;;  %v6874_v62 = vld [vmem:[%s11824_s0 + $0x7a0] sm:$0xf0]  ;;  %v7723_v9 = vld [vmem:[%s11824_s0 + $0x7a4] sm:$0xf0] }
 0x1f2   :  { %2871 = vmatmul.bf16.gmra.mxu1 %v6845_v60  ;;  %v7722_v59 = vld [vmem:[%s11824_s0 + $0x79c] sm:$0xf0]  ;;  %v7718_v60 = vld [vmem:[%s11824_s0 + $0x784] sm:$0xf] }
 0x1f3   :  { %11829 = vst [vmem:[#allocation6_spill] sm:$0xff] %v9126_v19  ;;  %3085 = vmatmul.bf16.gmra.mxu2 %v6849_v10  ;;  %v7719_v10 = vld [vmem:[%s11824_s0 + $0x78c] sm:$0xf]  ;;  %v6877_v35 = vor.u32 %v7718_v60, %v6874_v62  ;;  %v6904_v62 = vld [vmem:[%s11824_s0 + $0x7c0] sm:$0xf] }
 0x1f4   :  { %3299 = vmatmul.bf16.gmra.mxu3 %v6853_v15  ;;  %v6882_v15 = vld [vmem:[%s11824_s0 + $0x7a8] sm:$0xf0] }
 0x1f6   :  { %v3046_v43 = vpop.f32.mrf.mxu2  ;;  %v2620_v27 = vpop.f32.mrf.mxu0 }
 0x1f7   :  { %v3260_v45 = vpop.f32.mrf.mxu3  ;;  %v3047_v48 = vadd.f32 %v3046_v43, %v2833_v37  ;;  %v2834_v50 = vpop.f32.mrf.mxu1  ;;  %v2621_v52 = vadd.f32 %v8931_v13, %v2620_v27  ;;  %v6873_v37 = vor.u32 %v7722_v59, %v6872_v54 }
 0x1f9   :  { %v9141_v53 = vadd.f32 %v3260_v45, %v3047_v48  ;;  %v2835_v8 = vadd.f32 %v2834_v50, %v2621_v52  ;;  %v6881_v45 = vor.u32 %v7723_v9, %v6880_v0  ;;  %v6885_v48 = vor.u32 %v7719_v10, %v6882_v15  ;;  %v7730_v0 = vld [vmem:[%s11824_s0 + $0x7dc] sm:$0xf0]  ;;  %v7726_v9 = vld [vmem:[%s11824_s0 + $0x7c4] sm:$0xf]  ;;  %v6914_v10 = vld [vmem:[%s11824_s0 + $0x7e8] sm:$0xf0] }
 0x1fb   :  { %11830 = vst [vmem:[#allocation7_spill] sm:$0xff] %v9141_v53 }
 0x1fe   :  { %v3048_v18 = vpop.f32.mrf.mxu2  ;;  %v2623_v42 = vpop.f32.mrf.mxu0 }
 0x1ff   :  { %v3262_v26 = vpop.f32.mrf.mxu3  ;;  %v3049_v40 = vadd.f32 %v3048_v18, %v2835_v8  ;;  %v2837_v43 = vpop.f32.mrf.mxu1  ;;  %v2624_v27 = vadd.f32 %v8931_v13, %v2623_v42 }
 0x201   :  { %v9168_v50 = vadd.f32 %v3262_v26, %v3049_v40  ;;  %v2838_v52 = vadd.f32 %v2837_v43, %v2624_v27  ;;  %2662 = vmatmul.bf16.gmra.mxu0 %v6873_v37  ;;  %v6905_v26 = vor.u32 %v7730_v0, %v6904_v62 }
 0x202   :  { %2876 = vmatmul.bf16.gmra.mxu1 %v6877_v35 }
 0x203   :  { %11831 = vst [vmem:[#allocation8_spill] sm:$0xff] %v9168_v50  ;;  %3090 = vmatmul.bf16.gmra.mxu2 %v6881_v45 }
 0x204   :  { %3304 = vmatmul.bf16.gmra.mxu3 %v6885_v48 }
 0x206   :  { %v3051_v53 = vpop.f32.mrf.mxu2  ;;  %v2625_v11 = vpop.f32.mrf.mxu0 }
 0x207   :  { %v3265_v19 = vpop.f32.mrf.mxu3  ;;  %v3052_v38 = vadd.f32 %v3051_v53, %v2838_v52  ;;  %v2839_v54 = vpop.f32.mrf.mxu1  ;;  %v2626_v8 = vadd.f32 %v8931_v13, %v2625_v11  ;;  %v6906_v53 = vld [vmem:[%s11824_s0 + $0x7e0] sm:$0xf0]  ;;  %v6912_v11 = vld [vmem:[%s11824_s0 + $0x7c8] sm:$0xf] }
 0x208   :  { %v6909_v37 = vor.u32 %v7726_v9, %v6906_v53  ;;  %v6936_v53 = vld [vmem:[%s11824_s0 + $0x800] sm:$0xf] }
 0x209   :  { %v9171_v59 = vadd.f32 %v3265_v19, %v3052_v38  ;;  %v2840_v60 = vadd.f32 %v2839_v54, %v2626_v8  ;;  %v7731_v38 = vld [vmem:[%s11824_s0 + $0x7e4] sm:$0xf0]  ;;  %v7727_v19 = vld [vmem:[%s11824_s0 + $0x7cc] sm:$0xf] }
 0x20a   :  { %v6913_v43 = vor.u32 %v7731_v38, %v6912_v11  ;;  %v6917_v45 = vor.u32 %v7727_v19, %v6914_v10  ;;  %v7738_v11 = vld [vmem:[%s11824_s0 + $0x81c] sm:$0xf0]  ;;  %v7734_v38 = vld [vmem:[%s11824_s0 + $0x804] sm:$0xf]  ;;  %v7735_v10 = vld [vmem:[%s11824_s0 + $0x80c] sm:$0xf] }
 0x20b   :  { %11832 = vst [vmem:[#allocation9_spill] sm:$0xff] %v9171_v59  ;;  %v6938_v19 = vld [vmem:[%s11824_s0 + $0x820] sm:$0xf0] }
 0x20e   :  { %v3053_v15 = vpop.f32.mrf.mxu2  ;;  %v2628_v40 = vpop.f32.mrf.mxu0 }
 0x20f   :  { %v3267_v18 = vpop.f32.mrf.mxu3  ;;  %v3054_v35 = vadd.f32 %v3053_v15, %v2840_v60  ;;  %v2842_v42 = vpop.f32.mrf.mxu1  ;;  %v2629_v48 = vadd.f32 %v8931_v13, %v2628_v40  ;;  %v6946_v15 = vld [vmem:[%s11824_s0 + $0x828] sm:$0xf0] }
 0x211   :  { %v9198_v27 = vadd.f32 %v3267_v18, %v3054_v35  ;;  %v2843_v52 = vadd.f32 %v2842_v42, %v2629_v48  ;;  %2667 = vmatmul.bf16.gmra.mxu0 %v6905_v26  ;;  %v6941_v35 = vor.u32 %v7734_v38, %v6938_v19  ;;  %v6949_v48 = vor.u32 %v7735_v10, %v6946_v15  ;;  %v6968_v19 = vld [vmem:[%s11824_s0 + $0x840] sm:$0xf]  ;;  %v6970_v10 = vld [vmem:[%s11824_s0 + $0x860] sm:$0xf0]  ;;  %v7743_v15 = vld [vmem:[%s11824_s0 + $0x84c] sm:$0xf] }
 0x212   :  { %2881 = vmatmul.bf16.gmra.mxu1 %v6909_v37  ;;  %v6937_v37 = vor.u32 %v7738_v11, %v6936_v53 }
 0x213   :  { %11833 = vst [vmem:[#allocation10_spill] sm:$0xff] %v9198_v27  ;;  %3095 = vmatmul.bf16.gmra.mxu2 %v6913_v43 }
 0x214   :  { %3309 = vmatmul.bf16.gmra.mxu3 %v6917_v45 }
 0x216   :  { %v3056_v54 = vpop.f32.mrf.mxu2  ;;  %v2630_v50 = vpop.f32.mrf.mxu0 }
 0x217   :  { %v3270_v8 = vpop.f32.mrf.mxu3  ;;  %v3057_v59 = vadd.f32 %v3056_v54, %v2843_v52  ;;  %v2844_v62 = vpop.f32.mrf.mxu1  ;;  %v2631_v60 = vadd.f32 %v8931_v13, %v2630_v50  ;;  %v6944_v50 = vld [vmem:[%s11824_s0 + $0x808] sm:$0xf] }
 0x219   :  { %v9201_v0 = vadd.f32 %v3270_v8, %v3057_v59  ;;  %v2845_v9 = vadd.f32 %v2844_v62, %v2631_v60  ;;  %v7739_v59 = vld [vmem:[%s11824_s0 + $0x824] sm:$0xf0] }
 0x21a   :  { %v6945_v45 = vor.u32 %v7739_v59, %v6944_v50  ;;  %v7746_v50 = vld [vmem:[%s11824_s0 + $0x85c] sm:$0xf0]  ;;  %v7742_v59 = vld [vmem:[%s11824_s0 + $0x844] sm:$0xf] }
 0x21b   :  { %11834 = vst [vmem:[#allocation11_spill] sm:$0xff] %v9201_v0 }
 0x21e   :  { %v3058_v18 = vpop.f32.mrf.mxu2  ;;  %v2633_v42 = vpop.f32.mrf.mxu0 }
 0x21f   :  { %v3272_v26 = vpop.f32.mrf.mxu3  ;;  %v3059_v40 = vadd.f32 %v3058_v18, %v2845_v9  ;;  %v2847_v43 = vpop.f32.mrf.mxu1  ;;  %v2634_v52 = vadd.f32 %v8931_v13, %v2633_v42  ;;  %v6978_v18 = vld [vmem:[%s11824_s0 + $0x868] sm:$0xf0] }
 0x221   :  { %v9228_v54 = vadd.f32 %v3272_v26, %v3059_v40  ;;  %v2848_v8 = vadd.f32 %v2847_v43, %v2634_v52  ;;  %2672 = vmatmul.bf16.gmra.mxu0 %v6937_v37  ;;  %v6973_v40 = vor.u32 %v7742_v59, %v6970_v10  ;;  %v6981_v52 = vor.u32 %v7743_v15, %v6978_v18  ;;  %v7000_v10 = vld [vmem:[%s11824_s0 + $0x880] sm:$0xf]  ;;  %v7002_v15 = vld [vmem:[%s11824_s0 + $0x8a0] sm:$0xf0]  ;;  %v7751_v18 = vld [vmem:[%s11824_s0 + $0x88c] sm:$0xf] }
 0x222   :  { %2886 = vmatmul.bf16.gmra.mxu1 %v6941_v35  ;;  %v6969_v35 = vor.u32 %v7746_v50, %v6968_v19 }
 0x223   :  { %11835 = vst [vmem:[#allocation12_spill] sm:$0xff] %v9228_v54  ;;  %3100 = vmatmul.bf16.gmra.mxu2 %v6945_v45 }
 0x224   :  { %3314 = vmatmul.bf16.gmra.mxu3 %v6949_v48 }
 0x226   :  { %v3061_v62 = vpop.f32.mrf.mxu2  ;;  %v2635_v27 = vpop.f32.mrf.mxu0 }
 0x227   :  { %v3275_v60 = vpop.f32.mrf.mxu3  ;;  %v3062_v0 = vadd.f32 %v3061_v62, %v2848_v8  ;;  %v2849_v53 = vpop.f32.mrf.mxu1  ;;  %v2636_v9 = vadd.f32 %v8931_v13, %v2635_v27  ;;  %v6976_v27 = vld [vmem:[%s11824_s0 + $0x848] sm:$0xf] }
 0x229   :  { %v9231_v11 = vadd.f32 %v3275_v60, %v3062_v0  ;;  %v2850_v38 = vadd.f32 %v2849_v53, %v2636_v9  ;;  %v7747_v0 = vld [vmem:[%s11824_s0 + $0x864] sm:$0xf0] }
 0x22a   :  { %v6977_v48 = vor.u32 %v7747_v0, %v6976_v27  ;;  %v7754_v27 = vld [vmem:[%s11824_s0 + $0x89c] sm:$0xf0]  ;;  %v7750_v0 = vld [vmem:[%s11824_s0 + $0x884] sm:$0xf] }
 0x22b   :  { %11836 = vst [vmem:[#allocation13_spill] sm:$0xff] %v9231_v11 }
 0x22e   :  { %v3063_v26 = vpop.f32.mrf.mxu2  ;;  %v2638_v43 = vpop.f32.mrf.mxu0 }
 0x22f   :  { %v3277_v37 = vpop.f32.mrf.mxu3  ;;  %v3064_v42 = vadd.f32 %v3063_v26, %v2850_v38  ;;  %v2852_v45 = vpop.f32.mrf.mxu1  ;;  %v2639_v8 = vadd.f32 %v8931_v13, %v2638_v43  ;;  %v7010_v26 = vld [vmem:[%s11824_s0 + $0x8a8] sm:$0xf0] }
 0x231   :  { %v9258_v62 = vadd.f32 %v3277_v37, %v3064_v42  ;;  %v2853_v60 = vadd.f32 %v2852_v45, %v2639_v8  ;;  %2677 = vmatmul.bf16.gmra.mxu0 %v6969_v35  ;;  %v7005_v42 = vor.u32 %v7750_v0, %v7002_v15  ;;  %v7013_v8 = vor.u32 %v7751_v18, %v7010_v26 }
 0x232   :  { %2891 = vmatmul.bf16.gmra.mxu1 %v6973_v40  ;;  %v7001_v40 = vor.u32 %v7754_v27, %v7000_v10  ;;  %v7846_v10 = vld [vmem:[%s11822_s1 + $0x140] sm:$0xff] }
 0x233   :  { %11837 = vst [vmem:[#allocation14_spill] sm:$0xff] %v9258_v62  ;;  %3105 = vmatmul.bf16.gmra.mxu2 %v6977_v48  ;;  %3581 = vmatpush.bf16.msrb.mxu1 %v7846_v10 }
 0x234   :  { %3319 = vmatmul.bf16.gmra.mxu3 %v6981_v52 }
 0x236   :  { %v3066_v53 = vpop.f32.mrf.mxu2  ;;  %v2640_v54 = vpop.f32.mrf.mxu0 }
 0x237   :  { %v3280_v9 = vpop.f32.mrf.mxu3  ;;  %v3067_v11 = vadd.f32 %v3066_v53, %v2853_v60  ;;  %v2854_v19 = vpop.f32.mrf.mxu1  ;;  %v2641_v38 = vadd.f32 %v8931_v13, %v2640_v54  ;;  %v7008_v54 = vld [vmem:[%s11824_s0 + $0x888] sm:$0xf] }
 0x239   :  { %v9261_v50 = vadd.f32 %v3280_v9, %v3067_v11  ;;  %v2855_v59 = vadd.f32 %v2854_v19, %v2641_v38  ;;  %v7755_v11 = vld [vmem:[%s11824_s0 + $0x8a4] sm:$0xf0]  ;;  %v7854_v19 = vld [vmem:[%s11822_s1 + $0x180] sm:$0xff] }
 0x23a   :  { %v7009_v52 = vor.u32 %v7755_v11, %v7008_v54  ;;  %v7838_v38 = vld [vmem:[%s11822_s1 + $0x100] sm:$0xff]  ;;  %3795 = vmatpush.bf16.msrb.mxu2 %v7854_v19 }
 0x23b   :  { %11838 = vst [vmem:[#allocation15_spill] sm:$0xff] %v9261_v50  ;;  %3367 = vmatpush.bf16.msrb.mxu0 %v7838_v38 }
 0x23e   :  { %v3068_v37 = vpop.f32.mrf.mxu2  ;;  %v2643_v45 = vpop.f32.mrf.mxu0 }
 0x23f   :  { %v3282_v35 = vpop.f32.mrf.mxu3  ;;  %v3069_v43 = vadd.f32 %v3068_v37, %v2855_v59  ;;  %v2857_v48 = vpop.f32.mrf.mxu1  ;;  %v2644_v60 = vadd.f32 %v8931_v13, %v2643_v45  ;;  %v7862_v59 = vld [vmem:[%s11822_s1 + $0x1c0] sm:$0xff]  ;;  %v7040_v45 = vld [vmem:[%s11824_s0 + $0x8c8] sm:$0xf] }
 0x240   :  { %4009 = vmatpush.bf16.msrb.mxu3 %v7862_v59 }
 0x241   :  { %v9288_v53 = vadd.f32 %v3282_v35, %v3069_v43  ;;  %v2858_v9 = vadd.f32 %v2857_v48, %v2644_v60  ;;  %2682 = vmatmul.bf16.gmra.mxu0 %v7001_v40  ;;  %v7032_v35 = vld [vmem:[%s11824_s0 + $0x8c0] sm:$0xf]  ;;  %v7034_v43 = vld [vmem:[%s11824_s0 + $0x8e0] sm:$0xf0]  ;;  %v7763_v48 = vld [vmem:[%s11824_s0 + $0x8e4] sm:$0xf0] }
 0x242   :  { %2896 = vmatmul.bf16.gmra.mxu1 %v7005_v42  ;;  %v7762_v40 = vld [vmem:[%s11824_s0 + $0x8dc] sm:$0xf0]  ;;  %v7758_v42 = vld [vmem:[%s11824_s0 + $0x8c4] sm:$0xf] }
 0x243   :  { %11839 = vst [vmem:[#allocation16_spill] sm:$0xff] %v9288_v53  ;;  %3110 = vmatmul.bf16.gmra.mxu2 %v7009_v52  ;;  %v7759_v52 = vld [vmem:[%s11824_s0 + $0x8cc] sm:$0xf]  ;;  %v7033_v19 = vor.u32 %v7762_v40, %v7032_v35  ;;  %v7037_v38 = vor.u32 %v7758_v42, %v7034_v43  ;;  %v7064_v43 = vld [vmem:[%s11824_s0 + $0x900] sm:$0xf] }
 0x244   :  { %3324 = vmatmul.bf16.gmra.mxu3 %v7013_v8  ;;  %v7042_v8 = vld [vmem:[%s11824_s0 + $0x8e8] sm:$0xf0] }
 0x246   :  { %v3071_v27 = vpop.f32.mrf.mxu2  ;;  %v2645_v54 = vpop.f32.mrf.mxu0 }
 0x247   :  { %v3285_v0 = vpop.f32.mrf.mxu3  ;;  %v3072_v15 = vadd.f32 %v3071_v27, %v2858_v9  ;;  %v2859_v11 = vpop.f32.mrf.mxu1  ;;  %v2646_v18 = vadd.f32 %v8931_v13, %v2645_v54 }
 0x249   :  { %v9303_v26 = vadd.f32 %v3285_v0, %v3072_v15  ;;  %v2860_v37 = vadd.f32 %v2859_v11, %v2646_v18  ;;  %v7041_v0 = vor.u32 %v7763_v48, %v7040_v45  ;;  %v7045_v15 = vor.u32 %v7759_v52, %v7042_v8  ;;  %v7770_v45 = vld [vmem:[%s11824_s0 + $0x91c] sm:$0xf0]  ;;  %v7766_v48 = vld [vmem:[%s11824_s0 + $0x904] sm:$0xf]  ;;  %v7074_v52 = vld [vmem:[%s11824_s0 + $0x928] sm:$0xf0] }
 0x24b   :  { %11840 = vst [vmem:[#allocation17_spill] sm:$0xff] %v9303_v26 }
 0x24e   :  { %v3073_v60 = vpop.f32.mrf.mxu2  ;;  %v2648_v10 = vpop.f32.mrf.mxu0 }
 0x24f   :  { %v3287_v9 = vpop.f32.mrf.mxu3  ;;  %v3074_v59 = vadd.f32 %v3073_v60, %v2860_v37  ;;  %v2862_v27 = vpop.f32.mrf.mxu1  ;;  %v2649_v54 = vadd.f32 %v8931_v13, %v2648_v10 }
 0x251   :  { %v9330_v11 = vadd.f32 %v3287_v9, %v3074_v59  ;;  %v2863_v18 = vadd.f32 %v2862_v27, %v2649_v54  ;;  %2687 = vmatmul.bf16.gmra.mxu0 %v7033_v19  ;;  %v7065_v9 = vor.u32 %v7770_v45, %v7064_v43 }
 0x252   :  { %2901 = vmatmul.bf16.gmra.mxu1 %v7037_v38 }
 0x253   :  { %11841 = vst [vmem:[#allocation18_spill] sm:$0xff] %v9330_v11  ;;  %3115 = vmatmul.bf16.gmra.mxu2 %v7041_v0 }
 0x254   :  { %3329 = vmatmul.bf16.gmra.mxu3 %v7045_v15 }
 0x256   :  { %v3076_v26 = vpop.f32.mrf.mxu2  ;;  %v2650_v62 = vpop.f32.mrf.mxu0 }
 0x257   :  { %v3290_v53 = vpop.f32.mrf.mxu3  ;;  %v3077_v50 = vadd.f32 %v3076_v26, %v2863_v18  ;;  %v2864_v35 = vpop.f32.mrf.mxu1  ;;  %v2651_v37 = vadd.f32 %v8931_v13, %v2650_v62  ;;  %v7066_v26 = vld [vmem:[%s11824_s0 + $0x920] sm:$0xf0]  ;;  %v7072_v62 = vld [vmem:[%s11824_s0 + $0x908] sm:$0xf] }
 0x258   :  { %v7069_v19 = vor.u32 %v7766_v48, %v7066_v26  ;;  %v7096_v26 = vld [vmem:[%s11824_s0 + $0x940] sm:$0xf] }
 0x259   :  { %v9333_v40 = vadd.f32 %v3290_v53, %v3077_v50  ;;  %v2865_v42 = vadd.f32 %v2864_v35, %v2651_v37  ;;  %v7771_v50 = vld [vmem:[%s11824_s0 + $0x924] sm:$0xf0]  ;;  %v7767_v53 = vld [vmem:[%s11824_s0 + $0x90c] sm:$0xf] }
 0x25a   :  { %v7073_v27 = vor.u32 %v7771_v50, %v7072_v62  ;;  %v7077_v0 = vor.u32 %v7767_v53, %v7074_v52  ;;  %v7778_v62 = vld [vmem:[%s11824_s0 + $0x95c] sm:$0xf0]  ;;  %v7774_v50 = vld [vmem:[%s11824_s0 + $0x944] sm:$0xf]  ;;  %v7775_v52 = vld [vmem:[%s11824_s0 + $0x94c] sm:$0xf] }
 0x25b   :  { %11842 = vst [vmem:[#allocation19_spill] sm:$0xff] %v9333_v40  ;;  %v7098_v53 = vld [vmem:[%s11824_s0 + $0x960] sm:$0xf0] }
 0x25e   :  { %v3078_v8 = vpop.f32.mrf.mxu2  ;;  %v2653_v59 = vpop.f32.mrf.mxu0 }
 0x25f   :  { %v3292_v60 = vpop.f32.mrf.mxu3  ;;  %v3079_v38 = vadd.f32 %v3078_v8, %v2865_v42  ;;  %v2867_v10 = vpop.f32.mrf.mxu1  ;;  %v2654_v15 = vadd.f32 %v8931_v13, %v2653_v59  ;;  %v7106_v8 = vld [vmem:[%s11824_s0 + $0x968] sm:$0xf0] }
 0x261   :  { %v9360_v54 = vadd.f32 %v3292_v60, %v3079_v38  ;;  %v2868_v18 = vadd.f32 %v2867_v10, %v2654_v15  ;;  %2692 = vmatmul.bf16.gmra.mxu0 %v7065_v9  ;;  %v7101_v38 = vor.u32 %v7774_v50, %v7098_v53  ;;  %v7109_v15 = vor.u32 %v7775_v52, %v7106_v8  ;;  %v7128_v53 = vld [vmem:[%s11824_s0 + $0x980] sm:$0xf]  ;;  %v7130_v52 = vld [vmem:[%s11824_s0 + $0x9a0] sm:$0xf0]  ;;  %v7783_v8 = vld [vmem:[%s11824_s0 + $0x98c] sm:$0xf] }
 0x262   :  { %2906 = vmatmul.bf16.gmra.mxu1 %v7069_v19  ;;  %v7097_v19 = vor.u32 %v7778_v62, %v7096_v26 }
 0x263   :  { %11843 = vst [vmem:[#allocation20_spill] sm:$0xff] %v9360_v54  ;;  %3120 = vmatmul.bf16.gmra.mxu2 %v7073_v27 }
 0x264   :  { %3334 = vmatmul.bf16.gmra.mxu3 %v7077_v0 }
 0x266   :  { %v3081_v35 = vpop.f32.mrf.mxu2  ;;  %v2655_v11 = vpop.f32.mrf.mxu0 }
 0x267   :  { %v3295_v37 = vpop.f32.mrf.mxu3  ;;  %v3082_v40 = vadd.f32 %v3081_v35, %v2868_v18  ;;  %v2869_v43 = vpop.f32.mrf.mxu1  ;;  %v2656_v42 = vadd.f32 %v8931_v13, %v2655_v11  ;;  %v7104_v11 = vld [vmem:[%s11824_s0 + $0x948] sm:$0xf] }
 0x269   :  { %v9363_v45 = vadd.f32 %v3295_v37, %v3082_v40  ;;  %v2870_v48 = vadd.f32 %v2869_v43, %v2656_v42  ;;  %v7779_v40 = vld [vmem:[%s11824_s0 + $0x964] sm:$0xf0] }
 0x26a   :  { %v7105_v0 = vor.u32 %v7779_v40, %v7104_v11  ;;  %v7786_v11 = vld [vmem:[%s11824_s0 + $0x99c] sm:$0xf0]  ;;  %v7782_v40 = vld [vmem:[%s11824_s0 + $0x984] sm:$0xf] }
 0x26b   :  { %11844 = vst [vmem:[#allocation21_spill] sm:$0xff] %v9363_v45 }
 0x26e   :  { %v3083_v60 = vpop.f32.mrf.mxu2  ;;  %v2658_v10 = vpop.f32.mrf.mxu0 }
 0x26f   :  { %v3297_v9 = vpop.f32.mrf.mxu3  ;;  %v3084_v59 = vadd.f32 %v3083_v60, %v2870_v48  ;;  %v2872_v27 = vpop.f32.mrf.mxu1  ;;  %v2659_v18 = vadd.f32 %v8931_v13, %v2658_v10  ;;  %v7138_v60 = vld [vmem:[%s11824_s0 + $0x9a8] sm:$0xf0] }
 0x271   :  { %v9390_v35 = vadd.f32 %v3297_v9, %v3084_v59  ;;  %v2873_v37 = vadd.f32 %v2872_v27, %v2659_v18  ;;  %2697 = vmatmul.bf16.gmra.mxu0 %v7097_v19  ;;  %v7133_v59 = vor.u32 %v7782_v40, %v7130_v52  ;;  %v7141_v18 = vor.u32 %v7783_v8, %v7138_v60  ;;  %v7160_v52 = vld [vmem:[%s11824_s0 + $0x9c0] sm:$0xf]  ;;  %v7162_v8 = vld [vmem:[%s11824_s0 + $0x9e0] sm:$0xf0]  ;;  %v7791_v60 = vld [vmem:[%s11824_s0 + $0x9cc] sm:$0xf] }
 0x272   :  { %2911 = vmatmul.bf16.gmra.mxu1 %v7101_v38  ;;  %v7129_v38 = vor.u32 %v7786_v11, %v7128_v53 }
 0x273   :  { %11845 = vst [vmem:[#allocation22_spill] sm:$0xff] %v9390_v35  ;;  %3125 = vmatmul.bf16.gmra.mxu2 %v7105_v0 }
 0x274   :  { %3339 = vmatmul.bf16.gmra.mxu3 %v7109_v15 }
 0x276   :  { %v3086_v43 = vpop.f32.mrf.mxu2  ;;  %v2660_v54 = vpop.f32.mrf.mxu0 }
 0x277   :  { %v3300_v42 = vpop.f32.mrf.mxu3  ;;  %v3087_v45 = vadd.f32 %v3086_v43, %v2873_v37  ;;  %v2874_v26 = vpop.f32.mrf.mxu1  ;;  %v2661_v48 = vadd.f32 %v8931_v13, %v2660_v54  ;;  %v7136_v54 = vld [vmem:[%s11824_s0 + $0x988] sm:$0xf] }
 0x279   :  { %v9393_v62 = vadd.f32 %v3300_v42, %v3087_v45  ;;  %v2875_v50 = vadd.f32 %v2874_v26, %v2661_v48  ;;  %v7787_v45 = vld [vmem:[%s11824_s0 + $0x9a4] sm:$0xf0] }
 0x27a   :  { %v7137_v15 = vor.u32 %v7787_v45, %v7136_v54  ;;  %v7794_v54 = vld [vmem:[%s11824_s0 + $0x9dc] sm:$0xf0]  ;;  %v7790_v45 = vld [vmem:[%s11824_s0 + $0x9c4] sm:$0xf] }
 0x27b   :  { %11846 = vst [vmem:[#allocation23_spill] sm:$0xff] %v9393_v62 }
 0x27e   :  { %v3088_v9 = vpop.f32.mrf.mxu2  ;;  %v2663_v27 = vpop.f32.mrf.mxu0 }
 0x27f   :  { %v3302_v19 = vpop.f32.mrf.mxu3  ;;  %v3089_v10 = vadd.f32 %v3088_v9, %v2875_v50  ;;  %v2877_v0 = vpop.f32.mrf.mxu1  ;;  %v2664_v37 = vadd.f32 %v8931_v13, %v2663_v27  ;;  %v9425_v50 = vld [vmem:[%s11823_s2] ss:$0 sm:$0xff]  ;;  %v7170_v9 = vld [vmem:[%s11824_s0 + $0x9e8] sm:$0xf0] }
 0x281   :  { %v9420_v43 = vadd.f32 %v3302_v19, %v3089_v10  ;;  %v2878_v42 = vadd.f32 %v2877_v0, %v2664_v37  ;;  %2702 = vmatmul.bf16.gmra.mxu0 %v7129_v38  ;;  %v7165_v10 = vor.u32 %v7790_v45, %v7162_v8  ;;  %v7173_v37 = vor.u32 %v7791_v60, %v7170_v9  ;;  %v7192_v8 = vld [vmem:[%s11824_s0 + $0xa00] sm:$0xf]  ;;  %v7194_v60 = vld [vmem:[%s11824_s0 + $0xa20] sm:$0xf0]  ;;  %v7799_v9 = vld [vmem:[%s11824_s0 + $0xa0c] sm:$0xf] }
 0x282   :  { %2916 = vmatmul.bf16.gmra.mxu1 %v7133_v59  ;;  %v7161_v59 = vor.u32 %v7794_v54, %v7160_v52 }
 0x283   :  { %11847 = vst [vmem:[#allocation24_spill] sm:$0xff] %v9420_v43  ;;  %3130 = vmatmul.bf16.gmra.mxu2 %v7137_v15 }
 0x284   :  { %3344 = vmatmul.bf16.gmra.mxu3 %v7141_v18 }
 0x286   :  { %v3091_v26 = vpop.f32.mrf.mxu2  ;;  %v2665_v35 = vpop.f32.mrf.mxu0 }
 0x287   :  { %v3305_v48 = vpop.f32.mrf.mxu3  ;;  %v3092_v62 = vadd.f32 %v3091_v26, %v2878_v42  ;;  %v2879_v53 = vpop.f32.mrf.mxu1  ;;  %v2666_v11 = vadd.f32 %v9425_v50, %v2665_v35  ;;  %v7168_v35 = vld [vmem:[%s11824_s0 + $0x9c8] sm:$0xf] }
 0x289   :  { %v9428_v13 = vadd.f32 %v3305_v48, %v3092_v62  ;;  %v2880_v40 = vadd.f32 %v2879_v53, %v2666_v11  ;;  %v7795_v62 = vld [vmem:[%s11824_s0 + $0x9e4] sm:$0xf0] }
 0x28a   :  { %v7169_v18 = vor.u32 %v7795_v62, %v7168_v35  ;;  %v7802_v35 = vld [vmem:[%s11824_s0 + $0xa1c] sm:$0xf0]  ;;  %v7798_v62 = vld [vmem:[%s11824_s0 + $0xa04] sm:$0xf] }
 0x28b   :  { %11848 = vst [vmem:[#allocation25_spill] sm:$0xff] %v9428_v13 }
 0x28e   :  { %v3093_v19 = vpop.f32.mrf.mxu2  ;;  %v2668_v0 = vpop.f32.mrf.mxu0 }
 0x28f   :  { %v3307_v38 = vpop.f32.mrf.mxu3  ;;  %v3094_v27 = vadd.f32 %v3093_v19, %v2880_v40  ;;  %v2882_v15 = vpop.f32.mrf.mxu1  ;;  %v2669_v42 = vadd.f32 %v9425_v50, %v2668_v0  ;;  %v7202_v19 = vld [vmem:[%s11824_s0 + $0xa28] sm:$0xf0] }
 0x291   :  { %v9455_v26 = vadd.f32 %v3307_v38, %v3094_v27  ;;  %v2883_v48 = vadd.f32 %v2882_v15, %v2669_v42  ;;  %2707 = vmatmul.bf16.gmra.mxu0 %v7161_v59  ;;  %v7197_v27 = vor.u32 %v7798_v62, %v7194_v60  ;;  %v7205_v42 = vor.u32 %v7799_v9, %v7202_v19  ;;  %v5928_v60 = vld [vmem:[%s11824_s0 + $0x10] sm:$0xf]  ;;  %v5930_v9 = vld [vmem:[%s11824_s0 + $0x30] sm:$0xf0]  ;;  %v7481_v19 = vld [vmem:[%s11824_s0 + $0x1c] sm:$0xf] }
 0x292   :  { %2921 = vmatmul.bf16.gmra.mxu1 %v7165_v10  ;;  %v7193_v10 = vor.u32 %v7802_v35, %v7192_v8 }
 0x293   :  { %11849 = vst [vmem:[#allocation26_spill] sm:$0xff] %v9455_v26  ;;  %3135 = vmatmul.bf16.gmra.mxu2 %v7169_v18 }
 0x294   :  { %3349 = vmatmul.bf16.gmra.mxu3 %v7173_v37 }
 0x296   :  { %v3096_v53 = vpop.f32.mrf.mxu2  ;;  %v2670_v43 = vpop.f32.mrf.mxu0 }
 0x297   :  { %v3310_v11 = vpop.f32.mrf.mxu3  ;;  %v3097_v13 = vadd.f32 %v3096_v53, %v2883_v48  ;;  %v2884_v52 = vpop.f32.mrf.mxu1  ;;  %v2671_v40 = vadd.f32 %v9425_v50, %v2670_v43  ;;  %v7200_v43 = vld [vmem:[%s11824_s0 + $0xa08] sm:$0xf] }
 0x299   :  { %v9458_v54 = vadd.f32 %v3310_v11, %v3097_v13  ;;  %v2885_v45 = vadd.f32 %v2884_v52, %v2671_v40  ;;  %v7803_v13 = vld [vmem:[%s11824_s0 + $0xa24] sm:$0xf0] }
 0x29a   :  { %v7201_v37 = vor.u32 %v7803_v13, %v7200_v43  ;;  %v7484_v43 = vld [vmem:[%s11824_s0 + $0x2c] sm:$0xf0]  ;;  %v7480_v13 = vld [vmem:[%s11824_s0 + $0x14] sm:$0xf] }
 0x29b   :  { %11850 = vst [vmem:[#allocation27_spill] sm:$0xff] %v9458_v54 }
 0x29e   :  { %v3098_v38 = vpop.f32.mrf.mxu2  ;;  %v2673_v15 = vpop.f32.mrf.mxu0 }
 0x29f   :  { %v3312_v59 = vpop.f32.mrf.mxu3  ;;  %v3099_v0 = vadd.f32 %v3098_v38, %v2885_v45  ;;  %v2887_v18 = vpop.f32.mrf.mxu1  ;;  %v2674_v48 = vadd.f32 %v9425_v50, %v2673_v15  ;;  %v5938_v38 = vld [vmem:[%s11824_s0 + $0x38] sm:$0xf0] }
 0x2a1   :  { %v9485_v53 = vadd.f32 %v3312_v59, %v3099_v0  ;;  %v2888_v11 = vadd.f32 %v2887_v18, %v2674_v48  ;;  %2712 = vmatmul.bf16.gmra.mxu0 %v7193_v10  ;;  %v5933_v0 = vor.u32 %v7480_v13, %v5930_v9  ;;  %v5941_v48 = vor.u32 %v7481_v19, %v5938_v38  ;;  %v5960_v9 = vld [vmem:[%s11824_s0 + $0x50] sm:$0xf]  ;;  %v5962_v19 = vld [vmem:[%s11824_s0 + $0x70] sm:$0xf0]  ;;  %v7489_v38 = vld [vmem:[%s11824_s0 + $0x5c] sm:$0xf] }
 0x2a2   :  { %2926 = vmatmul.bf16.gmra.mxu1 %v7197_v27  ;;  %v5929_v27 = vor.u32 %v7484_v43, %v5928_v60 }
 0x2a3   :  { %11851 = vst [vmem:[#allocation28_spill] sm:$0xff] %v9485_v53  ;;  %3140 = vmatmul.bf16.gmra.mxu2 %v7201_v37 }
 0x2a4   :  { %3354 = vmatmul.bf16.gmra.mxu3 %v7205_v42 }
 0x2a6   :  { %v3101_v52 = vpop.f32.mrf.mxu2  ;;  %v2675_v26 = vpop.f32.mrf.mxu0 }
 0x2a7   :  { %v3315_v40 = vpop.f32.mrf.mxu3  ;;  %v3102_v54 = vadd.f32 %v3101_v52, %v2888_v11  ;;  %v2889_v8 = vpop.f32.mrf.mxu1  ;;  %v2676_v45 = vadd.f32 %v9425_v50, %v2675_v26  ;;  %v5936_v26 = vld [vmem:[%s11824_s0 + $0x18] sm:$0xf] }
 0x2a9   :  { %v9488_v35 = vadd.f32 %v3315_v40, %v3102_v54  ;;  %v2890_v62 = vadd.f32 %v2889_v8, %v2676_v45  ;;  %v7485_v54 = vld [vmem:[%s11824_s0 + $0x34] sm:$0xf0] }
 0x2aa   :  { %v5937_v42 = vor.u32 %v7485_v54, %v5936_v26  ;;  %v7492_v26 = vld [vmem:[%s11824_s0 + $0x6c] sm:$0xf0]  ;;  %v7488_v54 = vld [vmem:[%s11824_s0 + $0x54] sm:$0xf] }
 0x2ab   :  { %11852 = vst [vmem:[#allocation29_spill] sm:$0xff] %v9488_v35 }
 0x2ae   :  { %v3103_v59 = vpop.f32.mrf.mxu2  ;;  %v2678_v18 = vpop.f32.mrf.mxu0 }
 0x2af   :  { %v3317_v10 = vpop.f32.mrf.mxu3  ;;  %v3104_v15 = vadd.f32 %v3103_v59, %v2890_v62  ;;  %v2892_v37 = vpop.f32.mrf.mxu1  ;;  %v2679_v11 = vadd.f32 %v9425_v50, %v2678_v18  ;;  %v5970_v59 = vld [vmem:[%s11824_s0 + $0x78] sm:$0xf0] }
 0x2b1   :  { %v9515_v52 = vadd.f32 %v3317_v10, %v3104_v15  ;;  %v2893_v40 = vadd.f32 %v2892_v37, %v2679_v11  ;;  %3368 = vmatmul.bf16.vlgmr.msrb.gmra.mxu0 %v5929_v27  ;;  %v5965_v15 = vor.u32 %v7488_v54, %v5962_v19  ;;  %v5973_v11 = vor.u32 %v7489_v38, %v5970_v59  ;;  %v5992_v19 = vld [vmem:[%s11824_s0 + $0x90] sm:$0xf]  ;;  %v5994_v38 = vld [vmem:[%s11824_s0 + $0xb0] sm:$0xf0]  ;;  %v7497_v59 = vld [vmem:[%s11824_s0 + $0x9c] sm:$0xf] }
 0x2b2   :  { %3582 = vmatmul.bf16.vlgmr.msrb.gmra.mxu1 %v5933_v0  ;;  %v5961_v0 = vor.u32 %v7492_v26, %v5960_v9 }
 0x2b3   :  { %11853 = vst [vmem:[#allocation30_spill] sm:$0xff] %v9515_v52  ;;  %3796 = vmatmul.bf16.vlgmr.msrb.gmra.mxu2 %v5937_v42 }
 0x2b4   :  { %4010 = vmatmul.bf16.vlgmr.msrb.gmra.mxu3 %v5941_v48 }
 0x2b6   :  { %v3106_v8 = vpop.f32.mrf.mxu2  ;;  %v2680_v53 = vpop.f32.mrf.mxu0 }
 0x2b7   :  { %v3320_v45 = vpop.f32.mrf.mxu3  ;;  %v3107_v35 = vadd.f32 %v3106_v8, %v2893_v40  ;;  %v2894_v60 = vpop.f32.mrf.mxu1  ;;  %v2681_v62 = vadd.f32 %v9425_v50, %v2680_v53  ;;  %v5968_v53 = vld [vmem:[%s11824_s0 + $0x58] sm:$0xf] }
 0x2b9   :  { %v9518_v43 = vadd.f32 %v3320_v45, %v3107_v35  ;;  %v2895_v13 = vadd.f32 %v2894_v60, %v2681_v62  ;;  %v7493_v35 = vld [vmem:[%s11824_s0 + $0x74] sm:$0xf0] }
 0x2ba   :  { %v5969_v48 = vor.u32 %v7493_v35, %v5968_v53  ;;  %v7500_v53 = vld [vmem:[%s11824_s0 + $0xac] sm:$0xf0]  ;;  %v7496_v35 = vld [vmem:[%s11824_s0 + $0x94] sm:$0xf] }
 0x2bb   :  { %11854 = vst [vmem:[#allocation31_spill] sm:$0xff] %v9518_v43 }
 0x2be   :  { %v3108_v10 = vpop.f32.mrf.mxu2  ;;  %v2683_v37 = vpop.f32.mrf.mxu0 }
 0x2bf   :  { %v3322_v27 = vpop.f32.mrf.mxu3  ;;  %v3109_v18 = vadd.f32 %v3108_v10, %v2895_v13  ;;  %v2897_v42 = vpop.f32.mrf.mxu1  ;;  %v2684_v40 = vadd.f32 %v9425_v50, %v2683_v37  ;;  %v6002_v10 = vld [vmem:[%s11824_s0 + $0xb8] sm:$0xf0] }
 0x2c1   :  { %v9545_v8 = vadd.f32 %v3322_v27, %v3109_v18  ;;  %v2898_v45 = vadd.f32 %v2897_v42, %v2684_v40  ;;  %3373 = vmatmul.bf16.gmra.mxu0 %v5961_v0  ;;  %v5997_v18 = vor.u32 %v7496_v35, %v5994_v38  ;;  %v6005_v40 = vor.u32 %v7497_v59, %v6002_v10  ;;  %v6024_v38 = vld [vmem:[%s11824_s0 + $0xd0] sm:$0xf]  ;;  %v6026_v59 = vld [vmem:[%s11824_s0 + $0xf0] sm:$0xf0]  ;;  %v7505_v10 = vld [vmem:[%s11824_s0 + $0xdc] sm:$0xf] }
 0x2c2   :  { %3587 = vmatmul.bf16.gmra.mxu1 %v5965_v15  ;;  %v5993_v15 = vor.u32 %v7500_v53, %v5992_v19 }
 0x2c3   :  { %11855 = vst [vmem:[#allocation32_spill] sm:$0xff] %v9545_v8  ;;  %3801 = vmatmul.bf16.gmra.mxu2 %v5969_v48 }
 0x2c4   :  { %4015 = vmatmul.bf16.gmra.mxu3 %v5973_v11 }
 0x2c6   :  { %v3111_v60 = vpop.f32.mrf.mxu2  ;;  %v2685_v52 = vpop.f32.mrf.mxu0 }
 0x2c7   :  { %v3325_v62 = vpop.f32.mrf.mxu3  ;;  %v3112_v43 = vadd.f32 %v3111_v60, %v2898_v45  ;;  %v2899_v9 = vpop.f32.mrf.mxu1  ;;  %v2686_v13 = vadd.f32 %v9425_v50, %v2685_v52  ;;  %v6000_v52 = vld [vmem:[%s11824_s0 + $0x98] sm:$0xf] }
 0x2c9   :  { %v9548_v26 = vadd.f32 %v3325_v62, %v3112_v43  ;;  %v2900_v54 = vadd.f32 %v2899_v9, %v2686_v13  ;;  %v7501_v43 = vld [vmem:[%s11824_s0 + $0xb4] sm:$0xf0] }
 0x2ca   :  { %v6001_v11 = vor.u32 %v7501_v43, %v6000_v52  ;;  %v7508_v52 = vld [vmem:[%s11824_s0 + $0xec] sm:$0xf0]  ;;  %v7504_v43 = vld [vmem:[%s11824_s0 + $0xd4] sm:$0xf] }
 0x2cb   :  { %11856 = vst [vmem:[#allocation33_spill] sm:$0xff] %v9548_v26 }
 0x2ce   :  { %v3113_v27 = vpop.f32.mrf.mxu2  ;;  %v2688_v42 = vpop.f32.mrf.mxu0 }
 0x2cf   :  { %v3327_v0 = vpop.f32.mrf.mxu3  ;;  %v3114_v37 = vadd.f32 %v3113_v27, %v2900_v54  ;;  %v2902_v48 = vpop.f32.mrf.mxu1  ;;  %v2689_v45 = vadd.f32 %v9425_v50, %v2688_v42  ;;  %v6034_v27 = vld [vmem:[%s11824_s0 + $0xf8] sm:$0xf0] }
 0x2d1   :  { %v9575_v60 = vadd.f32 %v3327_v0, %v3114_v37  ;;  %v2903_v62 = vadd.f32 %v2902_v48, %v2689_v45  ;;  %3378 = vmatmul.bf16.gmra.mxu0 %v5993_v15  ;;  %v6029_v37 = vor.u32 %v7504_v43, %v6026_v59  ;;  %v6037_v45 = vor.u32 %v7505_v10, %v6034_v27  ;;  %v6056_v59 = vld [vmem:[%s11824_s0 + $0x110] sm:$0xf]  ;;  %v6058_v10 = vld [vmem:[%s11824_s0 + $0x130] sm:$0xf0]  ;;  %v7513_v27 = vld [vmem:[%s11824_s0 + $0x11c] sm:$0xf] }
 0x2d2   :  { %3592 = vmatmul.bf16.gmra.mxu1 %v5997_v18  ;;  %v6025_v18 = vor.u32 %v7508_v52, %v6024_v38 }
 0x2d3   :  { %11857 = vst [vmem:[#allocation34_spill] sm:$0xff] %v9575_v60  ;;  %3806 = vmatmul.bf16.gmra.mxu2 %v6001_v11 }
 0x2d4   :  { %4020 = vmatmul.bf16.gmra.mxu3 %v6005_v40 }
 0x2d6   :  { %v3116_v9 = vpop.f32.mrf.mxu2  ;;  %v2690_v8 = vpop.f32.mrf.mxu0 }
 0x2d7   :  { %v3330_v13 = vpop.f32.mrf.mxu3  ;;  %v3117_v26 = vadd.f32 %v3116_v9, %v2903_v62  ;;  %v2904_v19 = vpop.f32.mrf.mxu1  ;;  %v2691_v54 = vadd.f32 %v9425_v50, %v2690_v8  ;;  %v6032_v8 = vld [vmem:[%s11824_s0 + $0xd8] sm:$0xf] }
 0x2d9   :  { %v9578_v53 = vadd.f32 %v3330_v13, %v3117_v26  ;;  %v2905_v35 = vadd.f32 %v2904_v19, %v2691_v54  ;;  %v7509_v26 = vld [vmem:[%s11824_s0 + $0xf4] sm:$0xf0] }
 0x2da   :  { %v6033_v40 = vor.u32 %v7509_v26, %v6032_v8  ;;  %v7516_v8 = vld [vmem:[%s11824_s0 + $0x12c] sm:$0xf0]  ;;  %v7512_v26 = vld [vmem:[%s11824_s0 + $0x114] sm:$0xf] }
 0x2db   :  { %11858 = vst [vmem:[#allocation35_spill] sm:$0xff] %v9578_v53 }
 0x2de   :  { %v3118_v0 = vpop.f32.mrf.mxu2  ;;  %v2693_v48 = vpop.f32.mrf.mxu0 }
 0x2df   :  { %v3332_v15 = vpop.f32.mrf.mxu3  ;;  %v3119_v42 = vadd.f32 %v3118_v0, %v2905_v35  ;;  %v2907_v11 = vpop.f32.mrf.mxu1  ;;  %v2694_v62 = vadd.f32 %v9425_v50, %v2693_v48  ;;  %v6066_v0 = vld [vmem:[%s11824_s0 + $0x138] sm:$0xf0] }
 0x2e1   :  { %v9605_v9 = vadd.f32 %v3332_v15, %v3119_v42  ;;  %v2908_v13 = vadd.f32 %v2907_v11, %v2694_v62  ;;  %3383 = vmatmul.bf16.gmra.mxu0 %v6025_v18  ;;  %v6061_v42 = vor.u32 %v7512_v26, %v6058_v10  ;;  %v6069_v62 = vor.u32 %v7513_v27, %v6066_v0  ;;  %v6088_v10 = vld [vmem:[%s11824_s0 + $0x150] sm:$0xf]  ;;  %v6090_v27 = vld [vmem:[%s11824_s0 + $0x170] sm:$0xf0]  ;;  %v7521_v0 = vld [vmem:[%s11824_s0 + $0x15c] sm:$0xf] }
 0x2e2   :  { %3597 = vmatmul.bf16.gmra.mxu1 %v6029_v37  ;;  %v6057_v37 = vor.u32 %v7516_v8, %v6056_v59 }
 0x2e3   :  { %11859 = vst [vmem:[#allocation36_spill] sm:$0xff] %v9605_v9  ;;  %3811 = vmatmul.bf16.gmra.mxu2 %v6033_v40 }
 0x2e4   :  { %4025 = vmatmul.bf16.gmra.mxu3 %v6037_v45 }
 0x2e6   :  { %v3121_v19 = vpop.f32.mrf.mxu2  ;;  %v2695_v60 = vpop.f32.mrf.mxu0 }
 0x2e7   :  { %v3335_v54 = vpop.f32.mrf.mxu3  ;;  %v3122_v53 = vadd.f32 %v3121_v19, %v2908_v13  ;;  %v2909_v38 = vpop.f32.mrf.mxu1  ;;  %v2696_v35 = vadd.f32 %v9425_v50, %v2695_v60  ;;  %v6064_v60 = vld [vmem:[%s11824_s0 + $0x118] sm:$0xf] }
 0x2e9   :  { %v9608_v52 = vadd.f32 %v3335_v54, %v3122_v53  ;;  %v2910_v43 = vadd.f32 %v2909_v38, %v2696_v35  ;;  %v7517_v53 = vld [vmem:[%s11824_s0 + $0x134] sm:$0xf0] }
 0x2ea   :  { %v6065_v45 = vor.u32 %v7517_v53, %v6064_v60  ;;  %v7524_v60 = vld [vmem:[%s11824_s0 + $0x16c] sm:$0xf0]  ;;  %v7520_v53 = vld [vmem:[%s11824_s0 + $0x154] sm:$0xf] }
 0x2eb   :  { %11860 = vst [vmem:[#allocation37_spill] sm:$0xff] %v9608_v52 }
 0x2ee   :  { %v3123_v15 = vpop.f32.mrf.mxu2  ;;  %v2698_v11 = vpop.f32.mrf.mxu0 }
 0x2ef   :  { %v3337_v18 = vpop.f32.mrf.mxu3  ;;  %v3124_v48 = vadd.f32 %v3123_v15, %v2910_v43  ;;  %v2912_v40 = vpop.f32.mrf.mxu1  ;;  %v2699_v13 = vadd.f32 %v9425_v50, %v2698_v11  ;;  %v6098_v15 = vld [vmem:[%s11824_s0 + $0x178] sm:$0xf0] }
 0x2f1   :  { %v9635_v19 = vadd.f32 %v3337_v18, %v3124_v48  ;;  %v2913_v54 = vadd.f32 %v2912_v40, %v2699_v13  ;;  %3388 = vmatmul.bf16.gmra.mxu0 %v6057_v37  ;;  %v6093_v48 = vor.u32 %v7520_v53, %v6090_v27  ;;  %v6101_v13 = vor.u32 %v7521_v0, %v6098_v15  ;;  %v6120_v27 = vld [vmem:[%s11824_s0 + $0x190] sm:$0xf]  ;;  %v6122_v0 = vld [vmem:[%s11824_s0 + $0x1b0] sm:$0xf0]  ;;  %v7529_v15 = vld [vmem:[%s11824_s0 + $0x19c] sm:$0xf] }
 0x2f2   :  { %3602 = vmatmul.bf16.gmra.mxu1 %v6061_v42  ;;  %v6089_v42 = vor.u32 %v7524_v60, %v6088_v10 }
 0x2f3   :  { %11861 = vst [vmem:[#allocation38_spill] sm:$0xff] %v9635_v19  ;;  %3816 = vmatmul.bf16.gmra.mxu2 %v6065_v45 }
 0x2f4   :  { %4030 = vmatmul.bf16.gmra.mxu3 %v6069_v62 }
 0x2f6   :  { %v3126_v38 = vpop.f32.mrf.mxu2  ;;  %v2700_v9 = vpop.f32.mrf.mxu0 }
 0x2f7   :  { %v3340_v35 = vpop.f32.mrf.mxu3  ;;  %v3127_v52 = vadd.f32 %v3126_v38, %v2913_v54  ;;  %v2914_v59 = vpop.f32.mrf.mxu1  ;;  %v2701_v43 = vadd.f32 %v9425_v50, %v2700_v9  ;;  %v6096_v9 = vld [vmem:[%s11824_s0 + $0x158] sm:$0xf] }
 0x2f9   :  { %v9638_v8 = vadd.f32 %v3340_v35, %v3127_v52  ;;  %v2915_v26 = vadd.f32 %v2914_v59, %v2701_v43  ;;  %v7525_v52 = vld [vmem:[%s11824_s0 + $0x174] sm:$0xf0] }
 0x2fa   :  { %v6097_v62 = vor.u32 %v7525_v52, %v6096_v9  ;;  %v7532_v9 = vld [vmem:[%s11824_s0 + $0x1ac] sm:$0xf0]  ;;  %v7528_v52 = vld [vmem:[%s11824_s0 + $0x194] sm:$0xf] }
 0x2fb   :  { %11862 = vst [vmem:[#allocation39_spill] sm:$0xff] %v9638_v8 }
 0x2fe   :  { %v3128_v18 = vpop.f32.mrf.mxu2  ;;  %v2703_v40 = vpop.f32.mrf.mxu0 }
 0x2ff   :  { %v3342_v37 = vpop.f32.mrf.mxu3  ;;  %v3129_v11 = vadd.f32 %v3128_v18, %v2915_v26  ;;  %v2917_v45 = vpop.f32.mrf.mxu1  ;;  %v2704_v54 = vadd.f32 %v9425_v50, %v2703_v40  ;;  %v6130_v18 = vld [vmem:[%s11824_s0 + $0x1b8] sm:$0xf0] }
 0x301   :  { %v9665_v38 = vadd.f32 %v3342_v37, %v3129_v11  ;;  %v2918_v35 = vadd.f32 %v2917_v45, %v2704_v54  ;;  %3393 = vmatmul.bf16.gmra.mxu0 %v6089_v42  ;;  %v6125_v11 = vor.u32 %v7528_v52, %v6122_v0  ;;  %v6133_v54 = vor.u32 %v7529_v15, %v6130_v18  ;;  %v6152_v0 = vld [vmem:[%s11824_s0 + $0x1d0] sm:$0xf]  ;;  %v6154_v15 = vld [vmem:[%s11824_s0 + $0x1f0] sm:$0xf0]  ;;  %v7537_v18 = vld [vmem:[%s11824_s0 + $0x1dc] sm:$0xf] }
 0x302   :  { %3607 = vmatmul.bf16.gmra.mxu1 %v6093_v48  ;;  %v6121_v48 = vor.u32 %v7532_v9, %v6120_v27 }
 0x303   :  { %11863 = vst [vmem:[#allocation40_spill] sm:$0xff] %v9665_v38  ;;  %3821 = vmatmul.bf16.gmra.mxu2 %v6097_v62 }
 0x304   :  { %4035 = vmatmul.bf16.gmra.mxu3 %v6101_v13 }
 0x306   :  { %v3131_v59 = vpop.f32.mrf.mxu2  ;;  %v2705_v19 = vpop.f32.mrf.mxu0 }
 0x307   :  { %v3345_v43 = vpop.f32.mrf.mxu3  ;;  %v3132_v8 = vadd.f32 %v3131_v59, %v2918_v35  ;;  %v2919_v10 = vpop.f32.mrf.mxu1  ;;  %v2706_v26 = vadd.f32 %v9425_v50, %v2705_v19  ;;  %v6128_v19 = vld [vmem:[%s11824_s0 + $0x198] sm:$0xf] }
 0x309   :  { %v9668_v60 = vadd.f32 %v3345_v43, %v3132_v8  ;;  %v2920_v53 = vadd.f32 %v2919_v10, %v2706_v26  ;;  %v7533_v8 = vld [vmem:[%s11824_s0 + $0x1b4] sm:$0xf0] }
 0x30a   :  { %v6129_v13 = vor.u32 %v7533_v8, %v6128_v19  ;;  %v7540_v19 = vld [vmem:[%s11824_s0 + $0x1ec] sm:$0xf0]  ;;  %v7536_v8 = vld [vmem:[%s11824_s0 + $0x1d4] sm:$0xf] }
 0x30b   :  { %11864 = vst [vmem:[#allocation41_spill] sm:$0xff] %v9668_v60 }
 0x30e   :  { %v3133_v37 = vpop.f32.mrf.mxu2  ;;  %v2708_v45 = vpop.f32.mrf.mxu0 }
 0x30f   :  { %v3347_v42 = vpop.f32.mrf.mxu3  ;;  %v3134_v40 = vadd.f32 %v3133_v37, %v2920_v53  ;;  %v2922_v62 = vpop.f32.mrf.mxu1  ;;  %v2709_v35 = vadd.f32 %v9425_v50, %v2708_v45  ;;  %v6162_v37 = vld [vmem:[%s11824_s0 + $0x1f8] sm:$0xf0] }
 0x311   :  { %v9695_v59 = vadd.f32 %v3347_v42, %v3134_v40  ;;  %v2923_v43 = vadd.f32 %v2922_v62, %v2709_v35  ;;  %3398 = vmatmul.bf16.gmra.mxu0 %v6121_v48  ;;  %v6157_v40 = vor.u32 %v7536_v8, %v6154_v15  ;;  %v6165_v35 = vor.u32 %v7537_v18, %v6162_v37  ;;  %v7544_v8 = vld [vmem:[%s11824_s0 + $0x214] sm:$0xf] }
 0x312   :  { %3612 = vmatmul.bf16.gmra.mxu1 %v6125_v11  ;;  %v6153_v11 = vor.u32 %v7540_v19, %v6152_v0  ;;  %v6186_v15 = vld [vmem:[%s11824_s0 + $0x230] sm:$0xf0] }
 0x313   :  { %11865 = vst [vmem:[#allocation42_spill] sm:$0xff] %v9695_v59  ;;  %3826 = vmatmul.bf16.gmra.mxu2 %v6129_v13 }
 0x314   :  { %4040 = vmatmul.bf16.gmra.mxu3 %v6133_v54 }
 0x316   :  { %v3136_v10 = vpop.f32.mrf.mxu2  ;;  %v2710_v38 = vpop.f32.mrf.mxu0 }
 0x317   :  { %v3350_v26 = vpop.f32.mrf.mxu3  ;;  %v3137_v60 = vadd.f32 %v3136_v10, %v2923_v43  ;;  %v2924_v27 = vpop.f32.mrf.mxu1  ;;  %v2711_v53 = vadd.f32 %v9425_v50, %v2710_v38  ;;  %v6160_v38 = vld [vmem:[%s11824_s0 + $0x1d8] sm:$0xf] }
 0x319   :  { %v9698_v9 = vadd.f32 %v3350_v26, %v3137_v60  ;;  %v2925_v52 = vadd.f32 %v2924_v27, %v2711_v53  ;;  %v7541_v60 = vld [vmem:[%s11824_s0 + $0x1f4] sm:$0xf0] }
 0x31a   :  { %v6161_v54 = vor.u32 %v7541_v60, %v6160_v38  ;;  %v7545_v38 = vld [vmem:[%s11824_s0 + $0x21c] sm:$0xf] }
 0x31b   :  { %11866 = vst [vmem:[#allocation43_spill] sm:$0xff] %v9698_v9  ;;  %v6194_v60 = vld [vmem:[%s11824_s0 + $0x238] sm:$0xf0] }
 0x31e   :  { %v3138_v42 = vpop.f32.mrf.mxu2  ;;  %v2713_v62 = vpop.f32.mrf.mxu0 }
 0x31f   :  { %v3352_v48 = vpop.f32.mrf.mxu3  ;;  %v3139_v45 = vadd.f32 %v3138_v42, %v2925_v52  ;;  %v2927_v13 = vpop.f32.mrf.mxu1  ;;  %v2714_v43 = vadd.f32 %v9425_v50, %v2713_v62  ;;  %v6184_v52 = vld [vmem:[%s11824_s0 + $0x210] sm:$0xf]  ;;  %v6197_v62 = vor.u32 %v7545_v38, %v6194_v60  ;;  %v7553_v38 = vld [vmem:[%s11824_s0 + $0x25c] sm:$0xf] }
 0x320   :  { %v7548_v50 = vld [vmem:[%s11824_s0 + $0x22c] sm:$0xf0]  ;;  %v6226_v60 = vld [vmem:[%s11824_s0 + $0x278] sm:$0xf0] }
 0x321   :  { %v9725_v10 = vadd.f32 %v3352_v48, %v3139_v45  ;;  %v2928_v26 = vadd.f32 %v2927_v13, %v2714_v43  ;;  %3403 = vmatmul.bf16.gmra.mxu0 %v6153_v11  ;;  %v6185_v42 = vor.u32 %v7548_v50, %v6184_v52  ;;  %v6189_v48 = vor.u32 %v7544_v8, %v6186_v15  ;;  %v6216_v50 = vld [vmem:[%s11824_s0 + $0x250] sm:$0xf]  ;;  %v7552_v8 = vld [vmem:[%s11824_s0 + $0x254] sm:$0xf] }
 0x322   :  { %3617 = vmatmul.bf16.gmra.mxu1 %v6157_v40 }
 0x323   :  { %3831 = vmatmul.bf16.gmra.mxu2 %v6161_v54 }
 0x324   :  { %4045 = vmatmul.bf16.gmra.mxu3 %v6165_v35 }
 0x326   :  { %v3141_v27 = vpop.f32.mrf.mxu2  ;;  %v2715_v59 = vpop.f32.mrf.mxu0 }
 0x327   :  { %v3355_v53 = vpop.f32.mrf.mxu3  ;;  %v3142_v9 = vadd.f32 %v3141_v27, %v2928_v26  ;;  %v2929_v0 = vpop.f32.mrf.mxu1  ;;  %v6192_v59 = vld [vmem:[%s11824_s0 + $0x218] sm:$0xf] }
 0x329   :  { %v9727_v19 = vadd.f32 %v3355_v53, %v3142_v9  ;;  %v7549_v9 = vld [vmem:[%s11824_s0 + $0x234] sm:$0xf0] }
 0x32a   :  { %v6193_v45 = vor.u32 %v7549_v9, %v6192_v59  ;;  %v6218_v59 = vld [vmem:[%s11824_s0 + $0x270] sm:$0xf0]  ;;  %v7557_v9 = vld [vmem:[%s11824_s0 + $0x274] sm:$0xf0] }
 0x32b   :  { %11867 = vst [vmem:[#allocation44_spill] sm:$0xff] %v9727_v19 }
 0x32e   :  { %v3143_v18 = vpop.f32.mrf.mxu2  ;;  %v3369_v11 = vpop.f32.mrf.mxu0 }
 0x32f   :  { %v3357_v37 = vpop.f32.mrf.mxu3  ;;  %v3583_v40 = vpop.f32.mrf.mxu1  ;;  %v3370_v13 = vadd.f32 %v3369_v11, %v8446_v31  ;;  %v7556_v31 = vld [vmem:[%s11824_s0 + $0x26c] sm:$0xf0] }
 0x330   :  { %v6217_v11 = vor.u32 %v7556_v31, %v6216_v50 }
 0x331   :  { %3408 = vmatmul.bf16.gmra.mxu0 %v6185_v42  ;;  %v3584_v54 = vadd.f32 %v3583_v40, %v3370_v13  ;;  %v6221_v40 = vor.u32 %v7552_v8, %v6218_v59 }
 0x332   :  { %3622 = vmatmul.bf16.gmra.mxu1 %v6189_v48 }
 0x333   :  { %3836 = vmatmul.bf16.gmra.mxu2 %v6193_v45 }
 0x334   :  { %4050 = vmatmul.bf16.gmra.mxu3 %v6197_v62 }
 0x336   :  { %v3797_v35 = vpop.f32.mrf.mxu2  ;;  %v3371_v27 = vpop.f32.mrf.mxu0 }
 0x337   :  { %v4011_v43 = vpop.f32.mrf.mxu3  ;;  %v3798_v26 = vadd.f32 %v3797_v35, %v3584_v54  ;;  %v3585_v53 = vpop.f32.mrf.mxu1  ;;  %v3372_v52 = vadd.f32 %v3371_v27, %v8485_v55  ;;  %v6224_v55 = vld [vmem:[%s11824_s0 + $0x258] sm:$0xf]  ;;  %v6229_v35 = vor.u32 %v7553_v38, %v6226_v60 }
 0x338   :  { %v6225_v54 = vor.u32 %v7557_v9, %v6224_v55 }
 0x339   :  { %v4012_v0 = vadd.f32 %v4011_v43, %v3798_v26  ;;  %v3586_v37 = vadd.f32 %v3585_v53, %v3372_v52 }
 0x33b   :  { %v4216_v15 = vmax.f32 %v4012_v0, 0.0 }
 0x33d   :  { %v5221_v18 = vpack.c.bf16 %v4216_v15, %v4216_v15  ;;  %v4968_v27 = vmul.f32 %v4216_v15, %v4216_v15  ;;  %v4795_v0 = vsel %vm4794_vm1, %v4216_v15, 0.0 }
 0x33e   :  { %v3799_v42 = vpop.f32.mrf.mxu2  ;;  %v3374_v62 = vpop.f32.mrf.mxu0 }
 0x33f   :  { %v4013_v48 = vpop.f32.mrf.mxu3  ;;  %5308 = vst.msk [vmem:[%s11825_s3] sm:$0xf] %vm5307_vm0, %v5221_v18  ;;  %v3800_v45 = vadd.f32 %v3799_v42, %v3586_v37  ;;  %v3588_v13 = vpop.f32.mrf.mxu1  ;;  %v3375_v26 = vadd.f32 %v3374_v62, %v8488_v63  ;;  %v5050_v38 = vsel %vm4794_vm1, %v4968_v27, 0.0 }
 0x341   :  { %v4014_v43 = vadd.f32 %v4013_v48, %v3800_v45  ;;  %3413 = vmatmul.bf16.gmra.mxu0 %v6217_v11  ;;  %v3589_v8 = vadd.f32 %v3588_v13, %v3375_v26  ;;  %v6248_v11 = vld [vmem:[%s11824_s0 + $0x290] sm:$0xf]  ;;  %v7560_v45 = vld [vmem:[%s11824_s0 + $0x294] sm:$0xf] }
 0x342   :  { %3627 = vmatmul.bf16.gmra.mxu1 %v6221_v40  ;;  %v7564_v40 = vld [vmem:[%s11824_s0 + $0x2ac] sm:$0xf0]  ;;  %v6250_v13 = vld [vmem:[%s11824_s0 + $0x2b0] sm:$0xf0] }
 0x343   :  { %v4217_v53 = vmax.f32 %v4014_v43, 0.0  ;;  %3841 = vmatmul.bf16.gmra.mxu2 %v6225_v54  ;;  %v7565_v54 = vld [vmem:[%s11824_s0 + $0x2b4] sm:$0xf0]  ;;  %v6258_v43 = vld [vmem:[%s11824_s0 + $0x2b8] sm:$0xf0] }
 0x344   :  { %4055 = vmatmul.bf16.gmra.mxu3 %v6229_v35  ;;  %v7561_v35 = vld [vmem:[%s11824_s0 + $0x29c] sm:$0xf] }
 0x345   :  { %v4796_v52 = vsel %vm4794_vm1, %v4217_v53, 0.0  ;;  %v4969_v50 = vmul.f32 %v4217_v53, %v4217_v53  ;;  %v5222_v31 = vpack.c.bf16 %v4217_v53, %v4217_v53 }
 0x346   :  { %v4797_v59 = vadd.f32 %v4796_v52, %v4795_v0  ;;  %v3802_v55 = vpop.f32.mrf.mxu2  ;;  %v3376_v18 = vpop.f32.mrf.mxu0 }
 0x347   :  { %v4016_v9 = vpop.f32.mrf.mxu3  ;;  %v5051_v63 = vsel %vm4794_vm1, %v4969_v50, 0.0  ;;  %5309 = vst.msk [vmem:[%s11825_s3 + $0x4] sm:$0xf] %vm5307_vm0, %v5222_v31  ;;  %v3803_v60 = vadd.f32 %v3802_v55, %v3589_v8  ;;  %v3590_v15 = vpop.f32.mrf.mxu1  ;;  %v3377_v48 = vadd.f32 %v3376_v18, %v8515_v20  ;;  %v6256_v20 = vld [vmem:[%s11824_s0 + $0x298] sm:$0xf]  ;;  %v6249_v8 = vor.u32 %v7564_v40, %v6248_v11 }
 0x348   :  { %v5052_v37 = vadd.f32 %v5051_v63, %v5050_v38  ;;  %v6253_v55 = vor.u32 %v7560_v45, %v6250_v13  ;;  %v6257_v18 = vor.u32 %v7565_v54, %v6256_v20 }
 0x349   :  { %v4017_v42 = vadd.f32 %v4016_v9, %v3803_v60  ;;  %v3591_v0 = vadd.f32 %v3590_v15, %v3377_v48 }
 0x34b   :  { %v4218_v62 = vmax.f32 %v4017_v42, 0.0  ;;  %v6261_v42 = vor.u32 %v7561_v35, %v6258_v43 }
 0x34d   :  { %v4798_v26 = vsel %vm4794_vm1, %v4218_v62, 0.0  ;;  %v4970_v27 = vmul.f32 %v4218_v62, %v4218_v62  ;;  %v5223_v53 = vpack.c.bf16 %v4218_v62, %v4218_v62 }
 0x34e   :  { %v4799_v52 = vadd.f32 %v4798_v26, %v4797_v59  ;;  %v3804_v50 = vpop.f32.mrf.mxu2  ;;  %v3379_v63 = vpop.f32.mrf.mxu0 }
 0x34f   :  { %v4018_v31 = vpop.f32.mrf.mxu3  ;;  %v5053_v9 = vsel %vm4794_vm1, %v4970_v27, 0.0  ;;  %5310 = vst.msk [vmem:[%s11825_s3 + $0x8] sm:$0xf] %vm5307_vm0, %v5223_v53  ;;  %v3805_v38 = vadd.f32 %v3804_v50, %v3591_v0  ;;  %v3593_v60 = vpop.f32.mrf.mxu1  ;;  %v3380_v59 = vadd.f32 %v3379_v63, %v8518_v28  ;;  %v6280_v0 = vld [vmem:[%s11824_s0 + $0x2d0] sm:$0xf] }
 0x350   :  { %v5054_v19 = vadd.f32 %v5053_v9, %v5052_v37  ;;  %v7568_v50 = vld [vmem:[%s11824_s0 + $0x2d4] sm:$0xf]  ;;  %v6290_v9 = vld [vmem:[%s11824_s0 + $0x2f8] sm:$0xf0] }
 0x351   :  { %v4019_v62 = vadd.f32 %v4018_v31, %v3805_v38  ;;  %3418 = vmatmul.bf16.gmra.mxu0 %v6249_v8  ;;  %v3594_v45 = vadd.f32 %v3593_v60, %v3380_v59  ;;  %v7573_v8 = vld [vmem:[%s11824_s0 + $0x2f4] sm:$0xf0] }
 0x352   :  { %3632 = vmatmul.bf16.gmra.mxu1 %v6253_v55  ;;  %v7569_v55 = vld [vmem:[%s11824_s0 + $0x2dc] sm:$0xf] }
 0x353   :  { %v4219_v15 = vmax.f32 %v4019_v62, 0.0  ;;  %3846 = vmatmul.bf16.gmra.mxu2 %v6257_v18 }
 0x354   :  { %4060 = vmatmul.bf16.gmra.mxu3 %v6261_v42 }
 0x355   :  { %v4800_v48 = vsel %vm4794_vm1, %v4219_v15, 0.0  ;;  %v4971_v11 = vmul.f32 %v4219_v15, %v4219_v15  ;;  %v5224_v40 = vpack.c.bf16 %v4219_v15, %v4219_v15 }
 0x356   :  { %v4801_v13 = vadd.f32 %v4800_v48, %v4799_v52  ;;  %v3807_v26 = vpop.f32.mrf.mxu2  ;;  %v3381_v37 = vpop.f32.mrf.mxu0  ;;  %v7572_v52 = vld [vmem:[%s11824_s0 + $0x2ec] sm:$0xf0] }
 0x357   :  { %v4021_v27 = vpop.f32.mrf.mxu3  ;;  %v5055_v20 = vsel %vm4794_vm1, %v4971_v11, 0.0  ;;  %5311 = vst.msk [vmem:[%s11825_s3 + $0xc] sm:$0xf] %vm5307_vm0, %v5224_v40  ;;  %v3808_v28 = vadd.f32 %v3807_v26, %v3594_v45  ;;  %v3595_v54 = vpop.f32.mrf.mxu1  ;;  %v3382_v53 = vadd.f32 %v3381_v37, %v8545_v49  ;;  %v6288_v49 = vld [vmem:[%s11824_s0 + $0x2d8] sm:$0xf]  ;;  %v6281_v15 = vor.u32 %v7572_v52, %v6280_v0 }
 0x358   :  { %v5056_v35 = vadd.f32 %v5055_v20, %v5054_v19  ;;  %v6282_v19 = vld [vmem:[%s11824_s0 + $0x2f0] sm:$0xf0]  ;;  %v6293_v20 = vor.u32 %v7569_v55, %v6290_v9 }
 0x359   :  { %v4022_v43 = vadd.f32 %v4021_v27, %v3808_v28  ;;  %v3596_v18 = vadd.f32 %v3595_v54, %v3382_v53  ;;  %v6285_v48 = vor.u32 %v7568_v50, %v6282_v19  ;;  %v6289_v27 = vor.u32 %v7573_v8, %v6288_v49 }
 0x35b   :  { %v4220_v31 = vmax.f32 %v4022_v43, 0.0 }
 0x35d   :  { %v4802_v38 = vsel %vm4794_vm1, %v4220_v31, 0.0  ;;  %v4972_v63 = vmul.f32 %v4220_v31, %v4220_v31  ;;  %v5225_v60 = vpack.c.bf16 %v4220_v31, %v4220_v31 }
 0x35e   :  { %v4803_v42 = vadd.f32 %v4802_v38, %v4801_v13  ;;  %v3809_v62 = vpop.f32.mrf.mxu2  ;;  %v3384_v45 = vpop.f32.mrf.mxu0 }
 0x35f   :  { %v4023_v59 = vpop.f32.mrf.mxu3  ;;  %v5057_v11 = vsel %vm4794_vm1, %v4972_v63, 0.0  ;;  %5312 = vst.msk [vmem:[%s11825_s3 + $0x10] sm:$0xf] %vm5307_vm0, %v5225_v60  ;;  %v3810_v40 = vadd.f32 %v3809_v62, %v3596_v18  ;;  %v3598_v26 = vpop.f32.mrf.mxu1  ;;  %v3385_v13 = vadd.f32 %v3384_v45, %v8548_v58  ;;  %v6312_v63 = vld [vmem:[%s11824_s0 + $0x310] sm:$0xf] }
 0x360   :  { %v5058_v28 = vadd.f32 %v5057_v11, %v5056_v35  ;;  %v7580_v60 = vld [vmem:[%s11824_s0 + $0x32c] sm:$0xf0]  ;;  %v7576_v18 = vld [vmem:[%s11824_s0 + $0x314] sm:$0xf] }
 0x361   :  { %v4024_v37 = vadd.f32 %v4023_v59, %v3810_v40  ;;  %3423 = vmatmul.bf16.gmra.mxu0 %v6281_v15  ;;  %v3599_v52 = vadd.f32 %v3598_v26, %v3385_v13  ;;  %v6314_v62 = vld [vmem:[%s11824_s0 + $0x330] sm:$0xf0]  ;;  %v7581_v59 = vld [vmem:[%s11824_s0 + $0x334] sm:$0xf0]  ;;  %v7577_v15 = vld [vmem:[%s11824_s0 + $0x31c] sm:$0xf] }
 0x362   :  { %3637 = vmatmul.bf16.gmra.mxu1 %v6285_v48  ;;  %v6322_v48 = vld [vmem:[%s11824_s0 + $0x338] sm:$0xf0]  ;;  %v6317_v13 = vor.u32 %v7576_v18, %v6314_v62 }
 0x363   :  { %v4221_v54 = vmax.f32 %v4024_v37, 0.0  ;;  %3851 = vmatmul.bf16.gmra.mxu2 %v6289_v27  ;;  %v6313_v37 = vor.u32 %v7580_v60, %v6312_v63 }
 0x364   :  { %4065 = vmatmul.bf16.gmra.mxu3 %v6293_v20 }
 0x365   :  { %v4804_v43 = vsel %vm4794_vm1, %v4221_v54, 0.0  ;;  %v4973_v53 = vmul.f32 %v4221_v54, %v4221_v54  ;;  %v5226_v0 = vpack.c.bf16 %v4221_v54, %v4221_v54 }
 0x366   :  { %v4805_v50 = vadd.f32 %v4804_v43, %v4803_v42  ;;  %v3812_v31 = vpop.f32.mrf.mxu2  ;;  %v3386_v35 = vpop.f32.mrf.mxu0 }
 0x367   :  { %v4026_v19 = vpop.f32.mrf.mxu3  ;;  %v5059_v49 = vsel %vm4794_vm1, %v4973_v53, 0.0  ;;  %5313 = vst.msk [vmem:[%s11825_s3 + $0x14] sm:$0xf] %vm5307_vm0, %v5226_v0  ;;  %v3813_v58 = vadd.f32 %v3812_v31, %v3599_v52  ;;  %v3600_v8 = vpop.f32.mrf.mxu1  ;;  %v3387_v38 = vadd.f32 %v3386_v35, %v8575_v16  ;;  %v6320_v16 = vld [vmem:[%s11824_s0 + $0x318] sm:$0xf]  ;;  %v6325_v31 = vor.u32 %v7577_v15, %v6322_v48 }
 0x368   :  { %v5060_v55 = vadd.f32 %v5059_v49, %v5058_v28  ;;  %v6321_v52 = vor.u32 %v7581_v59, %v6320_v16  ;;  %v6344_v48 = vld [vmem:[%s11824_s0 + $0x350] sm:$0xf] }
 0x369   :  { %v4027_v9 = vadd.f32 %v4026_v19, %v3813_v58  ;;  %v3601_v26 = vadd.f32 %v3600_v8, %v3387_v38 }
 0x36b   :  { %v4222_v42 = vmax.f32 %v4027_v9, 0.0 }
 0x36d   :  { %v4806_v11 = vsel %vm4794_vm1, %v4222_v42, 0.0  ;;  %v4974_v40 = vmul.f32 %v4222_v42, %v4222_v42  ;;  %v5227_v45 = vpack.c.bf16 %v4222_v42, %v4222_v42 }
 0x36e   :  { %v4807_v27 = vadd.f32 %v4806_v11, %v4805_v50  ;;  %v3814_v20 = vpop.f32.mrf.mxu2  ;;  %v3389_v53 = vpop.f32.mrf.mxu0  ;;  %v7588_v11 = vld [vmem:[%s11824_s0 + $0x36c] sm:$0xf0] }
 0x36f   :  { %v4028_v28 = vpop.f32.mrf.mxu3  ;;  %v5061_v54 = vsel %vm4794_vm1, %v4974_v40, 0.0  ;;  %5314 = vst.msk [vmem:[%s11825_s3 + $0x18] sm:$0xf] %vm5307_vm0, %v5227_v45  ;;  %v3815_v43 = vadd.f32 %v3814_v20, %v3601_v26  ;;  %v3603_v0 = vpop.f32.mrf.mxu1  ;;  %v3390_v50 = vadd.f32 %v3389_v53, %v8578_v25  ;;  %v7584_v40 = vld [vmem:[%s11824_s0 + $0x354] sm:$0xf] }
 0x370   :  { %v5062_v19 = vadd.f32 %v5061_v54, %v5060_v55  ;;  %v6346_v26 = vld [vmem:[%s11824_s0 + $0x370] sm:$0xf0]  ;;  %v7585_v20 = vld [vmem:[%s11824_s0 + $0x35c] sm:$0xf] }
 0x371   :  { %v4029_v49 = vadd.f32 %v4028_v28, %v3815_v43  ;;  %3428 = vmatmul.bf16.gmra.mxu0 %v6313_v37  ;;  %v3604_v38 = vadd.f32 %v3603_v0, %v3390_v50  ;;  %v6354_v28 = vld [vmem:[%s11824_s0 + $0x378] sm:$0xf0] }
 0x372   :  { %3642 = vmatmul.bf16.gmra.mxu1 %v6317_v13 }
 0x373   :  { %v4223_v58 = vmax.f32 %v4029_v49, 0.0  ;;  %3856 = vmatmul.bf16.gmra.mxu2 %v6321_v52 }
 0x374   :  { %4070 = vmatmul.bf16.gmra.mxu3 %v6325_v31  ;;  %v6345_v31 = vor.u32 %v7588_v11, %v6344_v48 }
 0x375   :  { %v4808_v35 = vsel %vm4794_vm1, %v4223_v58, 0.0  ;;  %v4975_v8 = vmul.f32 %v4223_v58, %v4223_v58  ;;  %v5228_v9 = vpack.c.bf16 %v4223_v58, %v4223_v58 }
 0x376   :  { %v4809_v63 = vadd.f32 %v4808_v35, %v4807_v27  ;;  %v3817_v60 = vpop.f32.mrf.mxu2  ;;  %v3391_v55 = vpop.f32.mrf.mxu0  ;;  %v7589_v27 = vld [vmem:[%s11824_s0 + $0x374] sm:$0xf0] }
 0x377   :  { %v4031_v18 = vpop.f32.mrf.mxu3  ;;  %v5063_v42 = vsel %vm4794_vm1, %v4975_v8, 0.0  ;;  %5315 = vst.msk [vmem:[%s11825_s3 + $0x1c] sm:$0xf] %vm5307_vm0, %v5228_v9  ;;  %v3818_v25 = vadd.f32 %v3817_v60, %v3604_v38  ;;  %v3605_v62 = vpop.f32.mrf.mxu1  ;;  %v3392_v15 = vadd.f32 %v3391_v55, %v8605_v47  ;;  %v6352_v47 = vld [vmem:[%s11824_s0 + $0x358] sm:$0xf]  ;;  %v6357_v9 = vor.u32 %v7585_v20, %v6354_v28 }
 0x378   :  { %v5064_v16 = vadd.f32 %v5063_v42, %v5062_v19  ;;  %v6349_v19 = vor.u32 %v7584_v40, %v6346_v26  ;;  %v6353_v8 = vor.u32 %v7589_v27, %v6352_v47  ;;  %v6376_v27 = vld [vmem:[%s11824_s0 + $0x390] sm:$0xf]  ;;  %v7592_v28 = vld [vmem:[%s11824_s0 + $0x394] sm:$0xf] }
 0x379   :  { %v4032_v59 = vadd.f32 %v4031_v18, %v3818_v25  ;;  %v3606_v43 = vadd.f32 %v3605_v62, %v3392_v15  ;;  %v7596_v20 = vld [vmem:[%s11824_s0 + $0x3ac] sm:$0xf0] }
 0x37b   :  { %v4224_v45 = vmax.f32 %v4032_v59, 0.0 }
 0x37d   :  { %v4810_v37 = vsel %vm4794_vm1, %v4224_v45, 0.0  ;;  %v4976_v13 = vmul.f32 %v4224_v45, %v4224_v45  ;;  %v5229_v54 = vpack.c.bf16 %v4224_v45, %v4224_v45 }
 0x37e   :  { %v4811_v53 = vadd.f32 %v4810_v37, %v4809_v63  ;;  %v3819_v0 = vpop.f32.mrf.mxu2  ;;  %v3394_v58 = vpop.f32.mrf.mxu0 }
 0x37f   :  { %v4033_v52 = vpop.f32.mrf.mxu3  ;;  %v5065_v49 = vsel %vm4794_vm1, %v4976_v13, 0.0  ;;  %5316 = vst.msk [vmem:[%s11825_s3 + $0x20] sm:$0xf] %vm5307_vm0, %v5229_v54  ;;  %v3820_v50 = vadd.f32 %v3819_v0, %v3606_v43  ;;  %v3608_v35 = vpop.f32.mrf.mxu1  ;;  %v3395_v63 = vadd.f32 %v3394_v58, %v8608_v57  ;;  %v6378_v13 = vld [vmem:[%s11824_s0 + $0x3b0] sm:$0xf0] }
 0x380   :  { %v5066_v38 = vadd.f32 %v5065_v49, %v5064_v16  ;;  %v7597_v54 = vld [vmem:[%s11824_s0 + $0x3b4] sm:$0xf0]  ;;  %v7593_v43 = vld [vmem:[%s11824_s0 + $0x39c] sm:$0xf] }
 0x381   :  { %v4034_v60 = vadd.f32 %v4033_v52, %v3820_v50  ;;  %3433 = vmatmul.bf16.gmra.mxu0 %v6345_v31  ;;  %v3609_v62 = vadd.f32 %v3608_v35, %v3395_v63  ;;  %v6377_v35 = vor.u32 %v7596_v20, %v6376_v27 }
 0x382   :  { %3647 = vmatmul.bf16.gmra.mxu1 %v6349_v19 }
 0x383   :  { %v4225_v18 = vmax.f32 %v4034_v60, 0.0  ;;  %3861 = vmatmul.bf16.gmra.mxu2 %v6353_v8  ;;  %v6381_v8 = vor.u32 %v7592_v28, %v6378_v13  ;;  %v6408_v13 = vld [vmem:[%s11824_s0 + $0x3d0] sm:$0xf] }
 0x384   :  { %4075 = vmatmul.bf16.gmra.mxu3 %v6357_v9 }
 0x385   :  { %v4812_v42 = vsel %vm4794_vm1, %v4225_v18, 0.0  ;;  %v4977_v25 = vmul.f32 %v4225_v18, %v4225_v18  ;;  %v5230_v55 = vpack.c.bf16 %v4225_v18, %v4225_v18 }
 0x386   :  { %v4813_v59 = vadd.f32 %v4812_v42, %v4811_v53  ;;  %v3822_v15 = vpop.f32.mrf.mxu2  ;;  %v3396_v16 = vpop.f32.mrf.mxu0  ;;  %v6386_v53 = vld [vmem:[%s11824_s0 + $0x3b8] sm:$0xf0] }
 0x387   :  { %v4036_v48 = vpop.f32.mrf.mxu3  ;;  %v5067_v11 = vsel %vm4794_vm1, %v4977_v25, 0.0  ;;  %5317 = vst.msk [vmem:[%s11825_s3 + $0x24] sm:$0xf] %vm5307_vm0, %v5230_v55  ;;  %v3823_v57 = vadd.f32 %v3822_v15, %v3609_v62  ;;  %v3610_v40 = vpop.f32.mrf.mxu1  ;;  %v3397_v47 = vadd.f32 %v3396_v16, %v8647_v22  ;;  %v6384_v22 = vld [vmem:[%s11824_s0 + $0x398] sm:$0xf]  ;;  %v6389_v42 = vor.u32 %v7593_v43, %v6386_v53 }
 0x388   :  { %v5068_v45 = vadd.f32 %v5067_v11, %v5066_v38  ;;  %v6385_v18 = vor.u32 %v7597_v54, %v6384_v22  ;;  %v7604_v22 = vld [vmem:[%s11824_s0 + $0x3ec] sm:$0xf0]  ;;  %v7600_v54 = vld [vmem:[%s11824_s0 + $0x3d4] sm:$0xf] }
 0x389   :  { %v4037_v26 = vadd.f32 %v4036_v48, %v3823_v57  ;;  %v3611_v19 = vadd.f32 %v3610_v40, %v3397_v47  ;;  %v6410_v53 = vld [vmem:[%s11824_s0 + $0x3f0] sm:$0xf0] }
 0x38b   :  { %v4226_v37 = vmax.f32 %v4037_v26, 0.0 }
 0x38d   :  { %v4814_v0 = vsel %vm4794_vm1, %v4226_v37, 0.0  ;;  %v4978_v52 = vmul.f32 %v4226_v37, %v4226_v37  ;;  %v5231_v31 = vpack.c.bf16 %v4226_v37, %v4226_v37 }
 0x38e   :  { %v4815_v49 = vadd.f32 %v4814_v0, %v4813_v59  ;;  %v3824_v50 = vpop.f32.mrf.mxu2  ;;  %v3399_v60 = vpop.f32.mrf.mxu0  ;;  %v7605_v0 = vld [vmem:[%s11824_s0 + $0x3f4] sm:$0xf0] }
 0x38f   :  { %v4038_v58 = vpop.f32.mrf.mxu3  ;;  %v5069_v9 = vsel %vm4794_vm1, %v4978_v52, 0.0  ;;  %5318 = vst.msk [vmem:[%s11825_s3 + $0x28] sm:$0xf] %vm5307_vm0, %v5231_v31  ;;  %v3825_v38 = vadd.f32 %v3824_v50, %v3611_v19  ;;  %v3613_v63 = vpop.f32.mrf.mxu1  ;;  %v3400_v62 = vadd.f32 %v3399_v60, %v8650_v33  ;;  %v7601_v52 = vld [vmem:[%s11824_s0 + $0x3dc] sm:$0xf]  ;;  %v6413_v60 = vor.u32 %v7600_v54, %v6410_v53 }
 0x390   :  { %v5070_v25 = vadd.f32 %v5069_v9, %v5068_v45  ;;  %v6418_v31 = vld [vmem:[%s11824_s0 + $0x3f8] sm:$0xf0]  ;;  %v6440_v54 = vld [vmem:[%s11824_s0 + $0x410] sm:$0xf]  ;;  %v7608_v53 = vld [vmem:[%s11824_s0 + $0x414] sm:$0xf] }
 0x391   :  { %v4039_v55 = vadd.f32 %v4038_v58, %v3825_v38  ;;  %3438 = vmatmul.bf16.gmra.mxu0 %v6377_v35  ;;  %v3614_v57 = vadd.f32 %v3613_v63, %v3400_v62  ;;  %v6409_v38 = vor.u32 %v7604_v22, %v6408_v13  ;;  %v6421_v62 = vor.u32 %v7601_v52, %v6418_v31  ;;  %v7613_v52 = vld [vmem:[%s11824_s0 + $0x434] sm:$0xf0]  ;;  %v7609_v31 = vld [vmem:[%s11824_s0 + $0x41c] sm:$0xf] }
 0x392   :  { %3652 = vmatmul.bf16.gmra.mxu1 %v6381_v8 }
 0x393   :  { %v4227_v59 = vmax.f32 %v4039_v55, 0.0  ;;  %3866 = vmatmul.bf16.gmra.mxu2 %v6385_v18 }
 0x394   :  { %4080 = vmatmul.bf16.gmra.mxu3 %v6389_v42 }
 0x395   :  { %v4816_v15 = vsel %vm4794_vm1, %v4227_v59, 0.0  ;;  %v4979_v48 = vmul.f32 %v4227_v59, %v4227_v59  ;;  %v5232_v11 = vpack.c.bf16 %v4227_v59, %v4227_v59 }
 0x396   :  { %v4817_v16 = vadd.f32 %v4816_v15, %v4815_v49  ;;  %v3827_v40 = vpop.f32.mrf.mxu2  ;;  %v3401_v45 = vpop.f32.mrf.mxu0 }
 0x397   :  { %v4041_v26 = vpop.f32.mrf.mxu3  ;;  %v5071_v47 = vsel %vm4794_vm1, %v4979_v48, 0.0  ;;  %5319 = vst.msk [vmem:[%s11825_s3 + $0x2c] sm:$0xf] %vm5307_vm0, %v5232_v11  ;;  %v3828_v33 = vadd.f32 %v3827_v40, %v3614_v57  ;;  %v3615_v27 = vpop.f32.mrf.mxu1  ;;  %v3402_v37 = vadd.f32 %v3401_v45, %v8677_v56  ;;  %v6416_v56 = vld [vmem:[%s11824_s0 + $0x3d8] sm:$0xf] }
 0x398   :  { %v5072_v20 = vadd.f32 %v5071_v47, %v5070_v25  ;;  %v6417_v55 = vor.u32 %v7605_v0, %v6416_v56  ;;  %v6442_v0 = vld [vmem:[%s11824_s0 + $0x430] sm:$0xf0] }
 0x399   :  { %v4042_v28 = vadd.f32 %v4041_v26, %v3828_v33  ;;  %v3616_v58 = vadd.f32 %v3615_v27, %v3402_v37 }
 0x39b   :  { %v4228_v43 = vmax.f32 %v4042_v28, 0.0 }
 0x39d   :  { %v4818_v19 = vsel %vm4794_vm1, %v4228_v43, 0.0  ;;  %v4980_v49 = vmul.f32 %v4228_v43, %v4228_v43  ;;  %v5233_v50 = vpack.c.bf16 %v4228_v43, %v4228_v43  ;;  %v7612_v43 = vld [vmem:[%s11824_s0 + $0x42c] sm:$0xf0] }
 0x39e   :  { %v4819_v35 = vadd.f32 %v4818_v19, %v4817_v16  ;;  %v3829_v8 = vpop.f32.mrf.mxu2  ;;  %v3404_v42 = vpop.f32.mrf.mxu0  ;;  %v6450_v19 = vld [vmem:[%s11824_s0 + $0x438] sm:$0xf0] }
 0x39f   :  { %v4043_v9 = vpop.f32.mrf.mxu3  ;;  %v5073_v63 = vsel %vm4794_vm1, %v4980_v49, 0.0  ;;  %5320 = vst.msk [vmem:[%s11825_s3 + $0x30] sm:$0xf] %vm5307_vm0, %v5233_v50  ;;  %v3830_v18 = vadd.f32 %v3829_v8, %v3616_v58  ;;  %v3618_v25 = vpop.f32.mrf.mxu1  ;;  %v3405_v48 = vadd.f32 %v3404_v42, %v8680_v3 }
 0x3a0   :  { %v5074_v59 = vadd.f32 %v5073_v63, %v5072_v20  ;;  %v6445_v63 = vor.u32 %v7608_v53, %v6442_v0  ;;  %v7616_v53 = vld [vmem:[%s11824_s0 + $0x454] sm:$0xf] }
 0x3a1   :  { %v4044_v15 = vadd.f32 %v4043_v9, %v3830_v18  ;;  %3443 = vmatmul.bf16.gmra.mxu0 %v6409_v38  ;;  %v3619_v26 = vadd.f32 %v3618_v25, %v3405_v48  ;;  %v6474_v0 = vld [vmem:[%s11824_s0 + $0x470] sm:$0xf0] }
 0x3a2   :  { %3657 = vmatmul.bf16.gmra.mxu1 %v6413_v60  ;;  %v6441_v60 = vor.u32 %v7612_v43, %v6440_v54  ;;  %v6472_v54 = vld [vmem:[%s11824_s0 + $0x450] sm:$0xf] }
 0x3a3   :  { %v4229_v11 = vmax.f32 %v4044_v15, 0.0  ;;  %3871 = vmatmul.bf16.gmra.mxu2 %v6417_v55  ;;  %v7620_v43 = vld [vmem:[%s11824_s0 + $0x46c] sm:$0xf0] }
 0x3a4   :  { %4085 = vmatmul.bf16.gmra.mxu3 %v6421_v62 }
 0x3a5   :  { %v4820_v57 = vsel %vm4794_vm1, %v4229_v11, 0.0  ;;  %v4981_v16 = vmul.f32 %v4229_v11, %v4229_v11  ;;  %v5234_v40 = vpack.c.bf16 %v4229_v11, %v4229_v11 }
 0x3a6   :  { %v4821_v47 = vadd.f32 %v4820_v57, %v4819_v35  ;;  %v3832_v33 = vpop.f32.mrf.mxu2  ;;  %v3406_v20 = vpop.f32.mrf.mxu0 }
 0x3a7   :  { %v4046_v45 = vpop.f32.mrf.mxu3  ;;  %v5075_v27 = vsel %vm4794_vm1, %v4981_v16, 0.0  ;;  %5321 = vst.msk [vmem:[%s11825_s3 + $0x34] sm:$0xf] %vm5307_vm0, %v5234_v40  ;;  %v3833_v3 = vadd.f32 %v3832_v33, %v3619_v26  ;;  %v3620_v28 = vpop.f32.mrf.mxu1  ;;  %v3407_v22 = vadd.f32 %v3406_v20, %v8707_v29  ;;  %v6448_v29 = vld [vmem:[%s11824_s0 + $0x418] sm:$0xf] }
 0x3a8   :  { %v5076_v37 = vadd.f32 %v5075_v27, %v5074_v59  ;;  %v6449_v62 = vor.u32 %v7613_v52, %v6448_v29  ;;  %v6453_v59 = vor.u32 %v7609_v31, %v6450_v19  ;;  %v7621_v29 = vld [vmem:[%s11824_s0 + $0x474] sm:$0xf0]  ;;  %v7617_v52 = vld [vmem:[%s11824_s0 + $0x45c] sm:$0xf] }
 0x3a9   :  { %v4047_v13 = vadd.f32 %v4046_v45, %v3833_v3  ;;  %v3621_v35 = vadd.f32 %v3620_v28, %v3407_v22  ;;  %v6482_v31 = vld [vmem:[%s11824_s0 + $0x478] sm:$0xf0] }
 0x3ab   :  { %v4230_v56 = vmax.f32 %v4047_v13, 0.0 }
 0x3ad   :  { %v4822_v49 = vsel %vm4794_vm1, %v4230_v56, 0.0  ;;  %v4982_v50 = vmul.f32 %v4230_v56, %v4230_v56  ;;  %v5235_v58 = vpack.c.bf16 %v4230_v56, %v4230_v56 }
 0x3ae   :  { %v4823_v8 = vadd.f32 %v4822_v49, %v4821_v47  ;;  %v3834_v9 = vpop.f32.mrf.mxu2  ;;  %v3409_v25 = vpop.f32.mrf.mxu0 }
 0x3af   :  { %v4048_v38 = vpop.f32.mrf.mxu3  ;;  %v5077_v18 = vsel %vm4794_vm1, %v4982_v50, 0.0  ;;  %5322 = vst.msk [vmem:[%s11825_s3 + $0x38] sm:$0xf] %vm5307_vm0, %v5235_v58  ;;  %v3835_v42 = vadd.f32 %v3834_v9, %v3621_v35  ;;  %v3623_v55 = vpop.f32.mrf.mxu1  ;;  %v3410_v11 = vadd.f32 %v3409_v25, %v8710_v39 }
 0x3b0   :  { %v5078_v15 = vadd.f32 %v5077_v18, %v5076_v37 }
 0x3b1   :  { %v4049_v48 = vadd.f32 %v4048_v38, %v3835_v42  ;;  %3448 = vmatmul.bf16.gmra.mxu0 %v6441_v60  ;;  %v3624_v47 = vadd.f32 %v3623_v55, %v3410_v11  ;;  %v6473_v38 = vor.u32 %v7620_v43, %v6472_v54  ;;  %v6477_v60 = vor.u32 %v7616_v53, %v6474_v0  ;;  %v7624_v54 = vld [vmem:[%s11824_s0 + $0x494] sm:$0xf]  ;;  %v7625_v0 = vld [vmem:[%s11824_s0 + $0x49c] sm:$0xf] }
 0x3b2   :  { %3662 = vmatmul.bf16.gmra.mxu1 %v6445_v63  ;;  %v6506_v53 = vld [vmem:[%s11824_s0 + $0x4b0] sm:$0xf0] }
 0x3b3   :  { %v4231_v57 = vmax.f32 %v4049_v48, 0.0  ;;  %3876 = vmatmul.bf16.gmra.mxu2 %v6449_v62  ;;  %v6485_v62 = vor.u32 %v7617_v52, %v6482_v31 }
 0x3b4   :  { %4090 = vmatmul.bf16.gmra.mxu3 %v6453_v59 }
 0x3b5   :  { %v4824_v16 = vsel %vm4794_vm1, %v4231_v57, 0.0  ;;  %v4983_v40 = vmul.f32 %v4231_v57, %v4231_v57  ;;  %v5236_v26 = vpack.c.bf16 %v4231_v57, %v4231_v57 }
 0x3b6   :  { %v4825_v33 = vadd.f32 %v4824_v16, %v4823_v8  ;;  %v3837_v45 = vpop.f32.mrf.mxu2  ;;  %v3411_v20 = vpop.f32.mrf.mxu0 }
 0x3b7   :  { %v4051_v27 = vpop.f32.mrf.mxu3  ;;  %v5079_v3 = vsel %vm4794_vm1, %v4983_v40, 0.0  ;;  %5323 = vst.msk [vmem:[%s11825_s3 + $0x3c] sm:$0xf] %vm5307_vm0, %v5236_v26  ;;  %v3838_v39 = vadd.f32 %v3837_v45, %v3624_v47  ;;  %v3625_v28 = vpop.f32.mrf.mxu1  ;;  %v3412_v22 = vadd.f32 %v3411_v20, %v8737_v2  ;;  %v6480_v2 = vld [vmem:[%s11824_s0 + $0x458] sm:$0xf] }
 0x3b8   :  { %v5080_v37 = vadd.f32 %v5079_v3, %v5078_v15  ;;  %v6481_v55 = vor.u32 %v7621_v29, %v6480_v2  ;;  %v6514_v2 = vld [vmem:[%s11824_s0 + $0x4b8] sm:$0xf0] }
 0x3b9   :  { %v4052_v13 = vadd.f32 %v4051_v27, %v3838_v39  ;;  %v3626_v58 = vadd.f32 %v3625_v28, %v3412_v22  ;;  %v7628_v22 = vld [vmem:[%s11824_s0 + $0x4ac] sm:$0xf0] }
 0x3bb   :  { %v4232_v56 = vmax.f32 %v4052_v13, 0.0  ;;  %v6504_v13 = vld [vmem:[%s11824_s0 + $0x490] sm:$0xf] }
 0x3bd   :  { %v4826_v19 = vsel %vm4794_vm1, %v4232_v56, 0.0  ;;  %v4984_v49 = vmul.f32 %v4232_v56, %v4232_v56  ;;  %v5237_v50 = vpack.c.bf16 %v4232_v56, %v4232_v56  ;;  %v7629_v56 = vld [vmem:[%s11824_s0 + $0x4b4] sm:$0xf0] }
 0x3be   :  { %v4827_v35 = vadd.f32 %v4826_v19, %v4825_v33  ;;  %v3839_v8 = vpop.f32.mrf.mxu2  ;;  %v3414_v42 = vpop.f32.mrf.mxu0 }
 0x3bf   :  { %v4053_v9 = vpop.f32.mrf.mxu3  ;;  %v5081_v63 = vsel %vm4794_vm1, %v4984_v49, 0.0  ;;  %5324 = vst.msk [vmem:[%s11825_s3 + $0x40] sm:$0xf] %vm5307_vm0, %v5237_v50  ;;  %v3840_v18 = vadd.f32 %v3839_v8, %v3626_v58  ;;  %v3628_v25 = vpop.f32.mrf.mxu1  ;;  %v3415_v48 = vadd.f32 %v3414_v42, %v8740_v12  ;;  %v6509_v8 = vor.u32 %v7624_v54, %v6506_v53  ;;  %v7633_v54 = vld [vmem:[%s11824_s0 + $0x4dc] sm:$0xf] }
 0x3c0   :  { %v5082_v59 = vadd.f32 %v5081_v63, %v5080_v37  ;;  %v6517_v42 = vor.u32 %v7625_v0, %v6514_v2 }
 0x3c1   :  { %v4054_v15 = vadd.f32 %v4053_v9, %v3840_v18  ;;  %3453 = vmatmul.bf16.gmra.mxu0 %v6473_v38  ;;  %v3629_v26 = vadd.f32 %v3628_v25, %v3415_v48 }
 0x3c2   :  { %3667 = vmatmul.bf16.gmra.mxu1 %v6477_v60 }
 0x3c3   :  { %v4233_v11 = vmax.f32 %v4054_v15, 0.0  ;;  %3881 = vmatmul.bf16.gmra.mxu2 %v6481_v55 }
 0x3c4   :  { %4095 = vmatmul.bf16.gmra.mxu3 %v6485_v62 }
 0x3c5   :  { %v4828_v57 = vsel %vm4794_vm1, %v4233_v11, 0.0  ;;  %v4985_v16 = vmul.f32 %v4233_v11, %v4233_v11  ;;  %v5238_v40 = vpack.c.bf16 %v4233_v11, %v4233_v11 }
 0x3c6   :  { %v4829_v47 = vadd.f32 %v4828_v57, %v4827_v35  ;;  %v3842_v33 = vpop.f32.mrf.mxu2  ;;  %v3416_v3 = vpop.f32.mrf.mxu0  ;;  %v6505_v35 = vor.u32 %v7628_v22, %v6504_v13  ;;  %v6538_v13 = vld [vmem:[%s11824_s0 + $0x4f0] sm:$0xf0]  ;;  %v7637_v22 = vld [vmem:[%s11824_s0 + $0x4f4] sm:$0xf0] }
 0x3c7   :  { %v4056_v45 = vpop.f32.mrf.mxu3  ;;  %v5083_v27 = vsel %vm4794_vm1, %v4985_v16, 0.0  ;;  %5325 = vst.msk [vmem:[%s11825_s3 + $0x44] sm:$0xf] %vm5307_vm0, %v5238_v40  ;;  %v3843_v12 = vadd.f32 %v3842_v33, %v3629_v26  ;;  %v3630_v39 = vpop.f32.mrf.mxu1  ;;  %v3417_v37 = vadd.f32 %v3416_v3, %v8767_v41  ;;  %v6512_v41 = vld [vmem:[%s11824_s0 + $0x498] sm:$0xf] }
 0x3c8   :  { %v5084_v20 = vadd.f32 %v5083_v27, %v5082_v59  ;;  %v6513_v18 = vor.u32 %v7629_v56, %v6512_v41 }
 0x3c9   :  { %v4057_v28 = vadd.f32 %v4056_v45, %v3843_v12  ;;  %v3631_v19 = vadd.f32 %v3630_v39, %v3417_v37  ;;  %v6536_v39 = vld [vmem:[%s11824_s0 + $0x4d0] sm:$0xf] }
 0x3cb   :  { %v4234_v43 = vmax.f32 %v4057_v28, 0.0  ;;  %v7632_v28 = vld [vmem:[%s11824_s0 + $0x4d4] sm:$0xf] }
 0x3cd   :  { %v4830_v29 = vsel %vm4794_vm1, %v4234_v43, 0.0  ;;  %v4986_v52 = vmul.f32 %v4234_v43, %v4234_v43  ;;  %v5239_v31 = vpack.c.bf16 %v4234_v43, %v4234_v43  ;;  %v6546_v43 = vld [vmem:[%s11824_s0 + $0x4f8] sm:$0xf0] }
 0x3ce   :  { %v4831_v49 = vadd.f32 %v4830_v29, %v4829_v47  ;;  %v3844_v50 = vpop.f32.mrf.mxu2  ;;  %v3419_v60 = vpop.f32.mrf.mxu0 }
 0x3cf   :  { %v4058_v58 = vpop.f32.mrf.mxu3  ;;  %v5085_v9 = vsel %vm4794_vm1, %v4986_v52, 0.0  ;;  %5326 = vst.msk [vmem:[%s11825_s3 + $0x48] sm:$0xf] %vm5307_vm0, %v5239_v31  ;;  %v3845_v38 = vadd.f32 %v3844_v50, %v3631_v19  ;;  %v3633_v63 = vpop.f32.mrf.mxu1  ;;  %v3420_v62 = vadd.f32 %v3419_v60, %v8770_v51  ;;  %v6541_v19 = vor.u32 %v7632_v28, %v6538_v13 }
 0x3d0   :  { %v5086_v25 = vadd.f32 %v5085_v9, %v5084_v20  ;;  %v7636_v20 = vld [vmem:[%s11824_s0 + $0x4ec] sm:$0xf0]  ;;  %v6549_v9 = vor.u32 %v7633_v54, %v6546_v43 }
 0x3d1   :  { %v4059_v55 = vadd.f32 %v4058_v58, %v3845_v38  ;;  %3458 = vmatmul.bf16.gmra.mxu0 %v6505_v35  ;;  %v3634_v57 = vadd.f32 %v3633_v63, %v3420_v62  ;;  %v6537_v31 = vor.u32 %v7636_v20, %v6536_v39  ;;  %v7641_v39 = vld [vmem:[%s11824_s0 + $0x51c] sm:$0xf] }
 0x3d2   :  { %3672 = vmatmul.bf16.gmra.mxu1 %v6509_v8  ;;  %v6578_v20 = vld [vmem:[%s11824_s0 + $0x538] sm:$0xf0] }
 0x3d3   :  { %v4235_v59 = vmax.f32 %v4059_v55, 0.0  ;;  %3886 = vmatmul.bf16.gmra.mxu2 %v6513_v18 }
 0x3d4   :  { %4100 = vmatmul.bf16.gmra.mxu3 %v6517_v42 }
 0x3d5   :  { %v4832_v15 = vsel %vm4794_vm1, %v4235_v59, 0.0  ;;  %v4987_v48 = vmul.f32 %v4235_v59, %v4235_v59  ;;  %v5240_v11 = vpack.c.bf16 %v4235_v59, %v4235_v59 }
 0x3d6   :  { %v4833_v16 = vadd.f32 %v4832_v15, %v4831_v49  ;;  %v3847_v40 = vpop.f32.mrf.mxu2  ;;  %v3421_v33 = vpop.f32.mrf.mxu0 }
 0x3d7   :  { %v4061_v26 = vpop.f32.mrf.mxu3  ;;  %v5087_v47 = vsel %vm4794_vm1, %v4987_v48, 0.0  ;;  %5327 = vst.msk [vmem:[%s11825_s3 + $0x4c] sm:$0xf] %vm5307_vm0, %v5240_v11  ;;  %v3848_v51 = vadd.f32 %v3847_v40, %v3634_v57  ;;  %v3635_v45 = vpop.f32.mrf.mxu1  ;;  %v3422_v3 = vadd.f32 %v3421_v33, %v8806_v21  ;;  %v6544_v21 = vld [vmem:[%s11824_s0 + $0x4d8] sm:$0xf] }
 0x3d8   :  { %v5088_v27 = vadd.f32 %v5087_v47, %v5086_v25  ;;  %v6545_v8 = vor.u32 %v7637_v22, %v6544_v21  ;;  %v7644_v33 = vld [vmem:[%s11824_s0 + $0x52c] sm:$0xf0] }
 0x3d9   :  { %v4062_v12 = vadd.f32 %v4061_v26, %v3848_v51  ;;  %v3636_v0 = vadd.f32 %v3635_v45, %v3422_v3  ;;  %v6568_v51 = vld [vmem:[%s11824_s0 + $0x510] sm:$0xf]  ;;  %v7640_v45 = vld [vmem:[%s11824_s0 + $0x514] sm:$0xf]  ;;  %v7645_v3 = vld [vmem:[%s11824_s0 + $0x534] sm:$0xf0] }
 0x3db   :  { %v4236_v37 = vmax.f32 %v4062_v12, 0.0  ;;  %v6570_v12 = vld [vmem:[%s11824_s0 + $0x530] sm:$0xf0] }
 0x3dd   :  { %v4834_v53 = vsel %vm4794_vm1, %v4236_v37, 0.0  ;;  %v4988_v41 = vmul.f32 %v4236_v37, %v4236_v37  ;;  %v5241_v56 = vpack.c.bf16 %v4236_v37, %v4236_v37 }
 0x3de   :  { %v4835_v2 = vadd.f32 %v4834_v53, %v4833_v16  ;;  %v3849_v29 = vpop.f32.mrf.mxu2  ;;  %v3424_v58 = vpop.f32.mrf.mxu0  ;;  %v6569_v53 = vor.u32 %v7644_v33, %v6568_v51 }
 0x3df   :  { %v4063_v52 = vpop.f32.mrf.mxu3  ;;  %v5089_v49 = vsel %vm4794_vm1, %v4988_v41, 0.0  ;;  %5328 = vst.msk [vmem:[%s11825_s3 + $0x50] sm:$0xf] %vm5307_vm0, %v5241_v56  ;;  %v3850_v50 = vadd.f32 %v3849_v29, %v3636_v0  ;;  %v3638_v35 = vpop.f32.mrf.mxu1  ;;  %v3425_v63 = vadd.f32 %v3424_v58, %v8812_v36  ;;  %v6573_v41 = vor.u32 %v7640_v45, %v6570_v12 }
 0x3e0   :  { %v5090_v38 = vadd.f32 %v5089_v49, %v5088_v27 }
 0x3e1   :  { %v4064_v60 = vadd.f32 %v4063_v52, %v3850_v50  ;;  %3463 = vmatmul.bf16.gmra.mxu0 %v6537_v31  ;;  %v3639_v62 = vadd.f32 %v3638_v35, %v3425_v63  ;;  %v6581_v31 = vor.u32 %v7641_v39, %v6578_v20 }
 0x3e2   :  { %3677 = vmatmul.bf16.gmra.mxu1 %v6541_v19 }
 0x3e3   :  { %v4237_v18 = vmax.f32 %v4064_v60, 0.0  ;;  %3891 = vmatmul.bf16.gmra.mxu2 %v6545_v8 }
 0x3e4   :  { %4105 = vmatmul.bf16.gmra.mxu3 %v6549_v9 }
 0x3e5   :  { %v4836_v42 = vsel %vm4794_vm1, %v4237_v18, 0.0  ;;  %v4989_v25 = vmul.f32 %v4237_v18, %v4237_v18  ;;  %v5242_v55 = vpack.c.bf16 %v4237_v18, %v4237_v18 }
 0x3e6   :  { %v4837_v59 = vadd.f32 %v4836_v42, %v4835_v2  ;;  %v3852_v15 = vpop.f32.mrf.mxu2  ;;  %v3426_v57 = vpop.f32.mrf.mxu0 }
 0x3e7   :  { %v4066_v48 = vpop.f32.mrf.mxu3  ;;  %v5091_v11 = vsel %vm4794_vm1, %v4989_v25, 0.0  ;;  %5329 = vst.msk [vmem:[%s11825_s3 + $0x54] sm:$0xf] %vm5307_vm0, %v5242_v55  ;;  %v3853_v36 = vadd.f32 %v3852_v15, %v3639_v62  ;;  %v3640_v16 = vpop.f32.mrf.mxu1  ;;  %v3427_v47 = vadd.f32 %v3426_v57, %v8839_v4  ;;  %v6576_v4 = vld [vmem:[%s11824_s0 + $0x518] sm:$0xf] }
 0x3e8   :  { %v5092_v40 = vadd.f32 %v5091_v11, %v5090_v38  ;;  %v6577_v52 = vor.u32 %v7645_v3, %v6576_v4  ;;  %v7652_v11 = vld [vmem:[%s11824_s0 + $0x56c] sm:$0xf0] }
 0x3e9   :  { %v4067_v26 = vadd.f32 %v4066_v48, %v3853_v36  ;;  %v3641_v21 = vadd.f32 %v3640_v16, %v3427_v47  ;;  %v6600_v48 = vld [vmem:[%s11824_s0 + $0x550] sm:$0xf]  ;;  %v7648_v36 = vld [vmem:[%s11824_s0 + $0x554] sm:$0xf]  ;;  %v6610_v47 = vld [vmem:[%s11824_s0 + $0x578] sm:$0xf0] }
 0x3ea   :  { %v6602_v16 = vld [vmem:[%s11824_s0 + $0x570] sm:$0xf0]  ;;  %v6601_v39 = vor.u32 %v7652_v11, %v6600_v48 }
 0x3eb   :  { %v4238_v27 = vmax.f32 %v4067_v26, 0.0  ;;  %v7649_v26 = vld [vmem:[%s11824_s0 + $0x55c] sm:$0xf]  ;;  %v6605_v20 = vor.u32 %v7648_v36, %v6602_v16 }
 0x3ed   :  { %v4838_v28 = vsel %vm4794_vm1, %v4238_v27, 0.0  ;;  %v4990_v37 = vmul.f32 %v4238_v27, %v4238_v27  ;;  %v5243_v13 = vpack.c.bf16 %v4238_v27, %v4238_v27 }
 0x3ee   :  { %v4839_v22 = vadd.f32 %v4838_v28, %v4837_v59  ;;  %v3854_v54 = vpop.f32.mrf.mxu2  ;;  %v3429_v2 = vpop.f32.mrf.mxu0 }
 0x3ef   :  { %v4068_v43 = vpop.f32.mrf.mxu3  ;;  %v5093_v56 = vsel %vm4794_vm1, %v4990_v37, 0.0  ;;  %5330 = vst.msk [vmem:[%s11825_s3 + $0x58] sm:$0xf] %vm5307_vm0, %v5243_v13  ;;  %v3855_v0 = vadd.f32 %v3854_v54, %v3641_v21  ;;  %v3643_v29 = vpop.f32.mrf.mxu1  ;;  %v3430_v50 = vadd.f32 %v3429_v2, %v8842_v14  ;;  %v6613_v54 = vor.u32 %v7649_v26, %v6610_v47 }
 0x3f0   :  { %v5094_v19 = vadd.f32 %v5093_v56, %v5092_v40  ;;  %v7653_v40 = vld [vmem:[%s11824_s0 + $0x574] sm:$0xf0] }
 0x3f1   :  { %v4069_v49 = vadd.f32 %v4068_v43, %v3855_v0  ;;  %3468 = vmatmul.bf16.gmra.mxu0 %v6569_v53  ;;  %v3644_v38 = vadd.f32 %v3643_v29, %v3430_v50 }
 0x3f2   :  { %3682 = vmatmul.bf16.gmra.mxu1 %v6573_v41 }
 0x3f3   :  { %v4239_v58 = vmax.f32 %v4069_v49, 0.0  ;;  %3896 = vmatmul.bf16.gmra.mxu2 %v6577_v52 }
 0x3f4   :  { %4110 = vmatmul.bf16.gmra.mxu3 %v6581_v31 }
 0x3f5   :  { %v4840_v35 = vsel %vm4794_vm1, %v4239_v58, 0.0  ;;  %v4991_v8 = vmul.f32 %v4239_v58, %v4239_v58  ;;  %v5244_v9 = vpack.c.bf16 %v4239_v58, %v4239_v58 }
 0x3f6   :  { %v4841_v60 = vadd.f32 %v4840_v35, %v4839_v22  ;;  %v3857_v63 = vpop.f32.mrf.mxu2  ;;  %v3431_v25 = vpop.f32.mrf.mxu0 }
 0x3f7   :  { %v4071_v18 = vpop.f32.mrf.mxu3  ;;  %v5095_v42 = vsel %vm4794_vm1, %v4991_v8, 0.0  ;;  %5331 = vst.msk [vmem:[%s11825_s3 + $0x5c] sm:$0xf] %vm5307_vm0, %v5244_v9  ;;  %v3858_v14 = vadd.f32 %v3857_v63, %v3644_v38  ;;  %v3645_v55 = vpop.f32.mrf.mxu1  ;;  %v3432_v15 = vadd.f32 %v3431_v25, %v8869_v46  ;;  %v6608_v46 = vld [vmem:[%s11824_s0 + $0x558] sm:$0xf] }
 0x3f8   :  { %v5096_v62 = vadd.f32 %v5095_v42, %v5094_v19  ;;  %v6609_v22 = vor.u32 %v7653_v40, %v6608_v46  ;;  %v7660_v63 = vld [vmem:[%s11824_s0 + $0x5ac] sm:$0xf0]  ;;  %v7661_v25 = vld [vmem:[%s11824_s0 + $0x5b4] sm:$0xf0] }
 0x3f9   :  { %v4072_v59 = vadd.f32 %v4071_v18, %v3858_v14  ;;  %v3646_v27 = vadd.f32 %v3645_v55, %v3432_v15  ;;  %v7656_v18 = vld [vmem:[%s11824_s0 + $0x594] sm:$0xf]  ;;  %v7657_v55 = vld [vmem:[%s11824_s0 + $0x59c] sm:$0xf] }
 0x3fa   :  { %v6634_v14 = vld [vmem:[%s11824_s0 + $0x5b0] sm:$0xf0] }
 0x3fb   :  { %v4240_v57 = vmax.f32 %v4072_v59, 0.0  ;;  %v6637_v40 = vor.u32 %v7656_v18, %v6634_v14 }
 0x3fd   :  { %v4842_v51 = vsel %vm4794_vm1, %v4240_v57, 0.0  ;;  %v4992_v33 = vmul.f32 %v4240_v57, %v4240_v57  ;;  %v5245_v45 = vpack.c.bf16 %v4240_v57, %v4240_v57 }
 0x3fe   :  { %v4843_v12 = vadd.f32 %v4842_v51, %v4841_v60  ;;  %v3859_v4 = vpop.f32.mrf.mxu2  ;;  %v3434_v13 = vpop.f32.mrf.mxu0  ;;  %v6632_v60 = vld [vmem:[%s11824_s0 + $0x590] sm:$0xf] }
 0x3ff   :  { %v4073_v3 = vpop.f32.mrf.mxu3  ;;  %v5097_v28 = vsel %vm4794_vm1, %v4992_v33, 0.0  ;;  %5332 = vst.msk [vmem:[%s11825_s3 + $0x60] sm:$0xf] %vm5307_vm0, %v5245_v45  ;;  %v3860_v37 = vadd.f32 %v3859_v4, %v3646_v27  ;;  %v3648_v21 = vpop.f32.mrf.mxu1  ;;  %v3435_v41 = vadd.f32 %v3434_v13, %v8872_v61  ;;  %v6633_v46 = vor.u32 %v7660_v63, %v6632_v60 }
 0x400   :  { %v5098_v43 = vadd.f32 %v5097_v28, %v5096_v62  ;;  %v6642_v62 = vld [vmem:[%s11824_s0 + $0x5b8] sm:$0xf0] }
 0x401   :  { %v4074_v53 = vadd.f32 %v4073_v3, %v3860_v37  ;;  %3473 = vmatmul.bf16.gmra.mxu0 %v6601_v39  ;;  %v3649_v52 = vadd.f32 %v3648_v21, %v3435_v41  ;;  %v6645_v27 = vor.u32 %v7657_v55, %v6642_v62 }
 0x402   :  { %3687 = vmatmul.bf16.gmra.mxu1 %v6605_v20 }
 0x403   :  { %v4241_v56 = vmax.f32 %v4074_v53, 0.0  ;;  %3901 = vmatmul.bf16.gmra.mxu2 %v6609_v22 }
 0x404   :  { %4115 = vmatmul.bf16.gmra.mxu3 %v6613_v54 }
 0x405   :  { %v4844_v0 = vsel %vm4794_vm1, %v4241_v56, 0.0  ;;  %v4993_v2 = vmul.f32 %v4241_v56, %v4241_v56  ;;  %v5246_v29 = vpack.c.bf16 %v4241_v56, %v4241_v56 }
 0x406   :  { %v4845_v31 = vadd.f32 %v4844_v0, %v4843_v12  ;;  %v3862_v19 = vpop.f32.mrf.mxu2  ;;  %v3436_v58 = vpop.f32.mrf.mxu0 }
 0x407   :  { %v4076_v49 = vpop.f32.mrf.mxu3  ;;  %v5099_v50 = vsel %vm4794_vm1, %v4993_v2, 0.0  ;;  %5333 = vst.msk [vmem:[%s11825_s3 + $0x64] sm:$0xf] %vm5307_vm0, %v5246_v29  ;;  %v3863_v61 = vadd.f32 %v3862_v19, %v3649_v52  ;;  %v3650_v35 = vpop.f32.mrf.mxu1  ;;  %v3437_v38 = vadd.f32 %v3436_v58, %v8899_v32  ;;  %v6640_v32 = vld [vmem:[%s11824_s0 + $0x598] sm:$0xf] }
 0x408   :  { %v5100_v8 = vadd.f32 %v5099_v50, %v5098_v43  ;;  %v6641_v45 = vor.u32 %v7661_v25, %v6640_v32  ;;  %v6664_v29 = vld [vmem:[%s11824_s0 + $0x5d0] sm:$0xf]  ;;  %v7669_v50 = vld [vmem:[%s11824_s0 + $0x5f4] sm:$0xf0]  ;;  %v6674_v58 = vld [vmem:[%s11824_s0 + $0x5f8] sm:$0xf0] }
 0x409   :  { %v4077_v9 = vadd.f32 %v4076_v49, %v3863_v61  ;;  %v3651_v11 = vadd.f32 %v3650_v35, %v3437_v38  ;;  %v7668_v52 = vld [vmem:[%s11824_s0 + $0x5ec] sm:$0xf0]  ;;  %v6666_v49 = vld [vmem:[%s11824_s0 + $0x5f0] sm:$0xf0]  ;;  %v7665_v61 = vld [vmem:[%s11824_s0 + $0x5dc] sm:$0xf] }
 0x40b   :  { %v4242_v42 = vmax.f32 %v4077_v9, 0.0 }
 0x40d   :  { %v4846_v59 = vsel %vm4794_vm1, %v4242_v42, 0.0  ;;  %v4994_v15 = vmul.f32 %v4242_v42, %v4242_v42  ;;  %v5247_v48 = vpack.c.bf16 %v4242_v42, %v4242_v42  ;;  %v6665_v42 = vor.u32 %v7668_v52, %v6664_v29 }
 0x40e   :  { %v4847_v36 = vadd.f32 %v4846_v59, %v4845_v31  ;;  %v3864_v57 = vpop.f32.mrf.mxu2  ;;  %v3439_v51 = vpop.f32.mrf.mxu0  ;;  %v7664_v31 = vld [vmem:[%s11824_s0 + $0x5d4] sm:$0xf] }
 0x40f   :  { %v4078_v16 = vpop.f32.mrf.mxu3  ;;  %v5101_v26 = vsel %vm4794_vm1, %v4994_v15, 0.0  ;;  %5334 = vst.msk [vmem:[%s11825_s3 + $0x68] sm:$0xf] %vm5307_vm0, %v5247_v48  ;;  %v3865_v47 = vadd.f32 %v3864_v57, %v3651_v11  ;;  %v3653_v33 = vpop.f32.mrf.mxu1  ;;  %v3440_v3 = vadd.f32 %v3439_v51, %v8902_v44  ;;  %v6669_v14 = vor.u32 %v7664_v31, %v6666_v49 }
 0x410   :  { %v5102_v12 = vadd.f32 %v5101_v26, %v5100_v8  ;;  %v6677_v15 = vor.u32 %v7665_v61, %v6674_v58 }
 0x411   :  { %v4079_v4 = vadd.f32 %v4078_v16, %v3865_v47  ;;  %3478 = vmatmul.bf16.gmra.mxu0 %v6633_v46  ;;  %v3654_v13 = vadd.f32 %v3653_v33, %v3440_v3 }
 0x412   :  { %3692 = vmatmul.bf16.gmra.mxu1 %v6637_v40 }
 0x413   :  { %v4243_v39 = vmax.f32 %v4079_v4, 0.0  ;;  %3906 = vmatmul.bf16.gmra.mxu2 %v6641_v45 }
 0x414   :  { %4120 = vmatmul.bf16.gmra.mxu3 %v6645_v27 }
 0x415   :  { %v4848_v20 = vsel %vm4794_vm1, %v4243_v39, 0.0  ;;  %v4995_v28 = vmul.f32 %v4243_v39, %v4243_v39  ;;  %v5248_v37 = vpack.c.bf16 %v4243_v39, %v4243_v39 }
 0x416   :  { %v4849_v21 = vadd.f32 %v4848_v20, %v4847_v36  ;;  %v3867_v22 = vpop.f32.mrf.mxu2  ;;  %v3441_v53 = vpop.f32.mrf.mxu0  ;;  %v6696_v20 = vld [vmem:[%s11824_s0 + $0x610] sm:$0xf] }
 0x417   :  { %v4081_v54 = vpop.f32.mrf.mxu3  ;;  %v5103_v43 = vsel %vm4794_vm1, %v4995_v28, 0.0  ;;  %5335 = vst.msk [vmem:[%s11825_s3 + $0x6c] sm:$0xf] %vm5307_vm0, %v5248_v37  ;;  %v3868_v44 = vadd.f32 %v3867_v22, %v3654_v13  ;;  %v3655_v41 = vpop.f32.mrf.mxu1  ;;  %v3442_v2 = vadd.f32 %v3441_v53, %v8934_v17  ;;  %v6672_v17 = vld [vmem:[%s11824_s0 + $0x5d8] sm:$0xf] }
 0x418   :  { %v5104_v56 = vadd.f32 %v5103_v43, %v5102_v12  ;;  %v6673_v59 = vor.u32 %v7669_v50, %v6672_v17  ;;  %v7676_v28 = vld [vmem:[%s11824_s0 + $0x62c] sm:$0xf0]  ;;  %v7672_v37 = vld [vmem:[%s11824_s0 + $0x614] sm:$0xf]  ;;  %v7677_v22 = vld [vmem:[%s11824_s0 + $0x634] sm:$0xf0] }
 0x419   :  { %v4082_v0 = vadd.f32 %v4081_v54, %v3868_v44  ;;  %v3656_v38 = vadd.f32 %v3655_v41, %v3442_v2  ;;  %v7673_v54 = vld [vmem:[%s11824_s0 + $0x61c] sm:$0xf]  ;;  %v6697_v52 = vor.u32 %v7676_v28, %v6696_v20 }
 0x41a   :  { %v6706_v43 = vld [vmem:[%s11824_s0 + $0x638] sm:$0xf0] }
 0x41b   :  { %v4244_v19 = vmax.f32 %v4082_v0, 0.0  ;;  %v6709_v58 = vor.u32 %v7673_v54, %v6706_v43 }
 0x41d   :  { %v4850_v35 = vsel %vm4794_vm1, %v4244_v19, 0.0  ;;  %v4996_v8 = vmul.f32 %v4244_v19, %v4244_v19  ;;  %v5249_v9 = vpack.c.bf16 %v4244_v19, %v4244_v19 }
 0x41e   :  { %v4851_v60 = vadd.f32 %v4850_v35, %v4849_v21  ;;  %v3869_v63 = vpop.f32.mrf.mxu2  ;;  %v3444_v55 = vpop.f32.mrf.mxu0  ;;  %v6698_v21 = vld [vmem:[%s11824_s0 + $0x630] sm:$0xf0] }
 0x41f   :  { %v4083_v18 = vpop.f32.mrf.mxu3  ;;  %v5105_v32 = vsel %vm4794_vm1, %v4996_v8, 0.0  ;;  %5336 = vst.msk [vmem:[%s11825_s3 + $0x70] sm:$0xf] %vm5307_vm0, %v5249_v9  ;;  %v3870_v25 = vadd.f32 %v3869_v63, %v3656_v38  ;;  %v3658_v62 = vpop.f32.mrf.mxu1  ;;  %v3445_v36 = vadd.f32 %v3444_v55, %v8937_v34  ;;  %v6701_v31 = vor.u32 %v7672_v37, %v6698_v21 }
 0x420   :  { %v5106_v48 = vadd.f32 %v5105_v32, %v5104_v56 }
 0x421   :  { %v4084_v11 = vadd.f32 %v4083_v18, %v3870_v25  ;;  %3483 = vmatmul.bf16.gmra.mxu0 %v6665_v42  ;;  %v3659_v26 = vadd.f32 %v3658_v62, %v3445_v36  ;;  %v6728_v36 = vld [vmem:[%s11824_s0 + $0x650] sm:$0xf] }
 0x422   :  { %3697 = vmatmul.bf16.gmra.mxu1 %v6669_v14 }
 0x423   :  { %v4245_v57 = vmax.f32 %v4084_v11, 0.0  ;;  %3911 = vmatmul.bf16.gmra.mxu2 %v6673_v59 }
 0x424   :  { %4125 = vmatmul.bf16.gmra.mxu3 %v6677_v15 }
 0x425   :  { %v4852_v16 = vsel %vm4794_vm1, %v4245_v57, 0.0  ;;  %v4997_v46 = vmul.f32 %v4245_v57, %v4245_v57  ;;  %v5250_v40 = vpack.c.bf16 %v4245_v57, %v4245_v57  ;;  %v7684_v57 = vld [vmem:[%s11824_s0 + $0x66c] sm:$0xf0] }
 0x426   :  { %v4853_v47 = vadd.f32 %v4852_v16, %v4851_v60  ;;  %v3872_v51 = vpop.f32.mrf.mxu2  ;;  %v3446_v27 = vpop.f32.mrf.mxu0  ;;  %v7680_v16 = vld [vmem:[%s11824_s0 + $0x654] sm:$0xf] }
 0x427   :  { %v4086_v33 = vpop.f32.mrf.mxu3  ;;  %v5107_v45 = vsel %vm4794_vm1, %v4997_v46, 0.0  ;;  %5337 = vst.msk [vmem:[%s11825_s3 + $0x74] sm:$0xf] %vm5307_vm0, %v5250_v40  ;;  %v3873_v34 = vadd.f32 %v3872_v51, %v3659_v26  ;;  %v3660_v12 = vpop.f32.mrf.mxu1  ;;  %v3447_v39 = vadd.f32 %v3446_v27, %v8967_v7  ;;  %v6704_v7 = vld [vmem:[%s11824_s0 + $0x618] sm:$0xf] }
 0x428   :  { %v5108_v4 = vadd.f32 %v5107_v45, %v5106_v48  ;;  %v6705_v61 = vor.u32 %v7677_v22, %v6704_v7  ;;  %v6730_v40 = vld [vmem:[%s11824_s0 + $0x670] sm:$0xf0]  ;;  %v7685_v26 = vld [vmem:[%s11824_s0 + $0x674] sm:$0xf0]  ;;  %v6738_v51 = vld [vmem:[%s11824_s0 + $0x678] sm:$0xf0] }
 0x429   :  { %v4087_v3 = vadd.f32 %v4086_v33, %v3873_v34  ;;  %v3661_v56 = vadd.f32 %v3660_v12, %v3447_v39  ;;  %v6729_v39 = vor.u32 %v7684_v57, %v6728_v36  ;;  %v6733_v20 = vor.u32 %v7680_v16, %v6730_v40 }
 0x42b   :  { %v4246_v13 = vmax.f32 %v4087_v3, 0.0 }
 0x42d   :  { %v4854_v44 = vsel %vm4794_vm1, %v4246_v13, 0.0  ;;  %v4998_v53 = vmul.f32 %v4246_v13, %v4246_v13  ;;  %v5251_v41 = vpack.c.bf16 %v4246_v13, %v4246_v13 }
 0x42e   :  { %v4855_v0 = vadd.f32 %v4854_v44, %v4853_v47  ;;  %v3874_v2 = vpop.f32.mrf.mxu2  ;;  %v3449_v17 = vpop.f32.mrf.mxu0  ;;  %v7681_v47 = vld [vmem:[%s11824_s0 + $0x65c] sm:$0xf] }
 0x42f   :  { %v4088_v29 = vpop.f32.mrf.mxu3  ;;  %v5109_v19 = vsel %vm4794_vm1, %v4998_v53, 0.0  ;;  %5338 = vst.msk [vmem:[%s11825_s3 + $0x78] sm:$0xf] %vm5307_vm0, %v5251_v41  ;;  %v3875_v49 = vadd.f32 %v3874_v2, %v3661_v56  ;;  %v3663_v50 = vpop.f32.mrf.mxu1  ;;  %v3450_v9 = vadd.f32 %v3449_v17, %v8979_v30  ;;  %v6741_v22 = vor.u32 %v7681_v47, %v6738_v51 }
 0x430   :  { %v5110_v35 = vadd.f32 %v5109_v19, %v5108_v4 }
 0x431   :  { %v4089_v8 = vadd.f32 %v4088_v29, %v3875_v49  ;;  %3488 = vmatmul.bf16.gmra.mxu0 %v6697_v52  ;;  %v3664_v42 = vadd.f32 %v3663_v50, %v3450_v9  ;;  %v7688_v9 = vld [vmem:[%s11824_s0 + $0x694] sm:$0xf] }
 0x432   :  { %3702 = vmatmul.bf16.gmra.mxu1 %v6701_v31 }
 0x433   :  { %v4247_v38 = vmax.f32 %v4089_v8, 0.0  ;;  %3916 = vmatmul.bf16.gmra.mxu2 %v6705_v61  ;;  %v7692_v8 = vld [vmem:[%s11824_s0 + $0x6ac] sm:$0xf0] }
 0x434   :  { %4130 = vmatmul.bf16.gmra.mxu3 %v6709_v58 }
 0x435   :  { %v4856_v60 = vsel %vm4794_vm1, %v4247_v38, 0.0  ;;  %v4999_v63 = vmul.f32 %v4247_v38, %v4247_v38  ;;  %v5252_v18 = vpack.c.bf16 %v4247_v38, %v4247_v38 }
 0x436   :  { %v4857_v14 = vadd.f32 %v4856_v60, %v4855_v0  ;;  %v3877_v32 = vpop.f32.mrf.mxu2  ;;  %v3451_v62 = vpop.f32.mrf.mxu0  ;;  %v6762_v60 = vld [vmem:[%s11824_s0 + $0x6b0] sm:$0xf0] }
 0x437   :  { %v4091_v25 = vpop.f32.mrf.mxu3  ;;  %v5111_v55 = vsel %vm4794_vm1, %v4999_v63, 0.0  ;;  %5339 = vst.msk [vmem:[%s11825_s3 + $0x7c] sm:$0xf] %vm5307_vm0, %v5252_v18  ;;  %v3878_v30 = vadd.f32 %v3877_v32, %v3664_v42  ;;  %v3665_v59 = vpop.f32.mrf.mxu1  ;;  %v3452_v11 = vadd.f32 %v3451_v62, %v9006_v6  ;;  %v6736_v6 = vld [vmem:[%s11824_s0 + $0x658] sm:$0xf] }
 0x438   :  { %v5112_v15 = vadd.f32 %v5111_v55, %v5110_v35  ;;  %v6737_v7 = vor.u32 %v7685_v26, %v6736_v6  ;;  %v6760_v35 = vld [vmem:[%s11824_s0 + $0x690] sm:$0xf]  ;;  %v7693_v63 = vld [vmem:[%s11824_s0 + $0x6b4] sm:$0xf0]  ;;  %v7689_v18 = vld [vmem:[%s11824_s0 + $0x69c] sm:$0xf] }
 0x439   :  { %v4092_v48 = vadd.f32 %v4091_v25, %v3878_v30  ;;  %v3666_v27 = vadd.f32 %v3665_v59, %v3452_v11  ;;  %v6770_v42 = vld [vmem:[%s11824_s0 + $0x6b8] sm:$0xf0] }
 0x43a   :  { %v6773_v40 = vor.u32 %v7689_v18, %v6770_v42 }
 0x43b   :  { %v4248_v46 = vmax.f32 %v4092_v48, 0.0  ;;  %v6765_v48 = vor.u32 %v7688_v9, %v6762_v60 }
 0x43d   :  { %v4858_v33 = vsel %vm4794_vm1, %v4248_v46, 0.0  ;;  %v5000_v45 = vmul.f32 %v4248_v46, %v4248_v46  ;;  %v5253_v34 = vpack.c.bf16 %v4248_v46, %v4248_v46 }
 0x43e   :  { %v4859_v12 = vadd.f32 %v4858_v33, %v4857_v14  ;;  %v3879_v4 = vpop.f32.mrf.mxu2  ;;  %v3454_v13 = vpop.f32.mrf.mxu0 }
 0x43f   :  { %v4093_v3 = vpop.f32.mrf.mxu3  ;;  %v5113_v28 = vsel %vm4794_vm1, %v5000_v45, 0.0  ;;  %5340 = vst.msk [vmem:[%s11825_s3 + $0x80] sm:$0xf] %vm5307_vm0, %v5253_v34  ;;  %v3880_v37 = vadd.f32 %v3879_v4, %v3666_v27  ;;  %v3668_v21 = vpop.f32.mrf.mxu1  ;;  %v3455_v44 = vadd.f32 %v3454_v13, %v9009_v24 }
 0x440   :  { %v5114_v54 = vadd.f32 %v5113_v28, %v5112_v15  ;;  %v6761_v15 = vor.u32 %v7692_v8, %v6760_v35 }
 0x441   :  { %v4094_v43 = vadd.f32 %v4093_v3, %v3880_v37  ;;  %3493 = vmatmul.bf16.gmra.mxu0 %v6729_v39  ;;  %v3669_v2 = vadd.f32 %v3668_v21, %v3455_v44  ;;  %v6794_v44 = vld [vmem:[%s11824_s0 + $0x6f0] sm:$0xf0] }
 0x442   :  { %3707 = vmatmul.bf16.gmra.mxu1 %v6733_v20 }
 0x443   :  { %v4249_v53 = vmax.f32 %v4094_v43, 0.0  ;;  %3921 = vmatmul.bf16.gmra.mxu2 %v6737_v7  ;;  %v6792_v7 = vld [vmem:[%s11824_s0 + $0x6d0] sm:$0xf] }
 0x444   :  { %4135 = vmatmul.bf16.gmra.mxu3 %v6741_v22  ;;  %v7700_v22 = vld [vmem:[%s11824_s0 + $0x6ec] sm:$0xf0] }
 0x445   :  { %v4860_v41 = vsel %vm4794_vm1, %v4249_v53, 0.0  ;;  %v5001_v56 = vmul.f32 %v4249_v53, %v4249_v53  ;;  %v5254_v0 = vpack.c.bf16 %v4249_v53, %v4249_v53  ;;  %v7701_v53 = vld [vmem:[%s11824_s0 + $0x6f4] sm:$0xf0] }
 0x446   :  { %v4861_v29 = vadd.f32 %v4860_v41, %v4859_v12  ;;  %v3882_v52 = vpop.f32.mrf.mxu2  ;;  %v3456_v49 = vpop.f32.mrf.mxu0  ;;  %v7697_v41 = vld [vmem:[%s11824_s0 + $0x6dc] sm:$0xf] }
 0x447   :  { %v4096_v31 = vpop.f32.mrf.mxu3  ;;  %v5115_v19 = vsel %vm4794_vm1, %v5001_v56, 0.0  ;;  %5341 = vst.msk [vmem:[%s11825_s3 + $0x84] sm:$0xf] %vm5307_vm0, %v5254_v0  ;;  %v3883_v24 = vadd.f32 %v3882_v52, %v3669_v2  ;;  %v3670_v17 = vpop.f32.mrf.mxu1  ;;  %v3457_v58 = vadd.f32 %v3456_v49, %v9036_v1  ;;  %v6768_v1 = vld [vmem:[%s11824_s0 + $0x698] sm:$0xf]  ;;  %v6793_v49 = vor.u32 %v7700_v22, %v6792_v7 }
 0x448   :  { %v5116_v50 = vadd.f32 %v5115_v19, %v5114_v54  ;;  %v6769_v46 = vor.u32 %v7693_v63, %v6768_v1  ;;  %v7696_v54 = vld [vmem:[%s11824_s0 + $0x6d4] sm:$0xf]  ;;  %v6802_v56 = vld [vmem:[%s11824_s0 + $0x6f8] sm:$0xf0]  ;;  %v11868_v1 = vld [vmem:[#allocation3_spill] sm:$0xff] }
 0x449   :  { %v4097_v61 = vadd.f32 %v4096_v31, %v3883_v24  ;;  %v3671_v55 = vadd.f32 %v3670_v17, %v3457_v58  ;;  %v6797_v17 = vor.u32 %v7696_v54, %v6794_v44  ;;  %v6805_v9 = vor.u32 %v7697_v41, %v6802_v56  ;;  %v11870_v41 = vld [vmem:[#allocation5_spill] sm:$0xff] }
 0x44b   :  { %v4250_v38 = vmax.f32 %v4097_v61, 0.0 }
 0x44d   :  { %v4862_v14 = vsel %vm4794_vm1, %v4250_v38, 0.0  ;;  %v5002_v32 = vmul.f32 %v4250_v38, %v4250_v38  ;;  %v5255_v25 = vpack.c.bf16 %v4250_v38, %v4250_v38 }
 0x44e   :  { %v4863_v30 = vadd.f32 %v4862_v14, %v4861_v29  ;;  %v3884_v62 = vpop.f32.mrf.mxu2  ;;  %v3459_v57 = vpop.f32.mrf.mxu0 }
 0x44f   :  { %v4098_v59 = vpop.f32.mrf.mxu3  ;;  %v5117_v11 = vsel %vm4794_vm1, %v5002_v32, 0.0  ;;  %5342 = vst.msk [vmem:[%s11825_s3 + $0x88] sm:$0xf] %vm5307_vm0, %v5255_v25  ;;  %v3885_v36 = vadd.f32 %v3884_v62, %v3671_v55  ;;  %v3673_v16 = vpop.f32.mrf.mxu1  ;;  %v3460_v47 = vadd.f32 %v3459_v57, %v9039_v23 }
 0x450   :  { %v5118_v6 = vadd.f32 %v5117_v11, %v5116_v50 }
 0x451   :  { %v4099_v26 = vadd.f32 %v4098_v59, %v3885_v36  ;;  %3498 = vmatmul.bf16.gmra.mxu0 %v6761_v15  ;;  %v3674_v27 = vadd.f32 %v3673_v16, %v3460_v47  ;;  %v11869_v16 = vld [vmem:[#allocation4_spill] sm:$0xff] }
 0x452   :  { %3712 = vmatmul.bf16.gmra.mxu1 %v6765_v48 }
 0x453   :  { %v4251_v51 = vmax.f32 %v4099_v26, 0.0  ;;  %3926 = vmatmul.bf16.gmra.mxu2 %v6769_v46  ;;  %v7704_v26 = vld [vmem:[%s11824_s0 + $0x714] sm:$0xf] }
 0x454   :  { %4140 = vmatmul.bf16.gmra.mxu3 %v6773_v40  ;;  %v6824_v40 = vld [vmem:[%s11824_s0 + $0x710] sm:$0xf] }
 0x455   :  { %v4864_v33 = vsel %vm4794_vm1, %v4251_v51, 0.0  ;;  %v5003_v45 = vmul.f32 %v4251_v51, %v4251_v51  ;;  %v5256_v34 = vpack.c.bf16 %v4251_v51, %v4251_v51  ;;  %v6826_v51 = vld [vmem:[%s11824_s0 + $0x730] sm:$0xf0] }
 0x456   :  { %v4865_v12 = vadd.f32 %v4864_v33, %v4863_v30  ;;  %v3887_v4 = vpop.f32.mrf.mxu2  ;;  %v3461_v20 = vpop.f32.mrf.mxu0  ;;  %v6832_v33 = vld [vmem:[%s11824_s0 + $0x718] sm:$0xf] }
 0x457   :  { %v4101_v3 = vpop.f32.mrf.mxu3  ;;  %v5119_v39 = vsel %vm4794_vm1, %v5003_v45, 0.0  ;;  %5343 = vst.msk [vmem:[%s11825_s3 + $0x8c] sm:$0xf] %vm5307_vm0, %v5256_v34  ;;  %v3888_v23 = vadd.f32 %v3887_v4, %v3674_v27  ;;  %v3675_v28 = vpop.f32.mrf.mxu1  ;;  %v3462_v21 = vadd.f32 %v3461_v20, %v9066_v5  ;;  %v6800_v5 = vld [vmem:[%s11824_s0 + $0x6d8] sm:$0xf] }
 0x458   :  { %v5120_v37 = vadd.f32 %v5119_v39, %v5118_v6  ;;  %v6801_v8 = vor.u32 %v7701_v53, %v6800_v5  ;;  %v7708_v6 = vld [vmem:[%s11824_s0 + $0x72c] sm:$0xf0]  ;;  %v7709_v45 = vld [vmem:[%s11824_s0 + $0x734] sm:$0xf0]  ;;  %v7705_v34 = vld [vmem:[%s11824_s0 + $0x71c] sm:$0xf] }
 0x459   :  { %v4102_v13 = vadd.f32 %v4101_v3, %v3888_v23  ;;  %v3676_v52 = vadd.f32 %v3675_v28, %v3462_v21  ;;  %v6834_v27 = vld [vmem:[%s11824_s0 + $0x738] sm:$0xf0] }
 0x45a   :  { %v6837_v44 = vor.u32 %v7705_v34, %v6834_v27  ;;  %v11872_v34 = vld [vmem:[#allocation7_spill] sm:$0xff] }
 0x45b   :  { %v4252_v43 = vmax.f32 %v4102_v13, 0.0  ;;  %v6829_v13 = vor.u32 %v7704_v26, %v6826_v51 }
 0x45d   :  { %v4866_v0 = vsel %vm4794_vm1, %v4252_v43, 0.0  ;;  %v5004_v2 = vmul.f32 %v4252_v43, %v4252_v43  ;;  %v5257_v29 = vpack.c.bf16 %v4252_v43, %v4252_v43  ;;  %v6833_v43 = vor.u32 %v7709_v45, %v6832_v33 }
 0x45e   :  { %v4867_v31 = vadd.f32 %v4866_v0, %v4865_v12  ;;  %v3889_v19 = vpop.f32.mrf.mxu2  ;;  %v3464_v58 = vpop.f32.mrf.mxu0 }
 0x45f   :  { %v4103_v24 = vpop.f32.mrf.mxu3  ;;  %v5121_v50 = vsel %vm4794_vm1, %v5004_v2, 0.0  ;;  %5344 = vst.msk [vmem:[%s11825_s3 + $0x90] sm:$0xf] %vm5307_vm0, %v5257_v29  ;;  %v3890_v61 = vadd.f32 %v3889_v19, %v3676_v52  ;;  %v3678_v35 = vpop.f32.mrf.mxu1  ;;  %v3465_v63 = vadd.f32 %v3464_v58, %v11868_v1  ;;  %v7716_v1 = vld [vmem:[%s11824_s0 + $0x76c] sm:$0xf0] }
 0x460   :  { %v5122_v38 = vadd.f32 %v5121_v50, %v5120_v37  ;;  %v6825_v37 = vor.u32 %v7708_v6, %v6824_v40 }
 0x461   :  { %v4104_v60 = vadd.f32 %v4103_v24, %v3890_v61  ;;  %3503 = vmatmul.bf16.gmra.mxu0 %v6793_v49  ;;  %v3679_v25 = vadd.f32 %v3678_v35, %v3465_v63  ;;  %v7712_v63 = vld [vmem:[%s11824_s0 + $0x754] sm:$0xf] }
 0x462   :  { %3717 = vmatmul.bf16.gmra.mxu1 %v6797_v17 }
 0x463   :  { %v4253_v18 = vmax.f32 %v4104_v60, 0.0  ;;  %3931 = vmatmul.bf16.gmra.mxu2 %v6801_v8  ;;  %v6856_v60 = vld [vmem:[%s11824_s0 + $0x750] sm:$0xf] }
 0x464   :  { %4145 = vmatmul.bf16.gmra.mxu3 %v6805_v9  ;;  %v11871_v9 = vld [vmem:[#allocation6_spill] sm:$0xff] }
 0x465   :  { %v4868_v42 = vsel %vm4794_vm1, %v4253_v18, 0.0  ;;  %v5005_v14 = vmul.f32 %v4253_v18, %v4253_v18  ;;  %v5258_v32 = vpack.c.bf16 %v4253_v18, %v4253_v18 }
 0x466   :  { %v4869_v55 = vadd.f32 %v4868_v42, %v4867_v31  ;;  %v3892_v30 = vpop.f32.mrf.mxu2  ;;  %v3466_v48 = vpop.f32.mrf.mxu0  ;;  %v6858_v42 = vld [vmem:[%s11824_s0 + $0x770] sm:$0xf0] }
 0x467   :  { %v4106_v62 = vpop.f32.mrf.mxu3  ;;  %v5123_v59 = vsel %vm4794_vm1, %v5005_v14, 0.0  ;;  %5345 = vst.msk [vmem:[%s11825_s3 + $0x94] sm:$0xf] %vm5307_vm0, %v5258_v32  ;;  %v3893_v15 = vadd.f32 %v3892_v30, %v3679_v25  ;;  %v3680_v11 = vpop.f32.mrf.mxu1  ;;  %v3467_v46 = vadd.f32 %v3466_v48, %v11869_v16  ;;  %v6864_v14 = vld [vmem:[%s11824_s0 + $0x758] sm:$0xf]  ;;  %v6861_v16 = vor.u32 %v7712_v63, %v6858_v42 }
 0x468   :  { %v5124_v36 = vadd.f32 %v5123_v59, %v5122_v38  ;;  %v7717_v32 = vld [vmem:[%s11824_s0 + $0x774] sm:$0xf0]  ;;  %v7713_v25 = vld [vmem:[%s11824_s0 + $0x75c] sm:$0xf] }
 0x469   :  { %v4107_v57 = vadd.f32 %v4106_v62, %v3893_v15  ;;  %v3681_v39 = vadd.f32 %v3680_v11, %v3467_v46 }
 0x46b   :  { %v4254_v47 = vmax.f32 %v4107_v57, 0.0  ;;  %v6857_v57 = vor.u32 %v7716_v1, %v6856_v60 }
 0x46d   :  { %v4870_v12 = vsel %vm4794_vm1, %v4254_v47, 0.0  ;;  %v5006_v4 = vmul.f32 %v4254_v47, %v4254_v47  ;;  %v5259_v3 = vpack.c.bf16 %v4254_v47, %v4254_v47  ;;  %v6865_v47 = vor.u32 %v7717_v32, %v6864_v14 }
 0x46e   :  { %v4871_v23 = vadd.f32 %v4870_v12, %v4869_v55  ;;  %v3894_v20 = vpop.f32.mrf.mxu2  ;;  %v3469_v22 = vpop.f32.mrf.mxu0  ;;  %v6866_v55 = vld [vmem:[%s11824_s0 + $0x778] sm:$0xf0] }
 0x46f   :  { %v4108_v28 = vpop.f32.mrf.mxu3  ;;  %v5125_v21 = vsel %vm4794_vm1, %v5006_v4, 0.0  ;;  %5346 = vst.msk [vmem:[%s11825_s3 + $0x98] sm:$0xf] %vm5307_vm0, %v5259_v3  ;;  %v3895_v7 = vadd.f32 %v3894_v20, %v3681_v39  ;;  %v3683_v54 = vpop.f32.mrf.mxu1  ;;  %v3470_v56 = vadd.f32 %v3469_v22, %v11870_v41  ;;  %v6869_v51 = vor.u32 %v7713_v25, %v6866_v55  ;;  %v7724_v41 = vld [vmem:[%s11824_s0 + $0x7ac] sm:$0xf0] }
 0x470   :  { %v5126_v5 = vadd.f32 %v5125_v21, %v5124_v36  ;;  %v11874_v25 = vld [vmem:[#allocation9_spill] sm:$0xff] }
 0x471   :  { %v4109_v53 = vadd.f32 %v4108_v28, %v3895_v7  ;;  %3508 = vmatmul.bf16.gmra.mxu0 %v6825_v37  ;;  %v3684_v31 = vadd.f32 %v3683_v54, %v3470_v56  ;;  %v7720_v56 = vld [vmem:[%s11824_s0 + $0x794] sm:$0xf] }
 0x472   :  { %3722 = vmatmul.bf16.gmra.mxu1 %v6829_v13 }
 0x473   :  { %v4255_v0 = vmax.f32 %v4109_v53, 0.0  ;;  %3936 = vmatmul.bf16.gmra.mxu2 %v6833_v43  ;;  %v6888_v53 = vld [vmem:[%s11824_s0 + $0x790] sm:$0xf] }
 0x474   :  { %4150 = vmatmul.bf16.gmra.mxu3 %v6837_v44  ;;  %v11873_v44 = vld [vmem:[#allocation8_spill] sm:$0xff] }
 0x475   :  { %v4872_v2 = vsel %vm4794_vm1, %v4255_v0, 0.0  ;;  %v5007_v29 = vmul.f32 %v4255_v0, %v4255_v0  ;;  %v5260_v52 = vpack.c.bf16 %v4255_v0, %v4255_v0 }
 0x476   :  { %v4873_v19 = vadd.f32 %v4872_v2, %v4871_v23  ;;  %v3897_v24 = vpop.f32.mrf.mxu2  ;;  %v3471_v61 = vpop.f32.mrf.mxu0  ;;  %v6890_v2 = vld [vmem:[%s11824_s0 + $0x7b0] sm:$0xf0] }
 0x477   :  { %v4111_v49 = vpop.f32.mrf.mxu3  ;;  %v5127_v17 = vsel %vm4794_vm1, %v5007_v29, 0.0  ;;  %5347 = vst.msk [vmem:[%s11825_s3 + $0x9c] sm:$0xf] %vm5307_vm0, %v5260_v52  ;;  %v3898_v50 = vadd.f32 %v3897_v24, %v3684_v31  ;;  %v3685_v58 = vpop.f32.mrf.mxu1  ;;  %v3472_v38 = vadd.f32 %v3471_v61, %v11871_v9  ;;  %v6896_v29 = vld [vmem:[%s11824_s0 + $0x798] sm:$0xf]  ;;  %v6893_v9 = vor.u32 %v7720_v56, %v6890_v2 }
 0x478   :  { %v5128_v35 = vadd.f32 %v5127_v17, %v5126_v5  ;;  %v7725_v52 = vld [vmem:[%s11824_s0 + $0x7b4] sm:$0xf0]  ;;  %v7721_v31 = vld [vmem:[%s11824_s0 + $0x79c] sm:$0xf] }
 0x479   :  { %v4112_v8 = vadd.f32 %v4111_v49, %v3898_v50  ;;  %v3686_v15 = vadd.f32 %v3685_v58, %v3472_v38 }
 0x47b   :  { %v4256_v18 = vmax.f32 %v4112_v8, 0.0  ;;  %v6889_v8 = vor.u32 %v7724_v41, %v6888_v53 }
 0x47d   :  { %v4874_v30 = vsel %vm4794_vm1, %v4256_v18, 0.0  ;;  %v5008_v62 = vmul.f32 %v4256_v18, %v4256_v18  ;;  %v5261_v59 = vpack.c.bf16 %v4256_v18, %v4256_v18  ;;  %v6897_v18 = vor.u32 %v7725_v52, %v6896_v29 }
 0x47e   :  { %v4875_v48 = vadd.f32 %v4874_v30, %v4873_v19  ;;  %v3899_v11 = vpop.f32.mrf.mxu2  ;;  %v3474_v6 = vpop.f32.mrf.mxu0  ;;  %v6898_v19 = vld [vmem:[%s11824_s0 + $0x7b8] sm:$0xf0] }
 0x47f   :  { %v4113_v36 = vpop.f32.mrf.mxu3  ;;  %v5129_v46 = vsel %vm4794_vm1, %v5008_v62, 0.0  ;;  %5348 = vst.msk [vmem:[%s11825_s3 + $0xa0] sm:$0xf] %vm5307_vm0, %v5261_v59  ;;  %v3900_v40 = vadd.f32 %v3899_v11, %v3686_v15  ;;  %v3688_v26 = vpop.f32.mrf.mxu1  ;;  %v3475_v27 = vadd.f32 %v3474_v6, %v11872_v34  ;;  %v6901_v42 = vor.u32 %v7721_v31, %v6898_v19  ;;  %v7732_v34 = vld [vmem:[%s11824_s0 + $0x7ec] sm:$0xf0]  ;;  %v11876_v31 = vld [vmem:[#allocation11_spill] sm:$0xff] }
 0x480   :  { %v5130_v33 = vadd.f32 %v5129_v46, %v5128_v35 }
 0x481   :  { %v4114_v45 = vadd.f32 %v4113_v36, %v3900_v40  ;;  %3513 = vmatmul.bf16.gmra.mxu0 %v6857_v57  ;;  %v3689_v23 = vadd.f32 %v3688_v26, %v3475_v27  ;;  %v7728_v27 = vld [vmem:[%s11824_s0 + $0x7d4] sm:$0xf] }
 0x482   :  { %3727 = vmatmul.bf16.gmra.mxu1 %v6861_v16 }
 0x483   :  { %v4257_v12 = vmax.f32 %v4114_v45, 0.0  ;;  %3941 = vmatmul.bf16.gmra.mxu2 %v6865_v47  ;;  %v6920_v45 = vld [vmem:[%s11824_s0 + $0x7d0] sm:$0xf] }
 0x484   :  { %4155 = vmatmul.bf16.gmra.mxu3 %v6869_v51  ;;  %v11875_v51 = vld [vmem:[#allocation10_spill] sm:$0xff] }
 0x485   :  { %v4876_v4 = vsel %vm4794_vm1, %v4257_v12, 0.0  ;;  %v5009_v3 = vmul.f32 %v4257_v12, %v4257_v12  ;;  %v5262_v39 = vpack.c.bf16 %v4257_v12, %v4257_v12 }
 0x486   :  { %v4877_v20 = vadd.f32 %v4876_v4, %v4875_v48  ;;  %v3902_v28 = vpop.f32.mrf.mxu2  ;;  %v3476_v7 = vpop.f32.mrf.mxu0  ;;  %v6922_v4 = vld [vmem:[%s11824_s0 + $0x7f0] sm:$0xf0] }
 0x487   :  { %v4116_v37 = vpop.f32.mrf.mxu3  ;;  %v5131_v13 = vsel %vm4794_vm1, %v5009_v3, 0.0  ;;  %5349 = vst.msk [vmem:[%s11825_s3 + $0xa4] sm:$0xf] %vm5307_vm0, %v5262_v39  ;;  %v3903_v21 = vadd.f32 %v3902_v28, %v3689_v23  ;;  %v3690_v22 = vpop.f32.mrf.mxu1  ;;  %v3477_v5 = vadd.f32 %v3476_v7, %v11873_v44  ;;  %v6928_v3 = vld [vmem:[%s11824_s0 + $0x7d8] sm:$0xf]  ;;  %v6925_v44 = vor.u32 %v7728_v27, %v6922_v4 }
 0x488   :  { %v5132_v54 = vadd.f32 %v5131_v13, %v5130_v33  ;;  %v7733_v39 = vld [vmem:[%s11824_s0 + $0x7f4] sm:$0xf0]  ;;  %v7729_v23 = vld [vmem:[%s11824_s0 + $0x7dc] sm:$0xf] }
 0x489   :  { %v4117_v43 = vadd.f32 %v4116_v37, %v3903_v21  ;;  %v3691_v50 = vadd.f32 %v3690_v22, %v3477_v5 }
 0x48b   :  { %v4258_v0 = vmax.f32 %v4117_v43, 0.0  ;;  %v6921_v43 = vor.u32 %v7732_v34, %v6920_v45 }
 0x48d   :  { %v4878_v24 = vsel %vm4794_vm1, %v4258_v0, 0.0  ;;  %v5010_v49 = vmul.f32 %v4258_v0, %v4258_v0  ;;  %v5263_v17 = vpack.c.bf16 %v4258_v0, %v4258_v0  ;;  %v6929_v0 = vor.u32 %v7733_v39, %v6928_v3 }
 0x48e   :  { %v4879_v61 = vadd.f32 %v4878_v24, %v4877_v20  ;;  %v3904_v58 = vpop.f32.mrf.mxu2  ;;  %v3479_v1 = vpop.f32.mrf.mxu0  ;;  %v6930_v20 = vld [vmem:[%s11824_s0 + $0x7f8] sm:$0xf0] }
 0x48f   :  { %v4118_v35 = vpop.f32.mrf.mxu3  ;;  %v5133_v38 = vsel %vm4794_vm1, %v5010_v49, 0.0  ;;  %5350 = vst.msk [vmem:[%s11825_s3 + $0xa8] sm:$0xf] %vm5307_vm0, %v5263_v17  ;;  %v3905_v60 = vadd.f32 %v3904_v58, %v3691_v50  ;;  %v3693_v63 = vpop.f32.mrf.mxu1  ;;  %v3480_v55 = vadd.f32 %v3479_v1, %v11874_v25  ;;  %v6933_v2 = vor.u32 %v7729_v23, %v6930_v20  ;;  %v7740_v25 = vld [vmem:[%s11824_s0 + $0x82c] sm:$0xf0] }
 0x490   :  { %v5134_v14 = vadd.f32 %v5133_v38, %v5132_v54  ;;  %v11878_v23 = vld [vmem:[#allocation13_spill] sm:$0xff] }
 0x491   :  { %v4119_v32 = vadd.f32 %v4118_v35, %v3905_v60  ;;  %3518 = vmatmul.bf16.gmra.mxu0 %v6889_v8  ;;  %v3694_v48 = vadd.f32 %v3693_v63, %v3480_v55  ;;  %v7736_v55 = vld [vmem:[%s11824_s0 + $0x814] sm:$0xf] }
 0x492   :  { %3732 = vmatmul.bf16.gmra.mxu1 %v6893_v9 }
 0x493   :  { %v4259_v30 = vmax.f32 %v4119_v32, 0.0  ;;  %3946 = vmatmul.bf16.gmra.mxu2 %v6897_v18  ;;  %v6952_v32 = vld [vmem:[%s11824_s0 + $0x810] sm:$0xf] }
 0x494   :  { %4160 = vmatmul.bf16.gmra.mxu3 %v6901_v42  ;;  %v11877_v42 = vld [vmem:[#allocation12_spill] sm:$0xff] }
 0x495   :  { %v4880_v62 = vsel %vm4794_vm1, %v4259_v30, 0.0  ;;  %v5011_v59 = vmul.f32 %v4259_v30, %v4259_v30  ;;  %v5264_v15 = vpack.c.bf16 %v4259_v30, %v4259_v30 }
 0x496   :  { %v4881_v11 = vadd.f32 %v4880_v62, %v4879_v61  ;;  %v3907_v36 = vpop.f32.mrf.mxu2  ;;  %v3481_v40 = vpop.f32.mrf.mxu0  ;;  %v6954_v62 = vld [vmem:[%s11824_s0 + $0x830] sm:$0xf0] }
 0x497   :  { %v4121_v57 = vpop.f32.mrf.mxu3  ;;  %v5135_v16 = vsel %vm4794_vm1, %v5011_v59, 0.0  ;;  %5351 = vst.msk [vmem:[%s11825_s3 + $0xac] sm:$0xf] %vm5307_vm0, %v5264_v15  ;;  %v3908_v46 = vadd.f32 %v3907_v36, %v3694_v48  ;;  %v3695_v6 = vpop.f32.mrf.mxu1  ;;  %v3482_v33 = vadd.f32 %v3481_v40, %v11875_v51  ;;  %v6960_v59 = vld [vmem:[%s11824_s0 + $0x818] sm:$0xf]  ;;  %v6957_v51 = vor.u32 %v7736_v55, %v6954_v62 }
 0x498   :  { %v5136_v26 = vadd.f32 %v5135_v16, %v5134_v14  ;;  %v7741_v15 = vld [vmem:[%s11824_s0 + $0x834] sm:$0xf0]  ;;  %v7737_v48 = vld [vmem:[%s11824_s0 + $0x81c] sm:$0xf] }
 0x499   :  { %v4122_v47 = vadd.f32 %v4121_v57, %v3908_v46  ;;  %v3696_v21 = vadd.f32 %v3695_v6, %v3482_v33 }
 0x49b   :  { %v4260_v12 = vmax.f32 %v4122_v47, 0.0  ;;  %v6953_v47 = vor.u32 %v7740_v25, %v6952_v32 }
 0x49d   :  { %v4882_v28 = vsel %vm4794_vm1, %v4260_v12, 0.0  ;;  %v5012_v37 = vmul.f32 %v4260_v12, %v4260_v12  ;;  %v5265_v13 = vpack.c.bf16 %v4260_v12, %v4260_v12  ;;  %v6961_v12 = vor.u32 %v7741_v15, %v6960_v59 }
 0x49e   :  { %v4883_v7 = vadd.f32 %v4882_v28, %v4881_v11  ;;  %v3909_v22 = vpop.f32.mrf.mxu2  ;;  %v3484_v41 = vpop.f32.mrf.mxu0  ;;  %v6962_v11 = vld [vmem:[%s11824_s0 + $0x838] sm:$0xf0] }
 0x49f   :  { %v4123_v54 = vpop.f32.mrf.mxu3  ;;  %v5137_v5 = vsel %vm4794_vm1, %v5012_v37, 0.0  ;;  %5352 = vst.msk [vmem:[%s11825_s3 + $0xb0] sm:$0xf] %vm5307_vm0, %v5265_v13  ;;  %v3910_v53 = vadd.f32 %v3909_v22, %v3696_v21  ;;  %v3698_v56 = vpop.f32.mrf.mxu1  ;;  %v3485_v19 = vadd.f32 %v3484_v41, %v11876_v31  ;;  %v6965_v4 = vor.u32 %v7737_v48, %v6962_v11  ;;  %v7748_v31 = vld [vmem:[%s11824_s0 + $0x86c] sm:$0xf0]  ;;  %v11880_v48 = vld [vmem:[#allocation15_spill] sm:$0xff] }
 0x4a0   :  { %v5138_v29 = vadd.f32 %v5137_v5, %v5136_v26 }
 0x4a1   :  { %v4124_v52 = vadd.f32 %v4123_v54, %v3910_v53  ;;  %3523 = vmatmul.bf16.gmra.mxu0 %v6921_v43  ;;  %v3699_v61 = vadd.f32 %v3698_v56, %v3485_v19  ;;  %v7744_v19 = vld [vmem:[%s11824_s0 + $0x854] sm:$0xf] }
 0x4a2   :  { %3737 = vmatmul.bf16.gmra.mxu1 %v6925_v44 }
 0x4a3   :  { %v4261_v24 = vmax.f32 %v4124_v52, 0.0  ;;  %3951 = vmatmul.bf16.gmra.mxu2 %v6929_v0  ;;  %v6984_v52 = vld [vmem:[%s11824_s0 + $0x850] sm:$0xf] }
 0x4a4   :  { %4165 = vmatmul.bf16.gmra.mxu3 %v6933_v2  ;;  %v11879_v2 = vld [vmem:[#allocation14_spill] sm:$0xff] }
 0x4a5   :  { %v4884_v49 = vsel %vm4794_vm1, %v4261_v24, 0.0  ;;  %v5013_v17 = vmul.f32 %v4261_v24, %v4261_v24  ;;  %v5266_v50 = vpack.c.bf16 %v4261_v24, %v4261_v24 }
 0x4a6   :  { %v4885_v58 = vadd.f32 %v4884_v49, %v4883_v7  ;;  %v3912_v35 = vpop.f32.mrf.mxu2  ;;  %v3486_v60 = vpop.f32.mrf.mxu0  ;;  %v6986_v49 = vld [vmem:[%s11824_s0 + $0x870] sm:$0xf0] }
 0x4a7   :  { %v4126_v8 = vpop.f32.mrf.mxu3  ;;  %v5139_v9 = vsel %vm4794_vm1, %v5013_v17, 0.0  ;;  %5353 = vst.msk [vmem:[%s11825_s3 + $0xb4] sm:$0xf] %vm5307_vm0, %v5266_v50  ;;  %v3913_v38 = vadd.f32 %v3912_v35, %v3699_v61  ;;  %v3700_v1 = vpop.f32.mrf.mxu1  ;;  %v3487_v14 = vadd.f32 %v3486_v60, %v11877_v42  ;;  %v6992_v17 = vld [vmem:[%s11824_s0 + $0x858] sm:$0xf]  ;;  %v6989_v42 = vor.u32 %v7744_v19, %v6986_v49 }
 0x4a8   :  { %v5140_v63 = vadd.f32 %v5139_v9, %v5138_v29  ;;  %v7749_v50 = vld [vmem:[%s11824_s0 + $0x874] sm:$0xf0]  ;;  %v7745_v61 = vld [vmem:[%s11824_s0 + $0x85c] sm:$0xf] }
 0x4a9   :  { %v4127_v18 = vadd.f32 %v4126_v8, %v3913_v38  ;;  %v3701_v46 = vadd.f32 %v3700_v1, %v3487_v14 }
 0x4ab   :  { %v4262_v30 = vmax.f32 %v4127_v18, 0.0  ;;  %v6985_v18 = vor.u32 %v7748_v31, %v6984_v52 }
 0x4ad   :  { %v4886_v36 = vsel %vm4794_vm1, %v4262_v30, 0.0  ;;  %v5014_v57 = vmul.f32 %v4262_v30, %v4262_v30  ;;  %v5267_v16 = vpack.c.bf16 %v4262_v30, %v4262_v30  ;;  %v6993_v30 = vor.u32 %v7749_v50, %v6992_v17 }
 0x4ae   :  { %v4887_v40 = vadd.f32 %v4886_v36, %v4885_v58  ;;  %v3914_v6 = vpop.f32.mrf.mxu2  ;;  %v3489_v34 = vpop.f32.mrf.mxu0  ;;  %v6994_v58 = vld [vmem:[%s11824_s0 + $0x878] sm:$0xf0] }
 0x4af   :  { %v4128_v26 = vpop.f32.mrf.mxu3  ;;  %v5141_v33 = vsel %vm4794_vm1, %v5014_v57, 0.0  ;;  %5354 = vst.msk [vmem:[%s11825_s3 + $0xb8] sm:$0xf] %vm5307_vm0, %v5267_v16  ;;  %v3915_v45 = vadd.f32 %v3914_v6, %v3701_v46  ;;  %v3703_v27 = vpop.f32.mrf.mxu1  ;;  %v3490_v20 = vadd.f32 %v3489_v34, %v11878_v23  ;;  %v6997_v62 = vor.u32 %v7745_v61, %v6994_v58  ;;  %v7756_v23 = vld [vmem:[%s11824_s0 + $0x8ac] sm:$0xf0] }
 0x4b0   :  { %v5142_v3 = vadd.f32 %v5141_v33, %v5140_v63  ;;  %v11882_v61 = vld [vmem:[#allocation17_spill] sm:$0xff] }
 0x4b1   :  { %v4129_v39 = vadd.f32 %v4128_v26, %v3915_v45  ;;  %3528 = vmatmul.bf16.gmra.mxu0 %v6953_v47  ;;  %v3704_v7 = vadd.f32 %v3703_v27, %v3490_v20  ;;  %v7752_v20 = vld [vmem:[%s11824_s0 + $0x894] sm:$0xf] }
 0x4b2   :  { %3742 = vmatmul.bf16.gmra.mxu1 %v6957_v51 }
 0x4b3   :  { %v4263_v28 = vmax.f32 %v4129_v39, 0.0  ;;  %3956 = vmatmul.bf16.gmra.mxu2 %v6961_v12  ;;  %v7016_v39 = vld [vmem:[%s11824_s0 + $0x890] sm:$0xf] }
 0x4b4   :  { %4170 = vmatmul.bf16.gmra.mxu3 %v6965_v4  ;;  %v11881_v4 = vld [vmem:[#allocation16_spill] sm:$0xff] }
 0x4b5   :  { %v4888_v37 = vsel %vm4794_vm1, %v4263_v28, 0.0  ;;  %v5015_v13 = vmul.f32 %v4263_v28, %v4263_v28  ;;  %v5268_v21 = vpack.c.bf16 %v4263_v28, %v4263_v28 }
 0x4b6   :  { %v4889_v22 = vadd.f32 %v4888_v37, %v4887_v40  ;;  %v3917_v54 = vpop.f32.mrf.mxu2  ;;  %v3491_v53 = vpop.f32.mrf.mxu0  ;;  %v7018_v37 = vld [vmem:[%s11824_s0 + $0x8b0] sm:$0xf0] }
 0x4b7   :  { %v4131_v43 = vpop.f32.mrf.mxu3  ;;  %v5143_v44 = vsel %vm4794_vm1, %v5015_v13, 0.0  ;;  %5355 = vst.msk [vmem:[%s11825_s3 + $0xbc] sm:$0xf] %vm5307_vm0, %v5268_v21  ;;  %v3918_v5 = vadd.f32 %v3917_v54, %v3704_v7  ;;  %v3705_v41 = vpop.f32.mrf.mxu1  ;;  %v3492_v29 = vadd.f32 %v3491_v53, %v11879_v2  ;;  %v7024_v13 = vld [vmem:[%s11824_s0 + $0x898] sm:$0xf]  ;;  %v7021_v2 = vor.u32 %v7752_v20, %v7018_v37 }
 0x4b8   :  { %v5144_v56 = vadd.f32 %v5143_v44, %v5142_v3  ;;  %v7757_v21 = vld [vmem:[%s11824_s0 + $0x8b4] sm:$0xf0]  ;;  %v7753_v7 = vld [vmem:[%s11824_s0 + $0x89c] sm:$0xf] }
 0x4b9   :  { %v4132_v0 = vadd.f32 %v4131_v43, %v3918_v5  ;;  %v3706_v38 = vadd.f32 %v3705_v41, %v3492_v29 }
 0x4bb   :  { %v4264_v24 = vmax.f32 %v4132_v0, 0.0  ;;  %v7017_v0 = vor.u32 %v7756_v23, %v7016_v39 }
 0x4bd   :  { %v4890_v35 = vsel %vm4794_vm1, %v4264_v24, 0.0  ;;  %v5016_v8 = vmul.f32 %v4264_v24, %v4264_v24  ;;  %v5269_v9 = vpack.c.bf16 %v4264_v24, %v4264_v24  ;;  %v7025_v24 = vor.u32 %v7757_v21, %v7024_v13 }
 0x4be   :  { %v4891_v60 = vadd.f32 %v4890_v35, %v4889_v22  ;;  %v3919_v1 = vpop.f32.mrf.mxu2  ;;  %v3494_v25 = vpop.f32.mrf.mxu0  ;;  %v7026_v22 = vld [vmem:[%s11824_s0 + $0x8b8] sm:$0xf0] }
 0x4bf   :  { %v4133_v63 = vpop.f32.mrf.mxu3  ;;  %v5145_v14 = vsel %vm4794_vm1, %v5016_v8, 0.0  ;;  %5356 = vst.msk [vmem:[%s11825_s3 + $0xc0] sm:$0xf] %vm5307_vm0, %v5269_v9  ;;  %v3920_v32 = vadd.f32 %v3919_v1, %v3706_v38  ;;  %v3708_v55 = vpop.f32.mrf.mxu1  ;;  %v3495_v11 = vadd.f32 %v3494_v25, %v11880_v48  ;;  %v7029_v49 = vor.u32 %v7753_v7, %v7026_v22  ;;  %v7764_v48 = vld [vmem:[%s11824_s0 + $0x8ec] sm:$0xf0]  ;;  %v11884_v7 = vld [vmem:[#allocation19_spill] sm:$0xff] }
 0x4c0   :  { %v5146_v59 = vadd.f32 %v5145_v14, %v5144_v56 }
 0x4c1   :  { %v4134_v15 = vadd.f32 %v4133_v63, %v3920_v32  ;;  %3533 = vmatmul.bf16.gmra.mxu0 %v6985_v18  ;;  %v3709_v40 = vadd.f32 %v3708_v55, %v3495_v11  ;;  %v7760_v11 = vld [vmem:[%s11824_s0 + $0x8d4] sm:$0xf] }
 0x4c2   :  { %3747 = vmatmul.bf16.gmra.mxu1 %v6989_v42 }
 0x4c3   :  { %v4265_v36 = vmax.f32 %v4134_v15, 0.0  ;;  %3961 = vmatmul.bf16.gmra.mxu2 %v6993_v30  ;;  %v7048_v15 = vld [vmem:[%s11824_s0 + $0x8d0] sm:$0xf] }
 0x4c4   :  { %4175 = vmatmul.bf16.gmra.mxu3 %v6997_v62  ;;  %v11883_v62 = vld [vmem:[#allocation18_spill] sm:$0xff] }
 0x4c5   :  { %v4892_v57 = vsel %vm4794_vm1, %v4265_v36, 0.0  ;;  %v5017_v16 = vmul.f32 %v4265_v36, %v4265_v36  ;;  %v5270_v46 = vpack.c.bf16 %v4265_v36, %v4265_v36 }
 0x4c6   :  { %v4893_v6 = vadd.f32 %v4892_v57, %v4891_v60  ;;  %v3922_v26 = vpop.f32.mrf.mxu2  ;;  %v3496_v45 = vpop.f32.mrf.mxu0  ;;  %v7050_v57 = vld [vmem:[%s11824_s0 + $0x8f0] sm:$0xf0] }
 0x4c7   :  { %v4136_v47 = vpop.f32.mrf.mxu3  ;;  %v5147_v51 = vsel %vm4794_vm1, %v5017_v16, 0.0  ;;  %5357 = vst.msk [vmem:[%s11825_s3 + $0xc4] sm:$0xf] %vm5307_vm0, %v5270_v46  ;;  %v3923_v33 = vadd.f32 %v3922_v26, %v3709_v40  ;;  %v3710_v34 = vpop.f32.mrf.mxu1  ;;  %v3497_v3 = vadd.f32 %v3496_v45, %v11881_v4  ;;  %v7056_v16 = vld [vmem:[%s11824_s0 + $0x8d8] sm:$0xf]  ;;  %v7053_v4 = vor.u32 %v7760_v11, %v7050_v57 }
 0x4c8   :  { %v5148_v27 = vadd.f32 %v5147_v51, %v5146_v59  ;;  %v7765_v46 = vld [vmem:[%s11824_s0 + $0x8f4] sm:$0xf0]  ;;  %v7761_v40 = vld [vmem:[%s11824_s0 + $0x8dc] sm:$0xf] }
 0x4c9   :  { %v4137_v12 = vadd.f32 %v4136_v47, %v3923_v33  ;;  %v3711_v5 = vadd.f32 %v3710_v34, %v3497_v3 }
 0x4cb   :  { %v4266_v28 = vmax.f32 %v4137_v12, 0.0  ;;  %v7049_v12 = vor.u32 %v7764_v48, %v7048_v15 }
 0x4cd   :  { %v4894_v54 = vsel %vm4794_vm1, %v4266_v28, 0.0  ;;  %v5018_v43 = vmul.f32 %v4266_v28, %v4266_v28  ;;  %v5271_v44 = vpack.c.bf16 %v4266_v28, %v4266_v28  ;;  %v7057_v28 = vor.u32 %v7765_v46, %v7056_v16 }
 0x4ce   :  { %v4895_v53 = vadd.f32 %v4894_v54, %v4893_v6  ;;  %v3924_v41 = vpop.f32.mrf.mxu2  ;;  %v3499_v31 = vpop.f32.mrf.mxu0  ;;  %v7058_v6 = vld [vmem:[%s11824_s0 + $0x8f8] sm:$0xf0] }
 0x4cf   :  { %v4138_v56 = vpop.f32.mrf.mxu3  ;;  %v5149_v29 = vsel %vm4794_vm1, %v5018_v43, 0.0  ;;  %5358 = vst.msk [vmem:[%s11825_s3 + $0xc8] sm:$0xf] %vm5307_vm0, %v5271_v44  ;;  %v3925_v52 = vadd.f32 %v3924_v41, %v3711_v5  ;;  %v3713_v19 = vpop.f32.mrf.mxu1  ;;  %v3500_v58 = vadd.f32 %v3499_v31, %v11882_v61  ;;  %v7061_v37 = vor.u32 %v7761_v40, %v7058_v6  ;;  %v7772_v61 = vld [vmem:[%s11824_s0 + $0x92c] sm:$0xf0] }
 0x4d0   :  { %v5150_v17 = vadd.f32 %v5149_v29, %v5148_v27  ;;  %v11886_v40 = vld [vmem:[#allocation21_spill] sm:$0xff] }
 0x4d1   :  { %v4139_v50 = vadd.f32 %v4138_v56, %v3925_v52  ;;  %3538 = vmatmul.bf16.gmra.mxu0 %v7017_v0  ;;  %v3714_v60 = vadd.f32 %v3713_v19, %v3500_v58  ;;  %v7768_v58 = vld [vmem:[%s11824_s0 + $0x914] sm:$0xf] }
 0x4d2   :  { %3752 = vmatmul.bf16.gmra.mxu1 %v7021_v2 }
 0x4d3   :  { %v4267_v35 = vmax.f32 %v4139_v50, 0.0  ;;  %3966 = vmatmul.bf16.gmra.mxu2 %v7025_v24  ;;  %v7080_v50 = vld [vmem:[%s11824_s0 + $0x910] sm:$0xf] }
 0x4d4   :  { %4180 = vmatmul.bf16.gmra.mxu3 %v7029_v49  ;;  %v11885_v49 = vld [vmem:[#allocation20_spill] sm:$0xff] }
 0x4d5   :  { %v4896_v8 = vsel %vm4794_vm1, %v4267_v35, 0.0  ;;  %v5019_v9 = vmul.f32 %v4267_v35, %v4267_v35  ;;  %v5272_v38 = vpack.c.bf16 %v4267_v35, %v4267_v35 }
 0x4d6   :  { %v4897_v1 = vadd.f32 %v4896_v8, %v4895_v53  ;;  %v3927_v63 = vpop.f32.mrf.mxu2  ;;  %v3501_v32 = vpop.f32.mrf.mxu0  ;;  %v7082_v8 = vld [vmem:[%s11824_s0 + $0x930] sm:$0xf0] }
 0x4d7   :  { %v4141_v18 = vpop.f32.mrf.mxu3  ;;  %v5151_v42 = vsel %vm4794_vm1, %v5019_v9, 0.0  ;;  %5359 = vst.msk [vmem:[%s11825_s3 + $0xcc] sm:$0xf] %vm5307_vm0, %v5272_v38  ;;  %v3928_v14 = vadd.f32 %v3927_v63, %v3714_v60  ;;  %v3715_v25 = vpop.f32.mrf.mxu1  ;;  %v3502_v59 = vadd.f32 %v3501_v32, %v11883_v62  ;;  %v7088_v9 = vld [vmem:[%s11824_s0 + $0x918] sm:$0xf]  ;;  %v7085_v62 = vor.u32 %v7768_v58, %v7082_v8 }
 0x4d8   :  { %v5152_v55 = vadd.f32 %v5151_v42, %v5150_v17  ;;  %v7773_v38 = vld [vmem:[%s11824_s0 + $0x934] sm:$0xf0]  ;;  %v7769_v60 = vld [vmem:[%s11824_s0 + $0x91c] sm:$0xf] }
 0x4d9   :  { %v4142_v30 = vadd.f32 %v4141_v18, %v3928_v14  ;;  %v3716_v33 = vadd.f32 %v3715_v25, %v3502_v59 }
 0x4db   :  { %v4268_v36 = vmax.f32 %v4142_v30, 0.0  ;;  %v7081_v30 = vor.u32 %v7772_v61, %v7080_v50 }
 0x4dd   :  { %v4898_v26 = vsel %vm4794_vm1, %v4268_v36, 0.0  ;;  %v5020_v47 = vmul.f32 %v4268_v36, %v4268_v36  ;;  %v5273_v51 = vpack.c.bf16 %v4268_v36, %v4268_v36  ;;  %v7089_v36 = vor.u32 %v7773_v38, %v7088_v9 }
 0x4de   :  { %v4899_v45 = vadd.f32 %v4898_v26, %v4897_v1  ;;  %v3929_v34 = vpop.f32.mrf.mxu2  ;;  %v3504_v23 = vpop.f32.mrf.mxu0  ;;  %v7090_v1 = vld [vmem:[%s11824_s0 + $0x938] sm:$0xf0] }
 0x4df   :  { %v4143_v27 = vpop.f32.mrf.mxu3  ;;  %v5153_v3 = vsel %vm4794_vm1, %v5020_v47, 0.0  ;;  %5360 = vst.msk [vmem:[%s11825_s3 + $0xd0] sm:$0xf] %vm5307_vm0, %v5273_v51  ;;  %v3930_v39 = vadd.f32 %v3929_v34, %v3716_v33  ;;  %v3718_v20 = vpop.f32.mrf.mxu1  ;;  %v3505_v22 = vadd.f32 %v3504_v23, %v11884_v7  ;;  %v7093_v57 = vor.u32 %v7769_v60, %v7090_v1  ;;  %v7780_v7 = vld [vmem:[%s11824_s0 + $0x96c] sm:$0xf0]  ;;  %v11888_v60 = vld [vmem:[#allocation23_spill] sm:$0xff] }
 0x4e0   :  { %v5154_v13 = vadd.f32 %v5153_v3, %v5152_v55 }
 0x4e1   :  { %v4144_v21 = vadd.f32 %v4143_v27, %v3930_v39  ;;  %3543 = vmatmul.bf16.gmra.mxu0 %v7049_v12  ;;  %v3719_v53 = vadd.f32 %v3718_v20, %v3505_v22  ;;  %v7776_v22 = vld [vmem:[%s11824_s0 + $0x954] sm:$0xf] }
 0x4e2   :  { %3757 = vmatmul.bf16.gmra.mxu1 %v7053_v4 }
 0x4e3   :  { %v4269_v54 = vmax.f32 %v4144_v21, 0.0  ;;  %3971 = vmatmul.bf16.gmra.mxu2 %v7057_v28  ;;  %v7112_v21 = vld [vmem:[%s11824_s0 + $0x950] sm:$0xf] }
 0x4e4   :  { %4185 = vmatmul.bf16.gmra.mxu3 %v7061_v37  ;;  %v11887_v37 = vld [vmem:[#allocation22_spill] sm:$0xff] }
 0x4e5   :  { %v4900_v43 = vsel %vm4794_vm1, %v4269_v54, 0.0  ;;  %v5021_v44 = vmul.f32 %v4269_v54, %v4269_v54  ;;  %v5274_v5 = vpack.c.bf16 %v4269_v54, %v4269_v54 }
 0x4e6   :  { %v4901_v41 = vadd.f32 %v4900_v43, %v4899_v45  ;;  %v3932_v56 = vpop.f32.mrf.mxu2  ;;  %v3506_v52 = vpop.f32.mrf.mxu0  ;;  %v7114_v43 = vld [vmem:[%s11824_s0 + $0x970] sm:$0xf0] }
 0x4e7   :  { %v4146_v0 = vpop.f32.mrf.mxu3  ;;  %v5155_v2 = vsel %vm4794_vm1, %v5021_v44, 0.0  ;;  %5361 = vst.msk [vmem:[%s11825_s3 + $0xd4] sm:$0xf] %vm5307_vm0, %v5274_v5  ;;  %v3933_v29 = vadd.f32 %v3932_v56, %v3719_v53  ;;  %v3720_v31 = vpop.f32.mrf.mxu1  ;;  %v3507_v17 = vadd.f32 %v3506_v52, %v11885_v49  ;;  %v7120_v44 = vld [vmem:[%s11824_s0 + $0x958] sm:$0xf]  ;;  %v7117_v49 = vor.u32 %v7776_v22, %v7114_v43 }
 0x4e8   :  { %v5156_v19 = vadd.f32 %v5155_v2, %v5154_v13  ;;  %v7781_v5 = vld [vmem:[%s11824_s0 + $0x974] sm:$0xf0]  ;;  %v7777_v53 = vld [vmem:[%s11824_s0 + $0x95c] sm:$0xf] }
 0x4e9   :  { %v4147_v24 = vadd.f32 %v4146_v0, %v3933_v29  ;;  %v3721_v14 = vadd.f32 %v3720_v31, %v3507_v17 }
 0x4eb   :  { %v4270_v35 = vmax.f32 %v4147_v24, 0.0  ;;  %v7113_v24 = vor.u32 %v7780_v7, %v7112_v21 }
 0x4ed   :  { %v4902_v63 = vsel %vm4794_vm1, %v4270_v35, 0.0  ;;  %v5022_v18 = vmul.f32 %v4270_v35, %v4270_v35  ;;  %v5275_v42 = vpack.c.bf16 %v4270_v35, %v4270_v35  ;;  %v7121_v35 = vor.u32 %v7781_v5, %v7120_v44 }
 0x4ee   :  { %v4903_v32 = vadd.f32 %v4902_v63, %v4901_v41  ;;  %v3934_v25 = vpop.f32.mrf.mxu2  ;;  %v3509_v48 = vpop.f32.mrf.mxu0  ;;  %v7122_v41 = vld [vmem:[%s11824_s0 + $0x978] sm:$0xf0] }
 0x4ef   :  { %v4148_v55 = vpop.f32.mrf.mxu3  ;;  %v5157_v59 = vsel %vm4794_vm1, %v5022_v18, 0.0  ;;  %5362 = vst.msk [vmem:[%s11825_s3 + $0xd8] sm:$0xf] %vm5307_vm0, %v5275_v42  ;;  %v3935_v15 = vadd.f32 %v3934_v25, %v3721_v14  ;;  %v3723_v11 = vpop.f32.mrf.mxu1  ;;  %v3510_v6 = vadd.f32 %v3509_v48, %v11886_v40  ;;  %v7125_v8 = vor.u32 %v7777_v53, %v7122_v41  ;;  %v7788_v40 = vld [vmem:[%s11824_s0 + $0x9ac] sm:$0xf0] }
 0x4f0   :  { %v5158_v16 = vadd.f32 %v5157_v59, %v5156_v19  ;;  %v11890_v53 = vld [vmem:[#allocation25_spill] sm:$0xff] }
 0x4f1   :  { %v4149_v46 = vadd.f32 %v4148_v55, %v3935_v15  ;;  %3548 = vmatmul.bf16.gmra.mxu0 %v7081_v30  ;;  %v3724_v45 = vadd.f32 %v3723_v11, %v3510_v6  ;;  %v7784_v6 = vld [vmem:[%s11824_s0 + $0x994] sm:$0xf] }
 0x4f2   :  { %3762 = vmatmul.bf16.gmra.mxu1 %v7085_v62 }
 0x4f3   :  { %v4271_v26 = vmax.f32 %v4149_v46, 0.0  ;;  %3976 = vmatmul.bf16.gmra.mxu2 %v7089_v36  ;;  %v7144_v46 = vld [vmem:[%s11824_s0 + $0x990] sm:$0xf] }
 0x4f4   :  { %4190 = vmatmul.bf16.gmra.mxu3 %v7093_v57  ;;  %v11889_v57 = vld [vmem:[#allocation24_spill] sm:$0xff] }
 0x4f5   :  { %v4904_v47 = vsel %vm4794_vm1, %v4271_v26, 0.0  ;;  %v5023_v51 = vmul.f32 %v4271_v26, %v4271_v26  ;;  %v5276_v33 = vpack.c.bf16 %v4271_v26, %v4271_v26 }
 0x4f6   :  { %v4905_v34 = vadd.f32 %v4904_v47, %v4903_v32  ;;  %v3937_v27 = vpop.f32.mrf.mxu2  ;;  %v3511_v39 = vpop.f32.mrf.mxu0  ;;  %v7146_v47 = vld [vmem:[%s11824_s0 + $0x9b0] sm:$0xf0] }
 0x4f7   :  { %v4151_v12 = vpop.f32.mrf.mxu3  ;;  %v5159_v4 = vsel %vm4794_vm1, %v5023_v51, 0.0  ;;  %5363 = vst.msk [vmem:[%s11825_s3 + $0xdc] sm:$0xf] %vm5307_vm0, %v5276_v33  ;;  %v3938_v3 = vadd.f32 %v3937_v27, %v3724_v45  ;;  %v3725_v23 = vpop.f32.mrf.mxu1  ;;  %v3512_v13 = vadd.f32 %v3511_v39, %v11887_v37  ;;  %v7152_v51 = vld [vmem:[%s11824_s0 + $0x998] sm:$0xf]  ;;  %v7149_v37 = vor.u32 %v7784_v6, %v7146_v47 }
 0x4f8   :  { %v5160_v20 = vadd.f32 %v5159_v4, %v5158_v16  ;;  %v7789_v33 = vld [vmem:[%s11824_s0 + $0x9b4] sm:$0xf0]  ;;  %v7785_v45 = vld [vmem:[%s11824_s0 + $0x99c] sm:$0xf] }
 0x4f9   :  { %v4152_v28 = vadd.f32 %v4151_v12, %v3938_v3  ;;  %v3726_v29 = vadd.f32 %v3725_v23, %v3512_v13 }
 0x4fb   :  { %v4272_v54 = vmax.f32 %v4152_v28, 0.0  ;;  %v7145_v28 = vor.u32 %v7788_v40, %v7144_v46 }
 0x4fd   :  { %v4906_v56 = vsel %vm4794_vm1, %v4272_v54, 0.0  ;;  %v5024_v0 = vmul.f32 %v4272_v54, %v4272_v54  ;;  %v5277_v2 = vpack.c.bf16 %v4272_v54, %v4272_v54  ;;  %v7153_v54 = vor.u32 %v7789_v33, %v7152_v51 }
 0x4fe   :  { %v4907_v52 = vadd.f32 %v4906_v56, %v4905_v34  ;;  %v3939_v31 = vpop.f32.mrf.mxu2  ;;  %v3514_v61 = vpop.f32.mrf.mxu0  ;;  %v7154_v34 = vld [vmem:[%s11824_s0 + $0x9b8] sm:$0xf0] }
 0x4ff   :  { %v4153_v19 = vpop.f32.mrf.mxu3  ;;  %v5161_v17 = vsel %vm4794_vm1, %v5024_v0, 0.0  ;;  %5364 = vst.msk [vmem:[%s11825_s3 + $0xe0] sm:$0xf] %vm5307_vm0, %v5277_v2  ;;  %v3940_v50 = vadd.f32 %v3939_v31, %v3726_v29  ;;  %v3728_v58 = vpop.f32.mrf.mxu1  ;;  %v3515_v1 = vadd.f32 %v3514_v61, %v11888_v60  ;;  %v7157_v43 = vor.u32 %v7785_v45, %v7154_v34  ;;  %v7796_v60 = vld [vmem:[%s11824_s0 + $0x9ec] sm:$0xf0]  ;;  %v11892_v45 = vld [vmem:[#allocation27_spill] sm:$0xff] }
 0x500   :  { %v5162_v9 = vadd.f32 %v5161_v17, %v5160_v20 }
 0x501   :  { %v4154_v38 = vadd.f32 %v4153_v19, %v3940_v50  ;;  %3553 = vmatmul.bf16.gmra.mxu0 %v7113_v24  ;;  %v3729_v32 = vadd.f32 %v3728_v58, %v3515_v1  ;;  %v7792_v1 = vld [vmem:[%s11824_s0 + $0x9d4] sm:$0xf] }
 0x502   :  { %3767 = vmatmul.bf16.gmra.mxu1 %v7117_v49 }
 0x503   :  { %v4273_v63 = vmax.f32 %v4154_v38, 0.0  ;;  %3981 = vmatmul.bf16.gmra.mxu2 %v7121_v35  ;;  %v7176_v38 = vld [vmem:[%s11824_s0 + $0x9d0] sm:$0xf] }
 0x504   :  { %4195 = vmatmul.bf16.gmra.mxu3 %v7125_v8  ;;  %v11891_v8 = vld [vmem:[#allocation26_spill] sm:$0xff] }
 0x505   :  { %v4908_v18 = vsel %vm4794_vm1, %v4273_v63, 0.0  ;;  %v5025_v42 = vmul.f32 %v4273_v63, %v4273_v63  ;;  %v5278_v14 = vpack.c.bf16 %v4273_v63, %v4273_v63 }
 0x506   :  { %v4909_v25 = vadd.f32 %v4908_v18, %v4907_v52  ;;  %v3942_v55 = vpop.f32.mrf.mxu2  ;;  %v3516_v15 = vpop.f32.mrf.mxu0  ;;  %v7178_v18 = vld [vmem:[%s11824_s0 + $0x9f0] sm:$0xf0] }
 0x507   :  { %v4156_v30 = vpop.f32.mrf.mxu3  ;;  %v5163_v62 = vsel %vm4794_vm1, %v5025_v42, 0.0  ;;  %5365 = vst.msk [vmem:[%s11825_s3 + $0xe4] sm:$0xf] %vm5307_vm0, %v5278_v14  ;;  %v3943_v59 = vadd.f32 %v3942_v55, %v3729_v32  ;;  %v3730_v48 = vpop.f32.mrf.mxu1  ;;  %v3517_v16 = vadd.f32 %v3516_v15, %v11889_v57  ;;  %v7184_v42 = vld [vmem:[%s11824_s0 + $0x9d8] sm:$0xf]  ;;  %v7181_v57 = vor.u32 %v7792_v1, %v7178_v18 }
 0x508   :  { %v5164_v11 = vadd.f32 %v5163_v62, %v5162_v9  ;;  %v7797_v14 = vld [vmem:[%s11824_s0 + $0x9f4] sm:$0xf0]  ;;  %v7793_v32 = vld [vmem:[%s11824_s0 + $0x9dc] sm:$0xf] }
 0x509   :  { %v4157_v36 = vadd.f32 %v4156_v30, %v3943_v59  ;;  %v3731_v3 = vadd.f32 %v3730_v48, %v3517_v16 }
 0x50b   :  { %v4274_v26 = vmax.f32 %v4157_v36, 0.0  ;;  %v7177_v36 = vor.u32 %v7796_v60, %v7176_v38 }
 0x50d   :  { %v4910_v27 = vsel %vm4794_vm1, %v4274_v26, 0.0  ;;  %v5026_v12 = vmul.f32 %v4274_v26, %v4274_v26  ;;  %v5279_v4 = vpack.c.bf16 %v4274_v26, %v4274_v26  ;;  %v7185_v26 = vor.u32 %v7797_v14, %v7184_v42 }
 0x50e   :  { %v4911_v39 = vadd.f32 %v4910_v27, %v4909_v25  ;;  %v3944_v23 = vpop.f32.mrf.mxu2  ;;  %v3519_v7 = vpop.f32.mrf.mxu0  ;;  %v7186_v25 = vld [vmem:[%s11824_s0 + $0x9f8] sm:$0xf0] }
 0x50f   :  { %v4158_v20 = vpop.f32.mrf.mxu3  ;;  %v5165_v13 = vsel %vm4794_vm1, %v5026_v12, 0.0  ;;  %5366 = vst.msk [vmem:[%s11825_s3 + $0xe8] sm:$0xf] %vm5307_vm0, %v5279_v4  ;;  %v3945_v21 = vadd.f32 %v3944_v23, %v3731_v3  ;;  %v3733_v22 = vpop.f32.mrf.mxu1  ;;  %v3520_v41 = vadd.f32 %v3519_v7, %v11890_v53  ;;  %v7189_v47 = vor.u32 %v7793_v32, %v7186_v25  ;;  %v7804_v53 = vld [vmem:[%s11824_s0 + $0xa2c] sm:$0xf0] }
 0x510   :  { %v5166_v44 = vadd.f32 %v5165_v13, %v5164_v11  ;;  %v11894_v32 = vld [vmem:[#allocation29_spill] sm:$0xff] }
 0x511   :  { %v4159_v5 = vadd.f32 %v4158_v20, %v3945_v21  ;;  %3558 = vmatmul.bf16.gmra.mxu0 %v7145_v28  ;;  %v3734_v52 = vadd.f32 %v3733_v22, %v3520_v41  ;;  %v7800_v41 = vld [vmem:[%s11824_s0 + $0xa14] sm:$0xf] }
 0x512   :  { %3772 = vmatmul.bf16.gmra.mxu1 %v7149_v37 }
 0x513   :  { %v4275_v56 = vmax.f32 %v4159_v5, 0.0  ;;  %3986 = vmatmul.bf16.gmra.mxu2 %v7153_v54  ;;  %v7208_v5 = vld [vmem:[%s11824_s0 + $0xa10] sm:$0xf] }
 0x514   :  { %4200 = vmatmul.bf16.gmra.mxu3 %v7157_v43  ;;  %v11893_v43 = vld [vmem:[#allocation28_spill] sm:$0xff] }
 0x515   :  { %v4912_v0 = vsel %vm4794_vm1, %v4275_v56, 0.0  ;;  %v5027_v2 = vmul.f32 %v4275_v56, %v4275_v56  ;;  %v5280_v29 = vpack.c.bf16 %v4275_v56, %v4275_v56 }
 0x516   :  { %v4913_v31 = vadd.f32 %v4912_v0, %v4911_v39  ;;  %v3947_v19 = vpop.f32.mrf.mxu2  ;;  %v3521_v50 = vpop.f32.mrf.mxu0  ;;  %v7210_v0 = vld [vmem:[%s11824_s0 + $0xa30] sm:$0xf0] }
 0x517   :  { %v4161_v24 = vpop.f32.mrf.mxu3  ;;  %v5167_v49 = vsel %vm4794_vm1, %v5027_v2, 0.0  ;;  %5367 = vst.msk [vmem:[%s11825_s3 + $0xec] sm:$0xf] %vm5307_vm0, %v5280_v29  ;;  %v3948_v17 = vadd.f32 %v3947_v19, %v3734_v52  ;;  %v3735_v61 = vpop.f32.mrf.mxu1  ;;  %v3522_v9 = vadd.f32 %v3521_v50, %v11891_v8  ;;  %v7216_v2 = vld [vmem:[%s11824_s0 + $0xa18] sm:$0xf]  ;;  %v7213_v8 = vor.u32 %v7800_v41, %v7210_v0 }
 0x518   :  { %v5168_v58 = vadd.f32 %v5167_v49, %v5166_v44  ;;  %v7805_v29 = vld [vmem:[%s11824_s0 + $0xa34] sm:$0xf0]  ;;  %v7801_v52 = vld [vmem:[%s11824_s0 + $0xa1c] sm:$0xf] }
 0x519   :  { %v4162_v35 = vadd.f32 %v4161_v24, %v3948_v17  ;;  %v3736_v59 = vadd.f32 %v3735_v61, %v3522_v9 }
 0x51b   :  { %v4276_v63 = vmax.f32 %v4162_v35, 0.0  ;;  %v7209_v35 = vor.u32 %v7804_v53, %v7208_v5 }
 0x51d   :  { %v4914_v55 = vsel %vm4794_vm1, %v4276_v63, 0.0  ;;  %v5028_v30 = vmul.f32 %v4276_v63, %v4276_v63  ;;  %v5281_v62 = vpack.c.bf16 %v4276_v63, %v4276_v63  ;;  %v7217_v63 = vor.u32 %v7805_v29, %v7216_v2 }
 0x51e   :  { %v4915_v15 = vadd.f32 %v4914_v55, %v4913_v31  ;;  %v3949_v48 = vpop.f32.mrf.mxu2  ;;  %v3524_v40 = vpop.f32.mrf.mxu0  ;;  %v7218_v31 = vld [vmem:[%s11824_s0 + $0xa38] sm:$0xf0] }
 0x51f   :  { %v4163_v11 = vpop.f32.mrf.mxu3  ;;  %v5169_v16 = vsel %vm4794_vm1, %v5028_v30, 0.0  ;;  %5368 = vst.msk [vmem:[%s11825_s3 + $0xf0] sm:$0xf] %vm5307_vm0, %v5281_v62  ;;  %v3950_v46 = vadd.f32 %v3949_v48, %v3736_v59  ;;  %v3738_v6 = vpop.f32.mrf.mxu1  ;;  %v3525_v34 = vadd.f32 %v3524_v40, %v11892_v45  ;;  %v7221_v18 = vor.u32 %v7801_v52, %v7218_v31 }
 0x520   :  { %v5170_v51 = vadd.f32 %v5169_v16, %v5168_v58 }
 0x521   :  { %v4164_v33 = vadd.f32 %v4163_v11, %v3950_v46  ;;  %3563 = vmatmul.bf16.gmra.mxu0 %v7177_v36  ;;  %v3739_v39 = vadd.f32 %v3738_v6, %v3525_v34 }
 0x522   :  { %3777 = vmatmul.bf16.gmra.mxu1 %v7181_v57 }
 0x523   :  { %v4277_v27 = vmax.f32 %v4164_v33, 0.0  ;;  %3991 = vmatmul.bf16.gmra.mxu2 %v7185_v26 }
 0x524   :  { %4205 = vmatmul.bf16.gmra.mxu3 %v7189_v47  ;;  %v11895_v47 = vld [vmem:[#allocation30_spill] sm:$0xff] }
 0x525   :  { %v4916_v12 = vsel %vm4794_vm1, %v4277_v27, 0.0  ;;  %v5029_v4 = vmul.f32 %v4277_v27, %v4277_v27  ;;  %v5282_v3 = vpack.c.bf16 %v4277_v27, %v4277_v27 }
 0x526   :  { %v4917_v23 = vadd.f32 %v4916_v12, %v4915_v15  ;;  %v3952_v20 = vpop.f32.mrf.mxu2  ;;  %v3526_v21 = vpop.f32.mrf.mxu0 }
 0x527   :  { %v4166_v28 = vpop.f32.mrf.mxu3  ;;  %v5171_v37 = vsel %vm4794_vm1, %v5029_v4, 0.0  ;;  %5369 = vst.msk [vmem:[%s11825_s3 + $0xf4] sm:$0xf] %vm5307_vm0, %v5282_v3  ;;  %v3953_v13 = vadd.f32 %v3952_v20, %v3739_v39  ;;  %v3740_v7 = vpop.f32.mrf.mxu1  ;;  %v3527_v44 = vadd.f32 %v3526_v21, %v11893_v43 }
 0x528   :  { %v5172_v22 = vadd.f32 %v5171_v37, %v5170_v51 }
 0x529   :  { %v4167_v54 = vadd.f32 %v4166_v28, %v3953_v13  ;;  %v3741_v17 = vadd.f32 %v3740_v7, %v3527_v44  ;;  %v11896_v7 = vld [vmem:[#allocation31_spill] sm:$0xff] }
 0x52b   :  { %v4278_v56 = vmax.f32 %v4167_v54, 0.0 }
 0x52d   :  { %v4918_v19 = vsel %vm4794_vm1, %v4278_v56, 0.0  ;;  %v5030_v24 = vmul.f32 %v4278_v56, %v4278_v56  ;;  %v5283_v49 = vpack.c.bf16 %v4278_v56, %v4278_v56 }
 0x52e   :  { %v4919_v50 = vadd.f32 %v4918_v19, %v4917_v23  ;;  %v3954_v61 = vpop.f32.mrf.mxu2  ;;  %v3529_v60 = vpop.f32.mrf.mxu0 }
 0x52f   :  { %v4168_v58 = vpop.f32.mrf.mxu3  ;;  %v5173_v9 = vsel %vm4794_vm1, %v5030_v24, 0.0  ;;  %5370 = vst.msk [vmem:[%s11825_s3 + $0xf8] sm:$0xf] %vm5307_vm0, %v5283_v49  ;;  %v3955_v38 = vadd.f32 %v3954_v61, %v3741_v17  ;;  %v3743_v1 = vpop.f32.mrf.mxu1  ;;  %v3530_v25 = vadd.f32 %v3529_v60, %v11894_v32  ;;  %v11897_v49 = vld [vmem:[#allocation32_spill] sm:$0xff] }
 0x530   :  { %v5174_v42 = vadd.f32 %v5173_v9, %v5172_v22 }
 0x531   :  { %v4169_v14 = vadd.f32 %v4168_v58, %v3955_v38  ;;  %3568 = vmatmul.bf16.gmra.mxu0 %v7209_v35  ;;  %v3744_v15 = vadd.f32 %v3743_v1, %v3530_v25  ;;  %v11898_v25 = vld [vmem:[#allocation33_spill] sm:$0xff] }
 0x532   :  { %3782 = vmatmul.bf16.gmra.mxu1 %v7213_v8 }
 0x533   :  { %v4279_v55 = vmax.f32 %v4169_v14, 0.0  ;;  %3996 = vmatmul.bf16.gmra.mxu2 %v7217_v63 }
 0x534   :  { %4210 = vmatmul.bf16.gmra.mxu3 %v7221_v18 }
 0x535   :  { %v4920_v30 = vsel %vm4794_vm1, %v4279_v55, 0.0  ;;  %v5031_v62 = vmul.f32 %v4279_v55, %v4279_v55  ;;  %v5284_v59 = vpack.c.bf16 %v4279_v55, %v4279_v55 }
 0x536   :  { %v4921_v48 = vadd.f32 %v4920_v30, %v4919_v50  ;;  %v3957_v11 = vpop.f32.mrf.mxu2  ;;  %v3531_v46 = vpop.f32.mrf.mxu0 }
 0x537   :  { %v4171_v36 = vpop.f32.mrf.mxu3  ;;  %v5175_v57 = vsel %vm4794_vm1, %v5031_v62, 0.0  ;;  %5371 = vst.msk [vmem:[%s11825_s3 + $0xfc] sm:$0xf] %vm5307_vm0, %v5284_v59  ;;  %v3958_v16 = vadd.f32 %v3957_v11, %v3744_v15  ;;  %v3745_v40 = vpop.f32.mrf.mxu1  ;;  %v3532_v51 = vadd.f32 %v3531_v46, %v11895_v47 }
 0x538   :  { %v5176_v6 = vadd.f32 %v5175_v57, %v5174_v42 }
 0x539   :  { %v4172_v26 = vadd.f32 %v4171_v36, %v3958_v16  ;;  %v3746_v12 = vadd.f32 %v3745_v40, %v3532_v51  ;;  %v11899_v51 = vld [vmem:[#allocation34_spill] sm:$0xff] }
 0x53b   :  { %v4280_v33 = vmax.f32 %v4172_v26, 0.0 }
 0x53d   :  { %v4922_v45 = vsel %vm4794_vm1, %v4280_v33, 0.0  ;;  %v5032_v34 = vmul.f32 %v4280_v33, %v4280_v33  ;;  %v5285_v27 = vpack.c.bf16 %v4280_v33, %v4280_v33 }
 0x53e   :  { %v4923_v4 = vadd.f32 %v4922_v45, %v4921_v48  ;;  %v3959_v3 = vpop.f32.mrf.mxu2  ;;  %v3534_v28 = vpop.f32.mrf.mxu0 }
 0x53f   :  { %v4173_v39 = vpop.f32.mrf.mxu3  ;;  %v5177_v23 = vsel %vm4794_vm1, %v5032_v34, 0.0  ;;  %5372 = vst.msk [vmem:[%s11825_s3 + $0x100] sm:$0xf] %vm5307_vm0, %v5285_v27  ;;  %v3960_v20 = vadd.f32 %v3959_v3, %v3746_v12  ;;  %v3748_v37 = vpop.f32.mrf.mxu1  ;;  %v3535_v22 = vadd.f32 %v3534_v28, %v11896_v7 }
 0x540   :  { %v5178_v13 = vadd.f32 %v5177_v23, %v5176_v6 }
 0x541   :  { %v4174_v21 = vadd.f32 %v4173_v39, %v3960_v20  ;;  %v3749_v53 = vadd.f32 %v3748_v37, %v3535_v22  ;;  %v11900_v22 = vld [vmem:[#allocation35_spill] sm:$0xff] }
 0x543   :  { %v4281_v54 = vmax.f32 %v4174_v21, 0.0 }
 0x545   :  { %v4924_v43 = vsel %vm4794_vm1, %v4281_v54, 0.0  ;;  %v5033_v44 = vmul.f32 %v4281_v54, %v4281_v54  ;;  %v5286_v5 = vpack.c.bf16 %v4281_v54, %v4281_v54 }
 0x546   :  { %v4925_v41 = vadd.f32 %v4924_v43, %v4923_v4  ;;  %v3962_v56 = vpop.f32.mrf.mxu2  ;;  %v3536_v52 = vpop.f32.mrf.mxu0 }
 0x547   :  { %v4176_v0 = vpop.f32.mrf.mxu3  ;;  %v5179_v2 = vsel %vm4794_vm1, %v5033_v44, 0.0  ;;  %5373 = vst.msk [vmem:[%s11825_s3 + $0x104] sm:$0xf] %vm5307_vm0, %v5286_v5  ;;  %v3963_v29 = vadd.f32 %v3962_v56, %v3749_v53  ;;  %v3750_v31 = vpop.f32.mrf.mxu1  ;;  %v3537_v17 = vadd.f32 %v3536_v52, %v11897_v49 }
 0x548   :  { %v5180_v19 = vadd.f32 %v5179_v2, %v5178_v13 }
 0x549   :  { %v4177_v24 = vadd.f32 %v4176_v0, %v3963_v29  ;;  %v3751_v8 = vadd.f32 %v3750_v31, %v3537_v17  ;;  %v11901_v17 = vld [vmem:[#allocation36_spill] sm:$0xff] }
 0x54b   :  { %v4282_v50 = vmax.f32 %v4177_v24, 0.0 }
 0x54d   :  { %v4926_v61 = vsel %vm4794_vm1, %v4282_v50, 0.0  ;;  %v5034_v58 = vmul.f32 %v4282_v50, %v4282_v50  ;;  %v5287_v35 = vpack.c.bf16 %v4282_v50, %v4282_v50 }
 0x54e   :  { %v4927_v9 = vadd.f32 %v4926_v61, %v4925_v41  ;;  %v3964_v38 = vpop.f32.mrf.mxu2  ;;  %v3539_v18 = vpop.f32.mrf.mxu0 }
 0x54f   :  { %v4178_v60 = vpop.f32.mrf.mxu3  ;;  %v5181_v1 = vsel %vm4794_vm1, %v5034_v58, 0.0  ;;  %5374 = vst.msk [vmem:[%s11825_s3 + $0x108] sm:$0xf] %vm5307_vm0, %v5287_v35  ;;  %v3965_v63 = vadd.f32 %v3964_v38, %v3751_v8  ;;  %v3753_v42 = vpop.f32.mrf.mxu1  ;;  %v3540_v55 = vadd.f32 %v3539_v18, %v11898_v25 }
 0x550   :  { %v5182_v14 = vadd.f32 %v5181_v1, %v5180_v19 }
 0x551   :  { %v4179_v32 = vadd.f32 %v4178_v60, %v3965_v63  ;;  %v3754_v48 = vadd.f32 %v3753_v42, %v3540_v55  ;;  %v11902_v55 = vld [vmem:[#allocation37_spill] sm:$0xff] }
 0x553   :  { %v4283_v30 = vmax.f32 %v4179_v32, 0.0 }
 0x555   :  { %v4928_v62 = vsel %vm4794_vm1, %v4283_v30, 0.0  ;;  %v5035_v59 = vmul.f32 %v4283_v30, %v4283_v30  ;;  %v5288_v15 = vpack.c.bf16 %v4283_v30, %v4283_v30 }
 0x556   :  { %v4929_v11 = vadd.f32 %v4928_v62, %v4927_v9  ;;  %v3967_v36 = vpop.f32.mrf.mxu2  ;;  %v3541_v40 = vpop.f32.mrf.mxu0 }
 0x557   :  { %v4181_v57 = vpop.f32.mrf.mxu3  ;;  %v5183_v16 = vsel %vm4794_vm1, %v5035_v59, 0.0  ;;  %5375 = vst.msk [vmem:[%s11825_s3 + $0x10c] sm:$0xf] %vm5307_vm0, %v5288_v15  ;;  %v3968_v46 = vadd.f32 %v3967_v36, %v3754_v48  ;;  %v3755_v6 = vpop.f32.mrf.mxu1  ;;  %v3542_v33 = vadd.f32 %v3541_v40, %v11899_v51 }
 0x558   :  { %v5184_v26 = vadd.f32 %v5183_v16, %v5182_v14 }
 0x559   :  { %v4182_v47 = vadd.f32 %v4181_v57, %v3968_v46  ;;  %v3756_v4 = vadd.f32 %v3755_v6, %v3542_v33  ;;  %v11903_v33 = vld [vmem:[#allocation38_spill] sm:$0xff] }
 0x55b   :  { %v4284_v45 = vmax.f32 %v4182_v47, 0.0 }
 0x55d   :  { %v4930_v34 = vsel %vm4794_vm1, %v4284_v45, 0.0  ;;  %v5036_v27 = vmul.f32 %v4284_v45, %v4284_v45  ;;  %v5289_v12 = vpack.c.bf16 %v4284_v45, %v4284_v45 }
 0x55e   :  { %v4931_v3 = vadd.f32 %v4930_v34, %v4929_v11  ;;  %v3969_v39 = vpop.f32.mrf.mxu2  ;;  %v3544_v37 = vpop.f32.mrf.mxu0 }
 0x55f   :  { %v4183_v23 = vpop.f32.mrf.mxu3  ;;  %v5185_v20 = vsel %vm4794_vm1, %v5036_v27, 0.0  ;;  %5376 = vst.msk [vmem:[%s11825_s3 + $0x110] sm:$0xf] %vm5307_vm0, %v5289_v12  ;;  %v3970_v28 = vadd.f32 %v3969_v39, %v3756_v4  ;;  %v3758_v13 = vpop.f32.mrf.mxu1  ;;  %v3545_v54 = vadd.f32 %v3544_v37, %v11900_v22 }
 0x560   :  { %v5186_v21 = vadd.f32 %v5185_v20, %v5184_v26 }
 0x561   :  { %v4184_v7 = vadd.f32 %v4183_v23, %v3970_v28  ;;  %v3759_v41 = vadd.f32 %v3758_v13, %v3545_v54  ;;  %v11904_v54 = vld [vmem:[#allocation39_spill] sm:$0xff] }
 0x563   :  { %v4285_v43 = vmax.f32 %v4184_v7, 0.0 }
 0x565   :  { %v4932_v44 = vsel %vm4794_vm1, %v4285_v43, 0.0  ;;  %v5037_v5 = vmul.f32 %v4285_v43, %v4285_v43  ;;  %v5290_v53 = vpack.c.bf16 %v4285_v43, %v4285_v43 }
 0x566   :  { %v4933_v56 = vadd.f32 %v4932_v44, %v4931_v3  ;;  %v3972_v0 = vpop.f32.mrf.mxu2  ;;  %v3546_v31 = vpop.f32.mrf.mxu0 }
 0x567   :  { %v4186_v2 = vpop.f32.mrf.mxu3  ;;  %v5187_v29 = vsel %vm4794_vm1, %v5037_v5, 0.0  ;;  %5377 = vst.msk [vmem:[%s11825_s3 + $0x114] sm:$0xf] %vm5307_vm0, %v5290_v53  ;;  %v3973_v52 = vadd.f32 %v3972_v0, %v3759_v41  ;;  %v3760_v19 = vpop.f32.mrf.mxu1  ;;  %v3547_v50 = vadd.f32 %v3546_v31, %v11901_v17 }
 0x568   :  { %v5188_v24 = vadd.f32 %v5187_v29, %v5186_v21 }
 0x569   :  { %v4187_v49 = vadd.f32 %v4186_v2, %v3973_v52  ;;  %v3761_v9 = vadd.f32 %v3760_v19, %v3547_v50  ;;  %v11905_v50 = vld [vmem:[#allocation40_spill] sm:$0xff] }
 0x56b   :  { %v4286_v61 = vmax.f32 %v4187_v49, 0.0 }
 0x56d   :  { %v4934_v58 = vsel %vm4794_vm1, %v4286_v61, 0.0  ;;  %v5038_v35 = vmul.f32 %v4286_v61, %v4286_v61  ;;  %v5291_v8 = vpack.c.bf16 %v4286_v61, %v4286_v61 }
 0x56e   :  { %v4935_v38 = vadd.f32 %v4934_v58, %v4933_v56  ;;  %v3974_v60 = vpop.f32.mrf.mxu2  ;;  %v3549_v42 = vpop.f32.mrf.mxu0 }
 0x56f   :  { %v4188_v1 = vpop.f32.mrf.mxu3  ;;  %v5189_v63 = vsel %vm4794_vm1, %v5038_v35, 0.0  ;;  %5378 = vst.msk [vmem:[%s11825_s3 + $0x118] sm:$0xf] %vm5307_vm0, %v5291_v8  ;;  %v3975_v18 = vadd.f32 %v3974_v60, %v3761_v9  ;;  %v3763_v14 = vpop.f32.mrf.mxu1  ;;  %v3550_v30 = vadd.f32 %v3549_v42, %v11902_v55 }
 0x570   :  { %v5190_v32 = vadd.f32 %v5189_v63, %v5188_v24 }
 0x571   :  { %v4189_v25 = vadd.f32 %v4188_v1, %v3975_v18  ;;  %v3764_v11 = vadd.f32 %v3763_v14, %v3550_v30  ;;  %v11906_v30 = vld [vmem:[#allocation41_spill] sm:$0xff] }
 0x573   :  { %v4287_v62 = vmax.f32 %v4189_v25, 0.0 }
 0x575   :  { %v4936_v59 = vsel %vm4794_vm1, %v4287_v62, 0.0  ;;  %v5039_v15 = vmul.f32 %v4287_v62, %v4287_v62  ;;  %v5292_v48 = vpack.c.bf16 %v4287_v62, %v4287_v62 }
 0x576   :  { %v4937_v36 = vadd.f32 %v4936_v59, %v4935_v38  ;;  %v3977_v57 = vpop.f32.mrf.mxu2  ;;  %v3551_v6 = vpop.f32.mrf.mxu0 }
 0x577   :  { %v4191_v16 = vpop.f32.mrf.mxu3  ;;  %v5191_v46 = vsel %vm4794_vm1, %v5039_v15, 0.0  ;;  %5379 = vst.msk [vmem:[%s11825_s3 + $0x11c] sm:$0xf] %vm5307_vm0, %v5292_v48  ;;  %v3978_v40 = vadd.f32 %v3977_v57, %v3764_v11  ;;  %v3765_v26 = vpop.f32.mrf.mxu1  ;;  %v3552_v45 = vadd.f32 %v3551_v6, %v11903_v33 }
 0x578   :  { %v5192_v47 = vadd.f32 %v5191_v46, %v5190_v32 }
 0x579   :  { %v4192_v51 = vadd.f32 %v4191_v16, %v3978_v40  ;;  %v3766_v3 = vadd.f32 %v3765_v26, %v3552_v45  ;;  %v11907_v45 = vld [vmem:[#allocation42_spill] sm:$0xff] }
 0x57b   :  { %v4288_v34 = vmax.f32 %v4192_v51, 0.0 }
 0x57d   :  { %v4938_v27 = vsel %vm4794_vm1, %v4288_v34, 0.0  ;;  %v5040_v12 = vmul.f32 %v4288_v34, %v4288_v34  ;;  %v5293_v4 = vpack.c.bf16 %v4288_v34, %v4288_v34 }
 0x57e   :  { %v4939_v39 = vadd.f32 %v4938_v27, %v4937_v36  ;;  %v3979_v23 = vpop.f32.mrf.mxu2  ;;  %v3554_v13 = vpop.f32.mrf.mxu0 }
 0x57f   :  { %v4193_v20 = vpop.f32.mrf.mxu3  ;;  %v5193_v28 = vsel %vm4794_vm1, %v5040_v12, 0.0  ;;  %5380 = vst.msk [vmem:[%s11825_s3 + $0x120] sm:$0xf] %vm5307_vm0, %v5293_v4  ;;  %v3980_v37 = vadd.f32 %v3979_v23, %v3766_v3  ;;  %v3768_v21 = vpop.f32.mrf.mxu1  ;;  %v3555_v43 = vadd.f32 %v3554_v13, %v11904_v54  ;;  %v8081_v54 = vmov 0.0|0.0  }
 0x580   :  { %v5194_v7 = vadd.f32 %v5193_v28, %v5192_v47  ;;  %5389 = vst.msk [vmem:[%s11825_s3 + $0x144] sm:$0xf] %vm5307_vm0, %v8081_v54 }
 0x581   :  { %v4194_v22 = vadd.f32 %v4193_v20, %v3980_v37  ;;  %v3769_v56 = vadd.f32 %v3768_v21, %v3555_v43 }
 0x583   :  { %v4289_v44 = vmax.f32 %v4194_v22, 0.0 }
 0x585   :  { %v4940_v5 = vsel %vm4794_vm1, %v4289_v44, 0.0  ;;  %v5041_v53 = vmul.f32 %v4289_v44, %v4289_v44  ;;  %v5294_v41 = vpack.c.bf16 %v4289_v44, %v4289_v44  ;;  %v11908_v44 = vld [vmem:[#allocation43_spill] sm:$0xff] }
 0x586   :  { %v4941_v0 = vadd.f32 %v4940_v5, %v4939_v39  ;;  %v3982_v2 = vpop.f32.mrf.mxu2  ;;  %v3556_v19 = vpop.f32.mrf.mxu0 }
 0x587   :  { %v4196_v29 = vpop.f32.mrf.mxu3  ;;  %v5195_v52 = vsel %vm4794_vm1, %v5041_v53, 0.0  ;;  %5381 = vst.msk [vmem:[%s11825_s3 + $0x124] sm:$0xf] %vm5307_vm0, %v5294_v41  ;;  %v3983_v31 = vadd.f32 %v3982_v2, %v3769_v56  ;;  %v3770_v24 = vpop.f32.mrf.mxu1  ;;  %v3557_v61 = vadd.f32 %v3556_v19, %v11905_v50  ;;  %v8082_v53 = vmov 0.0  }
 0x588   :  { %v5196_v49 = vadd.f32 %v5195_v52, %v5194_v7  ;;  %19 = vst.msk [vmem:[#allocation2] sm:$0x3] %vm18_vm2, %v8082_v53 }
 0x589   :  { %v4197_v17 = vadd.f32 %v4196_v29, %v3983_v31  ;;  %v3771_v38 = vadd.f32 %v3770_v24, %v3557_v61 }
 0x58b   :  { %v4290_v58 = vmax.f32 %v4197_v17, 0.0 }
 0x58d   :  { %v4942_v35 = vsel %vm4794_vm1, %v4290_v58, 0.0  ;;  %v5042_v8 = vmul.f32 %v4290_v58, %v4290_v58  ;;  %v5295_v9 = vpack.c.bf16 %v4290_v58, %v4290_v58 }
 0x58e   :  { %v4943_v60 = vadd.f32 %v4942_v35, %v4941_v0  ;;  %v3984_v1 = vpop.f32.mrf.mxu2  ;;  %v3559_v14 = vpop.f32.mrf.mxu0 }
 0x58f   :  { %v4198_v63 = vpop.f32.mrf.mxu3  ;;  %v5197_v18 = vsel %vm4794_vm1, %v5042_v8, 0.0  ;;  %5382 = vst.msk [vmem:[%s11825_s3 + $0x128] sm:$0xf] %vm5307_vm0, %v5295_v9  ;;  %v3985_v42 = vadd.f32 %v3984_v1, %v3771_v38  ;;  %v3773_v32 = vpop.f32.mrf.mxu1  ;;  %v3560_v62 = vadd.f32 %v3559_v14, %v11906_v30  ;;  %v4793_v53 = vld [vmem:[#allocation2] sm:$0x1] }
 0x590   :  { %v5198_v25 = vadd.f32 %v5197_v18, %v5196_v49 }
 0x591   :  { %v4199_v55 = vadd.f32 %v4198_v63, %v3985_v42  ;;  %v3774_v36 = vadd.f32 %v3773_v32, %v3560_v62  ;;  %v11909_v62 = vld [vmem:[#allocation44_spill] sm:$0xff] }
 0x593   :  { %v4291_v59 = vmax.f32 %v4199_v55, 0.0 }
 0x595   :  { %v4944_v15 = vsel %vm4794_vm1, %v4291_v59, 0.0  ;;  %v5043_v48 = vmul.f32 %v4291_v59, %v4291_v59  ;;  %v5296_v11 = vpack.c.bf16 %v4291_v59, %v4291_v59 }
 0x596   :  { %v4945_v57 = vadd.f32 %v4944_v15, %v4943_v60  ;;  %v3987_v16 = vpop.f32.mrf.mxu2  ;;  %v3561_v26 = vpop.f32.mrf.mxu0 }
 0x597   :  { %v4201_v46 = vpop.f32.mrf.mxu3  ;;  %v5199_v40 = vsel %vm4794_vm1, %v5043_v48, 0.0  ;;  %5383 = vst.msk [vmem:[%s11825_s3 + $0x12c] sm:$0xf] %vm5307_vm0, %v5296_v11  ;;  %v3988_v6 = vadd.f32 %v3987_v16, %v3774_v36  ;;  %v3775_v47 = vpop.f32.mrf.mxu1  ;;  %v3562_v34 = vadd.f32 %v3561_v26, %v11907_v45 }
 0x598   :  { %v5200_v51 = vadd.f32 %v5199_v40, %v5198_v25 }
 0x599   :  { %v4202_v33 = vadd.f32 %v4201_v46, %v3988_v6  ;;  %v3776_v39 = vadd.f32 %v3775_v47, %v3562_v34 }
 0x59b   :  { %v4292_v27 = vmax.f32 %v4202_v33, 0.0 }
 0x59d   :  { %v4946_v12 = vsel %vm4794_vm1, %v4292_v27, 0.0  ;;  %v5044_v4 = vmul.f32 %v4292_v27, %v4292_v27  ;;  %v5297_v3 = vpack.c.bf16 %v4292_v27, %v4292_v27 }
 0x59e   :  { %v4947_v23 = vadd.f32 %v4946_v12, %v4945_v57  ;;  %v3989_v20 = vpop.f32.mrf.mxu2  ;;  %v3564_v21 = vpop.f32.mrf.mxu0 }
 0x59f   :  { %v4203_v28 = vpop.f32.mrf.mxu3  ;;  %v5201_v37 = vsel %vm4794_vm1, %v5044_v4, 0.0  ;;  %5384 = vst.msk [vmem:[%s11825_s3 + $0x130] sm:$0xf] %vm5307_vm0, %v5297_v3  ;;  %v3990_v13 = vadd.f32 %v3989_v20, %v3776_v39  ;;  %v3778_v7 = vpop.f32.mrf.mxu1  ;;  %v3565_v5 = vadd.f32 %v3564_v21, %v11908_v44 }
 0x5a0   :  { %v5202_v22 = vadd.f32 %v5201_v37, %v5200_v51 }
 0x5a1   :  { %v4204_v43 = vadd.f32 %v4203_v28, %v3990_v13  ;;  %v3779_v29 = vadd.f32 %v3778_v7, %v3565_v5 }
 0x5a3   :  { %v4293_v41 = vmax.f32 %v4204_v43, 0.0 }
 0x5a5   :  { %v4948_v56 = vsel %vm4794_vm1, %v4293_v41, 0.0  ;;  %v5045_v0 = vmul.f32 %v4293_v41, %v4293_v41  ;;  %v5298_v2 = vpack.c.bf16 %v4293_v41, %v4293_v41 }
 0x5a6   :  { %v4949_v52 = vadd.f32 %v4948_v56, %v4947_v23  ;;  %v3992_v31 = vpop.f32.mrf.mxu2  ;;  %v3566_v17 = vpop.f32.mrf.mxu0 }
 0x5a7   :  { %v4206_v19 = vpop.f32.mrf.mxu3  ;;  %v5203_v24 = vsel %vm4794_vm1, %v5045_v0, 0.0  ;;  %5385 = vst.msk [vmem:[%s11825_s3 + $0x134] sm:$0xf] %vm5307_vm0, %v5298_v2  ;;  %v3993_v49 = vadd.f32 %v3992_v31, %v3779_v29  ;;  %v3780_v50 = vpop.f32.mrf.mxu1  ;;  %v3567_v35 = vadd.f32 %v3566_v17, %v9725_v10  ;;  %v4967_v0 = vld [vmem:[#allocation2 + $0x1] sm:$0x1] }
 0x5a8   :  { %v5204_v61 = vadd.f32 %v5203_v24, %v5202_v22 }
 0x5a9   :  { %v4207_v58 = vadd.f32 %v4206_v19, %v3993_v49  ;;  %v3781_v1 = vadd.f32 %v3780_v50, %v3567_v35 }
 0x5ab   :  { %v4294_v8 = vmax.f32 %v4207_v58, 0.0 }
 0x5ad   :  { %v4950_v9 = vsel %vm4794_vm1, %v4294_v8, 0.0  ;;  %v5046_v38 = vmul.f32 %v4294_v8, %v4294_v8  ;;  %v5299_v60 = vpack.c.bf16 %v4294_v8, %v4294_v8 }
 0x5ae   :  { %v4951_v63 = vadd.f32 %v4950_v9, %v4949_v52  ;;  %v3994_v18 = vpop.f32.mrf.mxu2  ;;  %v3569_v25 = vpop.f32.mrf.mxu0  ;;  %v7871_v9 = vld [vmem:[%s11825_s3] sm:$0xff]  }
 0x5af   :  { %v4208_v42 = vpop.f32.mrf.mxu3  ;;  %v5205_v14 = vsel %vm4794_vm1, %v5046_v38, 0.0  ;;  %5386 = vst.msk [vmem:[%s11825_s3 + $0x138] sm:$0xf] %vm5307_vm0, %v5299_v60  ;;  %v3995_v32 = vadd.f32 %v3994_v18, %v3781_v1  ;;  %v3783_v55 = vpop.f32.mrf.mxu1  ;;  %v3570_v59 = vadd.f32 %v3569_v25, %v11909_v62  ;;  %v8034_v38 = vld [vmem:[%s11825_s3 + $0x8] sm:$0xff]   ;;  %v8035_v60 = vld [vmem:[%s11825_s3 + $0x10] sm:$0xff]   ;;  %v11111_v18 = vld [vmem:[%s11825_s3 + $0x20] sm:$0xff]  }
 0x5b0   :  { %v5206_v10 = vadd.f32 %v5205_v14, %v5204_v61  ;;  %v7873_v14 = vunpack.c.h.bf16 %v7871_v9  ;;  %v11121_v25 = vld [vmem:[%s11825_s3 + $0xf8] sm:$0xff]   ;;  %v7881_v62 = vunpack.c.h.bf16 %v8035_v60 }
 0x5b1   :  { %v4209_v30 = vadd.f32 %v4208_v42, %v3995_v32  ;;  %v3784_v57 = vadd.f32 %v3783_v55, %v3570_v59  ;;  %v7872_v42 = vunpack.c.l.bf16 %v7871_v9  ;;  %v11116_v32 = vld [vmem:[%s11825_s3 + $0x28] sm:$0xff]   ;;  %v7876_v55 = vunpack.c.l.bf16 %v8034_v38  ;;  %v8065_v59 = vld [vmem:[%s11825_s3 + $0x100] sm:$0xff]  }
 0x5b3   :  { %v4295_v15 = vmax.f32 %v4209_v30, 0.0  ;;  %v7880_v30 = vunpack.c.l.bf16 %v8035_v60 }
 0x5b5   :  { %v4952_v48 = vsel %vm4794_vm1, %v4295_v15, 0.0  ;;  %v5047_v11 = vmul.f32 %v4295_v15, %v4295_v15  ;;  %v5300_v36 = vpack.c.bf16 %v4295_v15, %v4295_v15  ;;  %v8066_v15 = vld [vmem:[%s11825_s3 + $0x108] sm:$0xff]  }
 0x5b6   :  { %v4953_v16 = vadd.f32 %v4952_v48, %v4951_v63  ;;  %v3997_v46 = vpop.f32.mrf.mxu2  ;;  %v3571_v47 = vpop.f32.mrf.mxu0  ;;  %v8036_v63 = vld [vmem:[%s11825_s3 + $0x18] sm:$0xff]  }
 0x5b7   :  { %v4211_v40 = vpop.f32.mrf.mxu3  ;;  %v5207_v6 = vsel %vm4794_vm1, %v5047_v11, 0.0  ;;  %5387 = vst.msk [vmem:[%s11825_s3 + $0x13c] sm:$0xf] %vm5307_vm0, %v5300_v36  ;;  %v3998_v26 = vadd.f32 %v3997_v46, %v3784_v57  ;;  %v3785_v51 = vpop.f32.mrf.mxu1  ;;  %v7884_v48 = vunpack.c.l.bf16 %v8036_v63  ;;  %v7885_v11 = vunpack.c.h.bf16 %v8036_v63  ;;  %v8067_v57 = vld [vmem:[%s11825_s3 + $0x110] sm:$0xff]  }
 0x5b8   :  { %v5208_v33 = vadd.f32 %v5207_v6, %v5206_v10  ;;  %v7877_v10 = vunpack.c.h.bf16 %v8034_v38  ;;  %v7888_v36 = vunpack.c.l.bf16 %v11111_v18  ;;  %v7892_v6 = vunpack.c.l.bf16 %v11116_v32  ;;  %v8069_v51 = vld [vmem:[%s11825_s3 + $0x120] sm:$0xff]  }
 0x5b9   :  { %v4212_v45 = vadd.f32 %v4211_v40, %v3998_v26  ;;  %v7889_v40 = vunpack.c.h.bf16 %v11111_v18  ;;  %v7893_v26 = vunpack.c.h.bf16 %v11116_v32  ;;  %v7997_v47 = vunpack.c.h.bf16 %v11121_v25  ;;  %v8041_v18 = vld [vmem:[%s11825_s3 + $0x40] sm:$0xff]  }
 0x5bb   :  { %v4296_v34 = vmax.f32 %v4212_v45, 0.0  ;;  %v8001_v45 = vunpack.c.h.bf16 %v8065_v59 }
 0x5bd   :  { %v4954_v27 = vsel %vm4794_vm1, %v4296_v34, 0.0  ;;  %v5048_v12 = vmul.f32 %v4296_v34, %v4296_v34  ;;  %v5301_v4 = vpack.c.bf16 %v4296_v34, %v4296_v34  ;;  %v8004_v34 = vunpack.c.l.bf16 %v8066_v15 }
 0x5be   :  { %v4955_v3 = vadd.f32 %v4954_v27, %v4953_v16  ;;  %v3999_v39 = vpop.f32.mrf.mxu2  ;;  %v8068_v16 = vld [vmem:[%s11825_s3 + $0x118] sm:$0xff]   ;;  %v8005_v27 = vunpack.c.h.bf16 %v8066_v15 }
 0x5bf   :  { %v4213_v23 = vpop.f32.mrf.mxu3  ;;  %v5209_v20 = vsel %vm4794_vm1, %v5048_v12, 0.0  ;;  %5388 = vst.msk [vmem:[%s11825_s3 + $0x140] sm:$0xf] %vm5307_vm0, %v5301_v4  ;;  %v8070_v12 = vld [vmem:[%s11825_s3 + $0x128] sm:$0xff]   ;;  %v8071_v4 = vld [vmem:[%s11825_s3 + $0x130] sm:$0xff]   ;;  %v8009_v39 = vunpack.c.h.bf16 %v8067_v57 }
 0x5c0   :  { %v4958_v28 = vrot.slane %v4955_v3, 4  ;;  %v5210_v37 = vadd.f32 %v5209_v20, %v5208_v33  ;;  %v8000_v33 = vunpack.c.l.bf16 %v8065_v59  ;;  %v8012_v23 = vunpack.c.l.bf16 %v8068_v16  ;;  %v8072_v20 = vld [vmem:[%s11825_s3 + $0x138] sm:$0xff]  }
 0x5c2   :  { %v4959_v13 = vadd.f32 %v4958_v28, %v4955_v3  ;;  %v5213_v21 = vrot.slane %v5210_v37, 4  ;;  %v8008_v3 = vunpack.c.l.bf16 %v8067_v57 }
 0x5c4   :  { %v4960_v7 = vrot.slane %v4959_v13, 2  ;;  %v5214_v22 = vadd.f32 %v5213_v21, %v5210_v37  ;;  %v8013_v37 = vunpack.c.h.bf16 %v8068_v16 }
 0x5c6   :  { %v4961_v54 = vadd.f32 %v4960_v7, %v4959_v13  ;;  %v5215_v43 = vrot.slane %v5214_v22, 2  ;;  %v8016_v13 = vunpack.c.l.bf16 %v8069_v51  ;;  %v8073_v7 = vld [vmem:[%s11825_s3 + $0x140] sm:$0xff]  }
 0x5c8   :  { %v4962_v44 = vrot.slane %v4961_v54, 1  ;;  %v5216_v5 = vadd.f32 %v5215_v43, %v5214_v22  ;;  %v8017_v22 = vunpack.c.h.bf16 %v8069_v51  ;;  %v8021_v43 = vunpack.c.h.bf16 %v8070_v12 }
 0x5ca   :  { %v4963_v41 = vadd.f32 %v4962_v44, %v4961_v54  ;;  %v5217_v56 = vrot.slane %v5216_v5, 1  ;;  %v8020_v54 = vunpack.c.l.bf16 %v8070_v12  ;;  %v8024_v44 = vunpack.c.l.bf16 %v8071_v4 }
 0x5cc   :  { %v4964_v2 = vadd.f32 %v4963_v41, %v4793_v53  ;;  %v5218_v29 = vadd.f32 %v5217_v56, %v5216_v5  ;;  %v8025_v5 = vunpack.c.h.bf16 %v8071_v4  ;;  %v8028_v53 = vunpack.c.l.bf16 %v8072_v20 }
 0x5cd   :  { %v8029_v41 = vunpack.c.h.bf16 %v8072_v20 }
 0x5ce   :  { %4966 = vst.msk [vmem:[#allocation2] sm:$0x1] %vm4965_vm3, %v4964_v2  ;;  %v5219_v52 = vadd.f32 %v5218_v29, %v4967_v0  ;;  %v8032_v0 = vunpack.c.l.bf16 %v8073_v7  ;;  %v8033_v2 = vunpack.c.h.bf16 %v8073_v7 }
 0x5d0   :  { %5220 = vst.msk [vmem:[#allocation2 + $0x1] sm:$0x1] %vm4965_vm3, %v5219_v52 }
 0x5d5   :  { %v5393_v31 = vld [vmem:[#allocation2] sm:$0x1] }
 0x5d6   :  { %v5394_v19 = vmul.f32 0.0015432099, %v5393_v31 }
 0x5d7   :  { %v5395_v24 = vld [vmem:[#allocation2 + $0x1] sm:$0x1] }
 0x5d8   :  { %v5396_v49 = vmul.f32 0.0015432099, %v5395_v24  ;;  %v5397_v17 = vmul.f32 %v5394_v19, %v5394_v19  ;;  %v11152_v28 = vperm.slane %v5394_v19, 0 }
 0x5da   :  { %v5398_v50 = vsub.f32 %v5396_v49, %v5397_v17  ;;  %v5575_v29 = vsub.f32 %v7872_v42, %v11152_v28  ;;  %v5576_v52 = vsub.f32 %v7873_v14, %v11152_v28  ;;  %v5577_v19 = vsub.f32 %v7876_v55, %v11152_v28 }
 0x5db   :  { %v5578_v24 = vsub.f32 %v7877_v10, %v11152_v28  ;;  %v5579_v49 = vsub.f32 %v7880_v30, %v11152_v28  ;;  %v5580_v17 = vsub.f32 %v7881_v62, %v11152_v28  ;;  %v5639_v9 = vsub.f32 %v8000_v33, %v11152_v28 }
 0x5dc   :  { %v5399_v61 = vadd.f32 1e-05, %v5398_v50  ;;  %v5581_v50 = vsub.f32 %v7884_v48, %v11152_v28  ;;  %v5641_v38 = vsub.f32 %v8004_v34, %v11152_v28  ;;  %v5642_v60 = vsub.f32 %v8005_v27, %v11152_v28 }
 0x5dd   :  { %v5644_v63 = vsub.f32 %v8009_v39, %v11152_v28  ;;  %v5645_v14 = vsub.f32 %v8012_v23, %v11152_v28  ;;  %v5646_v55 = vsub.f32 %v8013_v37, %v11152_v28  ;;  %v5647_v10 = vsub.f32 %v8016_v13, %v11152_v28 }
 0x5de   :  { %8077 = vrsqrt.f32 %v5399_v61  ;;  %vm5406_vm5 = vweird.f32 %v5399_v61  ;;  %v5648_v30 = vsub.f32 %v8017_v22, %v11152_v28  ;;  %v5649_v62 = vsub.f32 %v8020_v54, %v11152_v28 }
 0x5df   :  { %v5650_v59 = vsub.f32 %v8021_v43, %v11152_v28  ;;  %v5651_v15 = vsub.f32 %v8024_v44, %v11152_v28  ;;  %v5652_v48 = vsub.f32 %v8025_v5, %v11152_v28  ;;  %v5655_v57 = vsub.f32 %v8032_v0, %v11152_v28  ;;  %v8039_v44 = vld [vmem:[%s11825_s3 + $0x30] sm:$0xff]  }
 0x5e0   :  { %v5656_v16 = vsub.f32 %v8033_v2, %v11152_v28 }
 0x5e4   :  { %v11092_v58 = vpop.eup %8077 }
 0x5e5   :  { %v5401_v35 = vmul.f32 %v11092_v58, %v5399_v61  ;;  %vm5407_vm4 = vweird.f32 %v11092_v58  ;;  %v5582_v61 = vsub.f32 %v7885_v11, %v11152_v28  ;;  %v5653_v11 = vsub.f32 %v8028_v53, %v11152_v28 }
 0x5e6   :  { %vm11159_vm6 = vmor %vm5406_vm5, %vm5407_vm4 }
 0x5e7   :  { %v5402_v8 = vmul.f32 %v11092_v58, %v5401_v35  ;;  %v5583_v35 = vsub.f32 %v7888_v36, %v11152_v28  ;;  %v5654_v36 = vsub.f32 %v8029_v41, %v11152_v28 }
 0x5e9   :  { %v5403_v1 = vmul.f32 0.5, %v5402_v8  ;;  %v5638_v8 = vsub.f32 %v7997_v47, %v11152_v28 }
 0x5eb   :  { %v5404_v46 = vsub.f32 1.5, %v5403_v1  ;;  %v5643_v1 = vsub.f32 %v8008_v3, %v11152_v28 }
 0x5ed   :  { %v5405_v21 = vmul.f32 %v11092_v58, %v5404_v46 }
 0x5ef   :  { %v5409_v31 = vsel %vm11159_vm6, %v11092_v58, %v5405_v21  ;;  %v5640_v58 = vsub.f32 %v8001_v45, %v11152_v28 }
 0x5f0   :  { %v11182_v42 = vperm.slane %v5409_v31, 0  ;;  %v8040_v31 = vld [vmem:[%s11825_s3 + $0x38] sm:$0xff]  }
 0x5f1   :  { %v7901_v32 = vunpack.c.h.bf16 %v8040_v31 }
 0x5f2   :  { %v5658_v46 = vmul.f32 %v11182_v42, %v5575_v29  ;;  %v5659_v47 = vmul.f32 %v11182_v42, %v5576_v52  ;;  %v5660_v51 = vmul.f32 %v11182_v42, %v5577_v19  ;;  %v5661_v33 = vmul.f32 %v11182_v42, %v5578_v24 }
 0x5f3   :  { %v5662_v45 = vmul.f32 %v11182_v42, %v5579_v49  ;;  %v5663_v34 = vmul.f32 %v11182_v42, %v5580_v17  ;;  %v11203_v27 = vmul.f32 %v11182_v42, %v5581_v50  ;;  %v11206_v12 = vmul.f32 %v11182_v42, %v5638_v8 }
 0x5f4   :  { %v11209_v4 = vmul.f32 %v11182_v42, %v5639_v9  ;;  %v11212_v3 = vmul.f32 %v11182_v42, %v5640_v58  ;;  %v11215_v39 = vmul.f32 %v11182_v42, %v5641_v38  ;;  %v11218_v23 = vmul.f32 %v11182_v42, %v5642_v60 }
 0x5f5   :  { %v11221_v20 = vmul.f32 %v11182_v42, %v5643_v1  ;;  %v11224_v37 = vmul.f32 %v11182_v42, %v5644_v63  ;;  %v11227_v13 = vmul.f32 %v11182_v42, %v5645_v14  ;;  %v11230_v21 = vmul.f32 %v11182_v42, %v5646_v55 }
 0x5f6   :  { %v11233_v7 = vmul.f32 %v11182_v42, %v5647_v10  ;;  %v11236_v22 = vmul.f32 %v11182_v42, %v5648_v30  ;;  %v11239_v54 = vmul.f32 %v11182_v42, %v5649_v62  ;;  %v11242_v43 = vmul.f32 %v11182_v42, %v5650_v59 }
 0x5f7   :  { %v11248_v5 = vmul.f32 %v11182_v42, %v5651_v15  ;;  %v11251_v53 = vmul.f32 %v11182_v42, %v5652_v48  ;;  %v11254_v41 = vmul.f32 %v11182_v42, %v5653_v11  ;;  %v11257_v56 = vmul.f32 %v11182_v42, %v5654_v36  ;;  %v8043_v11 = vld [vmem:[%s11825_s3 + $0x50] sm:$0xff]  }
 0x5f8   :  { %v11260_v0 = vmul.f32 %v11182_v42, %v5655_v57  ;;  %v11263_v2 = vmul.f32 %v11182_v42, %v5656_v16  ;;  %v5740_v29 = vpack.c.bf16 %v5658_v46, %v5658_v46  ;;  %v5741_v52 = vpack.c.bf16 %v5659_v47, %v5659_v47 }
 0x5f9   :  { %v5584_v19 = vsub.f32 %v7889_v40, %v11152_v28  ;;  %v5665_v24 = vmul.f32 %v11182_v42, %v5582_v61  ;;  %v5742_v49 = vpack.c.bf16 %v5660_v51, %v5660_v51  ;;  %v5743_v17 = vpack.c.bf16 %v5661_v33, %v5661_v33 }
 0x5fa   :  { %v7896_v50 = vunpack.c.l.bf16 %v8039_v44  ;;  %v5585_v8 = vsub.f32 %v7892_v6, %v11152_v28  ;;  %v5666_v9 = vmul.f32 %v11182_v42, %v5583_v35  ;;  %v5744_v58 = vpack.c.bf16 %v5662_v45, %v5662_v45  ;;  %5822 = vst.msk [vmem:[%s11825_s3] sm:$0xf] %vm5307_vm0, %v5740_v29 }
 0x5fb   :  { %v7897_v38 = vunpack.c.h.bf16 %v8039_v44  ;;  %v5586_v40 = vsub.f32 %v7893_v26, %v11152_v28  ;;  %v5667_v61 = vmul.f32 %v11182_v42, %v5584_v19  ;;  %v5745_v6 = vpack.c.bf16 %v5663_v34, %v5663_v34  ;;  %5823 = vst.msk [vmem:[%s11825_s3 + $0x4] sm:$0xf] %vm5307_vm0, %v5741_v52  ;;  %v8042_v26 = vld [vmem:[%s11825_s3 + $0x48] sm:$0xff]   ;;  %v8044_v34 = vld [vmem:[%s11825_s3 + $0x58] sm:$0xff]  }
 0x5fc   :  { %v7900_v35 = vunpack.c.l.bf16 %v8040_v31  ;;  %v5587_v60 = vsub.f32 %v7896_v50, %v11152_v28  ;;  %v5668_v1 = vmul.f32 %v11182_v42, %v5585_v8  ;;  %v5746_v63 = vpack.c.bf16 %v11203_v27, %v11203_v27  ;;  %5824 = vst.msk [vmem:[%s11825_s3 + $0x8] sm:$0xf] %vm5307_vm0, %v5742_v49 }
 0x5fd   :  { %v5588_v14 = vsub.f32 %v7897_v38, %v11152_v28  ;;  %v5669_v55 = vmul.f32 %v11182_v42, %v5586_v40  ;;  %v5747_v10 = vpack.c.bf16 %v5665_v24, %v5665_v24  ;;  %5825 = vst.msk [vmem:[%s11825_s3 + $0xc] sm:$0xf] %vm5307_vm0, %v5743_v17  ;;  %v7904_v30 = vunpack.c.l.bf16 %v8041_v18  ;;  %v8045_v17 = vld [vmem:[%s11825_s3 + $0x60] sm:$0xff]  }
 0x5fe   :  { %v5589_v62 = vsub.f32 %v7900_v35, %v11152_v28  ;;  %v5670_v59 = vmul.f32 %v11182_v42, %v5587_v60  ;;  %v5748_v15 = vpack.c.bf16 %v5666_v9, %v5666_v9  ;;  %5826 = vst.msk [vmem:[%s11825_s3 + $0x10] sm:$0xf] %vm5307_vm0, %v5744_v58  ;;  %v7905_v48 = vunpack.c.h.bf16 %v8041_v18 }
 0x5ff   :  { %v5590_v36 = vsub.f32 %v7901_v32, %v11152_v28  ;;  %v5671_v57 = vmul.f32 %v11182_v42, %v5588_v14  ;;  %v5749_v16 = vpack.c.bf16 %v5667_v61, %v5667_v61  ;;  %5827 = vst.msk [vmem:[%s11825_s3 + $0x14] sm:$0xf] %vm5307_vm0, %v5745_v6  ;;  %v7908_v46 = vunpack.c.l.bf16 %v8042_v26  ;;  %v8046_v6 = vld [vmem:[%s11825_s3 + $0x68] sm:$0xff]  }
 0x600   :  { %v5591_v47 = vsub.f32 %v7904_v30, %v11152_v28  ;;  %v5672_v51 = vmul.f32 %v11182_v42, %v5589_v62  ;;  %v5750_v33 = vpack.c.bf16 %v5668_v1, %v5668_v1  ;;  %5828 = vst.msk [vmem:[%s11825_s3 + $0x18] sm:$0xf] %vm5307_vm0, %v5746_v63  ;;  %v7909_v45 = vunpack.c.h.bf16 %v8042_v26 }
 0x601   :  { %v5592_v27 = vsub.f32 %v7905_v48, %v11152_v28  ;;  %v5673_v44 = vmul.f32 %v11182_v42, %v5590_v36  ;;  %v5751_v29 = vpack.c.bf16 %v5669_v55, %v5669_v55  ;;  %5829 = vst.msk [vmem:[%s11825_s3 + $0x1c] sm:$0xf] %vm5307_vm0, %v5747_v10  ;;  %v7912_v52 = vunpack.c.l.bf16 %v8043_v11  ;;  %v8047_v10 = vld [vmem:[%s11825_s3 + $0x70] sm:$0xff]  }
 0x602   :  { %v5593_v31 = vsub.f32 %v7908_v46, %v11152_v28  ;;  %v5674_v19 = vmul.f32 %v11182_v42, %v5591_v47  ;;  %v5752_v24 = vpack.c.bf16 %v5670_v59, %v5670_v59  ;;  %5830 = vst.msk [vmem:[%s11825_s3 + $0x20] sm:$0xf] %vm5307_vm0, %v5748_v15  ;;  %v7913_v49 = vunpack.c.h.bf16 %v8043_v11 }
 0x603   :  { %v5594_v50 = vsub.f32 %v7909_v45, %v11152_v28  ;;  %v5675_v8 = vmul.f32 %v11182_v42, %v5592_v27  ;;  %v5753_v9 = vpack.c.bf16 %v5671_v57, %v5671_v57  ;;  %5831 = vst.msk [vmem:[%s11825_s3 + $0x24] sm:$0xf] %vm5307_vm0, %v5749_v16  ;;  %v7916_v58 = vunpack.c.l.bf16 %v8044_v34  ;;  %v8048_v16 = vld [vmem:[%s11825_s3 + $0x78] sm:$0xff]  }
 0x604   :  { %v5595_v38 = vsub.f32 %v7912_v52, %v11152_v28  ;;  %v5676_v18 = vmul.f32 %v11182_v42, %v5593_v31  ;;  %v5754_v40 = vpack.c.bf16 %v5672_v51, %v5672_v51  ;;  %5832 = vst.msk [vmem:[%s11825_s3 + $0x28] sm:$0xf] %vm5307_vm0, %v5750_v33  ;;  %v7917_v61 = vunpack.c.h.bf16 %v8044_v34 }
 0x605   :  { %v5596_v35 = vsub.f32 %v7913_v49, %v11152_v28  ;;  %v5677_v60 = vmul.f32 %v11182_v42, %v5594_v50  ;;  %v5755_v1 = vpack.c.bf16 %v5673_v44, %v5673_v44  ;;  %5833 = vst.msk [vmem:[%s11825_s3 + $0x2c] sm:$0xf] %vm5307_vm0, %v5751_v29  ;;  %v7920_v63 = vunpack.c.l.bf16 %v8045_v17  ;;  %v8049_v29 = vld [vmem:[%s11825_s3 + $0x80] sm:$0xff]  }
 0x606   :  { %v5597_v32 = vsub.f32 %v7916_v58, %v11152_v28  ;;  %v5678_v26 = vmul.f32 %v11182_v42, %v5595_v38  ;;  %v5756_v14 = vpack.c.bf16 %v5674_v19, %v5674_v19  ;;  %5834 = vst.msk [vmem:[%s11825_s3 + $0x30] sm:$0xf] %vm5307_vm0, %v5752_v24  ;;  %v7921_v55 = vunpack.c.h.bf16 %v8045_v17 }
 0x607   :  { %v5598_v30 = vsub.f32 %v7917_v61, %v11152_v28  ;;  %v5679_v62 = vmul.f32 %v11182_v42, %v5596_v35  ;;  %v5757_v59 = vpack.c.bf16 %v5675_v8, %v5675_v8  ;;  %5835 = vst.msk [vmem:[%s11825_s3 + $0x34] sm:$0xf] %vm5307_vm0, %v5753_v9  ;;  %v7924_v15 = vunpack.c.l.bf16 %v8046_v6  ;;  %v8050_v9 = vld [vmem:[%s11825_s3 + $0x88] sm:$0xff]  }
 0x608   :  { %v5599_v48 = vsub.f32 %v7920_v63, %v11152_v28  ;;  %v5680_v11 = vmul.f32 %v11182_v42, %v5597_v32  ;;  %v5758_v36 = vpack.c.bf16 %v5676_v18, %v5676_v18  ;;  %5836 = vst.msk [vmem:[%s11825_s3 + $0x38] sm:$0xf] %vm5307_vm0, %v5754_v40  ;;  %v7925_v57 = vunpack.c.h.bf16 %v8046_v6 }
 0x609   :  { %v5600_v46 = vsub.f32 %v7921_v55, %v11152_v28  ;;  %v5681_v47 = vmul.f32 %v11182_v42, %v5598_v30  ;;  %v5759_v51 = vpack.c.bf16 %v5677_v60, %v5677_v60  ;;  %5837 = vst.msk [vmem:[%s11825_s3 + $0x3c] sm:$0xf] %vm5307_vm0, %v5755_v1  ;;  %v7928_v33 = vunpack.c.l.bf16 %v8047_v10  ;;  %v8051_v1 = vld [vmem:[%s11825_s3 + $0x90] sm:$0xff]  }
 0x60a   :  { %v5601_v45 = vsub.f32 %v7924_v15, %v11152_v28  ;;  %v5682_v34 = vmul.f32 %v11182_v42, %v5599_v48  ;;  %v5760_v27 = vpack.c.bf16 %v5678_v26, %v5678_v26  ;;  %5838 = vst.msk [vmem:[%s11825_s3 + $0x40] sm:$0xf] %vm5307_vm0, %v5756_v14  ;;  %v7929_v44 = vunpack.c.h.bf16 %v8047_v10 }
 0x60b   :  { %v5602_v52 = vsub.f32 %v7925_v57, %v11152_v28  ;;  %v5683_v31 = vmul.f32 %v11182_v42, %v5600_v46  ;;  %v5761_v19 = vpack.c.bf16 %v5679_v62, %v5679_v62  ;;  %5839 = vst.msk [vmem:[%s11825_s3 + $0x44] sm:$0xf] %vm5307_vm0, %v5757_v59  ;;  %v7932_v24 = vunpack.c.l.bf16 %v8048_v16  ;;  %v8052_v59 = vld [vmem:[%s11825_s3 + $0x98] sm:$0xff]  }
 0x60c   :  { %v5603_v49 = vsub.f32 %v7928_v33, %v11152_v28  ;;  %v5684_v17 = vmul.f32 %v11182_v42, %v5601_v45  ;;  %v5762_v50 = vpack.c.bf16 %v5680_v11, %v5680_v11  ;;  %5840 = vst.msk [vmem:[%s11825_s3 + $0x48] sm:$0xf] %vm5307_vm0, %v5758_v36  ;;  %v7933_v8 = vunpack.c.h.bf16 %v8048_v16 }
 0x60d   :  { %v5604_v58 = vsub.f32 %v7929_v44, %v11152_v28  ;;  %v5685_v38 = vmul.f32 %v11182_v42, %v5602_v52  ;;  %v5763_v18 = vpack.c.bf16 %v5681_v47, %v5681_v47  ;;  %5841 = vst.msk [vmem:[%s11825_s3 + $0x4c] sm:$0xf] %vm5307_vm0, %v5759_v51  ;;  %v7936_v40 = vunpack.c.l.bf16 %v8049_v29  ;;  %v8053_v51 = vld [vmem:[%s11825_s3 + $0xa0] sm:$0xff]  }
 0x60e   :  { %v5605_v61 = vsub.f32 %v7932_v24, %v11152_v28  ;;  %v5686_v6 = vmul.f32 %v11182_v42, %v5603_v49  ;;  %v5764_v35 = vpack.c.bf16 %v5682_v34, %v5682_v34  ;;  %5842 = vst.msk [vmem:[%s11825_s3 + $0x50] sm:$0xf] %vm5307_vm0, %v5760_v27  ;;  %v7937_v60 = vunpack.c.h.bf16 %v8049_v29 }
 0x60f   :  { %v5606_v63 = vsub.f32 %v7933_v8, %v11152_v28  ;;  %v5687_v32 = vmul.f32 %v11182_v42, %v5604_v58  ;;  %v5765_v26 = vpack.c.bf16 %v5683_v31, %v5683_v31  ;;  %5843 = vst.msk [vmem:[%s11825_s3 + $0x54] sm:$0xf] %vm5307_vm0, %v5761_v19  ;;  %v7940_v14 = vunpack.c.l.bf16 %v8050_v9  ;;  %v8054_v19 = vld [vmem:[%s11825_s3 + $0xa8] sm:$0xff]  }
 0x610   :  { %v5607_v55 = vsub.f32 %v7936_v40, %v11152_v28  ;;  %v5688_v10 = vmul.f32 %v11182_v42, %v5605_v61  ;;  %v5766_v30 = vpack.c.bf16 %v5684_v17, %v5684_v17  ;;  %5844 = vst.msk [vmem:[%s11825_s3 + $0x58] sm:$0xf] %vm5307_vm0, %v5762_v50  ;;  %v7941_v62 = vunpack.c.h.bf16 %v8050_v9 }
 0x611   :  { %v5608_v15 = vsub.f32 %v7937_v60, %v11152_v28  ;;  %v5689_v48 = vmul.f32 %v11182_v42, %v5606_v63  ;;  %v5767_v11 = vpack.c.bf16 %v5685_v38, %v5685_v38  ;;  %5845 = vst.msk [vmem:[%s11825_s3 + $0x5c] sm:$0xf] %vm5307_vm0, %v5763_v18  ;;  %v7944_v36 = vunpack.c.l.bf16 %v8051_v1  ;;  %v8055_v18 = vld [vmem:[%s11825_s3 + $0xb0] sm:$0xff]  }
 0x612   :  { %v5609_v57 = vsub.f32 %v7940_v14, %v11152_v28  ;;  %v5690_v16 = vmul.f32 %v11182_v42, %v5607_v55  ;;  %v5768_v46 = vpack.c.bf16 %v5686_v6, %v5686_v6  ;;  %5846 = vst.msk [vmem:[%s11825_s3 + $0x60] sm:$0xf] %vm5307_vm0, %v5764_v35  ;;  %v7945_v47 = vunpack.c.h.bf16 %v8051_v1 }
 0x613   :  { %v5610_v33 = vsub.f32 %v7941_v62, %v11152_v28  ;;  %v5691_v45 = vmul.f32 %v11182_v42, %v5608_v15  ;;  %v5769_v34 = vpack.c.bf16 %v5687_v32, %v5687_v32  ;;  %5847 = vst.msk [vmem:[%s11825_s3 + $0x64] sm:$0xf] %vm5307_vm0, %v5765_v26  ;;  %v7948_v27 = vunpack.c.l.bf16 %v8052_v59  ;;  %v8056_v26 = vld [vmem:[%s11825_s3 + $0xb8] sm:$0xff]  }
 0x614   :  { %v5611_v44 = vsub.f32 %v7944_v36, %v11152_v28  ;;  %v5692_v29 = vmul.f32 %v11182_v42, %v5609_v57  ;;  %v5770_v52 = vpack.c.bf16 %v5688_v10, %v5688_v10  ;;  %5848 = vst.msk [vmem:[%s11825_s3 + $0x68] sm:$0xf] %vm5307_vm0, %v5766_v30  ;;  %v7949_v31 = vunpack.c.h.bf16 %v8052_v59 }
 0x615   :  { %v5612_v24 = vsub.f32 %v7945_v47, %v11152_v28  ;;  %v5693_v49 = vmul.f32 %v11182_v42, %v5610_v33  ;;  %v5771_v17 = vpack.c.bf16 %v5689_v48, %v5689_v48  ;;  %5849 = vst.msk [vmem:[%s11825_s3 + $0x6c] sm:$0xf] %vm5307_vm0, %v5767_v11  ;;  %v7952_v50 = vunpack.c.l.bf16 %v8053_v51  ;;  %v8057_v11 = vld [vmem:[%s11825_s3 + $0xc0] sm:$0xff]  }
 0x616   :  { %v5613_v8 = vsub.f32 %v7948_v27, %v11152_v28  ;;  %v5694_v9 = vmul.f32 %v11182_v42, %v5611_v44  ;;  %v5772_v58 = vpack.c.bf16 %v5690_v16, %v5690_v16  ;;  %5850 = vst.msk [vmem:[%s11825_s3 + $0x70] sm:$0xf] %vm5307_vm0, %v5768_v46  ;;  %v7953_v38 = vunpack.c.h.bf16 %v8053_v51 }
 0x617   :  { %v5614_v40 = vsub.f32 %v7949_v31, %v11152_v28  ;;  %v5695_v61 = vmul.f32 %v11182_v42, %v5612_v24  ;;  %v5773_v6 = vpack.c.bf16 %v5691_v45, %v5691_v45  ;;  %5851 = vst.msk [vmem:[%s11825_s3 + $0x74] sm:$0xf] %vm5307_vm0, %v5769_v34  ;;  %v7956_v35 = vunpack.c.l.bf16 %v8054_v19  ;;  %v8058_v34 = vld [vmem:[%s11825_s3 + $0xc8] sm:$0xff]  }
 0x618   :  { %v5615_v60 = vsub.f32 %v7952_v50, %v11152_v28  ;;  %v5696_v1 = vmul.f32 %v11182_v42, %v5613_v8  ;;  %v5774_v63 = vpack.c.bf16 %v5692_v29, %v5692_v29  ;;  %5852 = vst.msk [vmem:[%s11825_s3 + $0x78] sm:$0xf] %vm5307_vm0, %v5770_v52  ;;  %v7957_v32 = vunpack.c.h.bf16 %v8054_v19 }
 0x619   :  { %v5616_v14 = vsub.f32 %v7953_v38, %v11152_v28  ;;  %v5697_v55 = vmul.f32 %v11182_v42, %v5614_v40  ;;  %v5775_v10 = vpack.c.bf16 %v5693_v49, %v5693_v49  ;;  %5853 = vst.msk [vmem:[%s11825_s3 + $0x7c] sm:$0xf] %vm5307_vm0, %v5771_v17  ;;  %v7960_v30 = vunpack.c.l.bf16 %v8055_v18  ;;  %v8059_v17 = vld [vmem:[%s11825_s3 + $0xd0] sm:$0xff]  }
 0x61a   :  { %v5617_v62 = vsub.f32 %v7956_v35, %v11152_v28  ;;  %v5698_v59 = vmul.f32 %v11182_v42, %v5615_v60  ;;  %v5776_v15 = vpack.c.bf16 %v5694_v9, %v5694_v9  ;;  %5854 = vst.msk [vmem:[%s11825_s3 + $0x80] sm:$0xf] %vm5307_vm0, %v5772_v58  ;;  %v7961_v48 = vunpack.c.h.bf16 %v8055_v18 }
 0x61b   :  { %v5618_v36 = vsub.f32 %v7957_v32, %v11152_v28  ;;  %v5699_v57 = vmul.f32 %v11182_v42, %v5616_v14  ;;  %v5777_v16 = vpack.c.bf16 %v5695_v61, %v5695_v61  ;;  %5855 = vst.msk [vmem:[%s11825_s3 + $0x84] sm:$0xf] %vm5307_vm0, %v5773_v6  ;;  %v7964_v46 = vunpack.c.l.bf16 %v8056_v26  ;;  %v8060_v6 = vld [vmem:[%s11825_s3 + $0xd8] sm:$0xff]  }
 0x61c   :  { %v5619_v47 = vsub.f32 %v7960_v30, %v11152_v28  ;;  %v5700_v51 = vmul.f32 %v11182_v42, %v5617_v62  ;;  %v5778_v33 = vpack.c.bf16 %v5696_v1, %v5696_v1  ;;  %5856 = vst.msk [vmem:[%s11825_s3 + $0x88] sm:$0xf] %vm5307_vm0, %v5774_v63  ;;  %v7965_v45 = vunpack.c.h.bf16 %v8056_v26 }
 0x61d   :  { %v5620_v27 = vsub.f32 %v7961_v48, %v11152_v28  ;;  %v5701_v44 = vmul.f32 %v11182_v42, %v5618_v36  ;;  %v5779_v29 = vpack.c.bf16 %v5697_v55, %v5697_v55  ;;  %5857 = vst.msk [vmem:[%s11825_s3 + $0x8c] sm:$0xf] %vm5307_vm0, %v5775_v10  ;;  %v7968_v52 = vunpack.c.l.bf16 %v8057_v11  ;;  %v8061_v10 = vld [vmem:[%s11825_s3 + $0xe0] sm:$0xff]  }
 0x61e   :  { %v5621_v31 = vsub.f32 %v7964_v46, %v11152_v28  ;;  %v5702_v19 = vmul.f32 %v11182_v42, %v5619_v47  ;;  %v5780_v24 = vpack.c.bf16 %v5698_v59, %v5698_v59  ;;  %5858 = vst.msk [vmem:[%s11825_s3 + $0x90] sm:$0xf] %vm5307_vm0, %v5776_v15  ;;  %v7969_v49 = vunpack.c.h.bf16 %v8057_v11 }
 0x61f   :  { %v5622_v50 = vsub.f32 %v7965_v45, %v11152_v28  ;;  %v5703_v8 = vmul.f32 %v11182_v42, %v5620_v27  ;;  %v5781_v9 = vpack.c.bf16 %v5699_v57, %v5699_v57  ;;  %5859 = vst.msk [vmem:[%s11825_s3 + $0x94] sm:$0xf] %vm5307_vm0, %v5777_v16  ;;  %v7972_v58 = vunpack.c.l.bf16 %v8058_v34  ;;  %v8062_v16 = vld [vmem:[%s11825_s3 + $0xe8] sm:$0xff]  }
 0x620   :  { %v5623_v38 = vsub.f32 %v7968_v52, %v11152_v28  ;;  %v5704_v18 = vmul.f32 %v11182_v42, %v5621_v31  ;;  %v5782_v40 = vpack.c.bf16 %v5700_v51, %v5700_v51  ;;  %5860 = vst.msk [vmem:[%s11825_s3 + $0x98] sm:$0xf] %vm5307_vm0, %v5778_v33  ;;  %v7973_v61 = vunpack.c.h.bf16 %v8058_v34 }
 0x621   :  { %v5624_v35 = vsub.f32 %v7969_v49, %v11152_v28  ;;  %v5705_v60 = vmul.f32 %v11182_v42, %v5622_v50  ;;  %v5783_v1 = vpack.c.bf16 %v5701_v44, %v5701_v44  ;;  %5861 = vst.msk [vmem:[%s11825_s3 + $0x9c] sm:$0xf] %vm5307_vm0, %v5779_v29  ;;  %v7976_v63 = vunpack.c.l.bf16 %v8059_v17  ;;  %v8063_v29 = vld [vmem:[%s11825_s3 + $0xf0] sm:$0xff]  }
 0x622   :  { %v5625_v32 = vsub.f32 %v7972_v58, %v11152_v28  ;;  %v5706_v26 = vmul.f32 %v11182_v42, %v5623_v38  ;;  %v5784_v14 = vpack.c.bf16 %v5702_v19, %v5702_v19  ;;  %5862 = vst.msk [vmem:[%s11825_s3 + $0xa0] sm:$0xf] %vm5307_vm0, %v5780_v24  ;;  %v7977_v55 = vunpack.c.h.bf16 %v8059_v17 }
 0x623   :  { %v5626_v30 = vsub.f32 %v7973_v61, %v11152_v28  ;;  %v5707_v62 = vmul.f32 %v11182_v42, %v5624_v35  ;;  %v5785_v59 = vpack.c.bf16 %v5703_v8, %v5703_v8  ;;  %5863 = vst.msk [vmem:[%s11825_s3 + $0xa4] sm:$0xf] %vm5307_vm0, %v5781_v9  ;;  %v7980_v15 = vunpack.c.l.bf16 %v8060_v6 }
 0x624   :  { %v5627_v48 = vsub.f32 %v7976_v63, %v11152_v28  ;;  %v5708_v11 = vmul.f32 %v11182_v42, %v5625_v32  ;;  %v5786_v36 = vpack.c.bf16 %v5704_v18, %v5704_v18  ;;  %5864 = vst.msk [vmem:[%s11825_s3 + $0xa8] sm:$0xf] %vm5307_vm0, %v5782_v40  ;;  %v7981_v57 = vunpack.c.h.bf16 %v8060_v6 }
 0x625   :  { %v5628_v46 = vsub.f32 %v7977_v55, %v11152_v28  ;;  %v5709_v47 = vmul.f32 %v11182_v42, %v5626_v30  ;;  %v5787_v51 = vpack.c.bf16 %v5705_v60, %v5705_v60  ;;  %5865 = vst.msk [vmem:[%s11825_s3 + $0xac] sm:$0xf] %vm5307_vm0, %v5783_v1  ;;  %v7984_v33 = vunpack.c.l.bf16 %v8061_v10 }
 0x626   :  { %v5629_v45 = vsub.f32 %v7980_v15, %v11152_v28  ;;  %v5710_v34 = vmul.f32 %v11182_v42, %v5627_v48  ;;  %v5788_v27 = vpack.c.bf16 %v5706_v26, %v5706_v26  ;;  %5866 = vst.msk [vmem:[%s11825_s3 + $0xb0] sm:$0xf] %vm5307_vm0, %v5784_v14  ;;  %v7985_v44 = vunpack.c.h.bf16 %v8061_v10 }
 0x627   :  { %v5630_v52 = vsub.f32 %v7981_v57, %v11152_v28  ;;  %v5711_v31 = vmul.f32 %v11182_v42, %v5628_v46  ;;  %v5789_v19 = vpack.c.bf16 %v5707_v62, %v5707_v62  ;;  %5867 = vst.msk [vmem:[%s11825_s3 + $0xb4] sm:$0xf] %vm5307_vm0, %v5785_v59  ;;  %v7988_v24 = vunpack.c.l.bf16 %v8062_v16 }
 0x628   :  { %v5631_v49 = vsub.f32 %v7984_v33, %v11152_v28  ;;  %v5712_v17 = vmul.f32 %v11182_v42, %v5629_v45  ;;  %v5790_v50 = vpack.c.bf16 %v5708_v11, %v5708_v11  ;;  %5868 = vst.msk [vmem:[%s11825_s3 + $0xb8] sm:$0xf] %vm5307_vm0, %v5786_v36  ;;  %v7989_v8 = vunpack.c.h.bf16 %v8062_v16 }
 0x629   :  { %v5632_v9 = vsub.f32 %v7985_v44, %v11152_v28  ;;  %v5713_v58 = vmul.f32 %v11182_v42, %v5630_v52  ;;  %v5791_v38 = vpack.c.bf16 %v5709_v47, %v5709_v47  ;;  %5869 = vst.msk [vmem:[%s11825_s3 + $0xbc] sm:$0xf] %vm5307_vm0, %v5787_v51  ;;  %v7992_v18 = vunpack.c.l.bf16 %v8063_v29 }
 0x62a   :  { %v5633_v40 = vsub.f32 %v7988_v24, %v11152_v28  ;;  %v5714_v61 = vmul.f32 %v11182_v42, %v5631_v49  ;;  %v5792_v6 = vpack.c.bf16 %v5710_v34, %v5710_v34  ;;  %5870 = vst.msk [vmem:[%s11825_s3 + $0xc0] sm:$0xf] %vm5307_vm0, %v5788_v27  ;;  %v7993_v35 = vunpack.c.h.bf16 %v8063_v29 }
 0x62b   :  { %v5634_v60 = vsub.f32 %v7989_v8, %v11152_v28  ;;  %v5715_v1 = vmul.f32 %v11182_v42, %v5632_v9  ;;  %v5793_v63 = vpack.c.bf16 %v5711_v31, %v5711_v31  ;;  %5871 = vst.msk [vmem:[%s11825_s3 + $0xc4] sm:$0xf] %vm5307_vm0, %v5789_v19  ;;  %v7996_v32 = vunpack.c.l.bf16 %v11121_v25 }
 0x62c   :  { %v5635_v26 = vsub.f32 %v7992_v18, %v11152_v28  ;;  %v5716_v14 = vmul.f32 %v11182_v42, %v5633_v40  ;;  %v5794_v55 = vpack.c.bf16 %v5712_v17, %v5712_v17  ;;  %5872 = vst.msk [vmem:[%s11825_s3 + $0xc8] sm:$0xf] %vm5307_vm0, %v5790_v50  ;;  %v5636_v10 = vsub.f32 %v7993_v35, %v11152_v28 }
 0x62d   :  { %v5717_v30 = vmul.f32 %v11182_v42, %v5634_v60  ;;  %v5795_v62 = vpack.c.bf16 %v5713_v58, %v5713_v58  ;;  %5873 = vst.msk [vmem:[%s11825_s3 + $0xcc] sm:$0xf] %vm5307_vm0, %v5791_v38  ;;  %v5637_v25 = vsub.f32 %v7996_v32, %v11152_v28  ;;  %v5796_v15 = vpack.c.bf16 %v5714_v61, %v5714_v61 }
 0x62e   :  { %v5718_v59 = vmul.f32 %v11182_v42, %v5635_v26  ;;  %5874 = vst.msk [vmem:[%s11825_s3 + $0xd0] sm:$0xf] %vm5307_vm0, %v5792_v6  ;;  %v5719_v48 = vmul.f32 %v11182_v42, %v5636_v10  ;;  %v5797_v11 = vpack.c.bf16 %v5715_v1, %v5715_v1  ;;  %v5798_v57 = vpack.c.bf16 %v5716_v14, %v5716_v14 }
 0x62f   :  { %5875 = vst.msk [vmem:[%s11825_s3 + $0xd4] sm:$0xf] %vm5307_vm0, %v5793_v63  ;;  %v5720_v36 = vmul.f32 %v11182_v42, %v5637_v25  ;;  %v5799_v28 = vpack.c.bf16 %v5717_v30, %v5717_v30  ;;  %v5803_v47 = vpack.c.bf16 %v11206_v12, %v11206_v12  ;;  %v5804_v51 = vpack.c.bf16 %v11209_v4, %v11209_v4 }
 0x630   :  { %5876 = vst.msk [vmem:[%s11825_s3 + $0xd8] sm:$0xf] %vm5307_vm0, %v5794_v55  ;;  %v5800_v16 = vpack.c.bf16 %v5718_v59, %v5718_v59  ;;  %v5801_v46 = vpack.c.bf16 %v5719_v48, %v5719_v48  ;;  %v5805_v33 = vpack.c.bf16 %v11212_v3, %v11212_v3  ;;  %v5806_v12 = vpack.c.bf16 %v11215_v39, %v11215_v39 }
 0x631   :  { %5877 = vst.msk [vmem:[%s11825_s3 + $0xdc] sm:$0xf] %vm5307_vm0, %v5795_v62  ;;  %v5802_v42 = vpack.c.bf16 %v5720_v36, %v5720_v36  ;;  %v5807_v4 = vpack.c.bf16 %v11218_v23, %v11218_v23  ;;  %v5808_v3 = vpack.c.bf16 %v11221_v20, %v11221_v20  ;;  %v5809_v39 = vpack.c.bf16 %v11224_v37, %v11224_v37 }
 0x632   :  { %5878 = vst.msk [vmem:[%s11825_s3 + $0xe0] sm:$0xf] %vm5307_vm0, %v5796_v15  ;;  %v5810_v23 = vpack.c.bf16 %v11227_v13, %v11227_v13  ;;  %v5811_v20 = vpack.c.bf16 %v11230_v21, %v11230_v21  ;;  %v5812_v37 = vpack.c.bf16 %v11233_v7, %v11233_v7  ;;  %v5813_v13 = vpack.c.bf16 %v11236_v22, %v11236_v22 }
 0x633   :  { %5879 = vst.msk [vmem:[%s11825_s3 + $0xe4] sm:$0xf] %vm5307_vm0, %v5797_v11  ;;  %v5814_v21 = vpack.c.bf16 %v11239_v54, %v11239_v54  ;;  %v5815_v7 = vpack.c.bf16 %v11242_v43, %v11242_v43  ;;  %v5816_v22 = vpack.c.bf16 %v11248_v5, %v11248_v5  ;;  %v5817_v54 = vpack.c.bf16 %v11251_v53, %v11251_v53 }
 0x634   :  { %5880 = vst.msk [vmem:[%s11825_s3 + $0xe8] sm:$0xf] %vm5307_vm0, %v5798_v57  ;;  %v5818_v43 = vpack.c.bf16 %v11254_v41, %v11254_v41  ;;  %v5819_v5 = vpack.c.bf16 %v11257_v56, %v11257_v56  ;;  %v5820_v53 = vpack.c.bf16 %v11260_v0, %v11260_v0  ;;  %v5821_v41 = vpack.c.bf16 %v11263_v2, %v11263_v2 }
 0x635   :  { %5881 = vst.msk [vmem:[%s11825_s3 + $0xec] sm:$0xf] %vm5307_vm0, %v5799_v28 }
 0x636   :  { %5882 = vst.msk [vmem:[%s11825_s3 + $0xf0] sm:$0xf] %vm5307_vm0, %v5800_v16 }
 0x637   :  { %5883 = vst.msk [vmem:[%s11825_s3 + $0xf4] sm:$0xf] %vm5307_vm0, %v5801_v46 }
 0x638   :  { %5884 = vst.msk [vmem:[%s11825_s3 + $0xf8] sm:$0xf] %vm5307_vm0, %v5802_v42 }
 0x639   :  { %5885 = vst.msk [vmem:[%s11825_s3 + $0xfc] sm:$0xf] %vm5307_vm0, %v5803_v47 }
 0x63a   :  { %5886 = vst.msk [vmem:[%s11825_s3 + $0x100] sm:$0xf] %vm5307_vm0, %v5804_v51 }
 0x63b   :  { %5887 = vst.msk [vmem:[%s11825_s3 + $0x104] sm:$0xf] %vm5307_vm0, %v5805_v33 }
 0x63c   :  { %5888 = vst.msk [vmem:[%s11825_s3 + $0x108] sm:$0xf] %vm5307_vm0, %v5806_v12 }
 0x63d   :  { %5889 = vst.msk [vmem:[%s11825_s3 + $0x10c] sm:$0xf] %vm5307_vm0, %v5807_v4 }
 0x63e   :  { %5890 = vst.msk [vmem:[%s11825_s3 + $0x110] sm:$0xf] %vm5307_vm0, %v5808_v3 }
 0x63f   :  { %5891 = vst.msk [vmem:[%s11825_s3 + $0x114] sm:$0xf] %vm5307_vm0, %v5809_v39 }
 0x640   :  { %5892 = vst.msk [vmem:[%s11825_s3 + $0x118] sm:$0xf] %vm5307_vm0, %v5810_v23 }
 0x641   :  { %5893 = vst.msk [vmem:[%s11825_s3 + $0x11c] sm:$0xf] %vm5307_vm0, %v5811_v20 }
 0x642   :  { %5894 = vst.msk [vmem:[%s11825_s3 + $0x120] sm:$0xf] %vm5307_vm0, %v5812_v37 }
 0x643   :  { %5895 = vst.msk [vmem:[%s11825_s3 + $0x124] sm:$0xf] %vm5307_vm0, %v5813_v13 }
 0x644   :  { %5896 = vst.msk [vmem:[%s11825_s3 + $0x128] sm:$0xf] %vm5307_vm0, %v5814_v21 }
 0x645   :  { %5897 = vst.msk [vmem:[%s11825_s3 + $0x12c] sm:$0xf] %vm5307_vm0, %v5815_v7 }
 0x646   :  { %5898 = vst.msk [vmem:[%s11825_s3 + $0x130] sm:$0xf] %vm5307_vm0, %v5816_v22 }
 0x647   :  { %5899 = vst.msk [vmem:[%s11825_s3 + $0x134] sm:$0xf] %vm5307_vm0, %v5817_v54 }
 0x648   :  { %5900 = vst.msk [vmem:[%s11825_s3 + $0x138] sm:$0xf] %vm5307_vm0, %v5818_v43 }
 0x649   :  { %5901 = vst.msk [vmem:[%s11825_s3 + $0x13c] sm:$0xf] %vm5307_vm0, %v5819_v5 }
 0x64a   :  { %5902 = vst.msk [vmem:[%s11825_s3 + $0x140] sm:$0xf] %vm5307_vm0, %v5820_v53 }
 0x64b   :  { %5903 = vst.msk [vmem:[%s11825_s3 + $0x144] sm:$0xf] %vm5307_vm0, %v5821_v41 }

// kernel: rainbow_forward.4
= control target key start
LH: loop header
LB: loop body
LE: loop exit
PB: predicated region body
PF: predicated region fallthrough
CT: control target
= control target key end

     0   :  { %vm18_vm0 = vcmask 517120   ;;  %vm3495_vm1 = vcmask 519168   ;;  %vm3450_vm2 = vcmask 523264   ;;  %vm3465_vm3 = vcmask 516096   ;;  %s6776_s1 = inlined_call_operand.vmem [shape: bf16[4608,64], index: 1, kind: input, shape index: {}]   ;;  %s6777_s0 = inlined_call_operand.vmem [shape: bf16[32,4608], index: 0, kind: input, shape index: {}]   ;;  %s6778_s2 = inlined_call_operand.vmem [shape: f32[1,64], index: 2, kind: input, shape index: {}]   ;;  %s6779_s3 = inlined_call_operand.vmem [shape: bf16[32,64], index: 3, kind: output, shape index: {}]  }
   0x1   :  { %v5071_v0 = vld [vmem:[%s6776_s1 + $0x38] sm:$0xff]  ;;  %v5070_v4 = vld [vmem:[%s6776_s1 + $0x30] sm:$0xff]  ;;  %v5069_v8 = vld [vmem:[%s6776_s1 + $0x28] sm:$0xff] }
   0x2   :  { %v5079_v1 = vld [vmem:[%s6776_s1 + $0x78] sm:$0xff]  ;;  %2760 = vmatpush.bf16.msra.mxu0 %v5071_v0  ;;  %v5078_v5 = vld [vmem:[%s6776_s1 + $0x70] sm:$0xff]  ;;  %v5077_v9 = vld [vmem:[%s6776_s1 + $0x68] sm:$0xff] }
   0x3   :  { %v5087_v2 = vld [vmem:[%s6776_s1 + $0xb8] sm:$0xff]  ;;  %2779 = vmatpush.bf16.msra.mxu1 %v5079_v1  ;;  %v5086_v6 = vld [vmem:[%s6776_s1 + $0xb0] sm:$0xff]  ;;  %v5085_v10 = vld [vmem:[%s6776_s1 + $0xa8] sm:$0xff] }
   0x4   :  { %v5095_v3 = vld [vmem:[%s6776_s1 + $0xf8] sm:$0xff]  ;;  %2798 = vmatpush.bf16.msra.mxu2 %v5087_v2  ;;  %v5094_v7 = vld [vmem:[%s6776_s1 + $0xf0] sm:$0xff]  ;;  %v5093_v11 = vld [vmem:[%s6776_s1 + $0xe8] sm:$0xff] }
   0x5   :  { %2817 = vmatpush.bf16.msra.mxu3 %v5095_v3  ;;  %v5068_v12 = vld [vmem:[%s6776_s1 + $0x20] sm:$0xff]  ;;  %v5067_v16 = vld [vmem:[%s6776_s1 + $0x18] sm:$0xff]  ;;  %v5066_v20 = vld [vmem:[%s6776_s1 + $0x10] sm:$0xff] }
   0x6   :  { %2761 = vmatpush.bf16.msra.mxu0 %v5070_v4  ;;  %v5076_v13 = vld [vmem:[%s6776_s1 + $0x60] sm:$0xff]  ;;  %v5075_v17 = vld [vmem:[%s6776_s1 + $0x58] sm:$0xff]  ;;  %v5074_v21 = vld [vmem:[%s6776_s1 + $0x50] sm:$0xff] }
   0x7   :  { %2780 = vmatpush.bf16.msra.mxu1 %v5078_v5  ;;  %v5084_v14 = vld [vmem:[%s6776_s1 + $0xa0] sm:$0xff]  ;;  %v5083_v18 = vld [vmem:[%s6776_s1 + $0x98] sm:$0xff]  ;;  %v5082_v22 = vld [vmem:[%s6776_s1 + $0x90] sm:$0xff] }
   0x8   :  { %2799 = vmatpush.bf16.msra.mxu2 %v5086_v6  ;;  %v5092_v15 = vld [vmem:[%s6776_s1 + $0xe0] sm:$0xff]  ;;  %v5091_v19 = vld [vmem:[%s6776_s1 + $0xd8] sm:$0xff]  ;;  %v5090_v23 = vld [vmem:[%s6776_s1 + $0xd0] sm:$0xff] }
   0x9   :  { %2818 = vmatpush.bf16.msra.mxu3 %v5094_v7  ;;  %v5065_v24 = vld [vmem:[%s6776_s1 + $0x8] sm:$0xff]  ;;  %v5064_v28 = vld [vmem:[%s6776_s1] sm:$0xff]  ;;  %v5010_v33 = vld [vmem:[%s6777_s0 + $0x8c] sm:$0xf0] }
   0xa   :  { %2762 = vmatpush.bf16.msra.mxu0 %v5069_v8  ;;  %v5073_v25 = vld [vmem:[%s6776_s1 + $0x48] sm:$0xff]  ;;  %v5072_v29 = vld [vmem:[%s6776_s1 + $0x40] sm:$0xff]  ;;  %v3556_v35 = vld [vmem:[%s6777_s0 + $0x90] sm:$0xf0] }
   0xb   :  { %2781 = vmatpush.bf16.msra.mxu1 %v5077_v9  ;;  %v5081_v26 = vld [vmem:[%s6776_s1 + $0x88] sm:$0xff]  ;;  %v5080_v30 = vld [vmem:[%s6776_s1 + $0x80] sm:$0xff]  ;;  %v5011_v37 = vld [vmem:[%s6777_s0 + $0x94] sm:$0xf0] }
   0xc   :  { %2800 = vmatpush.bf16.msra.mxu2 %v5085_v10  ;;  %v5089_v27 = vld [vmem:[%s6776_s1 + $0xc8] sm:$0xff]  ;;  %v5088_v31 = vld [vmem:[%s6776_s1 + $0xc0] sm:$0xff]  ;;  %v3564_v39 = vld [vmem:[%s6777_s0 + $0x98] sm:$0xf0] }
   0xd   :  { %2819 = vmatpush.bf16.msra.mxu3 %v5093_v11  ;;  %v3554_v32 = vld [vmem:[%s6777_s0] sm:$0xf]  ;;  %v4992_v34 = vld [vmem:[%s6777_s0 + $0x4] sm:$0xf]  ;;  %v3562_v36 = vld [vmem:[%s6777_s0 + $0x8] sm:$0xf] }
   0xe   :  { %2763 = vmatpush.bf16.msra.mxu0 %v5068_v12  ;;  %v4993_v38 = vld [vmem:[%s6777_s0 + $0xc] sm:$0xf]  ;;  %v5119_v40 = vld [vmem:[%s6776_s1 + $0x1b8] sm:$0xff]  ;;  %v3555_v42 = vor.u32 %v5010_v33, %v3554_v32  ;;  %v3559_v43 = vor.u32 %v4992_v34, %v3556_v35  ;;  %v3563_v44 = vor.u32 %v5011_v37, %v3562_v36  ;;  %v5118_v48 = vld [vmem:[%s6776_s1 + $0x1b0] sm:$0xff] }
   0xf   :  { %2782 = vmatpush.bf16.msra.mxu1 %v5076_v13  ;;  %v5103_v41 = vld [vmem:[%s6776_s1 + $0x138] sm:$0xff]  ;;  %v3567_v45 = vor.u32 %v4993_v38, %v3564_v39  ;;  %v5102_v49 = vld [vmem:[%s6776_s1 + $0x130] sm:$0xff]  ;;  %v5117_v52 = vld [vmem:[%s6776_s1 + $0x1a8] sm:$0xff] }
  0x10   :  { %2801 = vmatpush.bf16.msra.mxu2 %v5084_v14  ;;  %v5111_v46 = vld [vmem:[%s6776_s1 + $0x178] sm:$0xff]  ;;  %v5110_v50 = vld [vmem:[%s6776_s1 + $0x170] sm:$0xff]  ;;  %v5101_v53 = vld [vmem:[%s6776_s1 + $0x128] sm:$0xff] }
  0x11   :  { %2820 = vmatpush.bf16.msra.mxu3 %v5092_v15  ;;  %v5127_v47 = vld [vmem:[%s6776_s1 + $0x1f8] sm:$0xff]  ;;  %v5126_v51 = vld [vmem:[%s6776_s1 + $0x1f0] sm:$0xff]  ;;  %v5109_v54 = vld [vmem:[%s6776_s1 + $0x168] sm:$0xff] }
  0x12   :  { %2764 = vmatpush.bf16.msra.mxu0 %v5067_v16  ;;  %v5125_v55 = vld [vmem:[%s6776_s1 + $0x1e8] sm:$0xff]  ;;  %v5116_v56 = vld [vmem:[%s6776_s1 + $0x1a0] sm:$0xff]  ;;  %v5046_v61 = vld [vmem:[%s6777_s0 + $0x1ac] sm:$0xf0] }
  0x13   :  { %2783 = vmatpush.bf16.msra.mxu1 %v5075_v17  ;;  %v5100_v57 = vld [vmem:[%s6776_s1 + $0x120] sm:$0xff]  ;;  %v3700_v63 = vld [vmem:[%s6777_s0 + $0x1b0] sm:$0xf0]  ;;  %v3706_v0 = vld [vmem:[%s6777_s0 + $0x128] sm:$0xf] }
  0x14   :  { %2802 = vmatpush.bf16.msra.mxu2 %v5083_v18  ;;  %v5108_v58 = vld [vmem:[%s6776_s1 + $0x160] sm:$0xff]  ;;  %v5047_v1 = vld [vmem:[%s6777_s0 + $0x1b4] sm:$0xf0]  ;;  %v5029_v2 = vld [vmem:[%s6777_s0 + $0x12c] sm:$0xf] }
  0x15   :  { %2821 = vmatpush.bf16.msra.mxu3 %v5091_v19  ;;  %v5124_v59 = vld [vmem:[%s6776_s1 + $0x1e0] sm:$0xff]  ;;  %v3708_v3 = vld [vmem:[%s6777_s0 + $0x1b8] sm:$0xf0]  ;;  %v3707_v8 = vor.u32 %v5047_v1, %v3706_v0  ;;  %v5114_v12 = vld [vmem:[%s6776_s1 + $0x190] sm:$0xff] }
  0x16   :  { %2765 = vmatpush.bf16.msra.mxu0 %v5066_v20  ;;  %v3698_v60 = vld [vmem:[%s6777_s0 + $0x120] sm:$0xf]  ;;  %v5028_v62 = vld [vmem:[%s6777_s0 + $0x124] sm:$0xf]  ;;  %v5115_v4 = vld [vmem:[%s6776_s1 + $0x198] sm:$0xff]  ;;  %v3711_v9 = vor.u32 %v5029_v2, %v3708_v3 }
  0x17   :  { %2784 = vmatpush.bf16.msra.mxu1 %v5074_v21  ;;  %v5099_v5 = vld [vmem:[%s6776_s1 + $0x118] sm:$0xff]  ;;  %v3699_v6 = vor.u32 %v5046_v61, %v3698_v60  ;;  %v3703_v7 = vor.u32 %v5028_v62, %v3700_v63  ;;  %v5098_v13 = vld [vmem:[%s6776_s1 + $0x110] sm:$0xff]  ;;  %v5113_v16 = vld [vmem:[%s6776_s1 + $0x188] sm:$0xff] }
  0x18   :  { %2803 = vmatpush.bf16.msra.mxu2 %v5082_v22  ;;  %v5107_v10 = vld [vmem:[%s6776_s1 + $0x158] sm:$0xff]  ;;  %v5106_v14 = vld [vmem:[%s6776_s1 + $0x150] sm:$0xff]  ;;  %v5097_v17 = vld [vmem:[%s6776_s1 + $0x108] sm:$0xff] }
  0x19   :  { %2822 = vmatpush.bf16.msra.mxu3 %v5090_v23  ;;  %v5123_v11 = vld [vmem:[%s6776_s1 + $0x1d8] sm:$0xff]  ;;  %v5122_v15 = vld [vmem:[%s6776_s1 + $0x1d0] sm:$0xff]  ;;  %v5105_v18 = vld [vmem:[%s6776_s1 + $0x148] sm:$0xff] }
  0x1a   :  { %2766 = vmatpush.bf16.msra.mxu0 %v5065_v24  ;;  %v5121_v19 = vld [vmem:[%s6776_s1 + $0x1c8] sm:$0xff]  ;;  %v5112_v20 = vld [vmem:[%s6776_s1 + $0x180] sm:$0xff]  ;;  %v3570_v24 = vld [vmem:[%s6777_s0 + $0x10] sm:$0xf] }
  0x1b   :  { %2785 = vmatpush.bf16.msra.mxu1 %v5073_v25  ;;  %v5096_v21 = vld [vmem:[%s6776_s1 + $0x100] sm:$0xff]  ;;  %v5151_v25 = vld [vmem:[%s6776_s1 + $0x2b8] sm:$0xff]  ;;  %v3580_v33 = vld [vmem:[%s6777_s0 + $0xa8] sm:$0xf0] }
  0x1c   :  { %2804 = vmatpush.bf16.msra.mxu2 %v5081_v26  ;;  %v5104_v22 = vld [vmem:[%s6776_s1 + $0x140] sm:$0xff]  ;;  %v5135_v26 = vld [vmem:[%s6776_s1 + $0x238] sm:$0xff]  ;;  %v5150_v37 = vld [vmem:[%s6776_s1 + $0x2b0] sm:$0xff] }
  0x1d   :  { %2823 = vmatpush.bf16.msra.mxu3 %v5089_v27  ;;  %v5120_v23 = vld [vmem:[%s6776_s1 + $0x1c0] sm:$0xff]  ;;  %v4995_v32 = vld [vmem:[%s6777_s0 + $0x1c] sm:$0xf]  ;;  %v3724_v61 = vld [vmem:[%s6777_s0 + $0x1c8] sm:$0xf0] }
  0x1e   :  { %2767 = vmatpush.bf16.msra.mxu0 %v5064_v28  ;;  %v5012_v27 = vld [vmem:[%s6777_s0 + $0x9c] sm:$0xf0]  ;;  %v4994_v28 = vld [vmem:[%s6777_s0 + $0x14] sm:$0xf]  ;;  %v5143_v34 = vld [vmem:[%s6776_s1 + $0x278] sm:$0xff] }
  0x1f   :  { %2786 = vmatpush.bf16.msra.mxu1 %v5072_v29  ;;  %v3572_v29 = vld [vmem:[%s6777_s0 + $0xa0] sm:$0xf0]  ;;  %v5159_v35 = vld [vmem:[%s6776_s1 + $0x2f8] sm:$0xff]  ;;  %v3571_v36 = vor.u32 %v5012_v27, %v3570_v24  ;;  %v5146_v1 = vld [vmem:[%s6776_s1 + $0x290] sm:$0xff] }
  0x20   :  { %2805 = vmatpush.bf16.msra.mxu2 %v5080_v30  ;;  %v3578_v30 = vld [vmem:[%s6777_s0 + $0x18] sm:$0xf]  ;;  %v3575_v38 = vor.u32 %v4994_v28, %v3572_v29  ;;  %v3588_v24 = vld [vmem:[%s6777_s0 + $0xb0] sm:$0xf0]  ;;  %v4997_v27 = vld [vmem:[%s6777_s0 + $0x2c] sm:$0xf] }
  0x21   :  { %2824 = vmatpush.bf16.msra.mxu3 %v5088_v31  ;;  %2768 = vmatmul.bf16.vlgmr.msra.gmra.mxu0 %v3555_v42  ;;  %v5013_v31 = vld [vmem:[%s6777_s0 + $0xa4] sm:$0xf0]  ;;  %v5142_v42 = vld [vmem:[%s6776_s1 + $0x270] sm:$0xff]  ;;  %v5131_v60 = vld [vmem:[%s6776_s1 + $0x218] sm:$0xff] }
  0x22   :  { %2836 = vmatpush.bf16.msrb.mxu0 %v5103_v41  ;;  %2787 = vmatmul.bf16.vlgmr.msra.gmra.mxu1 %v3559_v43  ;;  %v3579_v39 = vor.u32 %v5013_v31, %v3578_v30  ;;  %v5134_v41 = vld [vmem:[%s6776_s1 + $0x230] sm:$0xff]  ;;  %v5139_v62 = vld [vmem:[%s6776_s1 + $0x258] sm:$0xff] }
  0x23   :  { %2806 = vmatmul.bf16.vlgmr.msra.gmra.mxu2 %v3563_v44  ;;  %2855 = vmatpush.bf16.msrb.mxu1 %v5111_v46  ;;  %v5158_v43 = vld [vmem:[%s6776_s1 + $0x2f0] sm:$0xff]  ;;  %v5149_v44 = vld [vmem:[%s6776_s1 + $0x2a8] sm:$0xff]  ;;  %v5155_v63 = vld [vmem:[%s6776_s1 + $0x2d8] sm:$0xff] }
  0x24   :  { %2874 = vmatpush.bf16.msrb.mxu2 %v5119_v40  ;;  %2825 = vmatmul.bf16.vlgmr.msra.gmra.mxu3 %v3567_v45  ;;  %v3583_v40 = vor.u32 %v4995_v32, %v3580_v33  ;;  %v5133_v45 = vld [vmem:[%s6776_s1 + $0x228] sm:$0xff]  ;;  %v3596_v28 = vld [vmem:[%s6777_s0 + $0xb8] sm:$0xf0]  ;;  %v5174_v30 = vld [vmem:[%s6776_s1 + $0x370] sm:$0xff] }
  0x25   :  { %2893 = vmatpush.bf16.msrb.mxu3 %v5127_v47  ;;  %v5141_v46 = vld [vmem:[%s6776_s1 + $0x268] sm:$0xff]  ;;  %v3599_v33 = vor.u32 %v4997_v27, %v3596_v28 }
  0x26   :  { %2837 = vmatpush.bf16.msrb.mxu0 %v5102_v49  ;;  %v5157_v47 = vld [vmem:[%s6776_s1 + $0x2e8] sm:$0xff]  ;;  %v5132_v49 = vld [vmem:[%s6776_s1 + $0x220] sm:$0xff] }
  0x27   :  { %2856 = vmatpush.bf16.msrb.mxu1 %v5110_v50  ;;  %v5140_v50 = vld [vmem:[%s6776_s1 + $0x260] sm:$0xff]  ;;  %v5213_v28 = vld [vmem:[%s6776_s1 + $0x4a8] sm:$0xff] }
  0x28   :  { %2875 = vmatpush.bf16.msrb.mxu2 %v5118_v48  ;;  %v5148_v48 = vld [vmem:[%s6776_s1 + $0x2a0] sm:$0xff] }
  0x29   :  { %2894 = vmatpush.bf16.msrb.mxu3 %v5126_v51  ;;  %v5156_v51 = vld [vmem:[%s6776_s1 + $0x2e0] sm:$0xff] }
  0x2a   :  { %2838 = vmatpush.bf16.msrb.mxu0 %v5101_v53  ;;  %v5048_v53 = vld [vmem:[%s6777_s0 + $0x1bc] sm:$0xf0] }
  0x2b   :  { %2857 = vmatpush.bf16.msrb.mxu1 %v5109_v54  ;;  %v5147_v54 = vld [vmem:[%s6776_s1 + $0x298] sm:$0xff] }
  0x2c   :  { %2876 = vmatpush.bf16.msrb.mxu2 %v5117_v52  ;;  %v3714_v52 = vld [vmem:[%s6777_s0 + $0x130] sm:$0xf] }
  0x2d   :  { %2895 = vmatpush.bf16.msrb.mxu3 %v5125_v55  ;;  %v5030_v55 = vld [vmem:[%s6777_s0 + $0x134] sm:$0xf]  ;;  %v3715_v0 = vor.u32 %v5048_v53, %v3714_v52  ;;  %v5033_v52 = vld [vmem:[%s6777_s0 + $0x14c] sm:$0xf]  ;;  %v5163_v53 = vld [vmem:[%s6776_s1 + $0x318] sm:$0xff] }
  0x2e   :  { %2839 = vmatpush.bf16.msrb.mxu0 %v5100_v57  ;;  %v3722_v57 = vld [vmem:[%s6777_s0 + $0x138] sm:$0xf] }
  0x2f   :  { %2858 = vmatpush.bf16.msrb.mxu1 %v5108_v58  ;;  %v5049_v58 = vld [vmem:[%s6777_s0 + $0x1c4] sm:$0xf0] }
  0x30   :  { %2877 = vmatpush.bf16.msrb.mxu2 %v5116_v56  ;;  %v3716_v56 = vld [vmem:[%s6777_s0 + $0x1c0] sm:$0xf0]  ;;  %v3723_v3 = vor.u32 %v5049_v58, %v3722_v57  ;;  %v5170_v58 = vld [vmem:[%s6776_s1 + $0x350] sm:$0xff] }
  0x31   :  { %2896 = vmatpush.bf16.msrb.mxu3 %v5124_v59  ;;  %2773 = vmatmul.bf16.gmra.mxu0 %v3699_v6  ;;  %v5031_v59 = vld [vmem:[%s6777_s0 + $0x13c] sm:$0xf]  ;;  %v3719_v2 = vor.u32 %v5030_v55, %v3716_v56  ;;  %v5138_v6 = vld [vmem:[%s6776_s1 + $0x250] sm:$0xff] }
  0x32   :  { %2840 = vmatpush.bf16.msrb.mxu0 %v5099_v5  ;;  %2792 = vmatmul.bf16.gmra.mxu1 %v3703_v7  ;;  %v5130_v5 = vld [vmem:[%s6776_s1 + $0x210] sm:$0xff]  ;;  %v5187_v55 = vld [vmem:[%s6776_s1 + $0x3d8] sm:$0xff] }
  0x33   :  { %2811 = vmatmul.bf16.gmra.mxu2 %v3707_v8  ;;  %2859 = vmatpush.bf16.msrb.mxu1 %v5107_v10  ;;  %v5154_v7 = vld [vmem:[%s6776_s1 + $0x2d0] sm:$0xff]  ;;  %v5145_v8 = vld [vmem:[%s6776_s1 + $0x288] sm:$0xff] }
  0x34   :  { %2878 = vmatpush.bf16.msrb.mxu2 %v5115_v4  ;;  %2830 = vmatmul.bf16.gmra.mxu3 %v3711_v9  ;;  %v3727_v4 = vor.u32 %v5031_v59, %v3724_v61  ;;  %v5129_v9 = vld [vmem:[%s6776_s1 + $0x208] sm:$0xff]  ;;  %v5178_v56 = vld [vmem:[%s6776_s1 + $0x390] sm:$0xff] }
  0x35   :  { %2897 = vmatpush.bf16.msrb.mxu3 %v5123_v11  ;;  %v5137_v10 = vld [vmem:[%s6776_s1 + $0x248] sm:$0xff] }
  0x36   :  { %2841 = vmatpush.bf16.msrb.mxu0 %v5098_v13  ;;  %v5153_v11 = vld [vmem:[%s6776_s1 + $0x2c8] sm:$0xff]  ;;  %v5183_v13 = vld [vmem:[%s6776_s1 + $0x3b8] sm:$0xff] }
  0x37   :  { %2860 = vmatpush.bf16.msrb.mxu1 %v5106_v14  ;;  %v5128_v14 = vld [vmem:[%s6776_s1 + $0x200] sm:$0xff] }
  0x38   :  { %2879 = vmatpush.bf16.msrb.mxu2 %v5114_v12  ;;  %v5144_v12 = vld [vmem:[%s6776_s1 + $0x280] sm:$0xff] }
  0x39   :  { %2898 = vmatpush.bf16.msrb.mxu3 %v5122_v15  ;;  %v5136_v15 = vld [vmem:[%s6776_s1 + $0x240] sm:$0xff] }
  0x3a   :  { %2842 = vmatpush.bf16.msrb.mxu0 %v5097_v17  ;;  %v3586_v17 = vld [vmem:[%s6777_s0 + $0x20] sm:$0xf] }
  0x3b   :  { %2861 = vmatpush.bf16.msrb.mxu1 %v5105_v18  ;;  %v5014_v18 = vld [vmem:[%s6777_s0 + $0xac] sm:$0xf0] }
  0x3c   :  { %2880 = vmatpush.bf16.msrb.mxu2 %v5113_v16  ;;  %v5152_v16 = vld [vmem:[%s6776_s1 + $0x2c0] sm:$0xff]  ;;  %v3587_v29 = vor.u32 %v5014_v18, %v3586_v17  ;;  %v3610_v18 = vld [vmem:[%s6777_s0 + $0x38] sm:$0xf] }
  0x3d   :  { %2899 = vmatpush.bf16.msrb.mxu3 %v5121_v19  ;;  %v5167_v19 = vld [vmem:[%s6776_s1 + $0x338] sm:$0xff]  ;;  %v3604_v17 = vld [vmem:[%s6777_s0 + $0xc0] sm:$0xf0] }
  0x3e   :  { %2843 = vmatpush.bf16.msrb.mxu0 %v5096_v21  ;;  %v4996_v21 = vld [vmem:[%s6777_s0 + $0x24] sm:$0xf] }
  0x3f   :  { %2862 = vmatpush.bf16.msrb.mxu1 %v5104_v22  ;;  %v5191_v22 = vld [vmem:[%s6776_s1 + $0x3f8] sm:$0xff]  ;;  %v3591_v31 = vor.u32 %v4996_v21, %v3588_v24  ;;  %v3612_v21 = vld [vmem:[%s6777_s0 + $0xc8] sm:$0xf0]  ;;  %v5222_v24 = vld [vmem:[%s6776_s1 + $0x4f0] sm:$0xff] }
  0x40   :  { %2881 = vmatpush.bf16.msrb.mxu2 %v5112_v20  ;;  %v5175_v20 = vld [vmem:[%s6776_s1 + $0x378] sm:$0xff] }
  0x41   :  { %2900 = vmatpush.bf16.msrb.mxu3 %v5120_v23  ;;  %2844 = vmatmul.bf16.vlgmr.msrb.gmra.mxu0 %v3571_v36  ;;  %v5182_v23 = vld [vmem:[%s6776_s1 + $0x3b0] sm:$0xff]  ;;  %v5181_v36 = vld [vmem:[%s6776_s1 + $0x3a8] sm:$0xff] }
  0x42   :  { %2912 = vmatpush.bf16.msra.mxu0 %v5135_v26  ;;  %2863 = vmatmul.bf16.vlgmr.msrb.gmra.mxu1 %v3575_v38  ;;  %v5015_v26 = vld [vmem:[%s6777_s0 + $0xb4] sm:$0xf0]  ;;  %v5165_v38 = vld [vmem:[%s6776_s1 + $0x328] sm:$0xff] }
  0x43   :  { %2931 = vmatpush.bf16.msra.mxu1 %v5143_v34  ;;  %2882 = vmatmul.bf16.vlgmr.msrb.gmra.mxu2 %v3579_v39  ;;  %v5166_v34 = vld [vmem:[%s6776_s1 + $0x330] sm:$0xff]  ;;  %v5189_v39 = vld [vmem:[%s6776_s1 + $0x3e8] sm:$0xff] }
  0x44   :  { %2950 = vmatpush.bf16.msra.mxu2 %v5151_v25  ;;  %2901 = vmatmul.bf16.vlgmr.msrb.gmra.mxu3 %v3583_v40  ;;  %v3594_v25 = vld [vmem:[%s6777_s0 + $0x28] sm:$0xf]  ;;  %v5180_v40 = vld [vmem:[%s6776_s1 + $0x3a0] sm:$0xff] }
  0x45   :  { %2969 = vmatpush.bf16.msra.mxu3 %v5159_v35  ;;  %v3595_v32 = vor.u32 %v5015_v26, %v3594_v25  ;;  %v5190_v35 = vld [vmem:[%s6776_s1 + $0x3f0] sm:$0xff] }
  0x46   :  { %2913 = vmatpush.bf16.msra.mxu0 %v5134_v41  ;;  %v5172_v41 = vld [vmem:[%s6776_s1 + $0x360] sm:$0xff] }
  0x47   :  { %2932 = vmatpush.bf16.msra.mxu1 %v5142_v42  ;;  %v5164_v42 = vld [vmem:[%s6776_s1 + $0x320] sm:$0xff] }
  0x48   :  { %2951 = vmatpush.bf16.msra.mxu2 %v5150_v37  ;;  %v5173_v37 = vld [vmem:[%s6776_s1 + $0x368] sm:$0xff] }
  0x49   :  { %2970 = vmatpush.bf16.msra.mxu3 %v5158_v43  ;;  %v5188_v43 = vld [vmem:[%s6776_s1 + $0x3e0] sm:$0xff] }
  0x4a   :  { %2914 = vmatpush.bf16.msra.mxu0 %v5133_v45  ;;  %v3730_v45 = vld [vmem:[%s6777_s0 + $0x140] sm:$0xf] }
  0x4b   :  { %2933 = vmatpush.bf16.msra.mxu1 %v5141_v46  ;;  %v5050_v46 = vld [vmem:[%s6777_s0 + $0x1cc] sm:$0xf0] }
  0x4c   :  { %2952 = vmatpush.bf16.msra.mxu2 %v5149_v44  ;;  %v5179_v44 = vld [vmem:[%s6776_s1 + $0x398] sm:$0xff]  ;;  %v3731_v57 = vor.u32 %v5050_v46, %v3730_v45  ;;  %v5053_v45 = vld [vmem:[%s6777_s0 + $0x1e4] sm:$0xf0] }
  0x4d   :  { %2971 = vmatpush.bf16.msra.mxu3 %v5157_v47  ;;  %v5171_v47 = vld [vmem:[%s6776_s1 + $0x358] sm:$0xff] }
  0x4e   :  { %2915 = vmatpush.bf16.msra.mxu0 %v5132_v49  ;;  %v3732_v49 = vld [vmem:[%s6777_s0 + $0x1d0] sm:$0xf0]  ;;  %v5035_v46 = vld [vmem:[%s6777_s0 + $0x15c] sm:$0xf] }
  0x4f   :  { %2934 = vmatpush.bf16.msra.mxu1 %v5140_v50  ;;  %v3738_v50 = vld [vmem:[%s6777_s0 + $0x148] sm:$0xf] }
  0x50   :  { %2953 = vmatpush.bf16.msra.mxu2 %v5148_v48  ;;  %v5032_v48 = vld [vmem:[%s6777_s0 + $0x144] sm:$0xf] }
  0x51   :  { %2972 = vmatpush.bf16.msra.mxu3 %v5156_v51  ;;  %2849 = vmatmul.bf16.gmra.mxu0 %v3715_v0  ;;  %v5051_v51 = vld [vmem:[%s6777_s0 + $0x1d4] sm:$0xf0]  ;;  %v3735_v59 = vor.u32 %v5032_v48, %v3732_v49  ;;  %v5177_v0 = vld [vmem:[%s6776_s1 + $0x388] sm:$0xff]  ;;  %v5194_v49 = vld [vmem:[%s6776_s1 + $0x410] sm:$0xff] }
  0x52   :  { %2916 = vmatpush.bf16.msra.mxu0 %v5131_v60  ;;  %2868 = vmatmul.bf16.gmra.mxu1 %v3719_v2  ;;  %v3739_v60 = vor.u32 %v5051_v51, %v3738_v50  ;;  %v5161_v2 = vld [vmem:[%s6776_s1 + $0x308] sm:$0xff]  ;;  %v5202_v50 = vld [vmem:[%s6776_s1 + $0x450] sm:$0xff] }
  0x53   :  { %2935 = vmatpush.bf16.msra.mxu1 %v5139_v62  ;;  %2887 = vmatmul.bf16.gmra.mxu2 %v3723_v3  ;;  %v5162_v62 = vld [vmem:[%s6776_s1 + $0x310] sm:$0xff]  ;;  %v5185_v3 = vld [vmem:[%s6776_s1 + $0x3c8] sm:$0xff] }
  0x54   :  { %2954 = vmatpush.bf16.msra.mxu2 %v5147_v54  ;;  %2906 = vmatmul.bf16.gmra.mxu3 %v3727_v4  ;;  %v3740_v54 = vld [vmem:[%s6777_s0 + $0x1d8] sm:$0xf0]  ;;  %v5176_v4 = vld [vmem:[%s6776_s1 + $0x380] sm:$0xff]  ;;  %v3756_v48 = vld [vmem:[%s6777_s0 + $0x1e8] sm:$0xf0] }
  0x55   :  { %2973 = vmatpush.bf16.msra.mxu3 %v5155_v63  ;;  %v3743_v61 = vor.u32 %v5033_v52, %v3740_v54  ;;  %v5186_v63 = vld [vmem:[%s6776_s1 + $0x3d0] sm:$0xff] }
  0x56   :  { %2917 = vmatpush.bf16.msra.mxu0 %v5130_v5  ;;  %v5168_v5 = vld [vmem:[%s6776_s1 + $0x340] sm:$0xff]  ;;  %v5218_v52 = vld [vmem:[%s6776_s1 + $0x4d0] sm:$0xff] }
  0x57   :  { %2936 = vmatpush.bf16.msra.mxu1 %v5138_v6  ;;  %v5215_v6 = vld [vmem:[%s6776_s1 + $0x4b8] sm:$0xff] }
  0x58   :  { %2955 = vmatpush.bf16.msra.mxu2 %v5146_v1  ;;  %v5169_v1 = vld [vmem:[%s6776_s1 + $0x348] sm:$0xff] }
  0x59   :  { %2974 = vmatpush.bf16.msra.mxu3 %v5154_v7  ;;  %v5207_v7 = vld [vmem:[%s6776_s1 + $0x478] sm:$0xff] }
  0x5a   :  { %2918 = vmatpush.bf16.msra.mxu0 %v5129_v9  ;;  %v5184_v9 = vld [vmem:[%s6776_s1 + $0x3c0] sm:$0xff] }
  0x5b   :  { %2937 = vmatpush.bf16.msra.mxu1 %v5137_v10  ;;  %v5199_v10 = vld [vmem:[%s6776_s1 + $0x438] sm:$0xff] }
  0x5c   :  { %2956 = vmatpush.bf16.msra.mxu2 %v5145_v8  ;;  %v5160_v8 = vld [vmem:[%s6776_s1 + $0x300] sm:$0xff] }
  0x5d   :  { %2975 = vmatpush.bf16.msra.mxu3 %v5153_v11  ;;  %v3602_v11 = vld [vmem:[%s6777_s0 + $0x30] sm:$0xf] }
  0x5e   :  { %2919 = vmatpush.bf16.msra.mxu0 %v5128_v14  ;;  %v5016_v14 = vld [vmem:[%s6777_s0 + $0xbc] sm:$0xf0] }
  0x5f   :  { %2938 = vmatpush.bf16.msra.mxu1 %v5136_v15  ;;  %v4998_v15 = vld [vmem:[%s6777_s0 + $0x34] sm:$0xf] }
  0x60   :  { %2957 = vmatpush.bf16.msra.mxu2 %v5144_v12  ;;  %v5223_v12 = vld [vmem:[%s6776_s1 + $0x4f8] sm:$0xff]  ;;  %v3607_v25 = vor.u32 %v4998_v15, %v3604_v17  ;;  %v5001_v15 = vld [vmem:[%s6777_s0 + $0x4c] sm:$0xf] }
  0x61   :  { %2976 = vmatpush.bf16.msra.mxu3 %v5152_v16  ;;  %2920 = vmatmul.bf16.vlgmr.msra.gmra.mxu0 %v3587_v29  ;;  %v5206_v16 = vld [vmem:[%s6776_s1 + $0x470] sm:$0xff]  ;;  %v5197_v29 = vld [vmem:[%s6776_s1 + $0x428] sm:$0xff] }
  0x62   :  { %2988 = vmatpush.bf16.msrb.mxu0 %v5167_v19  ;;  %2939 = vmatmul.bf16.vlgmr.msra.gmra.mxu1 %v3591_v31  ;;  %v5017_v19 = vld [vmem:[%s6777_s0 + $0xc4] sm:$0xf0] }
  0x63   :  { %3007 = vmatpush.bf16.msrb.mxu1 %v5175_v20  ;;  %2958 = vmatmul.bf16.vlgmr.msra.gmra.mxu2 %v3595_v32  ;;  %v4999_v20 = vld [vmem:[%s6777_s0 + $0x3c] sm:$0xf]  ;;  %v3611_v26 = vor.u32 %v5017_v19, %v3610_v18  ;;  %v5221_v31 = vld [vmem:[%s6776_s1 + $0x4e8] sm:$0xff]  ;;  %v5212_v32 = vld [vmem:[%s6776_s1 + $0x4a0] sm:$0xff] }
  0x64   :  { %3026 = vmatpush.bf16.msrb.mxu2 %v5183_v13  ;;  %2977 = vmatmul.bf16.vlgmr.msra.gmra.mxu3 %v3599_v33  ;;  %v5214_v13 = vld [vmem:[%s6776_s1 + $0x4b0] sm:$0xff]  ;;  %v3615_v27 = vor.u32 %v4999_v20, %v3612_v21  ;;  %v5196_v33 = vld [vmem:[%s6776_s1 + $0x420] sm:$0xff]  ;;  %v5245_v18 = vld [vmem:[%s6776_s1 + $0x5a8] sm:$0xff] }
  0x65   :  { %3045 = vmatpush.bf16.msrb.mxu3 %v5191_v22  ;;  %v5198_v22 = vld [vmem:[%s6776_s1 + $0x430] sm:$0xff] }
  0x66   :  { %2989 = vmatpush.bf16.msrb.mxu0 %v5166_v34  ;;  %v5204_v34 = vld [vmem:[%s6776_s1 + $0x460] sm:$0xff] }
  0x67   :  { %3008 = vmatpush.bf16.msrb.mxu1 %v5174_v30  ;;  %v5205_v30 = vld [vmem:[%s6776_s1 + $0x468] sm:$0xff] }
  0x68   :  { %3027 = vmatpush.bf16.msrb.mxu2 %v5182_v23  ;;  %v3603_v23 = vor.u32 %v5016_v14, %v3602_v11  ;;  %v5238_v11 = vld [vmem:[%s6776_s1 + $0x570] sm:$0xff] }
  0x69   :  { %3046 = vmatpush.bf16.msrb.mxu3 %v5190_v35  ;;  %v5220_v35 = vld [vmem:[%s6776_s1 + $0x4e0] sm:$0xff]  ;;  %v5254_v14 = vld [vmem:[%s6776_s1 + $0x5f0] sm:$0xff] }
  0x6a   :  { %2990 = vmatpush.bf16.msrb.mxu0 %v5165_v38  ;;  %v5203_v38 = vld [vmem:[%s6776_s1 + $0x458] sm:$0xff] }
  0x6b   :  { %3009 = vmatpush.bf16.msrb.mxu1 %v5173_v37  ;;  %v5195_v37 = vld [vmem:[%s6776_s1 + $0x418] sm:$0xff] }
  0x6c   :  { %3028 = vmatpush.bf16.msrb.mxu2 %v5181_v36  ;;  %v5211_v36 = vld [vmem:[%s6776_s1 + $0x498] sm:$0xff] }
  0x6d   :  { %3047 = vmatpush.bf16.msrb.mxu3 %v5189_v39  ;;  %v3746_v39 = vld [vmem:[%s6777_s0 + $0x150] sm:$0xf] }
  0x6e   :  { %2991 = vmatpush.bf16.msrb.mxu0 %v5164_v42  ;;  %v5034_v42 = vld [vmem:[%s6777_s0 + $0x154] sm:$0xf] }
  0x6f   :  { %3010 = vmatpush.bf16.msrb.mxu1 %v5172_v41  ;;  %v5219_v41 = vld [vmem:[%s6776_s1 + $0x4d8] sm:$0xff] }
  0x70   :  { %3029 = vmatpush.bf16.msrb.mxu2 %v5180_v40  ;;  %v5052_v40 = vld [vmem:[%s6777_s0 + $0x1dc] sm:$0xf0] }
  0x71   :  { %3048 = vmatpush.bf16.msrb.mxu3 %v5188_v43  ;;  %2925 = vmatmul.bf16.gmra.mxu0 %v3731_v57  ;;  %v3748_v43 = vld [vmem:[%s6777_s0 + $0x1e0] sm:$0xf0]  ;;  %v3747_v51 = vor.u32 %v5052_v40, %v3746_v39  ;;  %v5193_v57 = vld [vmem:[%s6776_s1 + $0x408] sm:$0xff]  ;;  %v5227_v40 = vld [vmem:[%s6776_s1 + $0x518] sm:$0xff] }
  0x72   :  { %2992 = vmatpush.bf16.msrb.mxu0 %v5163_v53  ;;  %2944 = vmatmul.bf16.gmra.mxu1 %v3735_v59  ;;  %v3751_v53 = vor.u32 %v5034_v42, %v3748_v43  ;;  %v5217_v59 = vld [vmem:[%s6776_s1 + $0x4c8] sm:$0xff]  ;;  %v5235_v42 = vld [vmem:[%s6776_s1 + $0x558] sm:$0xff] }
  0x73   :  { %3011 = vmatpush.bf16.msrb.mxu1 %v5171_v47  ;;  %2963 = vmatmul.bf16.gmra.mxu2 %v3739_v60  ;;  %v5210_v47 = vld [vmem:[%s6776_s1 + $0x490] sm:$0xff]  ;;  %v5208_v60 = vld [vmem:[%s6776_s1 + $0x480] sm:$0xff]  ;;  %v5251_v43 = vld [vmem:[%s6776_s1 + $0x5d8] sm:$0xff] }
  0x74   :  { %3030 = vmatpush.bf16.msrb.mxu2 %v5179_v44  ;;  %2982 = vmatmul.bf16.gmra.mxu3 %v3743_v61  ;;  %v3754_v44 = vld [vmem:[%s6777_s0 + $0x158] sm:$0xf]  ;;  %v5192_v61 = vld [vmem:[%s6776_s1 + $0x400] sm:$0xff] }
  0x75   :  { %3049 = vmatpush.bf16.msrb.mxu3 %v5187_v55  ;;  %v3755_v54 = vor.u32 %v5053_v45, %v3754_v44  ;;  %v3759_v55 = vor.u32 %v5035_v46, %v3756_v48  ;;  %v3762_v45 = vld [vmem:[%s6777_s0 + $0x160] sm:$0xf]  ;;  %v5054_v46 = vld [vmem:[%s6777_s0 + $0x1ec] sm:$0xf0]  ;;  %v5036_v48 = vld [vmem:[%s6777_s0 + $0x164] sm:$0xf] }
  0x76   :  { %2993 = vmatpush.bf16.msrb.mxu0 %v5162_v62  ;;  %v5200_v62 = vld [vmem:[%s6776_s1 + $0x440] sm:$0xff] }
  0x77   :  { %3012 = vmatpush.bf16.msrb.mxu1 %v5170_v58  ;;  %v5201_v58 = vld [vmem:[%s6776_s1 + $0x448] sm:$0xff] }
  0x78   :  { %3031 = vmatpush.bf16.msrb.mxu2 %v5178_v56  ;;  %v5209_v56 = vld [vmem:[%s6776_s1 + $0x488] sm:$0xff] }
  0x79   :  { %3050 = vmatpush.bf16.msrb.mxu3 %v5186_v63  ;;  %v5216_v63 = vld [vmem:[%s6776_s1 + $0x4c0] sm:$0xff] }
  0x7a   :  { %2994 = vmatpush.bf16.msrb.mxu0 %v5161_v2  ;;  %v5239_v2 = vld [vmem:[%s6776_s1 + $0x578] sm:$0xff] }
  0x7b   :  { %3013 = vmatpush.bf16.msrb.mxu1 %v5169_v1  ;;  %v5231_v1 = vld [vmem:[%s6776_s1 + $0x538] sm:$0xff] }
  0x7c   :  { %3032 = vmatpush.bf16.msrb.mxu2 %v5177_v0  ;;  %v5247_v0 = vld [vmem:[%s6776_s1 + $0x5b8] sm:$0xff] }
  0x7d   :  { %3051 = vmatpush.bf16.msrb.mxu3 %v5185_v3  ;;  %v5255_v3 = vld [vmem:[%s6776_s1 + $0x5f8] sm:$0xff] }
  0x7e   :  { %2995 = vmatpush.bf16.msrb.mxu0 %v5160_v8  ;;  %v5246_v8 = vld [vmem:[%s6776_s1 + $0x5b0] sm:$0xff] }
  0x7f   :  { %3014 = vmatpush.bf16.msrb.mxu1 %v5168_v5  ;;  %v6076_v5 = vld [vmem:[%s6778_s2] ss:$0 sm:$0xff] }
  0x80   :  { %3033 = vmatpush.bf16.msrb.mxu2 %v5176_v4  ;;  %v3618_v4 = vld [vmem:[%s6777_s0 + $0x40] sm:$0xf] }
  0x81   :  { %3052 = vmatpush.bf16.msrb.mxu3 %v5184_v9  ;;  %2996 = vmatmul.bf16.vlgmr.msrb.gmra.mxu0 %v3603_v23  ;;  %v3620_v9 = vld [vmem:[%s6777_s0 + $0xd0] sm:$0xf0] }
  0x82   :  { %3064 = vmatpush.bf16.msra.mxu0 %v5199_v10  ;;  %3015 = vmatmul.bf16.vlgmr.msrb.gmra.mxu1 %v3607_v25  ;;  %v5230_v10 = vld [vmem:[%s6776_s1 + $0x530] sm:$0xff]  ;;  %v5229_v25 = vld [vmem:[%s6776_s1 + $0x528] sm:$0xff] }
  0x83   :  { %3083 = vmatpush.bf16.msra.mxu1 %v5207_v7  ;;  %3034 = vmatmul.bf16.vlgmr.msrb.gmra.mxu2 %v3611_v26  ;;  %v5000_v7 = vld [vmem:[%s6777_s0 + $0x44] sm:$0xf]  ;;  %v5237_v26 = vld [vmem:[%s6776_s1 + $0x568] sm:$0xff] }
  0x84   :  { %3102 = vmatpush.bf16.msra.mxu2 %v5215_v6  ;;  %3053 = vmatmul.bf16.vlgmr.msrb.gmra.mxu3 %v3615_v27  ;;  %v5018_v6 = vld [vmem:[%s6777_s0 + $0xcc] sm:$0xf0]  ;;  %v3623_v21 = vor.u32 %v5000_v7, %v3620_v9  ;;  %v5253_v27 = vld [vmem:[%s6776_s1 + $0x5e8] sm:$0xff] }
  0x85   :  { %3121 = vmatpush.bf16.msra.mxu3 %v5223_v12  ;;  %v3626_v12 = vld [vmem:[%s6777_s0 + $0x48] sm:$0xf]  ;;  %v3619_v17 = vor.u32 %v5018_v6, %v3618_v4 }
  0x86   :  { %3065 = vmatpush.bf16.msra.mxu0 %v5198_v22  ;;  %v5225_v4 = vld [vmem:[%s6776_s1 + $0x508] sm:$0xff] }
  0x87   :  { %3084 = vmatpush.bf16.msra.mxu1 %v5206_v16  ;;  %v3628_v16 = vld [vmem:[%s6777_s0 + $0xd8] sm:$0xf0]  ;;  %v5233_v7 = vld [vmem:[%s6776_s1 + $0x548] sm:$0xff] }
  0x88   :  { %3103 = vmatpush.bf16.msra.mxu2 %v5214_v13  ;;  %v5019_v13 = vld [vmem:[%s6777_s0 + $0xd4] sm:$0xf0] }
  0x89   :  { %3122 = vmatpush.bf16.msra.mxu3 %v5222_v24  ;;  %v3627_v22 = vor.u32 %v5019_v13, %v3626_v12  ;;  %v3631_v24 = vor.u32 %v5001_v15, %v3628_v16  ;;  %v5224_v12 = vld [vmem:[%s6776_s1 + $0x500] sm:$0xff] }
  0x8a   :  { %3066 = vmatpush.bf16.msra.mxu0 %v5197_v29  ;;  %v5244_v29 = vld [vmem:[%s6776_s1 + $0x5a0] sm:$0xff] }
  0x8b   :  { %3085 = vmatpush.bf16.msra.mxu1 %v5205_v30  ;;  %v5228_v30 = vld [vmem:[%s6776_s1 + $0x520] sm:$0xff] }
  0x8c   :  { %3104 = vmatpush.bf16.msra.mxu2 %v5213_v28  ;;  %v5232_v13 = vld [vmem:[%s6776_s1 + $0x540] sm:$0xff] }
  0x8d   :  { %3123 = vmatpush.bf16.msra.mxu3 %v5221_v31  ;;  %v5236_v31 = vld [vmem:[%s6776_s1 + $0x560] sm:$0xff] }
  0x8e   :  { %3067 = vmatpush.bf16.msra.mxu0 %v5196_v33 }
  0x8f   :  { %3086 = vmatpush.bf16.msra.mxu1 %v5204_v34 }
  0x90   :  { %3105 = vmatpush.bf16.msra.mxu2 %v5212_v32  ;;  %v5252_v32 = vld [vmem:[%s6776_s1 + $0x5e0] sm:$0xff] }
  0x91   :  { %3124 = vmatpush.bf16.msra.mxu3 %v5220_v35  ;;  %3001 = vmatmul.bf16.gmra.mxu0 %v3747_v51  ;;  %v5243_v35 = vld [vmem:[%s6776_s1 + $0x598] sm:$0xff] }
  0x92   :  { %3068 = vmatpush.bf16.msra.mxu0 %v5195_v37  ;;  %3020 = vmatmul.bf16.gmra.mxu1 %v3751_v53  ;;  %v5055_v51 = vld [vmem:[%s6777_s0 + $0x1f4] sm:$0xf0]  ;;  %v5226_v53 = vld [vmem:[%s6776_s1 + $0x510] sm:$0xff] }
  0x93   :  { %3087 = vmatpush.bf16.msra.mxu1 %v5203_v38  ;;  %3039 = vmatmul.bf16.gmra.mxu2 %v3755_v54  ;;  %v3772_v54 = vld [vmem:[%s6777_s0 + $0x1f8] sm:$0xf0] }
  0x94   :  { %3106 = vmatpush.bf16.msra.mxu2 %v5211_v36  ;;  %3058 = vmatmul.bf16.gmra.mxu3 %v3759_v55  ;;  %v5234_v55 = vld [vmem:[%s6776_s1 + $0x550] sm:$0xff] }
  0x95   :  { %3125 = vmatpush.bf16.msra.mxu3 %v5219_v41 }
  0x96   :  { %3069 = vmatpush.bf16.msra.mxu0 %v5194_v49  ;;  %v3764_v49 = vld [vmem:[%s6777_s0 + $0x1f0] sm:$0xf0] }
  0x97   :  { %3088 = vmatpush.bf16.msra.mxu1 %v5202_v50  ;;  %v3770_v50 = vld [vmem:[%s6777_s0 + $0x168] sm:$0xf] }
  0x98   :  { %3107 = vmatpush.bf16.msra.mxu2 %v5210_v47  ;;  %v5242_v47 = vld [vmem:[%s6776_s1 + $0x590] sm:$0xff] }
  0x99   :  { %3126 = vmatpush.bf16.msra.mxu3 %v5218_v52  ;;  %v5037_v52 = vld [vmem:[%s6777_s0 + $0x16c] sm:$0xf] }
  0x9a   :  { %3070 = vmatpush.bf16.msra.mxu0 %v5193_v57 }
  0x9b   :  { %3089 = vmatpush.bf16.msra.mxu1 %v5201_v58 }
  0x9c   :  { %3108 = vmatpush.bf16.msra.mxu2 %v5209_v56  ;;  %v5250_v56 = vld [vmem:[%s6776_s1 + $0x5d0] sm:$0xff] }
  0x9d   :  { %3127 = vmatpush.bf16.msra.mxu3 %v5217_v59  ;;  %v3763_v59 = vor.u32 %v5054_v46, %v3762_v45 }
  0x9e   :  { %3071 = vmatpush.bf16.msra.mxu0 %v5192_v61  ;;  %v2769_v19 = vpop.f32.mrf.mxu0 }
  0x9f   :  { %3090 = vmatpush.bf16.msra.mxu1 %v5200_v62  ;;  %v2788_v20 = vpop.f32.mrf.mxu1  ;;  %v2770_v23 = vadd.f32 %v6076_v5, %v2769_v19 }
  0xa0   :  { %3109 = vmatpush.bf16.msra.mxu2 %v5208_v60  ;;  %v5241_v60 = vld [vmem:[%s6776_s1 + $0x588] sm:$0xff] }
  0xa1   :  { %3128 = vmatpush.bf16.msra.mxu3 %v5216_v63  ;;  %v2789_v28 = vadd.f32 %v2788_v20, %v2770_v23  ;;  %3072 = vmatmul.bf16.vlgmr.msra.gmra.mxu0 %v3619_v17  ;;  %v5263_v17 = vld [vmem:[%s6776_s1 + $0x638] sm:$0xff]  ;;  %v5278_v23 = vld [vmem:[%s6776_s1 + $0x6b0] sm:$0xff] }
  0xa2   :  { %3140 = vmatpush.bf16.msrb.mxu0 %v5231_v1  ;;  %3091 = vmatmul.bf16.vlgmr.msra.gmra.mxu1 %v3623_v21  ;;  %v3771_v1 = vor.u32 %v5055_v51, %v3770_v50  ;;  %v5261_v50 = vld [vmem:[%s6776_s1 + $0x628] sm:$0xff] }
  0xa3   :  { %3159 = vmatpush.bf16.msrb.mxu1 %v5239_v2  ;;  %3110 = vmatmul.bf16.vlgmr.msra.gmra.mxu2 %v3627_v22  ;;  %v5287_v22 = vld [vmem:[%s6776_s1 + $0x6f8] sm:$0xff] }
  0xa4   :  { %3178 = vmatpush.bf16.msrb.mxu2 %v5247_v0  ;;  %3129 = vmatmul.bf16.vlgmr.msra.gmra.mxu3 %v3631_v24  ;;  %v3767_v0 = vor.u32 %v5036_v48, %v3764_v49 }
  0xa5   :  { %3197 = vmatpush.bf16.msrb.mxu3 %v5255_v3  ;;  %v3775_v3 = vor.u32 %v5037_v52, %v3772_v54  ;;  %v5285_v52 = vld [vmem:[%s6776_s1 + $0x6e8] sm:$0xff] }
  0xa6   :  { %3141 = vmatpush.bf16.msrb.mxu0 %v5230_v10  ;;  %v2807_v33 = vpop.f32.mrf.mxu2  ;;  %v2771_v37 = vpop.f32.mrf.mxu0  ;;  %v5240_v10 = vld [vmem:[%s6776_s1 + $0x580] sm:$0xff] }
  0xa7   :  { %3160 = vmatpush.bf16.msrb.mxu1 %v5238_v11  ;;  %v2826_v34 = vpop.f32.mrf.mxu3  ;;  %v2808_v36 = vadd.f32 %v2807_v33, %v2789_v28  ;;  %v2790_v38 = vpop.f32.mrf.mxu1  ;;  %v2772_v39 = vadd.f32 %v6076_v5, %v2771_v37  ;;  %v5279_v11 = vld [vmem:[%s6776_s1 + $0x6b8] sm:$0xff]  ;;  %v5020_v28 = vld [vmem:[%s6777_s0 + $0xdc] sm:$0xf0]  ;;  %v3636_v33 = vld [vmem:[%s6777_s0 + $0xe0] sm:$0xf0] }
  0xa8   :  { %3179 = vmatpush.bf16.msrb.mxu2 %v5246_v8  ;;  %v5249_v8 = vld [vmem:[%s6776_s1 + $0x5c8] sm:$0xff] }
  0xa9   :  { %3198 = vmatpush.bf16.msrb.mxu3 %v5254_v14  ;;  %v6143_v41 = vadd.f32 %v2826_v34, %v2808_v36  ;;  %v2791_v44 = vadd.f32 %v2790_v38, %v2772_v39  ;;  %v5248_v14 = vld [vmem:[%s6776_s1 + $0x5c0] sm:$0xff]  ;;  %v3642_v34 = vld [vmem:[%s6777_s0 + $0x58] sm:$0xf]  ;;  %v5003_v36 = vld [vmem:[%s6777_s0 + $0x5c] sm:$0xf] }
  0xaa   :  { %3142 = vmatpush.bf16.msrb.mxu0 %v5229_v25  ;;  %v3644_v37 = vld [vmem:[%s6777_s0 + $0xe8] sm:$0xf0] }
  0xab   :  { %3161 = vmatpush.bf16.msrb.mxu1 %v5237_v26  ;;  %v3634_v26 = vld [vmem:[%s6777_s0 + $0x50] sm:$0xf]  ;;  %v3647_v49 = vor.u32 %v5003_v36, %v3644_v37  ;;  %v5303_v36 = vld [vmem:[%s6776_s1 + $0x778] sm:$0xff]  ;;  %v5256_v37 = vld [vmem:[%s6776_s1 + $0x600] sm:$0xff] }
  0xac   :  { %3180 = vmatpush.bf16.msrb.mxu2 %v5245_v18  ;;  %v5271_v18 = vld [vmem:[%s6776_s1 + $0x678] sm:$0xff] }
  0xad   :  { %3199 = vmatpush.bf16.msrb.mxu3 %v5253_v27 }
  0xae   :  { %3143 = vmatpush.bf16.msrb.mxu0 %v5228_v30  ;;  %v2809_v57 = vpop.f32.mrf.mxu2  ;;  %v2774_v62 = vpop.f32.mrf.mxu0  ;;  %v5002_v30 = vld [vmem:[%s6777_s0 + $0x54] sm:$0xf] }
  0xaf   :  { %3162 = vmatpush.bf16.msrb.mxu1 %v5236_v31  ;;  %v2828_v58 = vpop.f32.mrf.mxu3  ;;  %v2810_v61 = vadd.f32 %v2809_v57, %v2791_v44  ;;  %v2793_v63 = vpop.f32.mrf.mxu1  ;;  %v2775_v2 = vadd.f32 %v6076_v5, %v2774_v62  ;;  %v5286_v31 = vld [vmem:[%s6776_s1 + $0x6f0] sm:$0xff]  ;;  %v3639_v45 = vor.u32 %v5002_v30, %v3636_v33  ;;  %v5275_v57 = vld [vmem:[%s6776_s1 + $0x698] sm:$0xff]  ;;  %v5257_v30 = vld [vmem:[%s6776_s1 + $0x608] sm:$0xff] }
  0xb0   :  { %3181 = vmatpush.bf16.msrb.mxu2 %v5244_v29  ;;  %v5270_v29 = vld [vmem:[%s6776_s1 + $0x670] sm:$0xff]  ;;  %v5272_v33 = vld [vmem:[%s6776_s1 + $0x680] sm:$0xff] }
  0xb1   :  { %3200 = vmatpush.bf16.msrb.mxu3 %v5252_v32  ;;  %v6194_v6 = vadd.f32 %v2828_v58, %v2810_v61  ;;  %v2794_v9 = vadd.f32 %v2793_v63, %v2775_v2  ;;  %3077 = vmatmul.bf16.gmra.mxu0 %v3763_v59  ;;  %v5277_v32 = vld [vmem:[%s6776_s1 + $0x6a8] sm:$0xff]  ;;  %v5267_v59 = vld [vmem:[%s6776_s1 + $0x658] sm:$0xff] }
  0xb2   :  { %3144 = vmatpush.bf16.msrb.mxu0 %v5227_v40  ;;  %3096 = vmatmul.bf16.gmra.mxu1 %v3767_v0  ;;  %v3635_v40 = vor.u32 %v5020_v28, %v3634_v26 }
  0xb3   :  { %3163 = vmatpush.bf16.msrb.mxu1 %v5235_v42  ;;  %3115 = vmatmul.bf16.gmra.mxu2 %v3771_v1  ;;  %v5269_v42 = vld [vmem:[%s6776_s1 + $0x668] sm:$0xff]  ;;  %v5259_v1 = vld [vmem:[%s6776_s1 + $0x618] sm:$0xff] }
  0xb4   :  { %3182 = vmatpush.bf16.msrb.mxu2 %v5243_v35  ;;  %3134 = vmatmul.bf16.gmra.mxu3 %v3775_v3  ;;  %v5021_v35 = vld [vmem:[%s6777_s0 + $0xe4] sm:$0xf0]  ;;  %v5283_v3 = vld [vmem:[%s6776_s1 + $0x6d8] sm:$0xff] }
  0xb5   :  { %3201 = vmatpush.bf16.msrb.mxu3 %v5251_v43  ;;  %v3643_v46 = vor.u32 %v5021_v35, %v3642_v34  ;;  %v5264_v34 = vld [vmem:[%s6776_s1 + $0x640] sm:$0xff]  ;;  %v5311_v35 = vld [vmem:[%s6776_s1 + $0x7b8] sm:$0xff] }
  0xb6   :  { %3145 = vmatpush.bf16.msrb.mxu0 %v5226_v53  ;;  %v2812_v15 = vpop.f32.mrf.mxu2  ;;  %v2776_v20 = vpop.f32.mrf.mxu0  ;;  %v5276_v53 = vld [vmem:[%s6776_s1 + $0x6a0] sm:$0xff] }
  0xb7   :  { %3164 = vmatpush.bf16.msrb.mxu1 %v5234_v55  ;;  %v2831_v16 = vpop.f32.mrf.mxu3  ;;  %v2813_v19 = vadd.f32 %v2812_v15, %v2794_v9  ;;  %v2795_v21 = vpop.f32.mrf.mxu1  ;;  %v2777_v24 = vadd.f32 %v6076_v5, %v2776_v20  ;;  %v5262_v5 = vld [vmem:[%s6776_s1 + $0x630] sm:$0xff]  ;;  %v5260_v55 = vld [vmem:[%s6776_s1 + $0x620] sm:$0xff] }
  0xb8   :  { %3183 = vmatpush.bf16.msrb.mxu2 %v5242_v47  ;;  %v5266_v9 = vld [vmem:[%s6776_s1 + $0x650] sm:$0xff] }
  0xb9   :  { %3202 = vmatpush.bf16.msrb.mxu3 %v5250_v56  ;;  %v6230_v25 = vadd.f32 %v2831_v16, %v2813_v19  ;;  %v2796_v27 = vadd.f32 %v2795_v21, %v2777_v24  ;;  %v5284_v56 = vld [vmem:[%s6776_s1 + $0x6e0] sm:$0xff]  ;;  %v5258_v15 = vld [vmem:[%s6776_s1 + $0x610] sm:$0xff]  ;;  %v3788_v16 = vld [vmem:[%s6777_s0 + $0x208] sm:$0xf0] }
  0xba   :  { %3146 = vmatpush.bf16.msrb.mxu0 %v5225_v4  ;;  %v5274_v4 = vld [vmem:[%s6776_s1 + $0x690] sm:$0xff]  ;;  %v5265_v21 = vld [vmem:[%s6776_s1 + $0x648] sm:$0xff] }
  0xbb   :  { %3165 = vmatpush.bf16.msrb.mxu1 %v5233_v7 }
  0xbc   :  { %3184 = vmatpush.bf16.msrb.mxu2 %v5241_v60 }
  0xbd   :  { %3203 = vmatpush.bf16.msrb.mxu3 %v5249_v8  ;;  %v5056_v8 = vld [vmem:[%s6777_s0 + $0x1fc] sm:$0xf0] }
  0xbe   :  { %3147 = vmatpush.bf16.msrb.mxu0 %v5224_v12  ;;  %v2814_v38 = vpop.f32.mrf.mxu2  ;;  %v2845_v44 = vpop.f32.mrf.mxu0  ;;  %v3786_v12 = vld [vmem:[%s6777_s0 + $0x178] sm:$0xf] }
  0xbf   :  { %3166 = vmatpush.bf16.msrb.mxu1 %v5232_v13  ;;  %v2833_v39 = vpop.f32.mrf.mxu3  ;;  %v2815_v43 = vadd.f32 %v2814_v38, %v2796_v27  ;;  %v2846_v47 = vadd.f32 %v2845_v44, %v6143_v41  ;;  %v2864_v48 = vpop.f32.mrf.mxu1  ;;  %v5268_v41 = vld [vmem:[%s6776_s1 + $0x660] sm:$0xff]  ;;  %v5057_v13 = vld [vmem:[%s6777_s0 + $0x204] sm:$0xf0] }
  0xc0   :  { %3185 = vmatpush.bf16.msrb.mxu2 %v5240_v10  ;;  %v5038_v10 = vld [vmem:[%s6777_s0 + $0x174] sm:$0xf]  ;;  %v3787_v27 = vor.u32 %v5057_v13, %v3786_v12  ;;  %v5280_v38 = vld [vmem:[%s6776_s1 + $0x6c0] sm:$0xff] }
  0xc1   :  { %3204 = vmatpush.bf16.msrb.mxu3 %v5248_v14  ;;  %v6275_v51 = vadd.f32 %v2833_v39, %v2815_v43  ;;  %v2865_v54 = vadd.f32 %v2864_v48, %v2846_v47  ;;  %3148 = vmatmul.bf16.vlgmr.msrb.gmra.mxu0 %v3635_v40  ;;  %v5039_v14 = vld [vmem:[%s6777_s0 + $0x17c] sm:$0xf]  ;;  %v5310_v43 = vld [vmem:[%s6776_s1 + $0x7b0] sm:$0xff]  ;;  %v5308_v13 = vld [vmem:[%s6776_s1 + $0x7a0] sm:$0xff] }
  0xc2   :  { %3216 = vmatpush.bf16.msra.mxu0 %v5263_v17  ;;  %3167 = vmatmul.bf16.vlgmr.msrb.gmra.mxu1 %v3639_v45  ;;  %v5282_v17 = vld [vmem:[%s6776_s1 + $0x6d0] sm:$0xff]  ;;  %v5295_v39 = vld [vmem:[%s6776_s1 + $0x738] sm:$0xff] }
  0xc3   :  { %3235 = vmatpush.bf16.msra.mxu1 %v5271_v18  ;;  %3186 = vmatmul.bf16.vlgmr.msrb.gmra.mxu2 %v3643_v46  ;;  %v5273_v18 = vld [vmem:[%s6776_s1 + $0x688] sm:$0xff]  ;;  %v5302_v47 = vld [vmem:[%s6776_s1 + $0x770] sm:$0xff] }
  0xc4   :  { %3254 = vmatpush.bf16.msra.mxu2 %v5279_v11  ;;  %3205 = vmatmul.bf16.vlgmr.msrb.gmra.mxu3 %v3647_v49  ;;  %v3780_v11 = vld [vmem:[%s6777_s0 + $0x200] sm:$0xf0] }
  0xc5   :  { %3273 = vmatpush.bf16.msra.mxu3 %v5287_v22  ;;  %v3783_v26 = vor.u32 %v5038_v10, %v3780_v11 }
  0xc6   :  { %3217 = vmatpush.bf16.msra.mxu0 %v5262_v5  ;;  %v2883_v58 = vpop.f32.mrf.mxu2  ;;  %v2847_v62 = vpop.f32.mrf.mxu0 }
  0xc7   :  { %3236 = vmatpush.bf16.msra.mxu1 %v5270_v29  ;;  %v2884_v60 = vadd.f32 %v2883_v58, %v2865_v54  ;;  %v2902_v61 = vpop.f32.mrf.mxu3  ;;  %v2848_v63 = vadd.f32 %v2847_v62, %v6194_v6  ;;  %v2866_v0 = vpop.f32.mrf.mxu1  ;;  %v3778_v6 = vld [vmem:[%s6777_s0 + $0x170] sm:$0xf]  ;;  %v3791_v29 = vor.u32 %v5039_v14, %v3788_v16  ;;  %v3650_v54 = vld [vmem:[%s6777_s0 + $0x60] sm:$0xf]  ;;  %v3652_v58 = vld [vmem:[%s6777_s0 + $0xf0] sm:$0xf0] }
  0xc8   :  { %3255 = vmatpush.bf16.msra.mxu2 %v5278_v23  ;;  %v3779_v20 = vor.u32 %v5056_v8, %v3778_v6  ;;  %v3660_v62 = vld [vmem:[%s6777_s0 + $0xf8] sm:$0xf0]  ;;  %v5300_v16 = vld [vmem:[%s6776_s1 + $0x760] sm:$0xff] }
  0xc9   :  { %3274 = vmatpush.bf16.msra.mxu3 %v5286_v31  ;;  %v6302_v2 = vadd.f32 %v2902_v61, %v2884_v60  ;;  %v2867_v7 = vadd.f32 %v2866_v0, %v2848_v63  ;;  %v5023_v60 = vld [vmem:[%s6777_s0 + $0xf4] sm:$0xf0]  ;;  %v5005_v61 = vld [vmem:[%s6777_s0 + $0x6c] sm:$0xf] }
  0xca   :  { %3218 = vmatpush.bf16.msra.mxu0 %v5261_v50  ;;  %v5293_v63 = vld [vmem:[%s6776_s1 + $0x728] sm:$0xff]  ;;  %v3663_v12 = vor.u32 %v5005_v61, %v3660_v62  ;;  %v5343_v61 = vld [vmem:[%s6776_s1 + $0x8b8] sm:$0xff] }
  0xcb   :  { %3237 = vmatpush.bf16.msra.mxu1 %v5269_v42  ;;  %v5319_v42 = vld [vmem:[%s6776_s1 + $0x7f8] sm:$0xff] }
  0xcc   :  { %3256 = vmatpush.bf16.msra.mxu2 %v5277_v32  ;;  %v5281_v32 = vld [vmem:[%s6776_s1 + $0x6c8] sm:$0xff]  ;;  %v5327_v62 = vld [vmem:[%s6776_s1 + $0x838] sm:$0xff] }
  0xcd   :  { %3275 = vmatpush.bf16.msra.mxu3 %v5285_v52  ;;  %v5294_v52 = vld [vmem:[%s6776_s1 + $0x730] sm:$0xff] }
  0xce   :  { %3219 = vmatpush.bf16.msra.mxu0 %v5260_v55  ;;  %v2885_v19 = vpop.f32.mrf.mxu2  ;;  %v2850_v24 = vpop.f32.mrf.mxu0  ;;  %v5022_v55 = vld [vmem:[%s6777_s0 + $0xec] sm:$0xf0] }
  0xcf   :  { %3238 = vmatpush.bf16.msra.mxu1 %v5268_v41  ;;  %v2886_v22 = vadd.f32 %v2885_v19, %v2867_v7  ;;  %v2904_v23 = vpop.f32.mrf.mxu3  ;;  %v2851_v28 = vadd.f32 %v2850_v24, %v6230_v25  ;;  %v2869_v5 = vpop.f32.mrf.mxu1  ;;  %v5309_v41 = vld [vmem:[%s6776_s1 + $0x7a8] sm:$0xff]  ;;  %v5291_v19 = vld [vmem:[%s6776_s1 + $0x718] sm:$0xff] }
  0xd0   :  { %3257 = vmatpush.bf16.msra.mxu2 %v5276_v53 }
  0xd1   :  { %3276 = vmatpush.bf16.msra.mxu3 %v5284_v56  ;;  %v6353_v31 = vadd.f32 %v2904_v23, %v2886_v22  ;;  %v2870_v25 = vadd.f32 %v2869_v5, %v2851_v28  ;;  %3153 = vmatmul.bf16.gmra.mxu0 %v3779_v20  ;;  %v5004_v56 = vld [vmem:[%s6777_s0 + $0x64] sm:$0xf]  ;;  %v5299_v20 = vld [vmem:[%s6776_s1 + $0x758] sm:$0xff]  ;;  %v5306_v5 = vld [vmem:[%s6776_s1 + $0x790] sm:$0xff] }
  0xd2   :  { %3220 = vmatpush.bf16.msra.mxu0 %v5259_v1  ;;  %3172 = vmatmul.bf16.gmra.mxu1 %v3783_v26  ;;  %v3651_v1 = vor.u32 %v5022_v55, %v3650_v54  ;;  %v3655_v8 = vor.u32 %v5004_v56, %v3652_v58  ;;  %v5315_v22 = vld [vmem:[%s6776_s1 + $0x7d8] sm:$0xff]  ;;  %v5304_v56 = vld [vmem:[%s6776_s1 + $0x780] sm:$0xff] }
  0xd3   :  { %3239 = vmatpush.bf16.msra.mxu1 %v5267_v59  ;;  %3191 = vmatmul.bf16.gmra.mxu2 %v3787_v27  ;;  %v3658_v59 = vld [vmem:[%s6777_s0 + $0x68] sm:$0xf]  ;;  %v5288_v58 = vld [vmem:[%s6776_s1 + $0x700] sm:$0xff] }
  0xd4   :  { %3258 = vmatpush.bf16.msra.mxu2 %v5275_v57  ;;  %3210 = vmatmul.bf16.gmra.mxu3 %v3791_v29  ;;  %v5301_v57 = vld [vmem:[%s6776_s1 + $0x768] sm:$0xff] }
  0xd5   :  { %3277 = vmatpush.bf16.msra.mxu3 %v5283_v3  ;;  %v5317_v3 = vld [vmem:[%s6776_s1 + $0x7e8] sm:$0xff] }
  0xd6   :  { %3221 = vmatpush.bf16.msra.mxu0 %v5258_v15  ;;  %v2888_v40 = vpop.f32.mrf.mxu2  ;;  %v2852_v46 = vpop.f32.mrf.mxu0  ;;  %v5292_v15 = vld [vmem:[%s6776_s1 + $0x720] sm:$0xff] }
  0xd7   :  { %3240 = vmatpush.bf16.msra.mxu1 %v5266_v9  ;;  %v2889_v44 = vadd.f32 %v2888_v40, %v2870_v25  ;;  %v2907_v45 = vpop.f32.mrf.mxu3  ;;  %v2853_v48 = vadd.f32 %v2852_v46, %v6275_v51  ;;  %v2871_v49 = vpop.f32.mrf.mxu1  ;;  %v5318_v51 = vld [vmem:[%s6776_s1 + $0x7f0] sm:$0xff]  ;;  %v3659_v9 = vor.u32 %v5023_v60, %v3658_v59  ;;  %v5305_v40 = vld [vmem:[%s6776_s1 + $0x788] sm:$0xff]  ;;  %v5296_v59 = vld [vmem:[%s6776_s1 + $0x740] sm:$0xff] }
  0xd8   :  { %3259 = vmatpush.bf16.msra.mxu2 %v5274_v4  ;;  %v5058_v25 = vld [vmem:[%s6777_s0 + $0x20c] sm:$0xf0]  ;;  %v5312_v60 = vld [vmem:[%s6776_s1 + $0x7c0] sm:$0xff] }
  0xd9   :  { %3278 = vmatpush.bf16.msra.mxu3 %v5282_v17  ;;  %v6389_v50 = vadd.f32 %v2907_v45, %v2889_v44  ;;  %v2872_v53 = vadd.f32 %v2871_v49, %v2853_v48  ;;  %v5297_v44 = vld [vmem:[%s6776_s1 + $0x748] sm:$0xff] }
  0xda   :  { %3222 = vmatpush.bf16.msra.mxu0 %v5257_v30  ;;  %v5290_v30 = vld [vmem:[%s6776_s1 + $0x710] sm:$0xff] }
  0xdb   :  { %3241 = vmatpush.bf16.msra.mxu1 %v5265_v21 }
  0xdc   :  { %3260 = vmatpush.bf16.msra.mxu2 %v5273_v18  ;;  %v5307_v18 = vld [vmem:[%s6776_s1 + $0x798] sm:$0xff] }
  0xdd   :  { %3279 = vmatpush.bf16.msra.mxu3 %v5281_v32  ;;  %v5298_v32 = vld [vmem:[%s6776_s1 + $0x750] sm:$0xff] }
  0xde   :  { %3223 = vmatpush.bf16.msra.mxu0 %v5256_v37  ;;  %v2890_v0 = vpop.f32.mrf.mxu2  ;;  %v2921_v6 = vpop.f32.mrf.mxu0  ;;  %v3802_v37 = vld [vmem:[%s6777_s0 + $0x188] sm:$0xf] }
  0xdf   :  { %3242 = vmatpush.bf16.msra.mxu1 %v5264_v34  ;;  %v2891_v4 = vadd.f32 %v2890_v0, %v2872_v53  ;;  %v2909_v7 = vpop.f32.mrf.mxu3  ;;  %v2922_v10 = vadd.f32 %v2921_v6, %v6302_v2  ;;  %v2940_v11 = vpop.f32.mrf.mxu1  ;;  %v5316_v2 = vld [vmem:[%s6776_s1 + $0x7e0] sm:$0xff]  ;;  %v5314_v34 = vld [vmem:[%s6776_s1 + $0x7d0] sm:$0xff]  ;;  %v5351_v0 = vld [vmem:[%s6776_s1 + $0x8f8] sm:$0xff] }
  0xe0   :  { %3261 = vmatpush.bf16.msra.mxu2 %v5272_v33 }
  0xe1   :  { %3280 = vmatpush.bf16.msra.mxu3 %v5280_v38  ;;  %v6437_v14 = vadd.f32 %v2909_v7, %v2891_v4  ;;  %v2941_v17 = vadd.f32 %v2940_v11, %v2922_v10  ;;  %3224 = vmatmul.bf16.vlgmr.msra.gmra.mxu0 %v3651_v1  ;;  %v5059_v38 = vld [vmem:[%s6777_s0 + $0x214] sm:$0xf0] }
  0xe2   :  { %3292 = vmatpush.bf16.msrb.mxu0 %v5295_v39  ;;  %3243 = vmatmul.bf16.vlgmr.msra.gmra.mxu1 %v3655_v8  ;;  %v5041_v39 = vld [vmem:[%s6777_s0 + $0x18c] sm:$0xf]  ;;  %v3803_v54 = vor.u32 %v5059_v38, %v3802_v37  ;;  %v5326_v8 = vld [vmem:[%s6776_s1 + $0x830] sm:$0xff]  ;;  %v5324_v37 = vld [vmem:[%s6776_s1 + $0x820] sm:$0xff] }
  0xe3   :  { %3311 = vmatpush.bf16.msrb.mxu1 %v5303_v36  ;;  %3262 = vmatmul.bf16.vlgmr.msra.gmra.mxu2 %v3659_v9  ;;  %v3796_v36 = vld [vmem:[%s6777_s0 + $0x210] sm:$0xf0] }
  0xe4   :  { %3330 = vmatpush.bf16.msrb.mxu2 %v5311_v35  ;;  %3281 = vmatmul.bf16.vlgmr.msra.gmra.mxu3 %v3663_v12  ;;  %v5040_v35 = vld [vmem:[%s6777_s0 + $0x184] sm:$0xf]  ;;  %v5334_v9 = vld [vmem:[%s6776_s1 + $0x870] sm:$0xff] }
  0xe5   :  { %3349 = vmatpush.bf16.msrb.mxu3 %v5319_v42  ;;  %v3804_v42 = vld [vmem:[%s6777_s0 + $0x218] sm:$0xf0]  ;;  %v3799_v53 = vor.u32 %v5040_v35, %v3796_v36  ;;  %v5350_v12 = vld [vmem:[%s6776_s1 + $0x8f0] sm:$0xff] }
  0xe6   :  { %3293 = vmatpush.bf16.msrb.mxu0 %v5294_v52  ;;  %v2959_v21 = vpop.f32.mrf.mxu2  ;;  %v2923_v26 = vpop.f32.mrf.mxu0  ;;  %v3807_v55 = vor.u32 %v5041_v39, %v3804_v42  ;;  %v5332_v39 = vld [vmem:[%s6776_s1 + $0x860] sm:$0xff] }
  0xe7   :  { %3312 = vmatpush.bf16.msrb.mxu1 %v5302_v47  ;;  %v2960_v23 = vadd.f32 %v2959_v21, %v2941_v17  ;;  %v2978_v24 = vpop.f32.mrf.mxu3  ;;  %v2924_v27 = vadd.f32 %v2923_v26, %v6353_v31  ;;  %v2942_v28 = vpop.f32.mrf.mxu1  ;;  %v3794_v31 = vld [vmem:[%s6777_s0 + $0x180] sm:$0xf]  ;;  %v5313_v47 = vld [vmem:[%s6776_s1 + $0x7c8] sm:$0xff]  ;;  %v3674_v21 = vld [vmem:[%s6777_s0 + $0x78] sm:$0xf] }
  0xe8   :  { %3331 = vmatpush.bf16.msrb.mxu2 %v5310_v43  ;;  %v5289_v43 = vld [vmem:[%s6776_s1 + $0x708] sm:$0xff]  ;;  %v3795_v46 = vor.u32 %v5058_v25, %v3794_v31  ;;  %v5024_v17 = vld [vmem:[%s6777_s0 + $0xfc] sm:$0xf0] }
  0xe9   :  { %3350 = vmatpush.bf16.msrb.mxu3 %v5318_v51  ;;  %v6464_v29 = vadd.f32 %v2978_v24, %v2960_v23  ;;  %v2943_v33 = vadd.f32 %v2942_v28, %v2924_v27  ;;  %v5349_v23 = vld [vmem:[%s6776_s1 + $0x8e8] sm:$0xff]  ;;  %v5007_v24 = vld [vmem:[%s6777_s0 + $0x7c] sm:$0xf] }
  0xea   :  { %3294 = vmatpush.bf16.msrb.mxu0 %v5293_v63  ;;  %v5335_v63 = vld [vmem:[%s6776_s1 + $0x878] sm:$0xff]  ;;  %v3676_v26 = vld [vmem:[%s6777_s0 + $0x108] sm:$0xf0] }
  0xeb   :  { %3313 = vmatpush.bf16.msrb.mxu1 %v5301_v57  ;;  %v3679_v36 = vor.u32 %v5007_v24, %v3676_v26 }
  0xec   :  { %3332 = vmatpush.bf16.msrb.mxu2 %v5309_v41 }
  0xed   :  { %3351 = vmatpush.bf16.msrb.mxu3 %v5317_v3  ;;  %v5342_v3 = vld [vmem:[%s6776_s1 + $0x8b0] sm:$0xff] }
  0xee   :  { %3295 = vmatpush.bf16.msrb.mxu0 %v5292_v15  ;;  %v2961_v45 = vpop.f32.mrf.mxu2  ;;  %v2926_v52 = vpop.f32.mrf.mxu0  ;;  %v3666_v15 = vld [vmem:[%s6777_s0 + $0x70] sm:$0xf] }
  0xef   :  { %3314 = vmatpush.bf16.msrb.mxu1 %v5300_v16  ;;  %v2962_v48 = vadd.f32 %v2961_v45, %v2943_v33  ;;  %v2980_v49 = vpop.f32.mrf.mxu3  ;;  %v2927_v51 = vadd.f32 %v2926_v52, %v6389_v50  ;;  %v2945_v41 = vpop.f32.mrf.mxu1  ;;  %v3667_v28 = vor.u32 %v5024_v17, %v3666_v15  ;;  %v5347_v45 = vld [vmem:[%s6776_s1 + $0x8d8] sm:$0xff] }
  0xf0   :  { %3333 = vmatpush.bf16.msrb.mxu2 %v5308_v13 }
  0xf1   :  { %3352 = vmatpush.bf16.msrb.mxu3 %v5316_v2  ;;  %v6515_v57 = vadd.f32 %v2980_v49, %v2962_v48  ;;  %v2946_v50 = vadd.f32 %v2945_v41, %v2927_v51  ;;  %3229 = vmatmul.bf16.gmra.mxu0 %v3795_v46  ;;  %v5341_v2 = vld [vmem:[%s6776_s1 + $0x8a8] sm:$0xff]  ;;  %v5322_v51 = vld [vmem:[%s6776_s1 + $0x810] sm:$0xff] }
  0xf2   :  { %3296 = vmatpush.bf16.msrb.mxu0 %v5291_v19  ;;  %3248 = vmatmul.bf16.gmra.mxu1 %v3799_v53  ;;  %v5325_v19 = vld [vmem:[%s6776_s1 + $0x828] sm:$0xff] }
  0xf3   :  { %3315 = vmatpush.bf16.msrb.mxu1 %v5299_v20  ;;  %3267 = vmatmul.bf16.gmra.mxu2 %v3803_v54  ;;  %v5333_v20 = vld [vmem:[%s6776_s1 + $0x868] sm:$0xff] }
  0xf4   :  { %3334 = vmatpush.bf16.msrb.mxu2 %v5307_v18  ;;  %3286 = vmatmul.bf16.gmra.mxu3 %v3807_v55  ;;  %v3668_v18 = vld [vmem:[%s6777_s0 + $0x100] sm:$0xf0]  ;;  %v5330_v55 = vld [vmem:[%s6776_s1 + $0x850] sm:$0xff] }
  0xf5   :  { %3353 = vmatpush.bf16.msrb.mxu3 %v5315_v22  ;;  %v5025_v22 = vld [vmem:[%s6777_s0 + $0x104] sm:$0xf0] }
  0xf6   :  { %3297 = vmatpush.bf16.msrb.mxu0 %v5290_v30  ;;  %v2964_v1 = vpop.f32.mrf.mxu2  ;;  %v2928_v6 = vpop.f32.mrf.mxu0  ;;  %v3675_v25 = vor.u32 %v5025_v22, %v3674_v21  ;;  %v5344_v21 = vld [vmem:[%s6776_s1 + $0x8c0] sm:$0xff] }
  0xf7   :  { %3316 = vmatpush.bf16.msrb.mxu1 %v5298_v32  ;;  %v2965_v4 = vadd.f32 %v2964_v1, %v2946_v50  ;;  %v2983_v7 = vpop.f32.mrf.mxu3  ;;  %v2929_v10 = vadd.f32 %v2928_v6, %v6437_v14  ;;  %v2947_v11 = vpop.f32.mrf.mxu1  ;;  %v5006_v14 = vld [vmem:[%s6777_s0 + $0x74] sm:$0xf]  ;;  %v5337_v50 = vld [vmem:[%s6776_s1 + $0x888] sm:$0xff] }
  0xf8   :  { %3335 = vmatpush.bf16.msrb.mxu2 %v5306_v5  ;;  %v5340_v5 = vld [vmem:[%s6776_s1 + $0x8a0] sm:$0xff]  ;;  %v3671_v31 = vor.u32 %v5006_v14, %v3668_v18  ;;  %v5321_v1 = vld [vmem:[%s6776_s1 + $0x808] sm:$0xff] }
  0xf9   :  { %3354 = vmatpush.bf16.msrb.mxu3 %v5314_v34  ;;  %v6551_v13 = vadd.f32 %v2983_v7, %v2965_v4  ;;  %v2948_v16 = vadd.f32 %v2947_v11, %v2929_v10  ;;  %v5329_v4 = vld [vmem:[%s6776_s1 + $0x848] sm:$0xff]  ;;  %v5320_v18 = vld [vmem:[%s6776_s1 + $0x800] sm:$0xff] }
  0xfa   :  { %3298 = vmatpush.bf16.msrb.mxu0 %v5289_v43  ;;  %v5323_v43 = vld [vmem:[%s6776_s1 + $0x818] sm:$0xff]  ;;  %v5345_v7 = vld [vmem:[%s6776_s1 + $0x8c8] sm:$0xff] }
  0xfb   :  { %3317 = vmatpush.bf16.msrb.mxu1 %v5297_v44  ;;  %v5331_v44 = vld [vmem:[%s6776_s1 + $0x858] sm:$0xff] }
  0xfc   :  { %3336 = vmatpush.bf16.msrb.mxu2 %v5305_v40  ;;  %v5348_v40 = vld [vmem:[%s6776_s1 + $0x8e0] sm:$0xff] }
  0xfd   :  { %3355 = vmatpush.bf16.msrb.mxu3 %v5313_v47  ;;  %v5338_v47 = vld [vmem:[%s6776_s1 + $0x890] sm:$0xff] }
  0xfe   :  { %3299 = vmatpush.bf16.msrb.mxu0 %v5288_v58  ;;  %v2966_v27 = vpop.f32.mrf.mxu2  ;;  %v2997_v33 = vpop.f32.mrf.mxu0 }
  0xff   :  { %3318 = vmatpush.bf16.msrb.mxu1 %v5296_v59  ;;  %v2967_v30 = vadd.f32 %v2966_v27, %v2948_v16  ;;  %v2985_v32 = vpop.f32.mrf.mxu3  ;;  %v2998_v34 = vadd.f32 %v2997_v33, %v6464_v29  ;;  %v3016_v35 = vpop.f32.mrf.mxu1  ;;  %v5339_v29 = vld [vmem:[%s6776_s1 + $0x898] sm:$0xff]  ;;  %v5060_v59 = vld [vmem:[%s6777_s0 + $0x21c] sm:$0xf0]  ;;  %v5026_v33 = vld [vmem:[%s6777_s0 + $0x10c] sm:$0xf0] }
 0x100   :  { %3337 = vmatpush.bf16.msrb.mxu2 %v5304_v56  ;;  %v5346_v56 = vld [vmem:[%s6776_s1 + $0x8d0] sm:$0xff] }
 0x101   :  { %3356 = vmatpush.bf16.msrb.mxu3 %v5312_v60  ;;  %v6596_v38 = vadd.f32 %v2985_v32, %v2967_v30  ;;  %v3017_v42 = vadd.f32 %v3016_v35, %v2998_v34  ;;  %3300 = vmatmul.bf16.vlgmr.msrb.gmra.mxu0 %v3667_v28  ;;  %v5042_v60 = vld [vmem:[%s6777_s0 + $0x194] sm:$0xf]  ;;  %v3682_v32 = vld [vmem:[%s6777_s0 + $0x80] sm:$0xf]  ;;  %v3690_v34 = vld [vmem:[%s6777_s0 + $0x88] sm:$0xf] }
 0x102   :  { %3368 = vmatpush.bf16.msra.mxu0 %v5327_v62  ;;  %3319 = vmatmul.bf16.vlgmr.msrb.gmra.mxu1 %v3671_v31  ;;  %v3818_v62 = vld [vmem:[%s6777_s0 + $0x198] sm:$0xf]  ;;  %v5008_v31 = vld [vmem:[%s6777_s0 + $0x84] sm:$0xf] }
 0x103   :  { %3387 = vmatpush.bf16.msra.mxu1 %v5335_v63  ;;  %3338 = vmatmul.bf16.vlgmr.msrb.gmra.mxu2 %v3675_v25  ;;  %v5061_v63 = vld [vmem:[%s6777_s0 + $0x224] sm:$0xf0]  ;;  %v3684_v25 = vld [vmem:[%s6777_s0 + $0x110] sm:$0xf0]  ;;  %v5027_v35 = vld [vmem:[%s6777_s0 + $0x114] sm:$0xf0] }
 0x104   :  { %3406 = vmatpush.bf16.msra.mxu2 %v5343_v61  ;;  %3357 = vmatmul.bf16.vlgmr.msrb.gmra.mxu3 %v3679_v36  ;;  %v3812_v61 = vld [vmem:[%s6777_s0 + $0x220] sm:$0xf0]  ;;  %v3819_v16 = vor.u32 %v5061_v63, %v3818_v62  ;;  %v5009_v36 = vld [vmem:[%s6777_s0 + $0x8c] sm:$0xf]  ;;  %v5063_v62 = vld [vmem:[%s6777_s0 + $0x234] sm:$0xf0] }
 0x105   :  { %3425 = vmatpush.bf16.msra.mxu3 %v5351_v0  ;;  %v5043_v0 = vld [vmem:[%s6777_s0 + $0x19c] sm:$0xf]  ;;  %v3815_v15 = vor.u32 %v5042_v60, %v3812_v61  ;;  %v3828_v60 = vld [vmem:[%s6777_s0 + $0x230] sm:$0xf0]  ;;  %v3834_v61 = vld [vmem:[%s6777_s0 + $0x1a8] sm:$0xf] }
 0x106   :  { %3369 = vmatpush.bf16.msra.mxu0 %v5326_v8  ;;  %v3035_v46 = vpop.f32.mrf.mxu2  ;;  %v2999_v52 = vpop.f32.mrf.mxu0  ;;  %v5045_v63 = vld [vmem:[%s6777_s0 + $0x1ac] sm:$0xf] }
 0x107   :  { %3388 = vmatpush.bf16.msra.mxu1 %v5334_v9  ;;  %v3036_v48 = vadd.f32 %v3035_v46, %v3017_v42  ;;  %v3054_v49 = vpop.f32.mrf.mxu3  ;;  %v3000_v53 = vadd.f32 %v2999_v52, %v6515_v57  ;;  %v3018_v54 = vpop.f32.mrf.mxu1  ;;  %v3810_v57 = vld [vmem:[%s6777_s0 + $0x190] sm:$0xf]  ;;  %v5336_v9 = vld [vmem:[%s6776_s1 + $0x880] sm:$0xff] }
 0x108   :  { %3407 = vmatpush.bf16.msra.mxu2 %v5342_v3  ;;  %v3820_v3 = vld [vmem:[%s6777_s0 + $0x228] sm:$0xf0]  ;;  %v3811_v8 = vor.u32 %v5060_v59, %v3810_v57  ;;  %v5062_v59 = vld [vmem:[%s6777_s0 + $0x22c] sm:$0xf0] }
 0x109   :  { %3426 = vmatpush.bf16.msra.mxu3 %v5350_v12  ;;  %v6623_v41 = vadd.f32 %v3054_v49, %v3036_v48  ;;  %v3019_v58 = vadd.f32 %v3018_v54, %v3000_v53 }
 0x10a   :  { %3370 = vmatpush.bf16.msra.mxu0 %v5325_v19 }
 0x10b   :  { %3389 = vmatpush.bf16.msra.mxu1 %v5333_v20  ;;  %v5328_v20 = vld [vmem:[%s6776_s1 + $0x840] sm:$0xff] }
 0x10c   :  { %3408 = vmatpush.bf16.msra.mxu2 %v5341_v2  ;;  %v3823_v2 = vor.u32 %v5043_v0, %v3820_v3  ;;  %v3836_v0 = vld [vmem:[%s6777_s0 + $0x238] sm:$0xf0] }
 0x10d   :  { %3427 = vmatpush.bf16.msra.mxu3 %v5349_v23 }
 0x10e   :  { %3371 = vmatpush.bf16.msra.mxu0 %v5324_v37  ;;  %v3037_v6 = vpop.f32.mrf.mxu2  ;;  %v3002_v12 = vpop.f32.mrf.mxu0  ;;  %v3692_v37 = vld [vmem:[%s6777_s0 + $0x118] sm:$0xf0] }
 0x10f   :  { %3390 = vmatpush.bf16.msra.mxu1 %v5332_v39  ;;  %v3038_v10 = vadd.f32 %v3037_v6, %v3019_v58  ;;  %v3056_v11 = vpop.f32.mrf.mxu3  ;;  %v3003_v17 = vadd.f32 %v3002_v12, %v6551_v13  ;;  %v3021_v14 = vpop.f32.mrf.mxu1  ;;  %v3683_v39 = vor.u32 %v5026_v33, %v3682_v32  ;;  %v3839_v12 = vor.u32 %v5045_v63, %v3836_v0 }
 0x110   :  { %3409 = vmatpush.bf16.msra.mxu2 %v5340_v5 }
 0x111   :  { %3428 = vmatpush.bf16.msra.mxu3 %v5348_v40  ;;  %v3057_v19 = vadd.f32 %v3056_v11, %v3038_v10  ;;  %v3022_v22 = vadd.f32 %v3021_v14, %v3003_v17  ;;  %3305 = vmatmul.bf16.gmra.mxu0 %v3811_v8 }
 0x112   :  { %3372 = vmatpush.bf16.msra.mxu0 %v5323_v43  ;;  %3324 = vmatmul.bf16.gmra.mxu1 %v3815_v15  ;;  %v3687_v43 = vor.u32 %v5008_v31, %v3684_v25 }
 0x113   :  { %3391 = vmatpush.bf16.msra.mxu1 %v5331_v44  ;;  %3343 = vmatmul.bf16.gmra.mxu2 %v3819_v16  ;;  %v3691_v44 = vor.u32 %v5027_v35, %v3690_v34 }
 0x114   :  { %3410 = vmatpush.bf16.msra.mxu2 %v5339_v29  ;;  %3362 = vmatmul.bf16.gmra.mxu3 %v3823_v2 }
 0x115   :  { %3429 = vmatpush.bf16.msra.mxu3 %v5347_v45 }
 0x116   :  { %3373 = vmatpush.bf16.msra.mxu0 %v5322_v51  ;;  %v3040_v13 = vpop.f32.mrf.mxu2  ;;  %v3004_v26 = vpop.f32.mrf.mxu0 }
 0x117   :  { %3392 = vmatpush.bf16.msra.mxu1 %v5330_v55  ;;  %v3041_v23 = vadd.f32 %v3040_v13, %v3022_v22  ;;  %v3059_v24 = vpop.f32.mrf.mxu3  ;;  %v3005_v27 = vadd.f32 %v3004_v26, %v6596_v38  ;;  %v3023_v28 = vpop.f32.mrf.mxu1 }
 0x118   :  { %3411 = vmatpush.bf16.msra.mxu2 %v5338_v47  ;;  %v3695_v47 = vor.u32 %v5009_v36, %v3692_v37 }
 0x119   :  { %3430 = vmatpush.bf16.msra.mxu3 %v5346_v56  ;;  %v3060_v5 = vadd.f32 %v3059_v24, %v3041_v23  ;;  %v3024_v30 = vadd.f32 %v3023_v28, %v3005_v27 }
 0x11a   :  { %3374 = vmatpush.bf16.msra.mxu0 %v5321_v1 }
 0x11b   :  { %3393 = vmatpush.bf16.msra.mxu1 %v5329_v4 }
 0x11c   :  { %3412 = vmatpush.bf16.msra.mxu2 %v5337_v50  ;;  %v5044_v50 = vld [vmem:[%s6777_s0 + $0x1a4] sm:$0xf] }
 0x11d   :  { %3431 = vmatpush.bf16.msra.mxu3 %v5345_v7  ;;  %v3831_v8 = vor.u32 %v5044_v50, %v3828_v60 }
 0x11e   :  { %3375 = vmatpush.bf16.msra.mxu0 %v5320_v18  ;;  %v3042_v38 = vpop.f32.mrf.mxu2  ;;  %v3073_v29 = vpop.f32.mrf.mxu0 }
 0x11f   :  { %3394 = vmatpush.bf16.msra.mxu1 %v5328_v20  ;;  %v3043_v40 = vadd.f32 %v3042_v38, %v3024_v30  ;;  %v3061_v42 = vpop.f32.mrf.mxu3  ;;  %v3074_v45 = vadd.f32 %v3073_v29, %v6623_v41  ;;  %v3092_v46 = vpop.f32.mrf.mxu1  ;;  %v3826_v41 = vld [vmem:[%s6777_s0 + $0x1a0] sm:$0xf] }
 0x120   :  { %3413 = vmatpush.bf16.msra.mxu2 %v5336_v9  ;;  %v3827_v3 = vor.u32 %v5062_v59, %v3826_v41  ;;  %v3835_v9 = vor.u32 %v5063_v62, %v3834_v61 }
 0x121   :  { %3432 = vmatpush.bf16.msra.mxu3 %v5344_v21  ;;  %v3062_v48 = vadd.f32 %v3061_v42, %v3043_v40  ;;  %v3093_v49 = vadd.f32 %v3092_v46, %v3074_v45  ;;  %3376 = vmatmul.bf16.vlgmr.msra.gmra.mxu0 %v3683_v39 }
 0x122   :  { %3395 = vmatmul.bf16.vlgmr.msra.gmra.mxu1 %v3687_v43 }
 0x123   :  { %3414 = vmatmul.bf16.vlgmr.msra.gmra.mxu2 %v3691_v44 }
 0x124   :  { %3433 = vmatmul.bf16.vlgmr.msra.gmra.mxu3 %v3695_v47 }
 0x126   :  { %v3111_v52 = vpop.f32.mrf.mxu2  ;;  %v3075_v51 = vpop.f32.mrf.mxu0 }
 0x127   :  { %v3112_v53 = vadd.f32 %v3111_v52, %v3093_v49  ;;  %v3130_v54 = vpop.f32.mrf.mxu3  ;;  %v3076_v55 = vadd.f32 %v3075_v51, %v3057_v19  ;;  %v3094_v56 = vpop.f32.mrf.mxu1 }
 0x129   :  { %v3131_v58 = vadd.f32 %v3130_v54, %v3112_v53  ;;  %v3095_v57 = vadd.f32 %v3094_v56, %v3076_v55 }
 0x12e   :  { %v3113_v1 = vpop.f32.mrf.mxu2  ;;  %v3078_v6 = vpop.f32.mrf.mxu0 }
 0x12f   :  { %v3114_v4 = vadd.f32 %v3113_v1, %v3095_v57  ;;  %v3132_v7 = vpop.f32.mrf.mxu3  ;;  %v3079_v10 = vadd.f32 %v3078_v6, %v3060_v5  ;;  %v3097_v11 = vpop.f32.mrf.mxu1 }
 0x131   :  { %v3133_v15 = vadd.f32 %v3132_v7, %v3114_v4  ;;  %v3098_v16 = vadd.f32 %v3097_v11, %v3079_v10  ;;  %3381 = vmatmul.bf16.gmra.mxu0 %v3827_v3 }
 0x132   :  { %3400 = vmatmul.bf16.gmra.mxu1 %v3831_v8 }
 0x133   :  { %3419 = vmatmul.bf16.gmra.mxu2 %v3835_v9 }
 0x134   :  { %3438 = vmatmul.bf16.gmra.mxu3 %v3839_v12 }
 0x136   :  { %v3116_v17 = vpop.f32.mrf.mxu2  ;;  %v3080_v18 = vpop.f32.mrf.mxu0 }
 0x137   :  { %v3117_v14 = vadd.f32 %v3116_v17, %v3098_v16  ;;  %v3135_v2 = vpop.f32.mrf.mxu3  ;;  %v3081_v19 = vadd.f32 %v3080_v18, %v3062_v48  ;;  %v3099_v20 = vpop.f32.mrf.mxu1 }
 0x139   :  { %v3136_v21 = vadd.f32 %v3135_v2, %v3117_v14  ;;  %v3100_v22 = vadd.f32 %v3099_v20, %v3081_v19 }
 0x13e   :  { %v3118_v13 = vpop.f32.mrf.mxu2  ;;  %v3149_v26 = vpop.f32.mrf.mxu0 }
 0x13f   :  { %v3119_v23 = vadd.f32 %v3118_v13, %v3100_v22  ;;  %v3137_v24 = vpop.f32.mrf.mxu3  ;;  %v3150_v27 = vadd.f32 %v3149_v26, %v3131_v58  ;;  %v3168_v28 = vpop.f32.mrf.mxu1 }
 0x141   :  { %v3138_v5 = vadd.f32 %v3137_v24, %v3119_v23  ;;  %v3169_v30 = vadd.f32 %v3168_v28, %v3150_v27 }
 0x146   :  { %v3187_v32 = vpop.f32.mrf.mxu2  ;;  %v3151_v25 = vpop.f32.mrf.mxu0 }
 0x147   :  { %v3188_v33 = vadd.f32 %v3187_v32, %v3169_v30  ;;  %v3206_v31 = vpop.f32.mrf.mxu3  ;;  %v3152_v34 = vadd.f32 %v3151_v25, %v3133_v15  ;;  %v3170_v35 = vpop.f32.mrf.mxu1 }
 0x149   :  { %v3207_v36 = vadd.f32 %v3206_v31, %v3188_v33  ;;  %v3171_v37 = vadd.f32 %v3170_v35, %v3152_v34 }
 0x14e   :  { %v3189_v38 = vpop.f32.mrf.mxu2  ;;  %v3154_v42 = vpop.f32.mrf.mxu0 }
 0x14f   :  { %v3190_v39 = vadd.f32 %v3189_v38, %v3171_v37  ;;  %v3208_v40 = vpop.f32.mrf.mxu3  ;;  %v3155_v29 = vadd.f32 %v3154_v42, %v3136_v21  ;;  %v3173_v43 = vpop.f32.mrf.mxu1 }
 0x151   :  { %v3209_v44 = vadd.f32 %v3208_v40, %v3190_v39  ;;  %v3174_v45 = vadd.f32 %v3173_v43, %v3155_v29 }
 0x156   :  { %v3192_v46 = vpop.f32.mrf.mxu2  ;;  %v3156_v49 = vpop.f32.mrf.mxu0 }
 0x157   :  { %v3193_v47 = vadd.f32 %v3192_v46, %v3174_v45  ;;  %v3211_v48 = vpop.f32.mrf.mxu3  ;;  %v3157_v52 = vadd.f32 %v3156_v49, %v3138_v5  ;;  %v3175_v53 = vpop.f32.mrf.mxu1 }
 0x159   :  { %v3212_v54 = vadd.f32 %v3211_v48, %v3193_v47  ;;  %v3176_v51 = vadd.f32 %v3175_v53, %v3157_v52  ;;  %v5365_v47 = vmov 0.0  }
 0x15a   :  { %19 = vst.msk [vmem:[#allocation2] sm:$0x3] %vm18_vm0, %v5365_v47 }
 0x15e   :  { %v3194_v55 = vpop.f32.mrf.mxu2  ;;  %v3225_v57 = vpop.f32.mrf.mxu0 }
 0x15f   :  { %v3195_v56 = vadd.f32 %v3194_v55, %v3176_v51  ;;  %v3213_v58 = vpop.f32.mrf.mxu3  ;;  %v3244_v41 = vpop.f32.mrf.mxu1  ;;  %v3226_v2 = vadd.f32 %v3225_v57, %v3207_v36 }
 0x161   :  { %v3214_v59 = vadd.f32 %v3213_v58, %v3195_v56  ;;  %v3245_v18 = vadd.f32 %v3244_v41, %v3226_v2 }
 0x166   :  { %v3263_v50 = vpop.f32.mrf.mxu2  ;;  %v3227_v61 = vpop.f32.mrf.mxu0 }
 0x167   :  { %v3282_v60 = vpop.f32.mrf.mxu3  ;;  %v3246_v62 = vpop.f32.mrf.mxu1  ;;  %v3264_v20 = vadd.f32 %v3263_v50, %v3245_v18  ;;  %v3228_v23 = vadd.f32 %v3227_v61, %v3209_v44 }
 0x169   :  { %v3283_v24 = vadd.f32 %v3282_v60, %v3264_v20  ;;  %v3247_v26 = vadd.f32 %v3246_v62, %v3228_v23 }
 0x16e   :  { %v3265_v63 = vpop.f32.mrf.mxu2  ;;  %v3230_v1 = vpop.f32.mrf.mxu0 }
 0x16f   :  { %v3284_v0 = vpop.f32.mrf.mxu3  ;;  %v3249_v3 = vpop.f32.mrf.mxu1  ;;  %v3266_v5 = vadd.f32 %v3265_v63, %v3247_v26  ;;  %v3231_v31 = vadd.f32 %v3230_v1, %v3212_v54 }
 0x171   :  { %v3285_v34 = vadd.f32 %v3284_v0, %v3266_v5  ;;  %v3250_v36 = vadd.f32 %v3249_v3, %v3231_v31 }
 0x176   :  { %v3268_v4 = vpop.f32.mrf.mxu2  ;;  %v3232_v6 = vpop.f32.mrf.mxu0 }
 0x177   :  { %v3287_v7 = vpop.f32.mrf.mxu3  ;;  %v3251_v8 = vpop.f32.mrf.mxu1  ;;  %v3269_v39 = vadd.f32 %v3268_v4, %v3250_v36  ;;  %v3233_v44 = vadd.f32 %v3232_v6, %v3214_v59 }
 0x179   :  { %v3288_v48 = vadd.f32 %v3287_v7, %v3269_v39  ;;  %v3252_v52 = vadd.f32 %v3251_v8, %v3233_v44 }
 0x17e   :  { %v3270_v9 = vpop.f32.mrf.mxu2  ;;  %v3301_v11 = vpop.f32.mrf.mxu0 }
 0x17f   :  { %v3289_v10 = vpop.f32.mrf.mxu3  ;;  %v3320_v12 = vpop.f32.mrf.mxu1  ;;  %v3302_v27 = vadd.f32 %v3301_v11, %v3283_v24  ;;  %v3271_v55 = vadd.f32 %v3270_v9, %v3252_v52 }
 0x181   :  { %v3321_v25 = vadd.f32 %v3320_v12, %v3302_v27  ;;  %v3290_v59 = vadd.f32 %v3289_v10, %v3271_v55 }
 0x186   :  { %v3339_v15 = vpop.f32.mrf.mxu2  ;;  %v3303_v17 = vpop.f32.mrf.mxu0 }
 0x187   :  { %v3358_v16 = vpop.f32.mrf.mxu3  ;;  %v3322_v14 = vpop.f32.mrf.mxu1  ;;  %v3340_v35 = vadd.f32 %v3339_v15, %v3321_v25  ;;  %v3304_v37 = vadd.f32 %v3303_v17, %v3285_v34 }
 0x189   :  { %v3359_v40 = vadd.f32 %v3358_v16, %v3340_v35  ;;  %v3323_v45 = vadd.f32 %v3322_v14, %v3304_v37 }
 0x18e   :  { %v3341_v19 = vpop.f32.mrf.mxu2  ;;  %v3306_v22 = vpop.f32.mrf.mxu0 }
 0x18f   :  { %v3360_v21 = vpop.f32.mrf.mxu3  ;;  %v3325_v13 = vpop.f32.mrf.mxu1  ;;  %v3342_v49 = vadd.f32 %v3341_v19, %v3323_v45  ;;  %v3307_v53 = vadd.f32 %v3306_v22, %v3288_v48 }
 0x191   :  { %v3361_v56 = vadd.f32 %v3360_v21, %v3342_v49  ;;  %v3326_v60 = vadd.f32 %v3325_v13, %v3307_v53 }
 0x196   :  { %v3344_v28 = vpop.f32.mrf.mxu2  ;;  %v3308_v32 = vpop.f32.mrf.mxu0 }
 0x197   :  { %v3363_v30 = vpop.f32.mrf.mxu3  ;;  %v3327_v33 = vpop.f32.mrf.mxu1  ;;  %v3345_v63 = vadd.f32 %v3344_v28, %v3326_v60  ;;  %v3309_v1 = vadd.f32 %v3308_v32, %v3290_v59 }
 0x199   :  { %v3364_v6 = vadd.f32 %v3363_v30, %v3345_v63  ;;  %v3328_v12 = vadd.f32 %v3327_v33, %v3309_v1 }
 0x19e   :  { %v3346_v38 = vpop.f32.mrf.mxu2  ;;  %v3377_v29 = vpop.f32.mrf.mxu0 }
 0x19f   :  { %v3365_v42 = vpop.f32.mrf.mxu3  ;;  %v3396_v43 = vpop.f32.mrf.mxu1  ;;  %v3378_v46 = vadd.f32 %v3377_v29, %v3359_v40  ;;  %v3347_v17 = vadd.f32 %v3346_v38, %v3328_v12 }
 0x1a1   :  { %v3397_v54 = vadd.f32 %v3396_v43, %v3378_v46  ;;  %v3366_v24 = vadd.f32 %v3365_v42, %v3347_v17 }
 0x1a6   :  { %v3415_v51 = vpop.f32.mrf.mxu2  ;;  %v3379_v41 = vpop.f32.mrf.mxu0 }
 0x1a7   :  { %v3416_v58 = vadd.f32 %v3415_v51, %v3397_v54  ;;  %v3434_v57 = vpop.f32.mrf.mxu3  ;;  %v3398_v50 = vpop.f32.mrf.mxu1  ;;  %v3380_v62 = vadd.f32 %v3379_v41, %v3361_v56 }
 0x1a9   :  { %v3435_v61 = vadd.f32 %v3434_v57, %v3416_v58  ;;  %v3399_v4 = vadd.f32 %v3398_v50, %v3380_v62  ;;  %v3449_v62 = vld [vmem:[#allocation2] sm:$0x1] }
 0x1ab   :  { %v3444_v0 = vmax.f32 %v3435_v61, 0.0 }
 0x1ad   :  { %v3487_v3 = vpack.c.bf16 %v3444_v0, %v3444_v0  ;;  %v3468_v14 = vmul.f32 %v3444_v0, %v3444_v0  ;;  %v3451_v18 = vsel %vm3450_vm2, %v3444_v0, 0.0  ;;  %v3467_v0 = vld [vmem:[#allocation2 + $0x1] sm:$0x1] }
 0x1ae   :  { %v3417_v7 = vpop.f32.mrf.mxu2  ;;  %v3382_v11 = vpop.f32.mrf.mxu0 }
 0x1af   :  { %3496 = vst.msk [vmem:[%s6779_s3] sm:$0xf] %vm3495_vm1, %v3487_v3  ;;  %v3418_v8 = vadd.f32 %v3417_v7, %v3399_v4  ;;  %v3436_v9 = vpop.f32.mrf.mxu3  ;;  %v3383_v10 = vadd.f32 %v3382_v11, %v3364_v6  ;;  %v3401_v16 = vpop.f32.mrf.mxu1  ;;  %v3472_v26 = vsel %vm3450_vm2, %v3468_v14, 0.0 }
 0x1b1   :  { %v3437_v15 = vadd.f32 %v3436_v9, %v3418_v8  ;;  %v3402_v22 = vadd.f32 %v3401_v16, %v3383_v10 }
 0x1b3   :  { %v3445_v2 = vmax.f32 %v3437_v15, 0.0 }
 0x1b5   :  { %v3452_v19 = vsel %vm3450_vm2, %v3445_v2, 0.0  ;;  %v3469_v20 = vmul.f32 %v3445_v2, %v3445_v2  ;;  %v3488_v21 = vpack.c.bf16 %v3445_v2, %v3445_v2 }
 0x1b6   :  { %v3453_v13 = vadd.f32 %v3452_v19, %v3451_v18  ;;  %v3420_v23 = vpop.f32.mrf.mxu2  ;;  %v3384_v30 = vpop.f32.mrf.mxu0 }
 0x1b7   :  { %v3473_v27 = vsel %vm3450_vm2, %v3469_v20, 0.0  ;;  %3497 = vst.msk [vmem:[%s6779_s3 + $0x4] sm:$0xf] %vm3495_vm1, %v3488_v21  ;;  %v3421_v28 = vadd.f32 %v3420_v23, %v3402_v22  ;;  %v3439_v5 = vpop.f32.mrf.mxu3  ;;  %v3385_v31 = vadd.f32 %v3384_v30, %v3366_v24  ;;  %v3403_v34 = vpop.f32.mrf.mxu1 }
 0x1b8   :  { %v3474_v32 = vadd.f32 %v3473_v27, %v3472_v26 }
 0x1b9   :  { %v3440_v33 = vadd.f32 %v3439_v5, %v3421_v28  ;;  %v3404_v38 = vadd.f32 %v3403_v34, %v3385_v31 }
 0x1bb   :  { %v3446_v25 = vmax.f32 %v3440_v33, 0.0 }
 0x1bd   :  { %v3454_v35 = vsel %vm3450_vm2, %v3446_v25, 0.0  ;;  %v3470_v36 = vmul.f32 %v3446_v25, %v3446_v25  ;;  %v3489_v37 = vpack.c.bf16 %v3446_v25, %v3446_v25 }
 0x1be   :  { %v3455_v39 = vadd.f32 %v3454_v35, %v3453_v13  ;;  %v3422_v40 = vpop.f32.mrf.mxu2  ;;  %v5353_v2 = vld [vmem:[%s6779_s3] sm:$0xff]  }
 0x1bf   :  { %v3475_v42 = vsel %vm3450_vm2, %v3470_v36, 0.0  ;;  %3498 = vst.msk [vmem:[%s6779_s3 + $0x8] sm:$0xf] %vm3495_vm1, %v3489_v37  ;;  %v3423_v29 = vadd.f32 %v3422_v40, %v3404_v38  ;;  %v3441_v44 = vpop.f32.mrf.mxu3  ;;  %v5354_v21 = vunpack.c.l.bf16 %v5353_v2  ;;  %v5355_v13 = vunpack.c.h.bf16 %v5353_v2 }
 0x1c0   :  { %v3476_v43 = vadd.f32 %v3475_v42, %v3474_v32 }
 0x1c1   :  { %v3442_v45 = vadd.f32 %v3441_v44, %v3423_v29 }
 0x1c3   :  { %v3447_v46 = vmax.f32 %v3442_v45, 0.0 }
 0x1c5   :  { %v3456_v47 = vsel %vm3450_vm2, %v3447_v46, 0.0  ;;  %v3471_v48 = vmul.f32 %v3447_v46, %v3447_v46  ;;  %v3490_v49 = vpack.c.bf16 %v3447_v46, %v3447_v46 }
 0x1c6   :  { %v3457_v52 = vadd.f32 %v3456_v47, %v3455_v39 }
 0x1c7   :  { %v3477_v53 = vsel %vm3450_vm2, %v3471_v48, 0.0  ;;  %3499 = vst.msk [vmem:[%s6779_s3 + $0xc] sm:$0xf] %vm3495_vm1, %v3490_v49 }
 0x1c8   :  { %v3458_v54 = vrot.slane %v3457_v52, 4  ;;  %v3478_v51 = vadd.f32 %v3477_v53, %v3476_v43 }
 0x1ca   :  { %v3459_v55 = vadd.f32 %v3458_v54, %v3457_v52  ;;  %v3479_v56 = vrot.slane %v3478_v51, 4 }
 0x1cc   :  { %v3460_v58 = vrot.slane %v3459_v55, 2  ;;  %v3480_v57 = vadd.f32 %v3479_v56, %v3478_v51 }
 0x1ce   :  { %v3461_v41 = vadd.f32 %v3460_v58, %v3459_v55  ;;  %v3481_v50 = vrot.slane %v3480_v57, 2  ;;  %v5360_v19 = vld [vmem:[%s6779_s3 + $0x8] sm:$0xff]  }
 0x1cf   :  { %v5358_v23 = vunpack.c.l.bf16 %v5360_v19  ;;  %v5359_v24 = vunpack.c.h.bf16 %v5360_v19 }
 0x1d0   :  { %v3462_v60 = vrot.slane %v3461_v41, 1  ;;  %v3482_v61 = vadd.f32 %v3481_v50, %v3480_v57 }
 0x1d2   :  { %v3463_v59 = vadd.f32 %v3462_v60, %v3461_v41  ;;  %v3483_v63 = vrot.slane %v3482_v61, 1 }
 0x1d4   :  { %v3464_v1 = vadd.f32 %v3463_v59, %v3449_v62  ;;  %v3484_v3 = vadd.f32 %v3483_v63, %v3482_v61 }
 0x1d6   :  { %3466 = vst.msk [vmem:[#allocation2] sm:$0x1] %vm3465_vm3, %v3464_v1  ;;  %v3485_v4 = vadd.f32 %v3484_v3, %v3467_v0 }
 0x1d8   :  { %3486 = vst.msk [vmem:[#allocation2 + $0x1] sm:$0x1] %vm3465_vm3, %v3485_v4 }
 0x1dd   :  { %v3503_v7 = vld [vmem:[#allocation2] sm:$0x1] }
 0x1de   :  { %v3504_v6 = vmul.f32 0.03125, %v3503_v7 }
 0x1df   :  { %v3505_v8 = vld [vmem:[#allocation2 + $0x1] sm:$0x1] }
 0x1e0   :  { %v3506_v9 = vmul.f32 0.03125, %v3505_v8  ;;  %v3507_v11 = vmul.f32 %v3504_v6, %v3504_v6  ;;  %v3528_v20 = vperm.slane %v3504_v6, 0 }
 0x1e2   :  { %v3508_v12 = vsub.f32 %v3506_v9, %v3507_v11  ;;  %v3529_v27 = vsub.f32 %v5354_v21, %v3528_v20  ;;  %v3530_v28 = vsub.f32 %v5355_v13, %v3528_v20  ;;  %v3531_v5 = vsub.f32 %v5358_v23, %v3528_v20 }
 0x1e3   :  { %v3532_v30 = vsub.f32 %v5359_v24, %v3528_v20 }
 0x1e4   :  { %v3509_v15 = vadd.f32 1e-05, %v3508_v12 }
 0x1e6   :  { %5363 = vrsqrt.f32 %v3509_v15  ;;  %vm3516_vm5 = vweird.f32 %v3509_v15 }
 0x1ec   :  { %v5364_v10 = vpop.eup %5363 }
 0x1ed   :  { %v3511_v16 = vmul.f32 %v5364_v10, %v3509_v15  ;;  %vm3517_vm4 = vweird.f32 %v5364_v10 }
 0x1ee   :  { %vm3518_vm6 = vmor %vm3516_vm5, %vm3517_vm4 }
 0x1ef   :  { %v3512_v17 = vmul.f32 %v5364_v10, %v3511_v16 }
 0x1f1   :  { %v3513_v14 = vmul.f32 0.5, %v3512_v17 }
 0x1f3   :  { %v3514_v18 = vsub.f32 1.5, %v3513_v14 }
 0x1f5   :  { %v3515_v22 = vmul.f32 %v5364_v10, %v3514_v18 }
 0x1f7   :  { %v3519_v26 = vsel %vm3518_vm6, %v5364_v10, %v3515_v22 }
 0x1f8   :  { %v3533_v32 = vperm.slane %v3519_v26, 0 }
 0x1fa   :  { %v3534_v33 = vmul.f32 %v3533_v32, %v3529_v27  ;;  %v3535_v31 = vmul.f32 %v3533_v32, %v3530_v28  ;;  %v3536_v25 = vmul.f32 %v3533_v32, %v3531_v5  ;;  %v3537_v34 = vmul.f32 %v3533_v32, %v3532_v30 }
 0x1fc   :  { %v3538_v35 = vpack.c.bf16 %v3534_v33, %v3534_v33  ;;  %v3539_v36 = vpack.c.bf16 %v3535_v31, %v3535_v31  ;;  %v3540_v37 = vpack.c.bf16 %v3536_v25, %v3536_v25  ;;  %v3541_v38 = vpack.c.bf16 %v3537_v34, %v3537_v34 }
 0x1fe   :  { %3542 = vst.msk [vmem:[%s6779_s3] sm:$0xf] %vm3495_vm1, %v3538_v35 }
 0x1ff   :  { %3543 = vst.msk [vmem:[%s6779_s3 + $0x4] sm:$0xf] %vm3495_vm1, %v3539_v36 }
 0x200   :  { %3544 = vst.msk [vmem:[%s6779_s3 + $0x8] sm:$0xf] %vm3495_vm1, %v3540_v37 }
 0x201   :  { %3545 = vst.msk [vmem:[%s6779_s3 + $0xc] sm:$0xf] %vm3495_vm1, %v3541_v38 }

// kernel: rainbow_forward.5
= control target key start
LH: loop header
LB: loop body
LE: loop exit
PB: predicated region body
PF: predicated region fallthrough
CT: control target
= control target key end

     0   :  { %vm922_vm0 = vcmask 523264   ;;  %s7044_s1 = inlined_call_operand.vmem [shape: bf16[1024,64], index: 1, kind: input, shape index: {}]   ;;  %s7045_s2 = inlined_call_operand.vmem [shape: f32[1,64], index: 2, kind: input, shape index: {}]   ;;  %s7046_s0 = inlined_call_operand.vmem [shape: bf16[16,1024], index: 0, kind: input, shape index: {}]   ;;  %s7047_s3 = inlined_call_operand.vmem [shape: bf16[64,1024], index: 3, kind: input, shape index: {}]   ;;  %s7048_s5 = inlined_call_operand.vmem [shape: bf16[512,768], index: 5, kind: input, shape index: {}]   ;;  %s7049_s4 = inlined_call_operand.vmem [shape: f32[1,1024], index: 4, kind: input, shape index: {}]   ;;  %s7050_s7 = inlined_call_operand.vmem [shape: bf16[512,128], index: 7, kind: input, shape index: {}]   ;;  %s7051_s6 = inlined_call_operand.vmem [shape: f32[1,768], index: 6, kind: input, shape index: {}]   ;;  %s7052_s8 = inlined_call_operand.vmem [shape: f32[1,128], index: 8, kind: input, shape index: {}]   ;;  %s7053_s9 = inlined_call_operand.vmem [shape: f32[16,768], index: 9, kind: output, shape index: {}]  }
   0x1   :  { %v4588_v0 = vld [vmem:[%s7044_s1 + $0x38] sm:$0xff]  ;;  %v4587_v4 = vld [vmem:[%s7044_s1 + $0x30] sm:$0xff]  ;;  %v4586_v8 = vld [vmem:[%s7044_s1 + $0x28] sm:$0xff] }
   0x2   :  { %v4596_v1 = vld [vmem:[%s7044_s1 + $0x78] sm:$0xff]  ;;  %597 = vmatpush.bf16.msra.mxu0 %v4588_v0  ;;  %v4595_v5 = vld [vmem:[%s7044_s1 + $0x70] sm:$0xff]  ;;  %v4594_v9 = vld [vmem:[%s7044_s1 + $0x68] sm:$0xff] }
   0x3   :  { %v4604_v2 = vld [vmem:[%s7044_s1 + $0xb8] sm:$0xff]  ;;  %611 = vmatpush.bf16.msra.mxu1 %v4596_v1  ;;  %v4603_v6 = vld [vmem:[%s7044_s1 + $0xb0] sm:$0xff]  ;;  %v4602_v10 = vld [vmem:[%s7044_s1 + $0xa8] sm:$0xff] }
   0x4   :  { %v4612_v3 = vld [vmem:[%s7044_s1 + $0xf8] sm:$0xff]  ;;  %625 = vmatpush.bf16.msra.mxu2 %v4604_v2  ;;  %v4611_v7 = vld [vmem:[%s7044_s1 + $0xf0] sm:$0xff]  ;;  %v4610_v11 = vld [vmem:[%s7044_s1 + $0xe8] sm:$0xff] }
   0x5   :  { %639 = vmatpush.bf16.msra.mxu3 %v4612_v3  ;;  %v4585_v12 = vld [vmem:[%s7044_s1 + $0x20] sm:$0xff]  ;;  %v4584_v16 = vld [vmem:[%s7044_s1 + $0x18] sm:$0xff]  ;;  %v4583_v20 = vld [vmem:[%s7044_s1 + $0x10] sm:$0xff] }
   0x6   :  { %598 = vmatpush.bf16.msra.mxu0 %v4587_v4  ;;  %v4593_v13 = vld [vmem:[%s7044_s1 + $0x60] sm:$0xff]  ;;  %v4592_v17 = vld [vmem:[%s7044_s1 + $0x58] sm:$0xff]  ;;  %v4591_v21 = vld [vmem:[%s7044_s1 + $0x50] sm:$0xff] }
   0x7   :  { %612 = vmatpush.bf16.msra.mxu1 %v4595_v5  ;;  %v4601_v14 = vld [vmem:[%s7044_s1 + $0xa0] sm:$0xff]  ;;  %v4600_v18 = vld [vmem:[%s7044_s1 + $0x98] sm:$0xff]  ;;  %v4599_v22 = vld [vmem:[%s7044_s1 + $0x90] sm:$0xff] }
   0x8   :  { %626 = vmatpush.bf16.msra.mxu2 %v4603_v6  ;;  %v4609_v15 = vld [vmem:[%s7044_s1 + $0xe0] sm:$0xff]  ;;  %v4608_v19 = vld [vmem:[%s7044_s1 + $0xd8] sm:$0xff]  ;;  %v4607_v23 = vld [vmem:[%s7044_s1 + $0xd0] sm:$0xff] }
   0x9   :  { %640 = vmatpush.bf16.msra.mxu3 %v4611_v7  ;;  %v4582_v24 = vld [vmem:[%s7044_s1 + $0x8] sm:$0xff]  ;;  %v4581_v28 = vld [vmem:[%s7044_s1] sm:$0xff]  ;;  %v4620_v32 = vld [vmem:[%s7044_s1 + $0x138] sm:$0xff] }
   0xa   :  { %599 = vmatpush.bf16.msra.mxu0 %v4586_v8  ;;  %v4590_v25 = vld [vmem:[%s7044_s1 + $0x48] sm:$0xff]  ;;  %v4589_v29 = vld [vmem:[%s7044_s1 + $0x40] sm:$0xff]  ;;  %v4628_v33 = vld [vmem:[%s7044_s1 + $0x178] sm:$0xff] }
   0xb   :  { %613 = vmatpush.bf16.msra.mxu1 %v4594_v9  ;;  %v4598_v26 = vld [vmem:[%s7044_s1 + $0x88] sm:$0xff]  ;;  %v4597_v30 = vld [vmem:[%s7044_s1 + $0x80] sm:$0xff]  ;;  %v4636_v42 = vld [vmem:[%s7044_s1 + $0x1b8] sm:$0xff] }
   0xc   :  { %627 = vmatpush.bf16.msra.mxu2 %v4602_v10  ;;  %v4606_v27 = vld [vmem:[%s7044_s1 + $0xc8] sm:$0xff]  ;;  %v4605_v31 = vld [vmem:[%s7044_s1 + $0xc0] sm:$0xff]  ;;  %v4644_v43 = vld [vmem:[%s7044_s1 + $0x1f8] sm:$0xff] }
   0xd   :  { %641 = vmatpush.bf16.msra.mxu3 %v4610_v11  ;;  %v3263_v34 = vld [vmem:[%s7046_s0 + $0x8] sm:$0xf]  ;;  %v3255_v36 = vld [vmem:[%s7046_s0] sm:$0xf]  ;;  %v4574_v38 = vld [vmem:[%s7046_s0 + $0xc] sm:$0xf] }
   0xe   :  { %600 = vmatpush.bf16.msra.mxu0 %v4585_v12  ;;  %v4578_v35 = vld [vmem:[%s7046_s0 + $0x24] sm:$0xf0]  ;;  %v4577_v37 = vld [vmem:[%s7046_s0 + $0x1c] sm:$0xf0]  ;;  %v3265_v39 = vld [vmem:[%s7046_s0 + $0x28] sm:$0xf0] }
   0xf   :  { %614 = vmatpush.bf16.msra.mxu1 %v4593_v13  ;;  %v4573_v40 = vld [vmem:[%s7046_s0 + $0x4] sm:$0xf]  ;;  %v3264_v44 = vor.u32 %v4578_v35, %v3263_v34  ;;  %v3256_v45 = vor.u32 %v4577_v37, %v3255_v36  ;;  %v3268_v46 = vor.u32 %v4574_v38, %v3265_v39  ;;  %v4619_v48 = vld [vmem:[%s7044_s1 + $0x130] sm:$0xff]  ;;  %v4618_v52 = vld [vmem:[%s7044_s1 + $0x128] sm:$0xff] }
  0x10   :  { %628 = vmatpush.bf16.msra.mxu2 %v4601_v14  ;;  %v3257_v41 = vld [vmem:[%s7046_s0 + $0x20] sm:$0xf0]  ;;  %v4627_v49 = vld [vmem:[%s7044_s1 + $0x170] sm:$0xff]  ;;  %v4626_v53 = vld [vmem:[%s7044_s1 + $0x168] sm:$0xff] }
  0x11   :  { %642 = vmatpush.bf16.msra.mxu3 %v4609_v15  ;;  %v3260_v47 = vor.u32 %v4573_v40, %v3257_v41  ;;  %v4635_v50 = vld [vmem:[%s7044_s1 + $0x1b0] sm:$0xff]  ;;  %v4634_v54 = vld [vmem:[%s7044_s1 + $0x1a8] sm:$0xff]  ;;  %v4617_v56 = vld [vmem:[%s7044_s1 + $0x120] sm:$0xff] }
  0x12   :  { %601 = vmatpush.bf16.msra.mxu0 %v4584_v16  ;;  %v4643_v51 = vld [vmem:[%s7044_s1 + $0x1f0] sm:$0xff]  ;;  %v4642_v55 = vld [vmem:[%s7044_s1 + $0x1e8] sm:$0xff]  ;;  %v4625_v57 = vld [vmem:[%s7044_s1 + $0x160] sm:$0xff] }
  0x13   :  { %615 = vmatpush.bf16.msra.mxu1 %v4592_v17  ;;  %v4633_v58 = vld [vmem:[%s7044_s1 + $0x1a0] sm:$0xff]  ;;  %v4616_v60 = vld [vmem:[%s7044_s1 + $0x118] sm:$0xff]  ;;  %v4615_v0 = vld [vmem:[%s7044_s1 + $0x110] sm:$0xff] }
  0x14   :  { %629 = vmatpush.bf16.msra.mxu2 %v4600_v18  ;;  %v4641_v59 = vld [vmem:[%s7044_s1 + $0x1e0] sm:$0xff]  ;;  %v4624_v61 = vld [vmem:[%s7044_s1 + $0x158] sm:$0xff]  ;;  %v4623_v1 = vld [vmem:[%s7044_s1 + $0x150] sm:$0xff] }
  0x15   :  { %643 = vmatpush.bf16.msra.mxu3 %v4608_v19  ;;  %v4632_v62 = vld [vmem:[%s7044_s1 + $0x198] sm:$0xff]  ;;  %v4631_v2 = vld [vmem:[%s7044_s1 + $0x190] sm:$0xff]  ;;  %v4614_v4 = vld [vmem:[%s7044_s1 + $0x108] sm:$0xff] }
  0x16   :  { %602 = vmatpush.bf16.msra.mxu0 %v4583_v20  ;;  %v4640_v63 = vld [vmem:[%s7044_s1 + $0x1d8] sm:$0xff]  ;;  %v4639_v3 = vld [vmem:[%s7044_s1 + $0x1d0] sm:$0xff]  ;;  %v4622_v5 = vld [vmem:[%s7044_s1 + $0x148] sm:$0xff] }
  0x17   :  { %616 = vmatpush.bf16.msra.mxu1 %v4591_v21  ;;  %v4630_v6 = vld [vmem:[%s7044_s1 + $0x188] sm:$0xff]  ;;  %v4613_v8 = vld [vmem:[%s7044_s1 + $0x100] sm:$0xff]  ;;  %v3271_v12 = vld [vmem:[%s7046_s0 + $0x10] sm:$0xf] }
  0x18   :  { %630 = vmatpush.bf16.msra.mxu2 %v4599_v22  ;;  %v4638_v7 = vld [vmem:[%s7044_s1 + $0x1c8] sm:$0xff]  ;;  %v4621_v9 = vld [vmem:[%s7044_s1 + $0x140] sm:$0xff]  ;;  %v4579_v13 = vld [vmem:[%s7046_s0 + $0x2c] sm:$0xf0] }
  0x19   :  { %644 = vmatpush.bf16.msra.mxu3 %v4607_v23  ;;  %v4629_v10 = vld [vmem:[%s7044_s1 + $0x180] sm:$0xff]  ;;  %v4575_v14 = vld [vmem:[%s7046_s0 + $0x14] sm:$0xf]  ;;  %v3279_v16 = vld [vmem:[%s7046_s0 + $0x18] sm:$0xf]  ;;  %v3272_v20 = vor.u32 %v4579_v13, %v3271_v12 }
  0x1a   :  { %603 = vmatpush.bf16.msra.mxu0 %v4582_v24  ;;  %v4637_v11 = vld [vmem:[%s7044_s1 + $0x1c0] sm:$0xff]  ;;  %v3273_v15 = vld [vmem:[%s7046_s0 + $0x30] sm:$0xf0]  ;;  %v4580_v17 = vld [vmem:[%s7046_s0 + $0x34] sm:$0xf0] }
  0x1b   :  { %617 = vmatpush.bf16.msra.mxu1 %v4590_v25  ;;  %v4576_v18 = vld [vmem:[%s7046_s0 + $0x1c] sm:$0xf]  ;;  %v3276_v21 = vor.u32 %v4575_v14, %v3273_v15  ;;  %v3280_v22 = vor.u32 %v4580_v17, %v3279_v16  ;;  %v3639_v24 = vld [vmem:[%s7047_s3 + $0xc0] sm:$0xf]  ;;  %v3649_v34 = vld [vmem:[%s7047_s3 + $0xe8] sm:$0xf0] }
  0x1c   :  { %631 = vmatpush.bf16.msra.mxu2 %v4598_v26  ;;  %v3281_v19 = vld [vmem:[%s7046_s0 + $0x38] sm:$0xf0]  ;;  %v4673_v25 = vld [vmem:[%s7047_s3 + $0xdc] sm:$0xf0]  ;;  %v4669_v26 = vld [vmem:[%s7047_s3 + $0xc4] sm:$0xf] }
  0x1d   :  { %645 = vmatpush.bf16.msra.mxu3 %v4606_v27  ;;  %v3284_v23 = vor.u32 %v4576_v18, %v3281_v19  ;;  %v3640_v27 = vor.u32 %v4673_v25, %v3639_v24  ;;  %v3607_v36 = vld [vmem:[%s7047_s3 + $0x80] sm:$0xf]  ;;  %v4661_v38 = vld [vmem:[%s7047_s3 + $0x84] sm:$0xf]  ;;  %v3615_v41 = vld [vmem:[%s7047_s3 + $0x88] sm:$0xf] }
  0x1e   :  { %604 = vmatpush.bf16.msra.mxu0 %v4581_v28  ;;  %v3641_v28 = vld [vmem:[%s7047_s3 + $0xe0] sm:$0xf0]  ;;  %v4665_v37 = vld [vmem:[%s7047_s3 + $0x9c] sm:$0xf0]  ;;  %v3655_v13 = vld [vmem:[%s7047_s3 + $0xd0] sm:$0xf] }
  0x1f   :  { %618 = vmatpush.bf16.msra.mxu1 %v4589_v29  ;;  %v3647_v29 = vld [vmem:[%s7047_s3 + $0xc8] sm:$0xf]  ;;  %v3608_v39 = vor.u32 %v4665_v37, %v3607_v36  ;;  %v3609_v40 = vld [vmem:[%s7047_s3 + $0xa0] sm:$0xf0]  ;;  %v4675_v14 = vld [vmem:[%s7047_s3 + $0xec] sm:$0xf0] }
  0x20   :  { %632 = vmatpush.bf16.msra.mxu2 %v4597_v30  ;;  %v4674_v30 = vld [vmem:[%s7047_s3 + $0xe4] sm:$0xf0]  ;;  %v4671_v15 = vld [vmem:[%s7047_s3 + $0xd4] sm:$0xf]  ;;  %v3656_v18 = vor.u32 %v4675_v14, %v3655_v13  ;;  %v4672_v24 = vld [vmem:[%s7047_s3 + $0xdc] sm:$0xf] }
  0x21   :  { %646 = vmatpush.bf16.msra.mxu3 %v4605_v31  ;;  %605 = vmatmul.bf16.vlgmr.msra.gmra.mxu0 %v3256_v45  ;;  %v3644_v31 = vor.u32 %v4669_v26, %v3641_v28  ;;  %v4662_v45 = vld [vmem:[%s7047_s3 + $0x8c] sm:$0xf]  ;;  %v3657_v19 = vld [vmem:[%s7047_s3 + $0xf0] sm:$0xf0]  ;;  %v3665_v25 = vld [vmem:[%s7047_s3 + $0xf8] sm:$0xf0] }
  0x22   :  { %653 = vmatpush.bf16.msrb.mxu0 %v4620_v32  ;;  %619 = vmatmul.bf16.vlgmr.msra.gmra.mxu1 %v3260_v47  ;;  %v3648_v32 = vor.u32 %v4674_v30, %v3647_v29  ;;  %v3623_v26 = vld [vmem:[%s7047_s3 + $0x90] sm:$0xf]  ;;  %v4663_v29 = vld [vmem:[%s7047_s3 + $0x94] sm:$0xf]  ;;  %v4664_v36 = vld [vmem:[%s7047_s3 + $0x9c] sm:$0xf] }
  0x23   :  { %667 = vmatpush.bf16.msrb.mxu1 %v4628_v33  ;;  %633 = vmatmul.bf16.vlgmr.msra.gmra.mxu2 %v3264_v44  ;;  %v4670_v33 = vld [vmem:[%s7047_s3 + $0xcc] sm:$0xf]  ;;  %v4667_v28 = vld [vmem:[%s7047_s3 + $0xac] sm:$0xf0]  ;;  %v3625_v30 = vld [vmem:[%s7047_s3 + $0xb0] sm:$0xf0] }
  0x24   :  { %681 = vmatpush.bf16.msrb.mxu2 %v4636_v42  ;;  %647 = vmatmul.bf16.vlgmr.msra.gmra.mxu3 %v3268_v46  ;;  %v3652_v35 = vor.u32 %v4670_v33, %v3649_v34  ;;  %v4666_v42 = vld [vmem:[%s7047_s3 + $0xa4] sm:$0xf0]  ;;  %v3617_v46 = vld [vmem:[%s7047_s3 + $0xa8] sm:$0xf0]  ;;  %v3628_v33 = vor.u32 %v4663_v29, %v3625_v30  ;;  %v3631_v34 = vld [vmem:[%s7047_s3 + $0x98] sm:$0xf] }
  0x25   :  { %695 = vmatpush.bf16.msrb.mxu3 %v4644_v43  ;;  %v3612_v43 = vor.u32 %v4661_v38, %v3609_v40  ;;  %v3616_v44 = vor.u32 %v4666_v42, %v3615_v41  ;;  %v3620_v47 = vor.u32 %v4662_v45, %v3617_v46  ;;  %v3633_v40 = vld [vmem:[%s7047_s3 + $0xb8] sm:$0xf0]  ;;  %v3591_v41 = vld [vmem:[%s7047_s3 + $0x50] sm:$0xf]  ;;  %v3593_v45 = vld [vmem:[%s7047_s3 + $0x70] sm:$0xf0] }
  0x26   :  { %654 = vmatpush.bf16.msrb.mxu0 %v4619_v48  ;;  %v4659_v42 = vld [vmem:[%s7047_s3 + $0x6c] sm:$0xf0]  ;;  %v3599_v46 = vld [vmem:[%s7047_s3 + $0x58] sm:$0xf]  ;;  %v4818_v30 = vld [vmem:[%s7048_s5 + $0x464] sm:$0xf0] }
  0x27   :  { %668 = vmatpush.bf16.msrb.mxu1 %v4627_v49  ;;  %v3575_v49 = vld [vmem:[%s7047_s3 + $0x40] sm:$0xf]  ;;  %v4231_v29 = vld [vmem:[%s7048_s5 + $0x450] sm:$0xf] }
  0x28   :  { %682 = vmatpush.bf16.msrb.mxu2 %v4635_v50  ;;  %v4657_v50 = vld [vmem:[%s7047_s3 + $0x5c] sm:$0xf0] }
  0x29   :  { %696 = vmatpush.bf16.msrb.mxu3 %v4643_v51  ;;  %v4653_v51 = vld [vmem:[%s7047_s3 + $0x44] sm:$0xf] }
  0x2a   :  { %655 = vmatpush.bf16.msrb.mxu0 %v4618_v52  ;;  %v3576_v52 = vor.u32 %v4657_v50, %v3575_v49  ;;  %v4656_v49 = vld [vmem:[%s7047_s3 + $0x5c] sm:$0xf] }
  0x2b   :  { %669 = vmatpush.bf16.msrb.mxu1 %v4626_v53  ;;  %v3577_v53 = vld [vmem:[%s7047_s3 + $0x60] sm:$0xf0]  ;;  %v3601_v50 = vld [vmem:[%s7047_s3 + $0x78] sm:$0xf0] }
  0x2c   :  { %683 = vmatpush.bf16.msrb.mxu2 %v4634_v54  ;;  %v3583_v54 = vld [vmem:[%s7047_s3 + $0x48] sm:$0xf] }
  0x2d   :  { %697 = vmatpush.bf16.msrb.mxu3 %v4642_v55  ;;  %v4658_v55 = vld [vmem:[%s7047_s3 + $0x64] sm:$0xf0] }
  0x2e   :  { %656 = vmatpush.bf16.msrb.mxu0 %v4617_v56  ;;  %v3580_v56 = vor.u32 %v4653_v51, %v3577_v53 }
  0x2f   :  { %670 = vmatpush.bf16.msrb.mxu1 %v4625_v57  ;;  %v3584_v57 = vor.u32 %v4658_v55, %v3583_v54  ;;  %v3559_v55 = vld [vmem:[%s7047_s3 + $0x10] sm:$0xf] }
  0x30   :  { %684 = vmatpush.bf16.msrb.mxu2 %v4633_v58  ;;  %v4654_v58 = vld [vmem:[%s7047_s3 + $0x4c] sm:$0xf] }
  0x31   :  { %698 = vmatpush.bf16.msrb.mxu3 %v4641_v59  ;;  %v3585_v59 = vld [vmem:[%s7047_s3 + $0x68] sm:$0xf0] }
  0x32   :  { %657 = vmatpush.bf16.msrb.mxu0 %v4616_v60 }
  0x33   :  { %671 = vmatpush.bf16.msrb.mxu1 %v4624_v61  ;;  %v3588_v61 = vor.u32 %v4654_v58, %v3585_v59 }
  0x34   :  { %685 = vmatpush.bf16.msrb.mxu2 %v4632_v62  ;;  %v3543_v62 = vld [vmem:[%s7047_s3] sm:$0xf] }
  0x35   :  { %699 = vmatpush.bf16.msrb.mxu3 %v4640_v63  ;;  %v4649_v63 = vld [vmem:[%s7047_s3 + $0x1c] sm:$0xf0] }
  0x36   :  { %658 = vmatpush.bf16.msrb.mxu0 %v4615_v0  ;;  %v4645_v0 = vld [vmem:[%s7047_s3 + $0x4] sm:$0xf] }
  0x37   :  { %672 = vmatpush.bf16.msrb.mxu1 %v4623_v1  ;;  %v3544_v1 = vor.u32 %v4649_v63, %v3543_v62  ;;  %v3561_v62 = vld [vmem:[%s7047_s3 + $0x30] sm:$0xf0]  ;;  %v3567_v63 = vld [vmem:[%s7047_s3 + $0x18] sm:$0xf] }
  0x38   :  { %686 = vmatpush.bf16.msrb.mxu2 %v4631_v2  ;;  %v3545_v2 = vld [vmem:[%s7047_s3 + $0x20] sm:$0xf0] }
  0x39   :  { %700 = vmatpush.bf16.msrb.mxu3 %v4639_v3  ;;  %v3551_v3 = vld [vmem:[%s7047_s3 + $0x8] sm:$0xf] }
  0x3a   :  { %659 = vmatpush.bf16.msrb.mxu0 %v4614_v4  ;;  %v4650_v4 = vld [vmem:[%s7047_s3 + $0x24] sm:$0xf0] }
  0x3b   :  { %673 = vmatpush.bf16.msrb.mxu1 %v4622_v5  ;;  %v4901_v5 = vld [vmem:[%s7045_s2] ss:$0 sm:$0xff] }
  0x3c   :  { %687 = vmatpush.bf16.msrb.mxu2 %v4630_v6  ;;  %v3548_v6 = vor.u32 %v4645_v0, %v3545_v2  ;;  %v4652_v0 = vld [vmem:[%s7047_s3 + $0x34] sm:$0xf0]  ;;  %v3569_v2 = vld [vmem:[%s7047_s3 + $0x38] sm:$0xf0] }
  0x3d   :  { %701 = vmatpush.bf16.msrb.mxu3 %v4638_v7  ;;  %v3552_v7 = vor.u32 %v4650_v4, %v3551_v3 }
  0x3e   :  { %660 = vmatpush.bf16.msrb.mxu0 %v4613_v8  ;;  %v4646_v8 = vld [vmem:[%s7047_s3 + $0xc] sm:$0xf] }
  0x3f   :  { %674 = vmatpush.bf16.msrb.mxu1 %v4621_v9  ;;  %v3553_v9 = vld [vmem:[%s7047_s3 + $0x28] sm:$0xf0] }
  0x40   :  { %688 = vmatpush.bf16.msrb.mxu2 %v4629_v10  ;;  %v3556_v12 = vor.u32 %v4646_v8, %v3553_v9 }
  0x41   :  { %702 = vmatpush.bf16.msrb.mxu3 %v4637_v11  ;;  %661 = vmatmul.bf16.vlgmr.msrb.gmra.mxu0 %v3272_v20  ;;  %v3663_v20 = vld [vmem:[%s7047_s3 + $0xd8] sm:$0xf] }
  0x42   :  { %675 = vmatmul.bf16.vlgmr.msrb.gmra.mxu1 %v3276_v21  ;;  %930 = vmatpush.bf16.msra.mxu0 %v3640_v27  ;;  %v4676_v21 = vld [vmem:[%s7047_s3 + $0xf4] sm:$0xf0]  ;;  %v3668_v27 = vor.u32 %v4672_v24, %v3665_v25  ;;  %v3847_v25 = vld [vmem:[%s7048_s5 + $0x150] sm:$0xf] }
  0x43   :  { %689 = vmatmul.bf16.vlgmr.msrb.gmra.mxu2 %v3280_v22  ;;  %944 = vmatpush.bf16.msra.mxu1 %v3644_v31  ;;  %v3660_v22 = vor.u32 %v4671_v15, %v3657_v19 }
  0x44   :  { %703 = vmatmul.bf16.vlgmr.msrb.gmra.mxu3 %v3284_v23  ;;  %958 = vmatpush.bf16.msra.mxu2 %v3648_v32  ;;  %v3664_v23 = vor.u32 %v4676_v21, %v3663_v20  ;;  %v3624_v32 = vor.u32 %v4667_v28, %v3623_v26  ;;  %v4722_v26 = vld [vmem:[%s7048_s5 + $0x164] sm:$0xf0] }
  0x45   :  { %972 = vmatpush.bf16.msra.mxu3 %v3652_v35  ;;  %v4668_v35 = vld [vmem:[%s7047_s3 + $0xb4] sm:$0xf0]  ;;  %v4770_v28 = vld [vmem:[%s7048_s5 + $0x2e4] sm:$0xf0] }
  0x46   :  { %931 = vmatpush.bf16.msra.mxu0 %v3608_v39  ;;  %v3632_v39 = vor.u32 %v4668_v35, %v3631_v34  ;;  %v4866_v34 = vld [vmem:[%s7048_s5 + $0x5e4] sm:$0xf0] }
  0x47   :  { %945 = vmatpush.bf16.msra.mxu1 %v3612_v43  ;;  %v3636_v43 = vor.u32 %v4664_v36, %v3633_v40  ;;  %v3848_v36 = vor.u32 %v4722_v26, %v3847_v25  ;;  %v4015_v40 = vld [vmem:[%s7048_s5 + $0x2a0] sm:$0xf]  ;;  %v4740_v25 = vld [vmem:[%s7048_s5 + $0x1f4] sm:$0xf0] }
  0x48   :  { %959 = vmatpush.bf16.msra.mxu2 %v3616_v44  ;;  %v4655_v44 = vld [vmem:[%s7047_s3 + $0x54] sm:$0xf] }
  0x49   :  { %973 = vmatpush.bf16.msra.mxu3 %v3620_v47  ;;  %v3592_v47 = vor.u32 %v4659_v42, %v3591_v41  ;;  %v3596_v53 = vor.u32 %v4655_v44, %v3593_v45  ;;  %v4764_v41 = vld [vmem:[%s7048_s5 + $0x2b4] sm:$0xf0]  ;;  %v4232_v42 = vor.u32 %v4818_v30, %v4231_v29  ;;  %v4207_v44 = vld [vmem:[%s7048_s5 + $0x420] sm:$0xf] }
  0x4a   :  { %932 = vmatpush.bf16.msra.mxu0 %v3576_v52  ;;  %v4812_v45 = vld [vmem:[%s7048_s5 + $0x434] sm:$0xf0]  ;;  %v4303_v30 = vld [vmem:[%s7048_s5 + $0x4e0] sm:$0xf] }
  0x4b   :  { %946 = vmatpush.bf16.msra.mxu1 %v3580_v56  ;;  %v4651_v56 = vld [vmem:[%s7047_s3 + $0x2c] sm:$0xf0]  ;;  %v4788_v29 = vld [vmem:[%s7048_s5 + $0x374] sm:$0xf0] }
  0x4c   :  { %960 = vmatpush.bf16.msra.mxu2 %v3584_v57  ;;  %v4647_v57 = vld [vmem:[%s7047_s3 + $0x14] sm:$0xf]  ;;  %v3560_v3 = vor.u32 %v4651_v56, %v3559_v55  ;;  %v4183_v56 = vld [vmem:[%s7048_s5 + $0x3f0] sm:$0xf] }
  0x4d   :  { %974 = vmatpush.bf16.msra.mxu3 %v3588_v61  ;;  %v3604_v61 = vor.u32 %v4656_v49, %v3601_v50  ;;  %v4016_v49 = vor.u32 %v4764_v41, %v4015_v40  ;;  %v3799_v50 = vld [vmem:[%s7048_s5 + $0xf0] sm:$0xf]  ;;  %v4782_v41 = vld [vmem:[%s7048_s5 + $0x344] sm:$0xf0] }
  0x4e   :  { %933 = vmatpush.bf16.msra.mxu0 %v3544_v1  ;;  %v4648_v1 = vld [vmem:[%s7047_s3 + $0x1c] sm:$0xf]  ;;  %v4087_v40 = vld [vmem:[%s7048_s5 + $0x330] sm:$0xf] }
  0x4f   :  { %947 = vmatpush.bf16.msra.mxu1 %v3548_v6  ;;  %v3568_v6 = vor.u32 %v4652_v0, %v3567_v63  ;;  %v3572_v9 = vor.u32 %v4648_v1, %v3569_v2  ;;  %v4704_v63 = vld [vmem:[%s7048_s5 + $0xd4] sm:$0xf0]  ;;  %v3967_v0 = vld [vmem:[%s7048_s5 + $0x240] sm:$0xf] }
  0x50   :  { %961 = vmatpush.bf16.msra.mxu2 %v3552_v7  ;;  %v4752_v1 = vld [vmem:[%s7048_s5 + $0x254] sm:$0xf0] }
  0x51   :  { %975 = vmatpush.bf16.msra.mxu3 %v3556_v12 }
  0x52   :  { %986 = vmatpush.bf16.msrb.mxu0 %v3656_v18 }
  0x53   :  { %1000 = vmatpush.bf16.msrb.mxu1 %v3660_v22 }
  0x54   :  { %1014 = vmatpush.bf16.msrb.mxu2 %v3664_v23 }
  0x55   :  { %1028 = vmatpush.bf16.msrb.mxu3 %v3668_v27  ;;  %v4039_v27 = vld [vmem:[%s7048_s5 + $0x2d0] sm:$0xf] }
  0x56   :  { %987 = vmatpush.bf16.msrb.mxu0 %v3624_v32 }
  0x57   :  { %1001 = vmatpush.bf16.msrb.mxu1 %v3628_v33  ;;  %v4423_v33 = vld [vmem:[%s7048_s5 + $0x5d0] sm:$0xf] }
  0x58   :  { %1015 = vmatpush.bf16.msrb.mxu2 %v3632_v39  ;;  %v4716_v39 = vld [vmem:[%s7048_s5 + $0x134] sm:$0xf0] }
  0x59   :  { %1029 = vmatpush.bf16.msrb.mxu3 %v3636_v43  ;;  %v4424_v43 = vor.u32 %v4866_v34, %v4423_v33  ;;  %v3703_v34 = vld [vmem:[%s7048_s5 + $0x30] sm:$0xf] }
  0x5a   :  { %988 = vmatpush.bf16.msrb.mxu0 %v3592_v47  ;;  %v4860_v47 = vld [vmem:[%s7048_s5 + $0x5b4] sm:$0xf0] }
  0x5b   :  { %1002 = vmatpush.bf16.msrb.mxu1 %v3596_v53  ;;  %v4758_v53 = vld [vmem:[%s7048_s5 + $0x284] sm:$0xf0] }
  0x5d   :  { %1030 = vmatpush.bf16.msrb.mxu3 %v3604_v61 }
  0x5e   :  { %989 = vmatpush.bf16.msrb.mxu0 %v3560_v3 }
  0x61   :  { %1031 = vmatpush.bf16.msrb.mxu3 %v3572_v9  ;;  %v3968_v9 = vor.u32 %v4752_v1, %v3967_v0  ;;  %v4863_v0 = vld [vmem:[%s7048_s5 + $0x5d4] sm:$0xf]  ;;  %v4425_v1 = vld [vmem:[%s7048_s5 + $0x5e8] sm:$0xf0] }
  0x9e   :  { %v606_v48 = vpop.f32.mrf.mxu0 }
  0x9f   :  { %v620_v60 = vpop.f32.mrf.mxu1  ;;  %v607_v16 = vadd.f32 %v4901_v5, %v606_v48  ;;  %v4660_v48 = vld [vmem:[%s7047_s3 + $0x74] sm:$0xf0] }
  0xa0   :  { %v3600_v54 = vor.u32 %v4660_v48, %v3599_v46  ;;  %v4399_v46 = vld [vmem:[%s7048_s5 + $0x5a0] sm:$0xf] }
  0xa1   :  { %v621_v37 = vadd.f32 %v620_v60, %v607_v16  ;;  %v4400_v55 = vor.u32 %v4860_v47, %v4399_v46  ;;  %v4680_v47 = vld [vmem:[%s7048_s5 + $0x14] sm:$0xf0] }
  0xa2   :  { %1016 = vmatpush.bf16.msrb.mxu2 %v3600_v54  ;;  %v4208_v54 = vor.u32 %v4812_v45, %v4207_v44  ;;  %v3679_v44 = vld [vmem:[%s7048_s5] sm:$0xf] }
  0xa6   :  { %v634_v10 = vpop.f32.mrf.mxu2  ;;  %v608_v17 = vpop.f32.mrf.mxu0  ;;  %1017 = vmatpush.bf16.msrb.mxu2 %v3568_v6  ;;  %v4351_v6 = vld [vmem:[%s7048_s5 + $0x540] sm:$0xf] }
  0xa7   :  { %v5341_v11 = vpop.f32.mrf.mxu3  ;;  %v622_v31 = vpop.f32.mrf.mxu1  ;;  %v609_v38 = vadd.f32 %v4901_v5, %v608_v17  ;;  %v635_v58 = vadd.f32 %v634_v10, %v621_v37  ;;  %v3564_v5 = vor.u32 %v4647_v57, %v3561_v62  ;;  %v4040_v37 = vor.u32 %v4770_v28, %v4039_v27  ;;  %v4806_v57 = vld [vmem:[%s7048_s5 + $0x404] sm:$0xf0]  ;;  %v3775_v62 = vld [vmem:[%s7048_s5 + $0xc0] sm:$0xf] }
  0xa8   :  { %v4184_v2 = vor.u32 %v4806_v57, %v4183_v56  ;;  %v4111_v28 = vld [vmem:[%s7048_s5 + $0x360] sm:$0xf]  ;;  %v4776_v57 = vld [vmem:[%s7048_s5 + $0x314] sm:$0xf0] }
  0xa9   :  { %v623_v59 = vadd.f32 %v622_v31, %v609_v38  ;;  %v649_v7 = vadd.f32 %v5341_v11, %v635_v58  ;;  %1003 = vmatpush.bf16.msrb.mxu1 %v3564_v5  ;;  %v3823_v38 = vld [vmem:[%s7048_s5 + $0x120] sm:$0xf]  ;;  %v4375_v58 = vld [vmem:[%s7048_s5 + $0x570] sm:$0xf]  ;;  %v4800_v5 = vld [vmem:[%s7048_s5 + $0x3d4] sm:$0xf0] }
  0xaa   :  { %v3824_v48 = vor.u32 %v4716_v39, %v3823_v38  ;;  %v4112_v38 = vor.u32 %v4788_v29, %v4111_v28  ;;  %v4063_v56 = vld [vmem:[%s7048_s5 + $0x300] sm:$0xf]  ;;  %v4749_v29 = vld [vmem:[%s7048_s5 + $0x244] sm:$0xf] }
  0xae   :  { %v636_v51 = vpop.f32.mrf.mxu2 }
  0xaf   :  { %v650_v52 = vpop.f32.mrf.mxu3  ;;  %v637_v8 = vadd.f32 %v636_v51, %v623_v59  ;;  %v4710_v51 = vld [vmem:[%s7048_s5 + $0x104] sm:$0xf0] }
  0xb0   :  { %v4854_v59 = vld [vmem:[%s7048_s5 + $0x584] sm:$0xf0] }
  0xb1   :  { %v651_v14 = vadd.f32 %v650_v52, %v637_v8  ;;  %v3991_v52 = vld [vmem:[%s7048_s5 + $0x270] sm:$0xf]  ;;  %v4376_v3 = vor.u32 %v4854_v59, %v4375_v58  ;;  %v3776_v8 = vor.u32 %v4704_v63, %v3775_v62  ;;  %v4255_v58 = vld [vmem:[%s7048_s5 + $0x480] sm:$0xf]  ;;  %v4824_v59 = vld [vmem:[%s7048_s5 + $0x494] sm:$0xf0] }
  0xb2   :  { %v3992_v61 = vor.u32 %v4758_v53, %v3991_v52  ;;  %v4767_v52 = vld [vmem:[%s7048_s5 + $0x2d4] sm:$0xf]  ;;  %v4088_v53 = vor.u32 %v4782_v41, %v4087_v40  ;;  %v4233_v63 = vld [vmem:[%s7048_s5 + $0x468] sm:$0xf0] }
  0xb3   :  { %v4743_v40 = vld [vmem:[%s7048_s5 + $0x214] sm:$0xf] }
  0xbe   :  { %v662_v60 = vpop.f32.mrf.mxu0 }
  0xbf   :  { %v676_v4 = vpop.f32.mrf.mxu1  ;;  %v663_v10 = vadd.f32 %v662_v60, %v649_v7  ;;  %v3800_v60 = vor.u32 %v4710_v51, %v3799_v50  ;;  %v4848_v7 = vld [vmem:[%s7048_s5 + $0x554] sm:$0xf0]  ;;  %v4719_v50 = vld [vmem:[%s7048_s5 + $0x154] sm:$0xf]  ;;  %v3849_v51 = vld [vmem:[%s7048_s5 + $0x168] sm:$0xf0] }
  0xc1   :  { %v677_v16 = vadd.f32 %v676_v4, %v663_v10  ;;  %v4159_v4 = vld [vmem:[%s7048_s5 + $0x3c0] sm:$0xf]  ;;  %v3751_v10 = vld [vmem:[%s7048_s5 + $0x90] sm:$0xf] }
  0xc6   :  { %v690_v12 = vpop.f32.mrf.mxu2  ;;  %v664_v15 = vpop.f32.mrf.mxu0 }
  0xc7   :  { %v704_v13 = vpop.f32.mrf.mxu3  ;;  %v665_v17 = vadd.f32 %v664_v15, %v651_v14  ;;  %v691_v18 = vadd.f32 %v690_v12, %v677_v16  ;;  %v678_v19 = vpop.f32.mrf.mxu1  ;;  %v4698_v12 = vld [vmem:[%s7048_s5 + $0xa4] sm:$0xf0]  ;;  %v4160_v15 = vor.u32 %v4800_v5, %v4159_v4  ;;  %v4352_v16 = vor.u32 %v4848_v7, %v4351_v6  ;;  %v4713_v4 = vld [vmem:[%s7048_s5 + $0x124] sm:$0xf]  ;;  %v3825_v5 = vld [vmem:[%s7048_s5 + $0x138] sm:$0xf0] }
  0xc8   :  { %v4746_v14 = vld [vmem:[%s7048_s5 + $0x224] sm:$0xf0]  ;;  %v4761_v6 = vld [vmem:[%s7048_s5 + $0x2a4] sm:$0xf]  ;;  %v4017_v7 = vld [vmem:[%s7048_s5 + $0x2b8] sm:$0xf0] }
  0xc9   :  { %v679_v20 = vadd.f32 %v678_v19, %v665_v17  ;;  %v705_v22 = vadd.f32 %v704_v13, %v691_v18  ;;  %v3943_v13 = vld [vmem:[%s7048_s5 + $0x210] sm:$0xf]  ;;  %v4794_v18 = vld [vmem:[%s7048_s5 + $0x3a4] sm:$0xf0] }
  0xca   :  { %v4135_v17 = vld [vmem:[%s7048_s5 + $0x390] sm:$0xf] }
  0xcb   :  { %v709_v31 = vmax.f32 %v705_v22, 0.0  ;;  %v4327_v19 = vld [vmem:[%s7048_s5 + $0x510] sm:$0xf]  ;;  %v3944_v22 = vor.u32 %v4746_v14, %v3943_v13  ;;  %v4136_v26 = vor.u32 %v4794_v18, %v4135_v17  ;;  %v3828_v13 = vor.u32 %v4713_v4, %v3825_v5  ;;  %v4755_v17 = vld [vmem:[%s7048_s5 + $0x274] sm:$0xf] }
  0xcc   :  { %v4020_v14 = vor.u32 %v4761_v6, %v4017_v7  ;;  %v3993_v18 = vld [vmem:[%s7048_s5 + $0x288] sm:$0xf0]  ;;  %v4785_v4 = vld [vmem:[%s7048_s5 + $0x364] sm:$0xf]  ;;  %v4113_v5 = vld [vmem:[%s7048_s5 + $0x378] sm:$0xf0] }
  0xcd   :  { %v4833_v6 = vld [vmem:[%s7048_s5 + $0x4e4] sm:$0xf]  ;;  %v4116_v7 = vor.u32 %v4785_v4, %v4113_v5  ;;  %v3831_v5 = vld [vmem:[%s7048_s5 + $0x128] sm:$0xf] }
  0xce   :  { %v692_v21 = vpop.f32.mrf.mxu2 }
  0xcf   :  { %v693_v11 = vadd.f32 %v692_v21, %v679_v20  ;;  %v706_v23 = vpop.f32.mrf.mxu3  ;;  %v4842_v20 = vld [vmem:[%s7048_s5 + $0x524] sm:$0xf0]  ;;  %v3752_v21 = vor.u32 %v4698_v12, %v3751_v10  ;;  %v4428_v12 = vor.u32 %v4863_v0, %v4425_v1  ;;  %v4731_v0 = vld [vmem:[%s7048_s5 + $0x1b4] sm:$0xf] }
  0xd0   :  { %v4328_v27 = vor.u32 %v4842_v20, %v4327_v19  ;;  %v3996_v20 = vor.u32 %v4755_v17, %v3993_v18  ;;  %v4779_v17 = vld [vmem:[%s7048_s5 + $0x334] sm:$0xf]  ;;  %v4089_v18 = vld [vmem:[%s7048_s5 + $0x348] sm:$0xf0] }
  0xd1   :  { %v707_v24 = vadd.f32 %v706_v23, %v693_v11  ;;  %v3727_v11 = vld [vmem:[%s7048_s5 + $0x60] sm:$0xf]  ;;  %v4692_v23 = vld [vmem:[%s7048_s5 + $0x74] sm:$0xf0] }
  0xd3   :  { %v710_v32 = vmax.f32 %v707_v24, 0.0  ;;  %v3919_v24 = vld [vmem:[%s7048_s5 + $0x1e0] sm:$0xf] }
  0xd4   :  { %v3920_v33 = vor.u32 %v4740_v25, %v3919_v24  ;;  %v4401_v24 = vld [vmem:[%s7048_s5 + $0x5b8] sm:$0xf0] }
  0xd5   :  { %v5464_v35 = vpack.c.bf16 %v710_v32, %v709_v31  ;;  %v4836_v31 = vld [vmem:[%s7048_s5 + $0x4f4] sm:$0xf0]  ;;  %v3728_v32 = vor.u32 %v4692_v23, %v3727_v11  ;;  %v4857_v11 = vld [vmem:[%s7048_s5 + $0x5a4] sm:$0xf] }
  0xd6   :  { %v4304_v39 = vor.u32 %v4836_v31, %v4303_v30  ;;  %v4404_v25 = vor.u32 %v4857_v11, %v4401_v24  ;;  %v3969_v30 = vld [vmem:[%s7048_s5 + $0x258] sm:$0xf0]  ;;  %v4773_v11 = vld [vmem:[%s7048_s5 + $0x304] sm:$0xf] }
  0xd7   :  { %3669 = vmatmul.msk.bf16.vlgmr.msra.gmra.mxu0 %vm922_vm0, %v5464_v35  ;;  %3670 = vmatmul.msk.bf16.vlgmr.msra.gmra.mxu1 %vm922_vm0, %v5464_v35  ;;  %v3972_v31 = vor.u32 %v4749_v29, %v3969_v30  ;;  %v4821_v24 = vld [vmem:[%s7048_s5 + $0x484] sm:$0xf] }
  0xd8   :  { %3671 = vmatmul.msk.bf16.vlgmr.msra.gmra.mxu2 %vm922_vm0, %v5464_v35  ;;  %3672 = vmatmul.msk.bf16.vlgmr.msra.gmra.mxu3 %vm922_vm0, %v5464_v35 }
  0xd9   :  { %2248 = vmatpush.bf16.msra.mxu0 %v3848_v36  ;;  %2262 = vmatpush.bf16.msra.mxu1 %v4040_v37  ;;  %v4686_v36 = vld [vmem:[%s7048_s5 + $0x44] sm:$0xf0]  ;;  %v3895_v37 = vld [vmem:[%s7048_s5 + $0x1b0] sm:$0xf] }
  0xda   :  { %2276 = vmatpush.bf16.msra.mxu2 %v4232_v42  ;;  %2290 = vmatpush.bf16.msra.mxu3 %v4424_v43  ;;  %v4279_v42 = vld [vmem:[%s7048_s5 + $0x4b0] sm:$0xf]  ;;  %v4830_v43 = vld [vmem:[%s7048_s5 + $0x4c4] sm:$0xf0]  ;;  %v3704_v45 = vor.u32 %v4686_v36, %v3703_v34  ;;  %v4851_v34 = vld [vmem:[%s7048_s5 + $0x574] sm:$0xf] }
  0xdd   :  { %2249 = vmatpush.bf16.msra.mxu0 %v3824_v48  ;;  %2263 = vmatpush.bf16.msra.mxu1 %v4016_v49  ;;  %v3871_v48 = vld [vmem:[%s7048_s5 + $0x180] sm:$0xf]  ;;  %v4728_v49 = vld [vmem:[%s7048_s5 + $0x194] sm:$0xf0] }
  0xde   :  { %2277 = vmatpush.bf16.msra.mxu2 %v4208_v54  ;;  %2291 = vmatpush.bf16.msra.mxu3 %v4400_v55  ;;  %v4280_v54 = vor.u32 %v4830_v43, %v4279_v42  ;;  %v4041_v55 = vld [vmem:[%s7048_s5 + $0x2e8] sm:$0xf0]  ;;  %v3872_v62 = vor.u32 %v4728_v49, %v3871_v48  ;;  %v4353_v48 = vld [vmem:[%s7048_s5 + $0x558] sm:$0xf0] }
  0xdf   :  { %v3945_v42 = vld [vmem:[%s7048_s5 + $0x228] sm:$0xf0] }
  0xe0   :  { %v3948_v43 = vor.u32 %v4743_v40, %v3945_v42 }
  0xe1   :  { %2250 = vmatpush.bf16.msra.mxu0 %v3800_v60  ;;  %2264 = vmatpush.bf16.msra.mxu1 %v3992_v61  ;;  %v4815_v60 = vld [vmem:[%s7048_s5 + $0x454] sm:$0xf]  ;;  %v3680_v61 = vor.u32 %v4680_v47, %v3679_v44  ;;  %v4797_v44 = vld [vmem:[%s7048_s5 + $0x3c4] sm:$0xf] }
  0xe2   :  { %2278 = vmatpush.bf16.msra.mxu2 %v4184_v2  ;;  %2292 = vmatpush.bf16.msra.mxu3 %v4376_v3  ;;  %v3852_v2 = vor.u32 %v4719_v50, %v3849_v51  ;;  %v4044_v3 = vor.u32 %v4767_v52, %v4041_v55  ;;  %v4236_v10 = vor.u32 %v4815_v60, %v4233_v63  ;;  %v4845_v47 = vld [vmem:[%s7048_s5 + $0x544] sm:$0xf]  ;;  %v3729_v51 = vld [vmem:[%s7048_s5 + $0x78] sm:$0xf0]  ;;  %v4329_v60 = vld [vmem:[%s7048_s5 + $0x528] sm:$0xf0] }
  0xe3   :  { %v4356_v49 = vor.u32 %v4845_v47, %v4353_v48  ;;  %v4689_v50 = vld [vmem:[%s7048_s5 + $0x64] sm:$0xf]  ;;  %v3705_v63 = vld [vmem:[%s7048_s5 + $0x48] sm:$0xf0] }
  0xe4   :  { %v4737_v52 = vld [vmem:[%s7048_s5 + $0x1e4] sm:$0xf] }
  0xe5   :  { %2251 = vmatpush.bf16.msra.mxu0 %v3776_v8  ;;  %2265 = vmatpush.bf16.msra.mxu1 %v3968_v9  ;;  %v4064_v8 = vor.u32 %v4776_v57, %v4063_v56  ;;  %v4256_v9 = vor.u32 %v4824_v59, %v4255_v58  ;;  %v4791_v56 = vld [vmem:[%s7048_s5 + $0x394] sm:$0xf]  ;;  %v4137_v57 = vld [vmem:[%s7048_s5 + $0x3a8] sm:$0xf0] }
  0xe6   :  { %2279 = vmatpush.bf16.msra.mxu2 %v4160_v15  ;;  %2293 = vmatpush.bf16.msra.mxu3 %v4352_v16  ;;  %v4707_v15 = vld [vmem:[%s7048_s5 + $0xf4] sm:$0xf]  ;;  %v3801_v16 = vld [vmem:[%s7048_s5 + $0x108] sm:$0xf0]  ;;  %v4140_v59 = vor.u32 %v4791_v56, %v4137_v57 }
  0xe7   :  { %3673 = vmatmul.msk.bf16.vlgmr.msrb.gmra.mxu0 %vm922_vm0, %v5464_v35  ;;  %3674 = vmatmul.msk.bf16.vlgmr.msrb.gmra.mxu1 %vm922_vm0, %v5464_v35  ;;  %v3804_v19 = vor.u32 %v4707_v15, %v3801_v16  ;;  %v4839_v58 = vld [vmem:[%s7048_s5 + $0x514] sm:$0xf]  ;;  %v3873_v15 = vld [vmem:[%s7048_s5 + $0x198] sm:$0xf0] }
  0xe8   :  { %3675 = vmatmul.msk.bf16.vlgmr.msrb.gmra.mxu2 %vm922_vm0, %v5464_v35  ;;  %3676 = vmatmul.msk.bf16.vlgmr.msrb.gmra.mxu3 %vm922_vm0, %v5464_v35  ;;  %v4734_v35 = vld [vmem:[%s7048_s5 + $0x1c4] sm:$0xf0] }
  0xe9   :  { %2252 = vmatpush.bf16.msra.mxu0 %v3752_v21  ;;  %2266 = vmatpush.bf16.msra.mxu1 %v3944_v22  ;;  %v3896_v46 = vor.u32 %v4734_v35, %v3895_v37  ;;  %v4809_v21 = vld [vmem:[%s7048_s5 + $0x424] sm:$0xf]  ;;  %v4209_v22 = vld [vmem:[%s7048_s5 + $0x438] sm:$0xf0]  ;;  %v4377_v37 = vld [vmem:[%s7048_s5 + $0x588] sm:$0xf0] }
  0xea   :  { %2280 = vmatpush.bf16.msra.mxu2 %v4136_v26  ;;  %2294 = vmatpush.bf16.msra.mxu3 %v4328_v27  ;;  %v4212_v23 = vor.u32 %v4809_v21, %v4209_v22  ;;  %v4701_v26 = vld [vmem:[%s7048_s5 + $0xc4] sm:$0xf]  ;;  %v3777_v27 = vld [vmem:[%s7048_s5 + $0xd8] sm:$0xf0]  ;;  %v4380_v35 = vor.u32 %v4851_v34, %v4377_v37  ;;  %v4281_v21 = vld [vmem:[%s7048_s5 + $0x4c8] sm:$0xf0] }
  0xeb   :  { %v3780_v28 = vor.u32 %v4701_v26, %v3777_v27  ;;  %v4257_v26 = vld [vmem:[%s7048_s5 + $0x498] sm:$0xf0] }
  0xec   :  { %v4260_v27 = vor.u32 %v4821_v24, %v4257_v26  ;;  %v4759_v26 = vld [vmem:[%s7048_s5 + $0x28c] sm:$0xf0] }
  0xed   :  { %2253 = vmatpush.bf16.msra.mxu0 %v3728_v32  ;;  %2267 = vmatpush.bf16.msra.mxu1 %v3920_v33  ;;  %v4803_v32 = vld [vmem:[%s7048_s5 + $0x3f4] sm:$0xf]  ;;  %v4185_v33 = vld [vmem:[%s7048_s5 + $0x408] sm:$0xf0] }
  0xee   :  { %2281 = vmatpush.bf16.msra.mxu2 %v4112_v38  ;;  %2295 = vmatpush.bf16.msra.mxu3 %v4304_v39  ;;  %v4188_v36 = vor.u32 %v4803_v32, %v4185_v33  ;;  %v4695_v38 = vld [vmem:[%s7048_s5 + $0x94] sm:$0xf]  ;;  %v3753_v39 = vld [vmem:[%s7048_s5 + $0xa8] sm:$0xf0] }
  0xef   :  { %v3756_v41 = vor.u32 %v4695_v38, %v3753_v39 }
  0xf1   :  { %2254 = vmatpush.bf16.msra.mxu0 %v3704_v45  ;;  %2268 = vmatpush.bf16.msra.mxu1 %v3896_v46  ;;  %v4161_v45 = vld [vmem:[%s7048_s5 + $0x3d8] sm:$0xf0] }
  0xf2   :  { %2282 = vmatpush.bf16.msra.mxu2 %v4088_v53  ;;  %2296 = vmatpush.bf16.msra.mxu3 %v4280_v54  ;;  %v4164_v46 = vor.u32 %v4797_v44, %v4161_v45  ;;  %v3732_v53 = vor.u32 %v4689_v50, %v3729_v51  ;;  %v3921_v54 = vld [vmem:[%s7048_s5 + $0x1f8] sm:$0xf0]  ;;  %v3855_v50 = vld [vmem:[%s7048_s5 + $0x158] sm:$0xf] }
  0xf3   :  { %v3924_v55 = vor.u32 %v4737_v52, %v3921_v54  ;;  %v4723_v52 = vld [vmem:[%s7048_s5 + $0x16c] sm:$0xf0] }
  0xf4   :  { %v4771_v54 = vld [vmem:[%s7048_s5 + $0x2ec] sm:$0xf0] }
  0xf5   :  { %2255 = vmatpush.bf16.msra.mxu0 %v3680_v61  ;;  %2269 = vmatpush.bf16.msra.mxu1 %v3872_v62  ;;  %v4332_v61 = vor.u32 %v4839_v58, %v4329_v60  ;;  %v4683_v62 = vld [vmem:[%s7048_s5 + $0x34] sm:$0xf] }
  0xf6   :  { %2283 = vmatpush.bf16.msra.mxu2 %v4064_v8  ;;  %2297 = vmatpush.bf16.msra.mxu3 %v4256_v9  ;;  %v3708_v1 = vor.u32 %v4683_v62, %v3705_v63  ;;  %v4305_v8 = vld [vmem:[%s7048_s5 + $0x4f8] sm:$0xf0] }
  0xf7   :  { %v4308_v9 = vor.u32 %v4833_v6, %v4305_v8  ;;  %v4717_v6 = vld [vmem:[%s7048_s5 + $0x13c] sm:$0xf0] }
  0xf9   :  { %2304 = vmatpush.bf16.msrb.mxu0 %v3852_v2  ;;  %2318 = vmatpush.bf16.msrb.mxu1 %v4044_v3  ;;  %v3897_v2 = vld [vmem:[%s7048_s5 + $0x1c8] sm:$0xf0] }
  0xfa   :  { %2332 = vmatpush.bf16.msrb.mxu2 %v4236_v10  ;;  %2346 = vmatpush.bf16.msrb.mxu3 %v4428_v12  ;;  %v3900_v3 = vor.u32 %v4731_v0, %v3897_v2  ;;  %v4677_v10 = vld [vmem:[%s7048_s5 + $0x4] sm:$0xf]  ;;  %v3681_v12 = vld [vmem:[%s7048_s5 + $0x18] sm:$0xf0] }
  0xfd   :  { %2305 = vmatpush.bf16.msrb.mxu0 %v3828_v13  ;;  %2319 = vmatpush.bf16.msrb.mxu1 %v4020_v14  ;;  %v3684_v13 = vor.u32 %v4677_v10, %v3681_v12  ;;  %v4725_v14 = vld [vmem:[%s7048_s5 + $0x184] sm:$0xf]  ;;  %v4023_v10 = vld [vmem:[%s7048_s5 + $0x2a8] sm:$0xf]  ;;  %v4765_v12 = vld [vmem:[%s7048_s5 + $0x2bc] sm:$0xf0] }
  0xfe   :  { %2333 = vmatpush.bf16.msrb.mxu2 %v4212_v23  ;;  %2347 = vmatpush.bf16.msrb.mxu3 %v4404_v25  ;;  %v3876_v16 = vor.u32 %v4725_v14, %v3873_v15  ;;  %v4065_v23 = vld [vmem:[%s7048_s5 + $0x318] sm:$0xf0]  ;;  %v3832_v15 = vor.u32 %v4717_v6, %v3831_v5  ;;  %v4143_v5 = vld [vmem:[%s7048_s5 + $0x398] sm:$0xf]  ;;  %v4795_v6 = vld [vmem:[%s7048_s5 + $0x3ac] sm:$0xf0] }
  0xff   :  { %v4068_v25 = vor.u32 %v4773_v11, %v4065_v23 }
 0x101   :  { %2306 = vmatpush.bf16.msrb.mxu0 %v3804_v19  ;;  %2320 = vmatpush.bf16.msrb.mxu1 %v3996_v20  ;;  %v4827_v19 = vld [vmem:[%s7048_s5 + $0x4b4] sm:$0xf]  ;;  %v4092_v20 = vor.u32 %v4779_v17, %v4089_v18  ;;  %v4431_v17 = vld [vmem:[%s7048_s5 + $0x5d8] sm:$0xf]  ;;  %v4867_v18 = vld [vmem:[%s7048_s5 + $0x5ec] sm:$0xf0] }
 0x102   :  { %2334 = vmatpush.bf16.msrb.mxu2 %v4188_v36  ;;  %2348 = vmatpush.bf16.msrb.mxu3 %v4380_v35  ;;  %v4284_v22 = vor.u32 %v4827_v19, %v4281_v21  ;;  %v4024_v19 = vor.u32 %v4765_v12, %v4023_v10  ;;  %v4711_v21 = vld [vmem:[%s7048_s5 + $0x10c] sm:$0xf0]  ;;  %v3711_v12 = vld [vmem:[%s7048_s5 + $0x38] sm:$0xf] }
 0x105   :  { %2307 = vmatpush.bf16.msrb.mxu0 %v3780_v28  ;;  %2321 = vmatpush.bf16.msrb.mxu1 %v3972_v31  ;;  %v744_v28 = vld [vmem:[%s7049_s4] sm:$0xff] }
 0x106   :  { %2335 = vmatpush.bf16.msrb.mxu2 %v4164_v46  ;;  %2349 = vmatpush.bf16.msrb.mxu3 %v4356_v49  ;;  %v746_v29 = vperm.slane %v744_v28, 0  ;;  %v747_v30 = vperm.slane %v744_v28, 1  ;;  %v748_v36 = vperm.slane %v744_v28, 2  ;;  %v749_v37 = vperm.slane %v744_v28, 3 }
 0x107   :  { %v4432_v28 = vor.u32 %v4867_v18, %v4431_v17  ;;  %v4119_v18 = vld [vmem:[%s7048_s5 + $0x368] sm:$0xf] }
 0x109   :  { %2308 = vmatpush.bf16.msrb.mxu0 %v3756_v41  ;;  %2322 = vmatpush.bf16.msrb.mxu1 %v3948_v43 }
 0x10a   :  { %2336 = vmatpush.bf16.msrb.mxu2 %v4140_v59  ;;  %2350 = vmatpush.bf16.msrb.mxu3 %v4332_v61 }
 0x10d   :  { %2309 = vmatpush.bf16.msrb.mxu0 %v3732_v53  ;;  %2323 = vmatpush.bf16.msrb.mxu1 %v3924_v55  ;;  %v4047_v53 = vld [vmem:[%s7048_s5 + $0x2d8] sm:$0xf] }
 0x10e   :  { %2337 = vmatpush.bf16.msrb.mxu2 %v4116_v7  ;;  %2351 = vmatpush.bf16.msrb.mxu3 %v4308_v9  ;;  %v4048_v2 = vor.u32 %v4771_v54, %v4047_v53 }
 0x111   :  { %2310 = vmatpush.bf16.msrb.mxu0 %v3708_v1  ;;  %2324 = vmatpush.bf16.msrb.mxu1 %v3900_v3  ;;  %v3856_v1 = vor.u32 %v4723_v52, %v3855_v50  ;;  %v4699_v50 = vld [vmem:[%s7048_s5 + $0xac] sm:$0xf0] }
 0x112   :  { %2338 = vmatpush.bf16.msrb.mxu2 %v4092_v20  ;;  %2352 = vmatpush.bf16.msrb.mxu3 %v4284_v22  ;;  %v3807_v20 = vld [vmem:[%s7048_s5 + $0xf8] sm:$0xf]  ;;  %v4747_v52 = vld [vmem:[%s7048_s5 + $0x22c] sm:$0xf0] }
 0x115   :  { %2311 = vmatpush.bf16.msrb.mxu0 %v3684_v13  ;;  %2325 = vmatpush.bf16.msrb.mxu1 %v3876_v16  ;;  %v4239_v13 = vld [vmem:[%s7048_s5 + $0x458] sm:$0xf]  ;;  %v4819_v16 = vld [vmem:[%s7048_s5 + $0x46c] sm:$0xf0] }
 0x116   :  { %2339 = vmatpush.bf16.msrb.mxu2 %v4068_v25  ;;  %2353 = vmatpush.bf16.msrb.mxu3 %v4260_v27  ;;  %v3999_v25 = vld [vmem:[%s7048_s5 + $0x278] sm:$0xf]  ;;  %v4240_v27 = vor.u32 %v4819_v16, %v4239_v13  ;;  %v4687_v13 = vld [vmem:[%s7048_s5 + $0x4c] sm:$0xf0]  ;;  %v4144_v16 = vor.u32 %v4795_v6, %v4143_v5  ;;  %v4810_v5 = vld [vmem:[%s7048_s5 + $0x42c] sm:$0xf] }
 0x117   :  { %v4217_v6 = vld [vmem:[%s7048_s5 + $0x440] sm:$0xf0] }
 0x154   :  { %v935_v31 = vpop.f32.mrf.mxu0  ;;  %v949_v32 = vpop.f32.mrf.mxu1 }
 0x155   :  { %v936_v33 = vadd.f32 %v935_v31, %v746_v29  ;;  %v950_v34 = vadd.f32 %v949_v32, %v747_v30  ;;  %v3808_v32 = vor.u32 %v4711_v21, %v3807_v20  ;;  %v4311_v20 = vld [vmem:[%s7048_s5 + $0x4e8] sm:$0xf]  ;;  %v4837_v21 = vld [vmem:[%s7048_s5 + $0x4fc] sm:$0xf0] }
 0x157   :  { %v1038_v35 = vmax.f32 %v936_v33, 0.0  ;;  %v1039_v38 = vmax.f32 %v950_v34, 0.0  ;;  %v4813_v33 = vld [vmem:[%s7048_s5 + $0x43c] sm:$0xf0]  ;;  %v4407_v34 = vld [vmem:[%s7048_s5 + $0x5a8] sm:$0xf] }
 0x159   :  { %v1054_v47 = vpack.c.bf16 %v1039_v38, %v1038_v35  ;;  %v3783_v35 = vld [vmem:[%s7048_s5 + $0xc8] sm:$0xf]  ;;  %v4705_v38 = vld [vmem:[%s7048_s5 + $0xdc] sm:$0xf0] }
 0x15b   :  { %v963_v39 = vpop.f32.mrf.mxu2  ;;  %v977_v40 = vpop.f32.mrf.mxu3  ;;  %v1272_v57 = vunpack.c.l.b16 %v1054_v47  ;;  %v1273_v58 = vunpack.c.h.b16 %v1054_v47  ;;  %v4855_v47 = vld [vmem:[%s7048_s5 + $0x58c] sm:$0xf0] }
 0x15c   :  { %v937_v41 = vpop.f32.mrf.mxu0  ;;  %v951_v42 = vpop.f32.mrf.mxu1  ;;  %v964_v45 = vadd.f32 %v963_v39, %v748_v36  ;;  %v978_v46 = vadd.f32 %v977_v40, %v749_v37  ;;  %v3975_v39 = vld [vmem:[%s7048_s5 + $0x248] sm:$0xf]  ;;  %v4753_v40 = vld [vmem:[%s7048_s5 + $0x25c] sm:$0xf0] }
 0x15d   :  { %v938_v43 = vadd.f32 %v937_v41, %v746_v29  ;;  %v952_v44 = vadd.f32 %v951_v42, %v747_v30  ;;  %v4215_v29 = vld [vmem:[%s7048_s5 + $0x428] sm:$0xf] }
 0x15e   :  { %v1040_v55 = vmax.f32 %v964_v45, 0.0  ;;  %v1041_v56 = vmax.f32 %v978_v46, 0.0  ;;  %v4216_v41 = vor.u32 %v4813_v33, %v4215_v29  ;;  %v4807_v45 = vld [vmem:[%s7048_s5 + $0x40c] sm:$0xf0]  ;;  %v4383_v46 = vld [vmem:[%s7048_s5 + $0x578] sm:$0xf] }
 0x15f   :  { %v1046_v48 = vmax.f32 %v938_v43, 0.0  ;;  %v1047_v49 = vmax.f32 %v952_v44, 0.0  ;;  %v4191_v43 = vld [vmem:[%s7048_s5 + $0x3f8] sm:$0xf]  ;;  %v3784_v44 = vor.u32 %v4705_v38, %v3783_v35  ;;  %v4384_v54 = vor.u32 %v4855_v47, %v4383_v46  ;;  %v4768_v33 = vld [vmem:[%s7048_s5 + $0x2dc] sm:$0xf] }
 0x160   :  { %v1055_v7 = vpack.c.bf16 %v1041_v56, %v1040_v55  ;;  %v4192_v53 = vor.u32 %v4807_v45, %v4191_v43  ;;  %v4167_v55 = vld [vmem:[%s7048_s5 + $0x3c8] sm:$0xf]  ;;  %v4801_v56 = vld [vmem:[%s7048_s5 + $0x3dc] sm:$0xf0]  ;;  %v4287_v35 = vld [vmem:[%s7048_s5 + $0x4b8] sm:$0xf] }
 0x161   :  { %v1058_v51 = vpack.c.bf16 %v1047_v49, %v1046_v48  ;;  %v3976_v48 = vor.u32 %v4753_v40, %v3975_v39  ;;  %v3759_v49 = vld [vmem:[%s7048_s5 + $0x98] sm:$0xf]  ;;  %v4831_v38 = vld [vmem:[%s7048_s5 + $0x4cc] sm:$0xf0]  ;;  %v4714_v43 = vld [vmem:[%s7048_s5 + $0x12c] sm:$0xf] }
 0x162   :  { %v1274_v22 = vunpack.c.l.b16 %v1055_v7  ;;  %v1275_v11 = vunpack.c.h.b16 %v1055_v7  ;;  %v4335_v7 = vld [vmem:[%s7048_s5 + $0x518] sm:$0xf]  ;;  %v4762_v45 = vld [vmem:[%s7048_s5 + $0x2ac] sm:$0xf]  ;;  %v4288_v47 = vor.u32 %v4831_v38, %v4287_v35  ;;  %v3737_v38 = vld [vmem:[%s7048_s5 + $0x80] sm:$0xf0] }
 0x163   :  { %v1276_v59 = vunpack.c.l.b16 %v1058_v51  ;;  %v1277_v60 = vunpack.c.h.b16 %v1058_v51  ;;  %v965_v61 = vpop.f32.mrf.mxu2  ;;  %v979_v62 = vpop.f32.mrf.mxu3  ;;  %v3951_v51 = vld [vmem:[%s7048_s5 + $0x218] sm:$0xf]  ;;  %v4690_v35 = vld [vmem:[%s7048_s5 + $0x6c] sm:$0xf] }
 0x164   :  { %v966_v63 = vadd.f32 %v965_v61, %v748_v36  ;;  %v980_v0 = vadd.f32 %v979_v62, %v749_v37  ;;  %v4861_v36 = vld [vmem:[%s7048_s5 + $0x5bc] sm:$0xf0]  ;;  %v4000_v37 = vor.u32 %v4759_v26, %v3999_v25  ;;  %v3735_v61 = vld [vmem:[%s7048_s5 + $0x68] sm:$0xf] }
 0x165   :  { %v5857_v3 = vpack.c.b16 %v1276_v59, %v1272_v57  ;;  %v5859_v4 = vpack.c.b16 %v1277_v60, %v1273_v58  ;;  %v4408_v42 = vor.u32 %v4861_v36, %v4407_v34  ;;  %v4359_v57 = vld [vmem:[%s7048_s5 + $0x548] sm:$0xf]  ;;  %v4849_v58 = vld [vmem:[%s7048_s5 + $0x55c] sm:$0xf0]  ;;  %v3760_v59 = vor.u32 %v4699_v50, %v3759_v49  ;;  %v4049_v34 = vld [vmem:[%s7048_s5 + $0x2f0] sm:$0xf0] }
 0x166   :  { %v1048_v8 = vmax.f32 %v966_v63, 0.0  ;;  %v1049_v9 = vmax.f32 %v980_v0, 0.0  ;;  %v3952_v60 = vor.u32 %v4747_v52, %v3951_v51  ;;  %v4693_v62 = vld [vmem:[%s7048_s5 + $0x7c] sm:$0xf0]  ;;  %v3927_v63 = vld [vmem:[%s7048_s5 + $0x1e8] sm:$0xf] }
 0x167   :  { %2256 = vmatmul.bf16.vlgmr.msra.gmra.mxu0 %v5857_v3  ;;  %2270 = vmatmul.bf16.vlgmr.msra.gmra.mxu1 %v5859_v4  ;;  %v4741_v0 = vld [vmem:[%s7048_s5 + $0x1fc] sm:$0xf0]  ;;  %v3879_v25 = vld [vmem:[%s7048_s5 + $0x188] sm:$0xf]  ;;  %v4095_v36 = vld [vmem:[%s7048_s5 + $0x338] sm:$0xf] }
 0x168   :  { %v1059_v14 = vpack.c.bf16 %v1049_v9, %v1048_v8  ;;  %2360 = vmatpush.bf16.msra.mxu0 %v3856_v1  ;;  %2374 = vmatpush.bf16.msra.mxu1 %v4048_v2  ;;  %v4168_v1 = vor.u32 %v4801_v56, %v4167_v55  ;;  %v4360_v2 = vor.u32 %v4849_v58, %v4359_v57  ;;  %v4843_v8 = vld [vmem:[%s7048_s5 + $0x52c] sm:$0xf0]  ;;  %v4729_v26 = vld [vmem:[%s7048_s5 + $0x19c] sm:$0xf0]  ;;  %v4071_v49 = vld [vmem:[%s7048_s5 + $0x308] sm:$0xf] }
 0x169   :  { %v3736_v9 = vor.u32 %v4693_v62, %v3735_v61  ;;  %v3928_v10 = vor.u32 %v4741_v0, %v3927_v63  ;;  %v4336_v17 = vor.u32 %v4843_v8, %v4335_v7  ;;  %v3880_v40 = vor.u32 %v4729_v26, %v3879_v25  ;;  %v4777_v50 = vld [vmem:[%s7048_s5 + $0x31c] sm:$0xf0]  ;;  %v4263_v51 = vld [vmem:[%s7048_s5 + $0x488] sm:$0xf]  ;;  %v4864_v55 = vld [vmem:[%s7048_s5 + $0x5dc] sm:$0xf] }
 0x16a   :  { %v1278_v23 = vunpack.c.l.b16 %v1059_v14  ;;  %v1279_v24 = vunpack.c.h.b16 %v1059_v14  ;;  %v3903_v14 = vld [vmem:[%s7048_s5 + $0x1b8] sm:$0xf]  ;;  %v4825_v52 = vld [vmem:[%s7048_s5 + $0x49c] sm:$0xf0]  ;;  %v4433_v56 = vld [vmem:[%s7048_s5 + $0x5f0] sm:$0xf0] }
 0x16b   :  { %v4264_v61 = vor.u32 %v4825_v52, %v4263_v51  ;;  %v3809_v62 = vld [vmem:[%s7048_s5 + $0x110] sm:$0xf0]  ;;  %v4756_v63 = vld [vmem:[%s7048_s5 + $0x27c] sm:$0xf]  ;;  %v4858_v7 = vld [vmem:[%s7048_s5 + $0x5ac] sm:$0xf] }
 0x16c   :  { %v5902_v30 = vpack.c.b16 %v1278_v23, %v1274_v22  ;;  %v5904_v31 = vpack.c.b16 %v1279_v24, %v1275_v11  ;;  %2361 = vmatpush.bf16.msra.mxu0 %v3832_v15  ;;  %2375 = vmatpush.bf16.msra.mxu1 %v4024_v19  ;;  %v4735_v15 = vld [vmem:[%s7048_s5 + $0x1cc] sm:$0xf0]  ;;  %v4789_v19 = vld [vmem:[%s7048_s5 + $0x37c] sm:$0xf0]  ;;  %v3712_v22 = vor.u32 %v4687_v13, %v3711_v12  ;;  %v3687_v23 = vld [vmem:[%s7048_s5 + $0x8] sm:$0xf] }
 0x16d   :  { %v3904_v11 = vor.u32 %v4735_v15, %v3903_v14  ;;  %v4681_v24 = vld [vmem:[%s7048_s5 + $0x1c] sm:$0xf0]  ;;  %v4120_v29 = vor.u32 %v4789_v19, %v4119_v18  ;;  %v4001_v0 = vld [vmem:[%s7048_s5 + $0x290] sm:$0xf0]  ;;  %v4409_v8 = vld [vmem:[%s7048_s5 + $0x5c0] sm:$0xf0] }
 0x16e   :  { %2284 = vmatmul.bf16.vlgmr.msra.gmra.mxu2 %v5902_v30  ;;  %2298 = vmatmul.bf16.vlgmr.msra.gmra.mxu3 %v5904_v31  ;;  %v3688_v39 = vor.u32 %v4681_v24, %v3687_v23  ;;  %v4702_v12 = vld [vmem:[%s7048_s5 + $0xcc] sm:$0xf]  ;;  %v3785_v13 = vld [vmem:[%s7048_s5 + $0xe0] sm:$0xf0]  ;;  %v4804_v18 = vld [vmem:[%s7048_s5 + $0x3fc] sm:$0xf] }
 0x16f   :  { %2388 = vmatpush.bf16.msra.mxu2 %v4240_v27  ;;  %2402 = vmatpush.bf16.msra.mxu3 %v4432_v28  ;;  %v4720_v27 = vld [vmem:[%s7048_s5 + $0x15c] sm:$0xf]  ;;  %v3857_v28 = vld [vmem:[%s7048_s5 + $0x170] sm:$0xf0]  ;;  %v4750_v14 = vld [vmem:[%s7048_s5 + $0x24c] sm:$0xf] }
 0x170   :  { %2362 = vmatpush.bf16.msra.mxu0 %v3808_v32  ;;  %2376 = vmatpush.bf16.msra.mxu1 %v4000_v37  ;;  %v4312_v32 = vor.u32 %v4837_v21, %v4311_v20  ;;  %v4783_v37 = vld [vmem:[%s7048_s5 + $0x34c] sm:$0xf0]  ;;  %v3977_v15 = vld [vmem:[%s7048_s5 + $0x260] sm:$0xf0]  ;;  %v4193_v19 = vld [vmem:[%s7048_s5 + $0x410] sm:$0xf0] }
 0x171   :  { %v4096_v46 = vor.u32 %v4783_v37, %v4095_v36  ;;  %v4852_v20 = vld [vmem:[%s7048_s5 + $0x57c] sm:$0xf]  ;;  %v4385_v21 = vld [vmem:[%s7048_s5 + $0x590] sm:$0xf0] }
 0x172   :  { %v4696_v23 = vld [vmem:[%s7048_s5 + $0x9c] sm:$0xf]  ;;  %v3761_v24 = vld [vmem:[%s7048_s5 + $0xb0] sm:$0xf0] }
 0x173   :  { %2389 = vmatpush.bf16.msra.mxu2 %v4216_v41  ;;  %2403 = vmatpush.bf16.msra.mxu3 %v4408_v42  ;;  %v3860_v41 = vor.u32 %v4720_v27, %v3857_v28  ;;  %v4052_v42 = vor.u32 %v4768_v33, %v4049_v34  ;;  %v4744_v25 = vld [vmem:[%s7048_s5 + $0x21c] sm:$0xf]  ;;  %v3953_v26 = vld [vmem:[%s7048_s5 + $0x230] sm:$0xf0]  ;;  %v4196_v27 = vor.u32 %v4804_v18, %v4193_v19  ;;  %v4846_v33 = vld [vmem:[%s7048_s5 + $0x54c] sm:$0xf] }
 0x174   :  { %2363 = vmatpush.bf16.msra.mxu0 %v3784_v44  ;;  %2377 = vmatpush.bf16.msra.mxu1 %v3976_v48  ;;  %v3833_v44 = vld [vmem:[%s7048_s5 + $0x140] sm:$0xf0]  ;;  %v4388_v28 = vor.u32 %v4852_v20, %v4385_v21  ;;  %v3764_v36 = vor.u32 %v4696_v23, %v3761_v24  ;;  %v3956_v37 = vor.u32 %v4744_v25, %v3953_v26  ;;  %v4732_v51 = vld [vmem:[%s7048_s5 + $0x1bc] sm:$0xf]  ;;  %v3905_v52 = vld [vmem:[%s7048_s5 + $0x1d0] sm:$0xf0] }
 0x175   :  { %v4025_v48 = vld [vmem:[%s7048_s5 + $0x2c0] sm:$0xf0]  ;;  %v3836_v57 = vor.u32 %v4714_v43, %v3833_v44  ;;  %v4792_v43 = vld [vmem:[%s7048_s5 + $0x39c] sm:$0xf]  ;;  %v4145_v44 = vld [vmem:[%s7048_s5 + $0x3b0] sm:$0xf0] }
 0x176   :  { %v4028_v58 = vor.u32 %v4762_v45, %v4025_v48  ;;  %v4361_v34 = vld [vmem:[%s7048_s5 + $0x560] sm:$0xf0]  ;;  %v4840_v45 = vld [vmem:[%s7048_s5 + $0x51c] sm:$0xf]  ;;  %v3839_v18 = vld [vmem:[%s7048_s5 + $0x130] sm:$0xf] }
 0x177   :  { %2390 = vmatpush.bf16.msra.mxu2 %v4192_v53  ;;  %2404 = vmatpush.bf16.msra.mxu3 %v4384_v54  ;;  %v4816_v53 = vld [vmem:[%s7048_s5 + $0x45c] sm:$0xf]  ;;  %v4241_v54 = vld [vmem:[%s7048_s5 + $0x470] sm:$0xf0]  ;;  %v4718_v19 = vld [vmem:[%s7048_s5 + $0x144] sm:$0xf0] }
 0x178   :  { %2312 = vmatmul.bf16.vlgmr.msrb.gmra.mxu0 %v5857_v3  ;;  %2326 = vmatmul.bf16.vlgmr.msrb.gmra.mxu1 %v5859_v4  ;;  %v4031_v20 = vld [vmem:[%s7048_s5 + $0x2b0] sm:$0xf]  ;;  %v4774_v23 = vld [vmem:[%s7048_s5 + $0x30c] sm:$0xf]  ;;  %v4073_v24 = vld [vmem:[%s7048_s5 + $0x320] sm:$0xf0] }
 0x179   :  { %2364 = vmatpush.bf16.msra.mxu0 %v3760_v59  ;;  %2378 = vmatpush.bf16.msra.mxu1 %v3952_v60  ;;  %v4708_v59 = vld [vmem:[%s7048_s5 + $0xfc] sm:$0xf]  ;;  %v4072_v60 = vor.u32 %v4777_v50, %v4071_v49  ;;  %v3713_v50 = vld [vmem:[%s7048_s5 + $0x50] sm:$0xf0]  ;;  %v4822_v25 = vld [vmem:[%s7048_s5 + $0x48c] sm:$0xf] }
 0x17a   :  { %v4684_v49 = vld [vmem:[%s7048_s5 + $0x3c] sm:$0xf]  ;;  %v4265_v26 = vld [vmem:[%s7048_s5 + $0x4a0] sm:$0xf0] }
 0x17b   :  { %2391 = vmatpush.bf16.msra.mxu2 %v4168_v1  ;;  %2405 = vmatpush.bf16.msra.mxu3 %v4360_v2  ;;  %v4244_v1 = vor.u32 %v4816_v53, %v4241_v54  ;;  %v4436_v2 = vor.u32 %v4864_v55, %v4433_v56  ;;  %v4148_v53 = vor.u32 %v4792_v43, %v4145_v44  ;;  %v4786_v55 = vld [vmem:[%s7048_s5 + $0x36c] sm:$0xf]  ;;  %v4121_v56 = vld [vmem:[%s7048_s5 + $0x380] sm:$0xf0]  ;;  %v4223_v43 = vld [vmem:[%s7048_s5 + $0x430] sm:$0xf] }
 0x17c   :  { %v4814_v44 = vld [vmem:[%s7048_s5 + $0x444] sm:$0xf0] }
 0x17d   :  { %2365 = vmatpush.bf16.msra.mxu0 %v3736_v9  ;;  %2379 = vmatpush.bf16.msra.mxu1 %v3928_v10  ;;  %v3812_v9 = vor.u32 %v4708_v59, %v3809_v62  ;;  %v4004_v10 = vor.u32 %v4756_v63, %v4001_v0  ;;  %v3716_v59 = vor.u32 %v4684_v49, %v3713_v50  ;;  %v3689_v62 = vld [vmem:[%s7048_s5 + $0x20] sm:$0xf0]  ;;  %v4726_v63 = vld [vmem:[%s7048_s5 + $0x18c] sm:$0xf]  ;;  %v3791_v49 = vld [vmem:[%s7048_s5 + $0xd0] sm:$0xf] }
 0x17e   :  { %2340 = vmatmul.bf16.vlgmr.msrb.gmra.mxu2 %v5902_v30  ;;  %2354 = vmatmul.bf16.vlgmr.msrb.gmra.mxu3 %v5904_v31  ;;  %v3881_v0 = vld [vmem:[%s7048_s5 + $0x1a0] sm:$0xf0]  ;;  %v4706_v50 = vld [vmem:[%s7048_s5 + $0xe4] sm:$0xf0] }
 0x17f   :  { %2392 = vmatpush.bf16.msra.mxu2 %v4144_v16  ;;  %2406 = vmatpush.bf16.msra.mxu3 %v4336_v17  ;;  %v4220_v16 = vor.u32 %v4810_v5, %v4217_v6  ;;  %v4412_v17 = vor.u32 %v4858_v7, %v4409_v8  ;;  %v4124_v5 = vor.u32 %v4786_v55, %v4121_v56  ;;  %v4055_v7 = vld [vmem:[%s7048_s5 + $0x2e0] sm:$0xf]  ;;  %v4772_v8 = vld [vmem:[%s7048_s5 + $0x2f4] sm:$0xf0] }
 0x180   :  { %v4199_v55 = vld [vmem:[%s7048_s5 + $0x400] sm:$0xf]  ;;  %v4808_v56 = vld [vmem:[%s7048_s5 + $0x414] sm:$0xf0] }
 0x181   :  { %2366 = vmatpush.bf16.msra.mxu0 %v3712_v22  ;;  %2380 = vmatpush.bf16.msra.mxu1 %v3904_v11  ;;  %v3788_v22 = vor.u32 %v4702_v12, %v3785_v13  ;;  %v3980_v11 = vor.u32 %v4750_v14, %v3977_v15  ;;  %v4828_v12 = vld [vmem:[%s7048_s5 + $0x4bc] sm:$0xf]  ;;  %v4289_v13 = vld [vmem:[%s7048_s5 + $0x4d0] sm:$0xf0]  ;;  %v3884_v15 = vor.u32 %v4726_v63, %v3881_v0 }
 0x182   :  { %v4200_v63 = vor.u32 %v4808_v56, %v4199_v55  ;;  %v4715_v55 = vld [vmem:[%s7048_s5 + $0x134] sm:$0xf]  ;;  %v3841_v56 = vld [vmem:[%s7048_s5 + $0x148] sm:$0xf0] }
 0x183   :  { %2393 = vmatpush.bf16.msra.mxu2 %v4120_v29  ;;  %2407 = vmatpush.bf16.msra.mxu3 %v4312_v32  ;;  %v4798_v29 = vld [vmem:[%s7048_s5 + $0x3cc] sm:$0xf]  ;;  %v4169_v32 = vld [vmem:[%s7048_s5 + $0x3e0] sm:$0xf0] }
 0x185   :  { %2367 = vmatpush.bf16.msra.mxu0 %v3688_v39  ;;  %2381 = vmatpush.bf16.msra.mxu1 %v3880_v40  ;;  %v4738_v39 = vld [vmem:[%s7048_s5 + $0x1ec] sm:$0xf]  ;;  %v3929_v40 = vld [vmem:[%s7048_s5 + $0x200] sm:$0xf0] }
 0x186   :  { %v3932_v48 = vor.u32 %v4738_v39, %v3929_v40 }
 0x187   :  { %2394 = vmatpush.bf16.msra.mxu2 %v4096_v46  ;;  %2408 = vmatpush.bf16.msra.mxu3 %v4288_v47  ;;  %v4337_v46 = vld [vmem:[%s7048_s5 + $0x530] sm:$0xf0]  ;;  %v3740_v47 = vor.u32 %v4690_v35, %v3737_v38  ;;  %v3815_v35 = vld [vmem:[%s7048_s5 + $0x100] sm:$0xf]  ;;  %v4712_v38 = vld [vmem:[%s7048_s5 + $0x114] sm:$0xf0] }
 0x188   :  { %2368 = vmatmul.bf16.vlgmr.msra.gmra.mxu0 %v5857_v3  ;;  %2382 = vmatmul.bf16.vlgmr.msra.gmra.mxu1 %v5859_v4  ;;  %v4340_v54 = vor.u32 %v4840_v45, %v4337_v46  ;;  %v4415_v45 = vld [vmem:[%s7048_s5 + $0x5b0] sm:$0xf]  ;;  %v4862_v46 = vld [vmem:[%s7048_s5 + $0x5c4] sm:$0xf0] }
 0x189   :  { %2416 = vmatpush.bf16.msrb.mxu0 %v3860_v41  ;;  %2430 = vmatpush.bf16.msrb.mxu1 %v4052_v42  ;;  %v4172_v41 = vor.u32 %v4798_v29, %v4169_v32  ;;  %v4364_v42 = vor.u32 %v4846_v33, %v4361_v34  ;;  %v4439_v29 = vld [vmem:[%s7048_s5 + $0x5e0] sm:$0xf]  ;;  %v4868_v32 = vld [vmem:[%s7048_s5 + $0x5f4] sm:$0xf0]  ;;  %v3840_v33 = vor.u32 %v4718_v19, %v3839_v18 }
 0x18a   :  { %v4440_v40 = vor.u32 %v4868_v32, %v4439_v29  ;;  %v4151_v18 = vld [vmem:[%s7048_s5 + $0x3a0] sm:$0xf]  ;;  %v4796_v19 = vld [vmem:[%s7048_s5 + $0x3b4] sm:$0xf0]  ;;  %v4127_v29 = vld [vmem:[%s7048_s5 + $0x370] sm:$0xf] }
 0x18b   :  { %2395 = vmatpush.bf16.msra.mxu2 %v4072_v60  ;;  %2409 = vmatpush.bf16.msra.mxu3 %v4264_v61  ;;  %v3908_v60 = vor.u32 %v4732_v51, %v3905_v52  ;;  %v4678_v61 = vld [vmem:[%s7048_s5 + $0xc] sm:$0xf]  ;;  %v4224_v51 = vor.u32 %v4814_v44, %v4223_v43  ;;  %v4416_v52 = vor.u32 %v4862_v46, %v4415_v45  ;;  %v4790_v32 = vld [vmem:[%s7048_s5 + $0x384] sm:$0xf0]  ;;  %v4721_v43 = vld [vmem:[%s7048_s5 + $0x164] sm:$0xf] }
 0x18c   :  { %v3692_v14 = vor.u32 %v4678_v61, %v3689_v62  ;;  %v3767_v61 = vld [vmem:[%s7048_s5 + $0xa0] sm:$0xf]  ;;  %v4700_v62 = vld [vmem:[%s7048_s5 + $0xb4] sm:$0xf0]  ;;  %v3865_v44 = vld [vmem:[%s7048_s5 + $0x178] sm:$0xf0] }
 0x18d   :  { %2417 = vmatpush.bf16.msrb.mxu0 %v3836_v57  ;;  %2431 = vmatpush.bf16.msrb.mxu1 %v4028_v58  ;;  %v4834_v57 = vld [vmem:[%s7048_s5 + $0x4ec] sm:$0xf]  ;;  %v4313_v58 = vld [vmem:[%s7048_s5 + $0x500] sm:$0xf0]  ;;  %v4057_v46 = vld [vmem:[%s7048_s5 + $0x2f8] sm:$0xf0] }
 0x18e   :  { %2396 = vmatmul.bf16.vlgmr.msra.gmra.mxu2 %v5902_v30  ;;  %2410 = vmatmul.bf16.vlgmr.msra.gmra.mxu3 %v5904_v31  ;;  %v4316_v6 = vor.u32 %v4834_v57, %v4313_v58  ;;  %v4391_v57 = vld [vmem:[%s7048_s5 + $0x580] sm:$0xf]  ;;  %v4856_v58 = vld [vmem:[%s7048_s5 + $0x594] sm:$0xf0]  ;;  %v4769_v45 = vld [vmem:[%s7048_s5 + $0x2e4] sm:$0xf] }
 0x18f   :  { %2444 = vmatpush.bf16.msrb.mxu2 %v4244_v1  ;;  %2458 = vmatpush.bf16.msrb.mxu3 %v4436_v2  ;;  %v3863_v1 = vld [vmem:[%s7048_s5 + $0x160] sm:$0xf]  ;;  %v4724_v2 = vld [vmem:[%s7048_s5 + $0x174] sm:$0xf0]  ;;  %v4392_v0 = vor.u32 %v4856_v58, %v4391_v57  ;;  %v4763_v57 = vld [vmem:[%s7048_s5 + $0x2b4] sm:$0xf] }
 0x191   :  { %2418 = vmatpush.bf16.msrb.mxu0 %v3812_v9  ;;  %2432 = vmatpush.bf16.msrb.mxu1 %v4004_v10  ;;  %v4780_v9 = vld [vmem:[%s7048_s5 + $0x33c] sm:$0xf]  ;;  %v4097_v10 = vld [vmem:[%s7048_s5 + $0x350] sm:$0xf0] }
 0x192   :  { %v4100_v21 = vor.u32 %v4780_v9, %v4097_v10  ;;  %v3768_v9 = vor.u32 %v4700_v62, %v3767_v61  ;;  %v4079_v61 = vld [vmem:[%s7048_s5 + $0x310] sm:$0xf]  ;;  %v4778_v62 = vld [vmem:[%s7048_s5 + $0x324] sm:$0xf0] }
 0x193   :  { %2445 = vmatpush.bf16.msrb.mxu2 %v4220_v16  ;;  %2459 = vmatpush.bf16.msrb.mxu3 %v4412_v17  ;;  %v3864_v16 = vor.u32 %v4724_v2, %v3863_v1  ;;  %v4056_v17 = vor.u32 %v4772_v8, %v4055_v7  ;;  %v3959_v1 = vld [vmem:[%s7048_s5 + $0x220] sm:$0xf]  ;;  %v4748_v2 = vld [vmem:[%s7048_s5 + $0x234] sm:$0xf0]  ;;  %v4367_v7 = vld [vmem:[%s7048_s5 + $0x550] sm:$0xf] }
 0x194   :  { %v4850_v8 = vld [vmem:[%s7048_s5 + $0x564] sm:$0xf0]  ;;  %v3960_v10 = vor.u32 %v4748_v2, %v3959_v1  ;;  %v4817_v1 = vld [vmem:[%s7048_s5 + $0x464] sm:$0xf]  ;;  %v4249_v2 = vld [vmem:[%s7048_s5 + $0x478] sm:$0xf0] }
 0x195   :  { %2419 = vmatpush.bf16.msrb.mxu0 %v3788_v22  ;;  %2433 = vmatpush.bf16.msrb.mxu1 %v3980_v11  ;;  %v4292_v22 = vor.u32 %v4828_v12, %v4289_v13  ;;  %v4766_v11 = vld [vmem:[%s7048_s5 + $0x2c4] sm:$0xf0]  ;;  %v3743_v12 = vld [vmem:[%s7048_s5 + $0x70] sm:$0xf] }
 0x196   :  { %v4032_v34 = vor.u32 %v4766_v11, %v4031_v20  ;;  %v4694_v13 = vld [vmem:[%s7048_s5 + $0x84] sm:$0xf0]  ;;  %v4343_v20 = vld [vmem:[%s7048_s5 + $0x520] sm:$0xf] }
 0x197   :  { %2446 = vmatpush.bf16.msrb.mxu2 %v4196_v27  ;;  %2460 = vmatpush.bf16.msrb.mxu3 %v4388_v28  ;;  %v4247_v27 = vld [vmem:[%s7048_s5 + $0x460] sm:$0xf]  ;;  %v4820_v28 = vld [vmem:[%s7048_s5 + $0x474] sm:$0xf0] }
 0x198   :  { %v4248_v39 = vor.u32 %v4820_v28, %v4247_v27  ;;  %v3911_v27 = vld [vmem:[%s7048_s5 + $0x1c0] sm:$0xf]  ;;  %v4736_v28 = vld [vmem:[%s7048_s5 + $0x1d4] sm:$0xf0] }
 0x199   :  { %2420 = vmatpush.bf16.msrb.mxu0 %v3764_v36  ;;  %2434 = vmatpush.bf16.msrb.mxu1 %v3956_v37  ;;  %v4076_v36 = vor.u32 %v4774_v23, %v4073_v24  ;;  %v4268_v37 = vor.u32 %v4822_v25, %v4265_v26  ;;  %v3719_v23 = vld [vmem:[%s7048_s5 + $0x40] sm:$0xf]  ;;  %v4688_v24 = vld [vmem:[%s7048_s5 + $0x54] sm:$0xf0]  ;;  %v4152_v25 = vor.u32 %v4796_v19, %v4151_v18  ;;  %v4811_v18 = vld [vmem:[%s7048_s5 + $0x434] sm:$0xf] }
 0x19a   :  { %v4225_v19 = vld [vmem:[%s7048_s5 + $0x448] sm:$0xf0] }
 0x19b   :  { %2447 = vmatpush.bf16.msrb.mxu2 %v4172_v41  ;;  %2461 = vmatpush.bf16.msrb.mxu3 %v4364_v42  ;;  %v4007_v41 = vld [vmem:[%s7048_s5 + $0x280] sm:$0xf]  ;;  %v4760_v42 = vld [vmem:[%s7048_s5 + $0x294] sm:$0xf0] }
 0x19d   :  { %2421 = vmatpush.bf16.msrb.mxu0 %v3740_v47  ;;  %2435 = vmatpush.bf16.msrb.mxu1 %v3932_v48  ;;  %v3816_v47 = vor.u32 %v4712_v38, %v3815_v35  ;;  %v4008_v48 = vor.u32 %v4760_v42, %v4007_v41  ;;  %v3695_v35 = vld [vmem:[%s7048_s5 + $0x10] sm:$0xf]  ;;  %v4682_v38 = vld [vmem:[%s7048_s5 + $0x24] sm:$0xf0] }
 0x19e   :  { %v4730_v42 = vld [vmem:[%s7048_s5 + $0x1a4] sm:$0xf0] }
 0x19f   :  { %2448 = vmatpush.bf16.msrb.mxu2 %v4148_v53  ;;  %2462 = vmatpush.bf16.msrb.mxu3 %v4340_v54  ;;  %v3983_v53 = vld [vmem:[%s7048_s5 + $0x250] sm:$0xf]  ;;  %v4754_v54 = vld [vmem:[%s7048_s5 + $0x264] sm:$0xf0] }
 0x1a1   :  { %2422 = vmatpush.bf16.msrb.mxu0 %v3716_v59  ;;  %2436 = vmatpush.bf16.msrb.mxu1 %v3908_v60  ;;  %v3792_v59 = vor.u32 %v4706_v50, %v3791_v49  ;;  %v3984_v60 = vor.u32 %v4754_v54, %v3983_v53  ;;  %v4295_v49 = vld [vmem:[%s7048_s5 + $0x4c0] sm:$0xf]  ;;  %v4832_v50 = vld [vmem:[%s7048_s5 + $0x4d4] sm:$0xf0]  ;;  %v3868_v53 = vor.u32 %v4721_v43, %v3865_v44  ;;  %v4799_v43 = vld [vmem:[%s7048_s5 + $0x3d4] sm:$0xf] }
 0x1a2   :  { %v4060_v54 = vor.u32 %v4769_v45, %v4057_v46  ;;  %v4177_v44 = vld [vmem:[%s7048_s5 + $0x3e8] sm:$0xf0]  ;;  %v4847_v45 = vld [vmem:[%s7048_s5 + $0x554] sm:$0xf] }
 0x1a3   :  { %2449 = vmatpush.bf16.msrb.mxu2 %v4124_v5  ;;  %2463 = vmatpush.bf16.msrb.mxu3 %v4316_v6  ;;  %v4175_v5 = vld [vmem:[%s7048_s5 + $0x3d0] sm:$0xf]  ;;  %v4802_v6 = vld [vmem:[%s7048_s5 + $0x3e4] sm:$0xf0]  ;;  %v4369_v46 = vld [vmem:[%s7048_s5 + $0x568] sm:$0xf0] }
 0x1a5   :  { %2423 = vmatpush.bf16.msrb.mxu0 %v3692_v14  ;;  %2437 = vmatpush.bf16.msrb.mxu1 %v3884_v15  ;;  %v4176_v14 = vor.u32 %v4802_v6, %v4175_v5  ;;  %v4368_v15 = vor.u32 %v4850_v8, %v4367_v7  ;;  %v4865_v5 = vld [vmem:[%s7048_s5 + $0x5e4] sm:$0xf]  ;;  %v4441_v6 = vld [vmem:[%s7048_s5 + $0x5f8] sm:$0xf0]  ;;  %v3844_v7 = vor.u32 %v4715_v55, %v3841_v56 }
 0x1a6   :  { %v4793_v55 = vld [vmem:[%s7048_s5 + $0x3a4] sm:$0xf]  ;;  %v4153_v56 = vld [vmem:[%s7048_s5 + $0x3b8] sm:$0xf0] }
 0x1a7   :  { %2450 = vmatpush.bf16.msrb.mxu2 %v4100_v21  ;;  %2464 = vmatpush.bf16.msrb.mxu3 %v4292_v22  ;;  %v4844_v21 = vld [vmem:[%s7048_s5 + $0x534] sm:$0xf0]  ;;  %v3744_v22 = vor.u32 %v4694_v13, %v3743_v12  ;;  %v4709_v12 = vld [vmem:[%s7048_s5 + $0x104] sm:$0xf]  ;;  %v3817_v13 = vld [vmem:[%s7048_s5 + $0x118] sm:$0xf0] }
 0x1a8   :  { %2424 = vmatmul.bf16.vlgmr.msrb.gmra.mxu0 %v5857_v3  ;;  %2438 = vmatmul.bf16.vlgmr.msrb.gmra.mxu1 %v5859_v4  ;;  %v4344_v26 = vor.u32 %v4844_v21, %v4343_v20  ;;  %v4859_v20 = vld [vmem:[%s7048_s5 + $0x5b4] sm:$0xf]  ;;  %v4417_v21 = vld [vmem:[%s7048_s5 + $0x5c8] sm:$0xf0] }
 0x1a9   :  { %2472 = vmatpush.bf16.msra.mxu0 %v3864_v16  ;;  %2486 = vmatpush.bf16.msra.mxu1 %v4056_v17  ;;  %v3935_v16 = vld [vmem:[%s7048_s5 + $0x1f0] sm:$0xf]  ;;  %v4742_v17 = vld [vmem:[%s7048_s5 + $0x204] sm:$0xf0] }
 0x1aa   :  { %v3936_v11 = vor.u32 %v4742_v17, %v3935_v16  ;;  %v4757_v16 = vld [vmem:[%s7048_s5 + $0x284] sm:$0xf]  ;;  %v4009_v17 = vld [vmem:[%s7048_s5 + $0x298] sm:$0xf0] }
 0x1ab   :  { %2451 = vmatpush.bf16.msrb.mxu2 %v4076_v36  ;;  %2465 = vmatpush.bf16.msrb.mxu3 %v4268_v37  ;;  %v3720_v36 = vor.u32 %v4688_v24, %v3719_v23  ;;  %v3912_v37 = vor.u32 %v4736_v28, %v3911_v27  ;;  %v4703_v23 = vld [vmem:[%s7048_s5 + $0xd4] sm:$0xf]  ;;  %v3793_v24 = vld [vmem:[%s7048_s5 + $0xe8] sm:$0xf0] }
 0x1ac   :  { %v4751_v27 = vld [vmem:[%s7048_s5 + $0x254] sm:$0xf]  ;;  %v3985_v28 = vld [vmem:[%s7048_s5 + $0x268] sm:$0xf0] }
 0x1ad   :  { %2473 = vmatpush.bf16.msra.mxu0 %v3840_v33  ;;  %2487 = vmatpush.bf16.msra.mxu1 %v4032_v34  ;;  %v4319_v33 = vld [vmem:[%s7048_s5 + $0x4f0] sm:$0xf]  ;;  %v4838_v34 = vld [vmem:[%s7048_s5 + $0x504] sm:$0xf0] }
 0x1ae   :  { %2452 = vmatmul.bf16.vlgmr.msrb.gmra.mxu2 %v5902_v30  ;;  %2466 = vmatmul.bf16.vlgmr.msrb.gmra.mxu3 %v5904_v31  ;;  %v4320_v41 = vor.u32 %v4838_v34, %v4319_v33  ;;  %v4853_v33 = vld [vmem:[%s7048_s5 + $0x584] sm:$0xf]  ;;  %v4393_v34 = vld [vmem:[%s7048_s5 + $0x598] sm:$0xf0] }
 0x1af   :  { %2500 = vmatpush.bf16.msra.mxu2 %v4248_v39  ;;  %2514 = vmatpush.bf16.msra.mxu3 %v4440_v40  ;;  %v3887_v39 = vld [vmem:[%s7048_s5 + $0x190] sm:$0xf]  ;;  %v4128_v40 = vor.u32 %v4790_v32, %v4127_v29  ;;  %v4805_v29 = vld [vmem:[%s7048_s5 + $0x404] sm:$0xf]  ;;  %v4201_v32 = vld [vmem:[%s7048_s5 + $0x418] sm:$0xf0] }
 0x1b1   :  { %2474 = vmatpush.bf16.msra.mxu0 %v3816_v47  ;;  %2488 = vmatpush.bf16.msra.mxu1 %v4008_v48  ;;  %v4103_v47 = vld [vmem:[%s7048_s5 + $0x340] sm:$0xf]  ;;  %v4784_v48 = vld [vmem:[%s7048_s5 + $0x354] sm:$0xf0] }
 0x1b2   :  { %v4104_v58 = vor.u32 %v4784_v48, %v4103_v47 }
 0x1b3   :  { %2501 = vmatpush.bf16.msra.mxu2 %v4224_v51  ;;  %2515 = vmatpush.bf16.msra.mxu3 %v4416_v52  ;;  %v3696_v51 = vor.u32 %v4682_v38, %v3695_v35  ;;  %v3888_v52 = vor.u32 %v4730_v42, %v3887_v39  ;;  %v4697_v35 = vld [vmem:[%s7048_s5 + $0xa4] sm:$0xf]  ;;  %v3769_v38 = vld [vmem:[%s7048_s5 + $0xb8] sm:$0xf0]  ;;  %v4204_v39 = vor.u32 %v4805_v29, %v4201_v32 }
 0x1b4   :  { %v3961_v42 = vld [vmem:[%s7048_s5 + $0x238] sm:$0xf0]  ;;  %v3772_v47 = vor.u32 %v4697_v35, %v3769_v38  ;;  %v6654_v35 = vld [vmem:[%s7051_s6] sm:$0x3f]  ;;  %v6656_v38 = vpop.f32.mrf.mxu2 }
 0x1b5   :  { %2475 = vmatpush.bf16.msra.mxu0 %v3792_v59  ;;  %2489 = vmatpush.bf16.msra.mxu1 %v3984_v60  ;;  %v4296_v59 = vor.u32 %v4832_v50, %v4295_v49  ;;  %v4033_v60 = vld [vmem:[%s7048_s5 + $0x2c8] sm:$0xf0]  ;;  %v4691_v49 = vld [vmem:[%s7048_s5 + $0x74] sm:$0xf] }
 0x1b6   :  { %v4036_v8 = vor.u32 %v4763_v57, %v4033_v60  ;;  %v3745_v50 = vld [vmem:[%s7048_s5 + $0x88] sm:$0xf0]  ;;  %v4841_v57 = vld [vmem:[%s7048_s5 + $0x524] sm:$0xf]  ;;  %v6583_v60 = vpop.f32.mrf.mxu1 }
 0x1b7   :  { %2502 = vmatpush.bf16.msra.mxu2 %v4200_v63  ;;  %2516 = vmatpush.bf16.msra.mxu3 %v4392_v0  ;;  %v4271_v63 = vld [vmem:[%s7048_s5 + $0x490] sm:$0xf]  ;;  %v4826_v0 = vld [vmem:[%s7048_s5 + $0x4a4] sm:$0xf0] }
 0x1b9   :  { %2476 = vmatpush.bf16.msra.mxu0 %v3768_v9  ;;  %2490 = vmatpush.bf16.msra.mxu1 %v3960_v10  ;;  %v4080_v9 = vor.u32 %v4778_v62, %v4079_v61  ;;  %v4272_v10 = vor.u32 %v4826_v0, %v4271_v63  ;;  %v3748_v61 = vor.u32 %v4691_v49, %v3745_v50  ;;  %v4685_v63 = vld [vmem:[%s7048_s5 + $0x44] sm:$0xf]  ;;  %v3721_v0 = vld [vmem:[%s7048_s5 + $0x58] sm:$0xf0]  ;;  %v4891_v50 = vld [vmem:[%s7050_s7 + $0xb0] sm:$0xff] }
 0x1bb   :  { %2503 = vmatpush.bf16.msra.mxu2 %v4176_v14  ;;  %2517 = vmatpush.bf16.msra.mxu3 %v4368_v15  ;;  %v4252_v14 = vor.u32 %v4817_v1, %v4249_v2  ;;  %v4444_v15 = vor.u32 %v4865_v5, %v4441_v6  ;;  %v4156_v1 = vor.u32 %v4793_v55, %v4153_v56  ;;  %v4733_v5 = vld [vmem:[%s7048_s5 + $0x1c4] sm:$0xf]  ;;  %v3913_v6 = vld [vmem:[%s7048_s5 + $0x1d8] sm:$0xf0] }
 0x1bc   :  { %v1021_v55 = vpop.f32.mrf.mxu2 }
 0x1bd   :  { %2477 = vmatpush.bf16.msra.mxu0 %v3744_v22  ;;  %2491 = vmatpush.bf16.msra.mxu1 %v3936_v11  ;;  %v3820_v22 = vor.u32 %v4709_v12, %v3817_v13  ;;  %v4012_v11 = vor.u32 %v4757_v16, %v4009_v17  ;;  %v3724_v12 = vor.u32 %v4685_v63, %v3721_v0  ;;  %v3697_v17 = vld [vmem:[%s7048_s5 + $0x28] sm:$0xf0]  ;;  %v4880_v63 = vld [vmem:[%s7050_s7 + $0x58] sm:$0xff] }
 0x1be   :  { %v3916_v13 = vor.u32 %v4733_v5, %v3913_v6 }
 0x1bf   :  { %2504 = vmatpush.bf16.msra.mxu2 %v4152_v25  ;;  %2518 = vmatpush.bf16.msra.mxu3 %v4344_v26  ;;  %v4228_v25 = vor.u32 %v4811_v18, %v4225_v19  ;;  %v4420_v26 = vor.u32 %v4859_v20, %v4417_v21  ;;  %v4727_v18 = vld [vmem:[%s7048_s5 + $0x194] sm:$0xf]  ;;  %v3889_v19 = vld [vmem:[%s7048_s5 + $0x1a8] sm:$0xf0]  ;;  %v4781_v20 = vld [vmem:[%s7048_s5 + $0x344] sm:$0xf] }
 0x1c0   :  { %v4105_v21 = vld [vmem:[%s7048_s5 + $0x358] sm:$0xf0] }
 0x1c1   :  { %2478 = vmatpush.bf16.msra.mxu0 %v3720_v36  ;;  %2492 = vmatpush.bf16.msra.mxu1 %v3912_v37  ;;  %v3796_v36 = vor.u32 %v4703_v23, %v3793_v24  ;;  %v3988_v37 = vor.u32 %v4751_v27, %v3985_v28  ;;  %v3892_v24 = vor.u32 %v4727_v18, %v3889_v19  ;;  %v1007_v28 = vpop.f32.mrf.mxu1 }
 0x1c2   :  { %v4108_v29 = vor.u32 %v4781_v20, %v4105_v21  ;;  %v4896_v20 = vld [vmem:[%s7050_s7 + $0xd8] sm:$0xff] }
 0x1c3   :  { %2505 = vmatpush.bf16.msra.mxu2 %v4128_v40  ;;  %2519 = vmatpush.bf16.msra.mxu3 %v4320_v41  ;;  %v4396_v40 = vor.u32 %v4853_v33, %v4393_v34  ;;  %v4745_v41 = vld [vmem:[%s7048_s5 + $0x224] sm:$0xf]  ;;  %v4775_v33 = vld [vmem:[%s7048_s5 + $0x314] sm:$0xf]  ;;  %v4081_v34 = vld [vmem:[%s7048_s5 + $0x328] sm:$0xf0] }
 0x1c4   :  { %v3964_v48 = vor.u32 %v4745_v41, %v3961_v42  ;;  %v4883_v41 = vld [vmem:[%s7050_s7 + $0x70] sm:$0xff]  ;;  %v4084_v42 = vor.u32 %v4775_v33, %v4081_v34 }
 0x1c5   :  { %2479 = vmatpush.bf16.msra.mxu0 %v3696_v51  ;;  %2493 = vmatpush.bf16.msra.mxu1 %v3888_v52  ;;  %v4180_v51 = vor.u32 %v4799_v43, %v4177_v44  ;;  %v4372_v52 = vor.u32 %v4847_v45, %v4369_v46  ;;  %v4892_v44 = vld [vmem:[%s7050_s7 + $0xb8] sm:$0xff]  ;;  %v1256_v46 = vperm.slane %v6654_v35, 0 }
 0x1c6   :  { %v4900_v45 = vld [vmem:[%s7050_s7 + $0xf8] sm:$0xff] }
 0x1c7   :  { %2506 = vmatpush.bf16.msra.mxu2 %v4104_v58  ;;  %2520 = vmatpush.bf16.msra.mxu3 %v4296_v59  ;;  %v4345_v58 = vld [vmem:[%s7048_s5 + $0x538] sm:$0xf0]  ;;  %v6581_v59 = vpop.f32.mrf.mxu0 }
 0x1c8   :  { %2480 = vmatmul.bf16.vlgmr.msra.gmra.mxu0 %v5857_v3  ;;  %2494 = vmatmul.bf16.vlgmr.msra.gmra.mxu1 %v5859_v4  ;;  %v4348_v2 = vor.u32 %v4841_v57, %v4345_v58  ;;  %v4951_v57 = vld [vmem:[%s7049_s4] sm:$0xff] }
 0x1c9   :  { %2528 = vmatpush.bf16.msrb.mxu0 %v3868_v53  ;;  %2542 = vmatpush.bf16.msrb.mxu1 %v4060_v54  ;;  %v4739_v53 = vld [vmem:[%s7048_s5 + $0x1f4] sm:$0xf]  ;;  %v3937_v54 = vld [vmem:[%s7048_s5 + $0x208] sm:$0xf0]  ;;  %v750_v58 = vperm.slane %v4951_v57, 4 }
 0x1ca   :  { %v3940_v62 = vor.u32 %v4739_v53, %v3937_v54  ;;  %v4873_v53 = vld [vmem:[%s7050_s7 + $0x20] sm:$0xff] }
 0x1cb   :  { %2507 = vmatpush.bf16.msra.mxu2 %v4080_v9  ;;  %2521 = vmatpush.bf16.msra.mxu3 %v4272_v10  ;;  %v4835_v9 = vld [vmem:[%s7048_s5 + $0x4f4] sm:$0xf]  ;;  %v4321_v10 = vld [vmem:[%s7048_s5 + $0x508] sm:$0xf0]  ;;  %v4881_v54 = vld [vmem:[%s7050_s7 + $0x60] sm:$0xff] }
 0x1cc   :  { %v4324_v16 = vor.u32 %v4835_v9, %v4321_v10  ;;  %v992_v9 = vadd.f32 %v6581_v59, %v750_v58 }
 0x1cd   :  { %2529 = vmatpush.bf16.msrb.mxu0 %v3844_v7  ;;  %2543 = vmatpush.bf16.msrb.mxu1 %v4036_v8  ;;  %v4787_v7 = vld [vmem:[%s7048_s5 + $0x374] sm:$0xf]  ;;  %v4129_v8 = vld [vmem:[%s7048_s5 + $0x388] sm:$0xf0] }
 0x1ce   :  { %2508 = vmatmul.bf16.vlgmr.msra.gmra.mxu2 %v5902_v30  ;;  %2522 = vmatmul.bf16.vlgmr.msra.gmra.mxu3 %v5904_v31 }
 0x1cf   :  { %2556 = vmatpush.bf16.msrb.mxu2 %v4252_v14  ;;  %2570 = vmatpush.bf16.msrb.mxu3 %v4444_v15  ;;  %v4679_v14 = vld [vmem:[%s7048_s5 + $0x14] sm:$0xf]  ;;  %v4132_v15 = vor.u32 %v4787_v7, %v4129_v8  ;;  %v993_v27 = vpop.f32.mrf.mxu0  ;;  %v4889_v7 = vld [vmem:[%s7050_s7 + $0xa0] sm:$0xff] }
 0x1d0   :  { %v3700_v23 = vor.u32 %v4679_v14, %v3697_v17  ;;  %v4897_v8 = vld [vmem:[%s7050_s7 + $0xe0] sm:$0xff]  ;;  %v753_v14 = vperm.slane %v4951_v57, 7 }
 0x1d1   :  { %2530 = vmatpush.bf16.msrb.mxu0 %v3820_v22  ;;  %2544 = vmatpush.bf16.msrb.mxu1 %v4012_v11  ;;  %v4829_v22 = vld [vmem:[%s7048_s5 + $0x4c4] sm:$0xf]  ;;  %v4297_v11 = vld [vmem:[%s7048_s5 + $0x4d8] sm:$0xf0] }
 0x1d2   :  { %v4300_v32 = vor.u32 %v4829_v22, %v4297_v11 }
 0x1d3   :  { %2557 = vmatpush.bf16.msrb.mxu2 %v4228_v25  ;;  %2571 = vmatpush.bf16.msrb.mxu3 %v4420_v26  ;;  %v4876_v25 = vld [vmem:[%s7050_s7 + $0x38] sm:$0xff] }
 0x1d4   :  { %v4884_v26 = vld [vmem:[%s7050_s7 + $0x78] sm:$0xff] }
 0x1d5   :  { %2531 = vmatpush.bf16.msrb.mxu0 %v3796_v36  ;;  %2545 = vmatpush.bf16.msrb.mxu1 %v3988_v37  ;;  %v4823_v36 = vld [vmem:[%s7048_s5 + $0x494] sm:$0xf]  ;;  %v4273_v37 = vld [vmem:[%s7048_s5 + $0x4a8] sm:$0xf0] }
 0x1d6   :  { %v4276_v43 = vor.u32 %v4823_v36, %v4273_v37  ;;  %v4887_v37 = vld [vmem:[%s7050_s7 + $0x90] sm:$0xff] }
 0x1d7   :  { %2558 = vmatpush.bf16.msrb.mxu2 %v4204_v39  ;;  %2572 = vmatpush.bf16.msrb.mxu3 %v4396_v40  ;;  %v6658_v39 = vpop.f32.mrf.mxu3  ;;  %v4875_v40 = vld [vmem:[%s7050_s7 + $0x30] sm:$0xff] }
 0x1d9   :  { %2532 = vmatpush.bf16.msrb.mxu0 %v3772_v47  ;;  %2546 = vmatpush.bf16.msrb.mxu1 %v3964_v48 }
 0x1db   :  { %2559 = vmatpush.bf16.msrb.mxu2 %v4180_v51  ;;  %2573 = vmatpush.bf16.msrb.mxu3 %v4372_v52  ;;  %v4899_v51 = vld [vmem:[%s7050_s7 + $0xf0] sm:$0xff] }
 0x1dd   :  { %2533 = vmatpush.bf16.msrb.mxu0 %v3748_v61  ;;  %2547 = vmatpush.bf16.msrb.mxu1 %v3940_v62  ;;  %v751_v61 = vperm.slane %v4951_v57, 5  ;;  %v4872_v62 = vld [vmem:[%s7050_s7 + $0x18] sm:$0xff] }
 0x1df   :  { %2560 = vmatpush.bf16.msrb.mxu2 %v4156_v1  ;;  %2574 = vmatpush.bf16.msrb.mxu3 %v4348_v2  ;;  %v1035_v56 = vpop.f32.mrf.mxu3  ;;  %v994_v2 = vadd.f32 %v993_v27, %v750_v58  ;;  %v1008_v5 = vadd.f32 %v1007_v28, %v751_v61  ;;  %v1006_v10 = vadd.f32 %v6583_v60, %v751_v61  ;;  %v4888_v60 = vld [vmem:[%s7050_s7 + $0x98] sm:$0xff]  ;;  %v4885_v61 = vld [vmem:[%s7050_s7 + $0x80] sm:$0xff] }
 0x1e0   :  { %v1036_v22 = vadd.f32 %v1035_v56, %v753_v14  ;;  %v1034_v27 = vadd.f32 %v6658_v39, %v753_v14 }
 0x1e1   :  { %2534 = vmatpush.bf16.msrb.mxu0 %v3724_v12  ;;  %2548 = vmatpush.bf16.msrb.mxu1 %v3916_v13  ;;  %v752_v13 = vperm.slane %v4951_v57, 6  ;;  %v1050_v17 = vmax.f32 %v994_v2, 0.0  ;;  %v1051_v18 = vmax.f32 %v1008_v5, 0.0 }
 0x1e3   :  { %2561 = vmatpush.bf16.msrb.mxu2 %v4132_v15  ;;  %2575 = vmatpush.bf16.msrb.mxu3 %v4324_v16  ;;  %v4871_v15 = vld [vmem:[%s7050_s7 + $0x10] sm:$0xff]  ;;  %v1022_v21 = vadd.f32 %v1021_v55, %v752_v13  ;;  %v1060_v33 = vpack.c.bf16 %v1051_v18, %v1050_v17 }
 0x1e4   :  { %v2257_v47 = vpop.f32.mrf.mxu0  ;;  %v2271_v48 = vpop.f32.mrf.mxu1  ;;  %v4879_v16 = vld [vmem:[%s7050_s7 + $0x50] sm:$0xff] }
 0x1e5   :  { %2535 = vmatpush.bf16.msrb.mxu0 %v3700_v23  ;;  %2549 = vmatpush.bf16.msrb.mxu1 %v3892_v24  ;;  %v2258_v49 = vadd.f32 %v2257_v47, %v1256_v46  ;;  %v1257_v23 = vperm.slane %v6654_v35, 1  ;;  %v1042_v24 = vmax.f32 %v992_v9, 0.0  ;;  %v1052_v39 = vmax.f32 %v1022_v21, 0.0 }
 0x1e6   :  { %v2661_v47 = vunpack.c.h.b16 %v1060_v33 }
 0x1e7   :  { %2562 = vmatpush.bf16.msrb.mxu2 %v4108_v29  ;;  %2576 = vmatpush.bf16.msrb.mxu3 %v4300_v32  ;;  %v2272_v52 = vadd.f32 %v2271_v48, %v2258_v49  ;;  %v4870_v29 = vld [vmem:[%s7050_s7 + $0x8] sm:$0xff] }
 0x1e8   :  { %2536 = vmatmul.bf16.vlgmr.msrb.gmra.mxu0 %v5857_v3  ;;  %2550 = vmatmul.bf16.vlgmr.msrb.gmra.mxu1 %v5859_v4  ;;  %v4874_v3 = vld [vmem:[%s7050_s7 + $0x28] sm:$0xff] }
 0x1e9   :  { %2864 = vmatpush.bf16.msra.mxu0 %v4876_v25  ;;  %2878 = vmatpush.bf16.msra.mxu1 %v4884_v26  ;;  %v4882_v4 = vld [vmem:[%s7050_s7 + $0x68] sm:$0xff]  ;;  %v1043_v25 = vmax.f32 %v1006_v10, 0.0  ;;  %v1020_v26 = vadd.f32 %v6656_v38, %v752_v13  ;;  %v4895_v38 = vld [vmem:[%s7050_s7 + $0xd0] sm:$0xff] }
 0x1ea   :  { %v4878_v32 = vld [vmem:[%s7050_s7 + $0x48] sm:$0xff] }
 0x1eb   :  { %2563 = vmatpush.bf16.msrb.mxu2 %v4084_v42  ;;  %2577 = vmatpush.bf16.msrb.mxu3 %v4276_v43  ;;  %v1056_v42 = vpack.c.bf16 %v1043_v25, %v1042_v24  ;;  %v1044_v43 = vmax.f32 %v1020_v26, 0.0 }
 0x1ec   :  { %v2259_v0 = vpop.f32.mrf.mxu0  ;;  %v2273_v1 = vpop.f32.mrf.mxu1 }
 0x1ed   :  { %2865 = vmatpush.bf16.msra.mxu0 %v4875_v40  ;;  %2879 = vmatpush.bf16.msra.mxu1 %v4883_v41  ;;  %v2260_v6 = vadd.f32 %v2259_v0, %v1256_v46  ;;  %v1053_v40 = vmax.f32 %v1036_v22, 0.0  ;;  %v4869_v46 = vld [vmem:[%s7050_s7] sm:$0xff]  ;;  %v2657_v55 = vunpack.c.h.b16 %v1056_v42 }
 0x1ee   :  { %2564 = vmatmul.bf16.vlgmr.msrb.gmra.mxu2 %v5902_v30  ;;  %2578 = vmatmul.bf16.vlgmr.msrb.gmra.mxu3 %v5904_v31  ;;  %v4890_v30 = vld [vmem:[%s7050_s7 + $0xa8] sm:$0xff] }
 0x1ef   :  { %2892 = vmatpush.bf16.msra.mxu2 %v4892_v44  ;;  %2906 = vmatpush.bf16.msra.mxu3 %v4900_v45  ;;  %v4898_v31 = vld [vmem:[%s7050_s7 + $0xe8] sm:$0xff]  ;;  %v2274_v12 = vadd.f32 %v2273_v1, %v2260_v6  ;;  %v1045_v44 = vmax.f32 %v1034_v27, 0.0  ;;  %v2665_v57 = vpack.c.b16 %v2661_v47, %v2657_v55 }
 0x1f1   :  { %2866 = vmatpush.bf16.msra.mxu0 %v4874_v3  ;;  %2880 = vmatpush.bf16.msra.mxu1 %v4882_v4  ;;  %v2285_v59 = vpop.f32.mrf.mxu2  ;;  %v2299_v19 = vpop.f32.mrf.mxu3  ;;  %v4877_v3 = vld [vmem:[%s7050_s7 + $0x40] sm:$0xff]  ;;  %v2660_v4 = vunpack.c.l.b16 %v1060_v33  ;;  %v1057_v56 = vpack.c.bf16 %v1045_v44, %v1044_v43  ;;  %v1259_v44 = vperm.slane %v6654_v35, 3 }
 0x1f2   :  { %v2286_v11 = vadd.f32 %v2285_v59, %v2272_v52  ;;  %v1061_v52 = vpack.c.bf16 %v1053_v40, %v1052_v39  ;;  %v1258_v40 = vperm.slane %v6654_v35, 2 }
 0x1f3   :  { %2893 = vmatpush.bf16.msra.mxu2 %v4891_v50  ;;  %2907 = vmatpush.bf16.msra.mxu3 %v4899_v51  ;;  %v4886_v50 = vld [vmem:[%s7050_s7 + $0x88] sm:$0xff]  ;;  %v2658_v5 = vunpack.c.l.b16 %v1057_v56  ;;  %v2659_v6 = vunpack.c.h.b16 %v1057_v56 }
 0x1f4   :  { %v6733_v28 = vadd.f32 %v2299_v19, %v2286_v11  ;;  %v4894_v51 = vld [vmem:[%s7050_s7 + $0xc8] sm:$0xff]  ;;  %v2663_v0 = vunpack.c.h.b16 %v1061_v52 }
 0x1f5   :  { %2867 = vmatpush.bf16.msra.mxu0 %v4873_v53  ;;  %2881 = vmatpush.bf16.msra.mxu1 %v4881_v54  ;;  %v2313_v34 = vpop.f32.mrf.mxu0  ;;  %v2327_v36 = vpop.f32.mrf.mxu1  ;;  %v2656_v54 = vunpack.c.l.b16 %v1056_v42 }
 0x1f6   :  { %v2314_v41 = vadd.f32 %v2313_v34, %v1257_v23 }
 0x1f7   :  { %2894 = vmatpush.bf16.msra.mxu2 %v4890_v30  ;;  %2908 = vmatpush.bf16.msra.mxu3 %v4898_v31  ;;  %v2664_v31 = vpack.c.b16 %v2660_v4, %v2656_v54 }
 0x1f8   :  { %v2328_v45 = vadd.f32 %v2327_v36, %v2314_v41 }
 0x1f9   :  { %2868 = vmatpush.bf16.msra.mxu0 %v4872_v62  ;;  %2882 = vmatpush.bf16.msra.mxu1 %v4880_v63  ;;  %v2287_v48 = vpop.f32.mrf.mxu2  ;;  %v2301_v49 = vpop.f32.mrf.mxu3  ;;  %v4893_v62 = vld [vmem:[%s7050_s7 + $0xc0] sm:$0xff]  ;;  %v2662_v63 = vunpack.c.l.b16 %v1061_v52  ;;  %v1261_v52 = vperm.slane %v6654_v35, 5 }
 0x1fa   :  { %v2288_v53 = vadd.f32 %v2287_v48, %v2274_v12  ;;  %v2667_v12 = vpack.c.b16 %v2663_v0, %v2659_v6 }
 0x1fb   :  { %2895 = vmatpush.bf16.msra.mxu2 %v4889_v7  ;;  %2909 = vmatpush.bf16.msra.mxu3 %v4897_v8  ;;  %v2666_v10 = vpack.c.b16 %v2662_v63, %v2658_v5 }
 0x1fc   :  { %v6759_v30 = vadd.f32 %v2301_v49, %v2288_v53 }
 0x1fd   :  { %2869 = vmatpush.bf16.msra.mxu0 %v4871_v15  ;;  %2883 = vmatpush.bf16.msra.mxu1 %v4879_v16  ;;  %v2315_v58 = vpop.f32.mrf.mxu0  ;;  %v2329_v2 = vpop.f32.mrf.mxu1 }
 0x1fe   :  { %v2316_v1 = vadd.f32 %v2315_v58, %v1257_v23 }
 0x1ff   :  { %2896 = vmatpush.bf16.msra.mxu2 %v4888_v60  ;;  %2910 = vmatpush.bf16.msra.mxu3 %v4896_v20 }
 0x200   :  { %v2330_v7 = vadd.f32 %v2329_v2, %v2316_v1 }
 0x201   :  { %2870 = vmatpush.bf16.msra.mxu0 %v4870_v29  ;;  %2884 = vmatpush.bf16.msra.mxu1 %v4878_v32  ;;  %v2341_v8 = vpop.f32.mrf.mxu2  ;;  %v2355_v9 = vpop.f32.mrf.mxu3 }
 0x202   :  { %v2342_v13 = vadd.f32 %v2341_v8, %v2328_v45 }
 0x203   :  { %2897 = vmatpush.bf16.msra.mxu2 %v4887_v37  ;;  %2911 = vmatpush.bf16.msra.mxu3 %v4895_v38 }
 0x204   :  { %v6767_v14 = vadd.f32 %v2355_v9, %v2342_v13 }
 0x205   :  { %2871 = vmatpush.bf16.msra.mxu0 %v4869_v46  ;;  %2885 = vmatpush.bf16.msra.mxu1 %v4877_v3  ;;  %v2369_v60 = vpop.f32.mrf.mxu0  ;;  %v2383_v20 = vpop.f32.mrf.mxu1  ;;  %v1260_v46 = vperm.slane %v6654_v35, 4 }
 0x206   :  { %v2920_v15 = vadd.f32 %v6767_v14, %v6733_v28  ;;  %v2370_v45 = vadd.f32 %v2369_v60, %v1258_v40 }
 0x207   :  { %2898 = vmatpush.bf16.msra.mxu2 %v4886_v50  ;;  %2912 = vmatpush.bf16.msra.mxu3 %v4894_v51 }
 0x208   :  { %2872 = vmatmul.bf16.vlgmr.msra.gmra.mxu0 %v2664_v31  ;;  %2886 = vmatmul.bf16.vlgmr.msra.gmra.mxu1 %v2665_v57  ;;  %v2384_v47 = vadd.f32 %v2383_v20, %v2370_v45  ;;  %v4902_v45 = vld [vmem:[%s7052_s8] ss:$0 sm:$0xff] }
 0x209   :  { %v2343_v16 = vpop.f32.mrf.mxu2  ;;  %v2357_v18 = vpop.f32.mrf.mxu3 }
 0x20a   :  { %v2344_v17 = vadd.f32 %v2343_v16, %v2330_v7 }
 0x20b   :  { %2899 = vmatpush.bf16.msra.mxu2 %v4885_v61  ;;  %2913 = vmatpush.bf16.msra.mxu3 %v4893_v62 }
 0x20c   :  { %v6771_v59 = vadd.f32 %v2357_v18, %v2344_v17 }
 0x20d   :  { %v2371_v21 = vpop.f32.mrf.mxu0  ;;  %v2385_v23 = vpop.f32.mrf.mxu1 }
 0x20e   :  { %2900 = vmatmul.bf16.vlgmr.msra.gmra.mxu2 %v2666_v10  ;;  %2914 = vmatmul.bf16.vlgmr.msra.gmra.mxu3 %v2667_v12  ;;  %v6775_v19 = vadd.f32 %v6771_v59, %v6759_v30  ;;  %v2372_v53 = vadd.f32 %v2371_v21, %v1258_v40 }
 0x210   :  { %v2386_v63 = vadd.f32 %v2385_v23, %v2372_v53 }
 0x211   :  { %v2397_v22 = vpop.f32.mrf.mxu2  ;;  %v2411_v11 = vpop.f32.mrf.mxu3 }
 0x212   :  { %v2398_v50 = vadd.f32 %v2397_v22, %v2384_v47 }
 0x214   :  { %v2412_v57 = vadd.f32 %v2411_v11, %v2398_v50 }
 0x216   :  { %v2922_v6 = vadd.f32 %v2920_v15, %v2412_v57 }
 0x219   :  { %v2399_v25 = vpop.f32.mrf.mxu2  ;;  %v2413_v26 = vpop.f32.mrf.mxu3 }
 0x21a   :  { %v2400_v5 = vadd.f32 %v2399_v25, %v2386_v63 }
 0x21c   :  { %v6786_v60 = vadd.f32 %v2413_v26, %v2400_v5 }
 0x21e   :  { %v2923_v25 = vadd.f32 %v6775_v19, %v6786_v60 }
 0x225   :  { %v2425_v24 = vpop.f32.mrf.mxu0  ;;  %v2439_v27 = vpop.f32.mrf.mxu1 }
 0x226   :  { %v2426_v3 = vadd.f32 %v2425_v24, %v1259_v44 }
 0x228   :  { %v2440_v51 = vadd.f32 %v2439_v27, %v2426_v3  ;;  %v2932_v3 = vlaneseq }
 0x22d   :  { %v2427_v29 = vpop.f32.mrf.mxu0  ;;  %v2441_v34 = vpop.f32.mrf.mxu1 }
 0x22e   :  { %v2428_v58 = vadd.f32 %v2427_v29, %v1259_v44 }
 0x230   :  { %v2442_v7 = vadd.f32 %v2441_v34, %v2428_v58 }
 0x231   :  { %v2453_v32 = vpop.f32.mrf.mxu2  ;;  %v2467_v33 = vpop.f32.mrf.mxu3 }
 0x232   :  { %v2454_v56 = vadd.f32 %v2453_v32, %v2440_v51 }
 0x234   :  { %v6781_v1 = vadd.f32 %v2467_v33, %v2454_v56 }
 0x236   :  { %v2924_v13 = vadd.f32 %v2922_v6, %v6781_v1 }
 0x239   :  { %v2455_v37 = vpop.f32.mrf.mxu2  ;;  %v2469_v38 = vpop.f32.mrf.mxu3 }
 0x23a   :  { %v2456_v16 = vadd.f32 %v2455_v37, %v2442_v7 }
 0x23c   :  { %v6791_v15 = vadd.f32 %v2469_v38, %v2456_v16 }
 0x23e   :  { %v2925_v33 = vadd.f32 %v2923_v25, %v6791_v15 }
 0x245   :  { %v2481_v36 = vpop.f32.mrf.mxu0  ;;  %v2495_v39 = vpop.f32.mrf.mxu1 }
 0x246   :  { %v2482_v48 = vadd.f32 %v2481_v36, %v1260_v46 }
 0x248   :  { %v2496_v31 = vadd.f32 %v2495_v39, %v2482_v48 }
 0x24d   :  { %v2483_v41 = vpop.f32.mrf.mxu0  ;;  %v2497_v4 = vpop.f32.mrf.mxu1 }
 0x24e   :  { %v2484_v2 = vadd.f32 %v2483_v41, %v1260_v46 }
 0x250   :  { %v2498_v17 = vadd.f32 %v2497_v4, %v2484_v2 }
 0x251   :  { %v2509_v42 = vpop.f32.mrf.mxu2  ;;  %v2523_v43 = vpop.f32.mrf.mxu3 }
 0x252   :  { %v2510_v61 = vadd.f32 %v2509_v42, %v2496_v31 }
 0x254   :  { %v6783_v8 = vadd.f32 %v2523_v43, %v2510_v61 }
 0x256   :  { %v2926_v20 = vadd.f32 %v2924_v13, %v6783_v8 }
 0x259   :  { %v2511_v54 = vpop.f32.mrf.mxu2  ;;  %v2525_v55 = vpop.f32.mrf.mxu3 }
 0x25a   :  { %v2512_v21 = vadd.f32 %v2511_v54, %v2498_v17 }
 0x25c   :  { %v6796_v27 = vadd.f32 %v2525_v55, %v2512_v21 }
 0x25e   :  { %v2927_v39 = vadd.f32 %v2925_v33, %v6796_v27 }
 0x265   :  { %v2537_v49 = vpop.f32.mrf.mxu0  ;;  %v2551_v0 = vpop.f32.mrf.mxu1 }
 0x266   :  { %v2538_v62 = vadd.f32 %v2537_v49, %v1261_v52  ;;  %v2933_v49 = vand.u32 127, %v2932_v3 }
 0x268   :  { %v2552_v35 = vadd.f32 %v2551_v0, %v2538_v62  ;;  %vm2934_vm1 = vcmp.lt.s32.totalorder %v2933_v49, 51 }
 0x26d   :  { %v2539_v9 = vpop.f32.mrf.mxu0  ;;  %v2553_v24 = vpop.f32.mrf.mxu1 }
 0x26e   :  { %v2540_v22 = vadd.f32 %v2539_v9, %v1261_v52 }
 0x270   :  { %v2554_v29 = vadd.f32 %v2553_v24, %v2540_v22 }
 0x271   :  { %v2565_v10 = vpop.f32.mrf.mxu2  ;;  %v2579_v12 = vpop.f32.mrf.mxu3 }
 0x272   :  { %v2566_v18 = vadd.f32 %v2565_v10, %v2552_v35 }
 0x274   :  { %v6789_v11 = vadd.f32 %v2579_v12, %v2566_v18 }
 0x276   :  { %v2928_v23 = vadd.f32 %v2926_v20, %v6789_v11 }
 0x278   :  { %v6798_v32 = vmul.f32 0.16666667, %v2928_v23 }
 0x279   :  { %v2567_v26 = vpop.f32.mrf.mxu2  ;;  %v2581_v37 = vpop.f32.mrf.mxu3 }
 0x27a   :  { %v2568_v34 = vadd.f32 %v2567_v26, %v2554_v29  ;;  %v2989_v36 = vsub.f32 %v6767_v14, %v6798_v32  ;;  %v2935_v38 = vsub.f32 %v6733_v28, %v6798_v32  ;;  %v3093_v2 = vsub.f32 %v6781_v1, %v6798_v32 }
 0x27b   :  { %v3197_v22 = vsub.f32 %v6789_v11, %v6798_v32 }
 0x27c   :  { %v2582_v40 = vadd.f32 %v2581_v37, %v2568_v34 }
 0x27e   :  { %v2929_v19 = vadd.f32 %v2927_v39, %v2582_v40 }
 0x280   :  { %v2931_v41 = vmul.f32 0.16666667, %v2929_v19 }
 0x282   :  { %v2990_v42 = vsub.f32 %v6771_v59, %v2931_v41  ;;  %v2936_v44 = vsub.f32 %v6759_v30, %v2931_v41  ;;  %v3041_v59 = vsub.f32 %v2412_v57, %v6798_v32  ;;  %v3145_v57 = vsub.f32 %v6783_v8, %v6798_v32 }
 0x283   :  { %v3042_v13 = vsub.f32 %v6786_v60, %v2931_v41  ;;  %v3094_v8 = vsub.f32 %v6791_v15, %v2931_v41  ;;  %v3198_v23 = vsub.f32 %v2582_v40, %v2931_v41  ;;  %v3146_v60 = vsub.f32 %v6796_v27, %v2931_v41 }
 0x285   :  { %v2873_v43 = vpop.f32.mrf.mxu0  ;;  %v2887_v14 = vpop.f32.mrf.mxu1 }
 0x286   :  { %v2874_v46 = vadd.f32 %v4902_v45, %v2873_v43 }
 0x288   :  { %v2888_v4 = vadd.f32 %v2887_v14, %v2874_v46 }
 0x28d   :  { %v2875_v47 = vpop.f32.mrf.mxu0  ;;  %v2889_v55 = vpop.f32.mrf.mxu1 }
 0x28e   :  { %v2876_v51 = vadd.f32 %v4902_v45, %v2875_v47 }
 0x290   :  { %v2890_v56 = vadd.f32 %v2889_v55, %v2876_v51 }
 0x291   :  { %v2901_v28 = vpop.f32.mrf.mxu2  ;;  %v2915_v48 = vpop.f32.mrf.mxu3 }
 0x292   :  { %v2902_v50 = vadd.f32 %v2901_v28, %v2888_v4 }
 0x294   :  { %v2916_v52 = vadd.f32 %v2915_v48, %v2902_v50 }
 0x296   :  { %v3043_v53 = vadd.f32 %v3041_v59, %v2916_v52  ;;  %v2991_v30 = vadd.f32 %v2989_v36, %v2916_v52  ;;  %v2937_v54 = vadd.f32 %v2935_v38, %v2916_v52  ;;  %v3147_v6 = vadd.f32 %v3145_v57, %v2916_v52 }
 0x297   :  { %v3095_v7 = vadd.f32 %v3093_v2, %v2916_v52  ;;  %v3199_v24 = vadd.f32 %v3197_v22, %v2916_v52 }
 0x298   :  { %v3045_v31 = vsel %vm2934_vm1, %v3043_v53, -1e+30  ;;  %v2993_v58 = vsel %vm2934_vm1, %v2991_v30, -1e+30  ;;  %v2941_v61 = vsel %vm2934_vm1, %v2937_v54, -1e+30 }
 0x299   :  { %v2903_v62 = vpop.f32.mrf.mxu2  ;;  %3047 = vmax.xlane.f32.xlu2 %v3045_v31  ;;  %2995 = vmax.xlane.f32.xlu1 %v2993_v58  ;;  %v2917_v0 = vpop.f32.mrf.mxu3  ;;  %v3149_v9 = vsel %vm2934_vm1, %v3147_v6, -1e+30  ;;  %v3097_v12 = vsel %vm2934_vm1, %v3095_v7, -1e+30  ;;  %v6835_v26 = vsel %vm2934_vm1, %v3199_v24, -1e+30 }
 0x29a   :  { %v2904_v63 = vadd.f32 %v2903_v62, %v2890_v56  ;;  %2943 = vmax.xlane.f32.xlu0 %v2941_v61 }
 0x29c   :  { %v2918_v5 = vadd.f32 %v2917_v0, %v2904_v63 }
 0x29e   :  { %v2992_v35 = vadd.f32 %v2990_v42, %v2918_v5  ;;  %v3044_v16 = vadd.f32 %v3042_v13, %v2918_v5  ;;  %v3096_v17 = vadd.f32 %v3094_v8, %v2918_v5  ;;  %v2938_v1 = vadd.f32 %v2936_v44, %v2918_v5 }
 0x29f   :  { %v3200_v15 = vadd.f32 %v3198_v23, %v2918_v5  ;;  %v3148_v25 = vadd.f32 %v3146_v60, %v2918_v5 }
 0x2a0   :  { %v2994_v10 = vsel %vm2934_vm1, %v2992_v35, -1e+30  ;;  %v3046_v18 = vsel %vm2934_vm1, %v3044_v16, -1e+30  ;;  %v6826_v20 = vsel %vm2934_vm1, %v3096_v17, -1e+30 }
 0x2a1   :  { %3151 = vmax.xlane.f32.xlu2 %v3149_v9  ;;  %2997 = vmax.xlane.f32.xlu1 %v2994_v10  ;;  %v2942_v21 = vsel %vm2934_vm1, %v2938_v1, -1e+30  ;;  %v3202_v29 = vsel %vm2934_vm1, %v3200_v15, -1e+30  ;;  %v3150_v33 = vsel %vm2934_vm1, %v3148_v25, -1e+30 }
 0x2a2   :  { %3099 = vmax.xlane.f32.xlu0 %v3097_v12 }
 0x2a9   :  { %3049 = vmax.xlane.f32.xlu2 %v3046_v18  ;;  %3101 = vmax.xlane.f32.xlu1 %v6826_v20 }
 0x2aa   :  { %2945 = vmax.xlane.f32.xlu0 %v2942_v21 }
 0x2b1   :  { %3205 = vmax.xlane.f32.xlu2 %v3202_v29  ;;  %3203 = vmax.xlane.f32.xlu1 %v6835_v26 }
 0x2b2   :  { %3153 = vmax.xlane.f32.xlu0 %v3150_v33 }
 0x30c   :  { %v3048_v34 = vpop.xlane.xlu2 %3047  ;;  %v2996_v11 = vpop.xlane.xlu1 %2995 }
 0x30d   :  { %v3051_v32 = vsub.f32 %v3045_v31, %v3048_v34  ;;  %v2999_v36 = vsub.f32 %v2993_v58, %v2996_v11  ;;  %v2944_v37 = vpop.xlane.xlu0 %2943 }
 0x30e   :  { %v2947_v27 = vsub.f32 %v2941_v61, %v2944_v37 }
 0x30f   :  { %v3053_v38 = vmul.f32 1.442695, %v3051_v32  ;;  %v3001_v39 = vmul.f32 1.442695, %v2999_v36 }
 0x310   :  { %v2949_v40 = vmul.f32 1.442695, %v2947_v27 }
 0x311   :  { %4903 = vpow2.f32 %v3053_v38 }
 0x312   :  { %4905 = vpow2.f32 %v3001_v39 }
 0x313   :  { %4907 = vpow2.f32 %v2949_v40 }
 0x314   :  { %v3152_v19 = vpop.xlane.xlu2 %3151  ;;  %v2998_v41 = vpop.xlane.xlu1 %2997 }
 0x315   :  { %v3155_v42 = vsub.f32 %v3149_v9, %v3152_v19  ;;  %v3100_v43 = vpop.xlane.xlu0 %3099  ;;  %v3000_v47 = vsub.f32 %v2994_v10, %v2998_v41 }
 0x316   :  { %v3103_v44 = vsub.f32 %v3097_v12, %v3100_v43 }
 0x317   :  { %v6839_v45 = vpop.eup %4903  ;;  %v3157_v46 = vmul.f32 1.442695, %v3155_v42  ;;  %v3003_v50 = vmul.f32 1.442695, %v3000_v47 }
 0x318   :  { %v6841_v14 = vpop.eup %4905  ;;  %v3105_v3 = vmul.f32 1.442695, %v3103_v44  ;;  %3057 = vadd.xlane.f32.xlu1 %v6839_v45 }
 0x319   :  { %v6844_v4 = vpop.eup %4907  ;;  %4909 = vpow2.f32 %v3157_v46  ;;  %3005 = vadd.xlane.f32.xlu2 %v6841_v14 }
 0x31a   :  { %2953 = vadd.xlane.f32.xlu0 %v6844_v4  ;;  %4911 = vpow2.f32 %v3105_v3 }
 0x31c   :  { %v3050_v28 = vpop.xlane.xlu2 %3049  ;;  %v3102_v51 = vpop.xlane.xlu1 %3101 }
 0x31d   :  { %v3052_v48 = vsub.f32 %v3046_v18, %v3050_v28  ;;  %v2946_v49 = vpop.xlane.xlu0 %2945  ;;  %v3104_v55 = vsub.f32 %v6826_v20, %v3102_v51 }
 0x31e   :  { %v2948_v52 = vsub.f32 %v2942_v21, %v2946_v49 }
 0x31f   :  { %v6848_v59 = vpop.eup %4909  ;;  %v3055_v53 = vmul.f32 1.442695, %v3052_v48  ;;  %v3107_v61 = vmul.f32 1.442695, %v3104_v55 }
 0x320   :  { %v2951_v30 = vmul.f32 1.442695, %v2948_v52  ;;  %v6850_v54 = vpop.eup %4911 }
 0x321   :  { %4913 = vpow2.f32 %v3055_v53  ;;  %3161 = vadd.xlane.f32.xlu2 %v6848_v59 }
 0x322   :  { %4915 = vpow2.f32 %v3003_v50  ;;  %3109 = vadd.xlane.f32.xlu0 %v6850_v54 }
 0x323   :  { %4917 = vpow2.f32 %v2951_v30 }
 0x324   :  { %v3206_v56 = vpop.xlane.xlu2 %3205  ;;  %v3204_v2 = vpop.xlane.xlu1 %3203 }
 0x325   :  { %v3208_v31 = vsub.f32 %v3202_v29, %v3206_v56  ;;  %v3154_v58 = vpop.xlane.xlu0 %3153  ;;  %v3207_v7 = vsub.f32 %v6835_v26, %v3204_v2 }
 0x326   :  { %v3156_v62 = vsub.f32 %v3150_v33, %v3154_v58 }
 0x327   :  { %v6855_v63 = vpop.eup %4913  ;;  %v3211_v57 = vmul.f32 1.442695, %v3208_v31  ;;  %v3209_v9 = vmul.f32 1.442695, %v3207_v7 }
 0x328   :  { %v6857_v0 = vpop.eup %4915  ;;  %v3159_v5 = vmul.f32 1.442695, %v3156_v62 }
 0x329   :  { %v6859_v6 = vpop.eup %4917  ;;  %4919 = vpow2.f32 %v3211_v57  ;;  %3059 = vadd.xlane.f32.xlu2 %v6855_v63 }
 0x32a   :  { %4921 = vpow2.f32 %v3107_v61  ;;  %3007 = vadd.xlane.f32.xlu0 %v6857_v0  ;;  %2955 = vadd.xlane.f32.xlu1 %v6859_v6 }
 0x32b   :  { %4923 = vpow2.f32 %v3159_v5 }
 0x32c   :  { %4925 = vpow2.f32 %v3209_v9 }
 0x32f   :  { %v6865_v35 = vpop.eup %4919 }
 0x330   :  { %v6867_v10 = vpop.eup %4921 }
 0x331   :  { %v6869_v12 = vpop.eup %4923  ;;  %3215 = vadd.xlane.f32.xlu2 %v6865_v35 }
 0x332   :  { %3111 = vadd.xlane.f32.xlu1 %v6867_v10  ;;  %3163 = vadd.xlane.f32.xlu0 %v6869_v12  ;;  %v6874_v13 = vpop.eup %4925 }
 0x33a   :  { %3213 = vadd.xlane.f32.xlu1 %v6874_v13 }
 0x38b   :  { %v3058_v8 = vpop.xlane.xlu1 %3057 }
 0x38c   :  { %v3006_v16 = vpop.xlane.xlu2 %3005  ;;  %4927 = vrcp.f32 %v3058_v8  ;;  %vm3066_vm2 = vweird.f32 %v3058_v8  ;;  %v3070_v23 = vand.u32 2147483647, %v3058_v8  ;;  %v3072_v60 = vand.u32 2147483648, %v3058_v8 }
 0x38d   :  { %4929 = vrcp.f32 %v3006_v16  ;;  %v2954_v17 = vpop.xlane.xlu0 %2953  ;;  %v3018_v24 = vand.u32 2147483647, %v3006_v16  ;;  %v3020_v34 = vand.u32 2147483648, %v3006_v16  ;;  %vm3014_vm4 = vweird.f32 %v3006_v16 }
 0x38e   :  { %4931 = vrcp.f32 %v2954_v17  ;;  %v2966_v11 = vand.u32 2147483647, %v2954_v17  ;;  %v2968_v32 = vand.u32 2147483648, %v2954_v17  ;;  %vm6883_vm6 = vcmp.eq.f32.partialorder %v3070_v23, 8.507059e+37 }
 0x38f   :  { %v3073_v40 = vor.u32 1.1754944e-38, %v3072_v60  ;;  %vm6887_vm8 = vcmp.eq.f32.partialorder %v3018_v24, 8.507059e+37  ;;  %v3021_v43 = vor.u32 1.1754944e-38, %v3020_v34  ;;  %vm2962_vm10 = vweird.f32 %v2954_v17 }
 0x390   :  { %vm6892_vm12 = vcmp.eq.f32.partialorder %v2966_v11, 8.507059e+37  ;;  %v2969_v28 = vor.u32 1.1754944e-38, %v2968_v32 }
 0x392   :  { %v4928_v1 = vpop.eup %4927 }
 0x393   :  { %v4930_v18 = vpop.eup %4929  ;;  %v3062_v20 = vmul.f32 %v4928_v1, %v3058_v8  ;;  %vm3067_vm3 = vweird.f32 %v4928_v1 }
 0x394   :  { %v4932_v21 = vpop.eup %4931  ;;  %v3010_v22 = vmul.f32 %v4930_v18, %v3006_v16  ;;  %v6877_v15 = vpop.xlane.xlu2 %3161  ;;  %vm3015_vm5 = vweird.f32 %v4930_v18  ;;  %vm3068_vm9 = vmor %vm3066_vm2, %vm3067_vm3 }
 0x395   :  { %v3063_v25 = vsub.f32 1.0, %v3062_v20  ;;  %v2958_v29 = vmul.f32 %v4932_v21, %v2954_v17  ;;  %4933 = vrcp.f32 %v6877_v15  ;;  %v6880_v26 = vpop.xlane.xlu0 %3109  ;;  %vm2963_vm7 = vweird.f32 %v4932_v21  ;;  %vm3016_vm11 = vmor %vm3014_vm4, %vm3015_vm5 }
 0x396   :  { %v3011_v33 = vsub.f32 1.0, %v3010_v22  ;;  %4935 = vrcp.f32 %v6880_v26  ;;  %vm2964_vm13 = vmor %vm2962_vm10, %vm2963_vm7  ;;  %v3174_v51 = vand.u32 2147483647, %v6877_v15  ;;  %v3122_v5 = vand.u32 2147483647, %v6880_v26 }
 0x397   :  { %v3064_v36 = vmul.f32 %v4928_v1, %v3063_v25  ;;  %v2959_v37 = vsub.f32 1.0, %v2958_v29  ;;  %v3124_v7 = vand.u32 2147483648, %v6880_v26  ;;  %vm3170_vm15 = vweird.f32 %v6877_v15 }
 0x398   :  { %v3012_v27 = vmul.f32 %v4930_v18, %v3011_v33  ;;  %vm3118_vm0 = vweird.f32 %v6880_v26  ;;  %vm3175_vm3 = vcmp.eq.f32.partialorder %v3174_v51, 8.507059e+37  ;;  %vm6932_vm4 = vcmp.eq.f32.partialorder %v3122_v5, 8.507059e+37 }
 0x399   :  { %v3065_v39 = vadd.f32 %v4928_v1, %v3064_v36  ;;  %v2960_v19 = vmul.f32 %v4932_v21, %v2959_v37  ;;  %v3125_v23 = vor.u32 1.1754944e-38, %v3124_v7 }
 0x39a   :  { %v3013_v41 = vadd.f32 %v4930_v18, %v3012_v27 }
 0x39b   :  { %v4934_v44 = vpop.eup %4933  ;;  %v3069_v46 = vsel %vm3068_vm9, %v4928_v1, %v3065_v39  ;;  %v2961_v3 = vadd.f32 %v4932_v21, %v2960_v19 }
 0x39c   :  { %v3017_v48 = vsel %vm3016_vm11, %v4930_v18, %v3013_v41  ;;  %v3074_v49 = vsel %vm6883_vm6, %v3073_v40, %v3069_v46  ;;  %v3166_v50 = vmul.f32 %v4934_v44, %v6877_v15  ;;  %v6901_v52 = vpop.xlane.xlu2 %3059  ;;  %v4936_v53 = vpop.eup %4935  ;;  %vm3171_vm14 = vweird.f32 %v4934_v44 }
 0x39d   :  { %v3022_v30 = vsel %vm6887_vm8, %v3021_v43, %v3017_v48  ;;  %v3075_v55 = vmul.f32 %v6839_v45, %v3074_v49  ;;  %v2965_v56 = vsel %vm2964_vm13, %v4932_v21, %v2961_v3  ;;  %4937 = vrcp.f32 %v6901_v52  ;;  %v6907_v31 = vpop.xlane.xlu1 %2955  ;;  %v6920_v9 = vpop.xlane.xlu0 %3007  ;;  %vm3172_vm2 = vmor %vm3170_vm15, %vm3171_vm14 }
 0x39e   :  { %v3023_v58 = vmul.f32 %v6841_v14, %v3022_v30  ;;  %v2970_v61 = vsel %vm6892_vm12, %v2969_v28, %v2965_v56  ;;  %v3167_v62 = vsub.f32 1.0, %v3166_v50  ;;  %v3114_v57 = vmul.f32 %v4936_v53, %v6880_v26 }
 0x39f   :  { %3091 = vst [vmem:[%s7053_s9 + $0x10] sm:$0xff] %v3075_v55  ;;  %v2971_v2 = vmul.f32 %v6844_v4, %v2970_v61  ;;  %v3176_v45 = vand.u32 2147483648, %v6877_v15  ;;  %4939 = vrcp.f32 %v6907_v31  ;;  %vm3119_vm1 = vweird.f32 %v4936_v53 }
 0x3a0   :  { %3039 = vst [vmem:[%s7053_s9 + $0x8] sm:$0xff] %v3023_v58  ;;  %v3168_v14 = vmul.f32 %v4934_v44, %v3167_v62  ;;  %v3115_v8 = vsub.f32 1.0, %v3114_v57  ;;  %4941 = vrcp.f32 %v6920_v9  ;;  %v3085_v20 = vand.u32 2147483647, %v6901_v52  ;;  %vm3120_vm5 = vmor %vm3118_vm0, %vm3119_vm1 }
 0x3a1   :  { %2987 = vst [vmem:[%s7053_s9] sm:$0xff] %v2971_v2  ;;  %v3177_v1 = vor.u32 1.1754944e-38, %v3176_v45  ;;  %v3087_v25 = vand.u32 2147483648, %v6901_v52  ;;  %v2981_v29 = vand.u32 2147483647, %v6907_v31  ;;  %v2983_v37 = vand.u32 2147483648, %v6907_v31 }
 0x3a2   :  { %v3169_v4 = vadd.f32 %v4934_v44, %v3168_v14  ;;  %v3116_v16 = vmul.f32 %v4936_v53, %v3115_v8  ;;  %vm3081_vm6 = vweird.f32 %v6901_v52  ;;  %vm6952_vm7 = vcmp.eq.f32.partialorder %v3085_v20, 8.507059e+37 }
 0x3a3   :  { %v4938_v17 = vpop.eup %4937  ;;  %vm2977_vm9 = vweird.f32 %v6907_v31  ;;  %v3088_v19 = vor.u32 1.1754944e-38, %v3087_v25  ;;  %vm6969_vm10 = vcmp.eq.f32.partialorder %v2981_v29, 8.507059e+37  ;;  %v3033_v3 = vand.u32 2147483647, %v6920_v9 }
 0x3a4   :  { %v3173_v21 = vsel %vm3172_vm2, %v4934_v44, %v3169_v4  ;;  %v3117_v22 = vadd.f32 %v4936_v53, %v3116_v16  ;;  %v3077_v60 = vmul.f32 %v4938_v17, %v6901_v52  ;;  %v6938_v15 = vpop.xlane.xlu2 %3215  ;;  %vm3082_vm8 = vweird.f32 %v4938_v17 }
 0x3a5   :  { %v3178_v24 = vsel %vm3175_vm3, %v3177_v1, %v3173_v21  ;;  %4943 = vrcp.f32 %v6938_v15  ;;  %v6945_v33 = vpop.xlane.xlu1 %3111  ;;  %v4940_v34 = vpop.eup %4939  ;;  %vm3083_vm11 = vmor %vm3081_vm6, %vm3082_vm8  ;;  %v3035_v49 = vand.u32 2147483648, %v6920_v9  ;;  %vm3029_vm15 = vweird.f32 %v6920_v9 }
 0x3a6   :  { %v3179_v11 = vmul.f32 %v6848_v59, %v3178_v24  ;;  %v3121_v32 = vsel %vm3120_vm5, %v4936_v53, %v3117_v22  ;;  %v3078_v36 = vsub.f32 1.0, %v3077_v60  ;;  %v2973_v38 = vmul.f32 %v4940_v34, %v6907_v31  ;;  %v4942_v39 = vpop.eup %4941  ;;  %v6964_v43 = vpop.xlane.xlu0 %3163 }
 0x3a7   :  { %v3126_v27 = vsel %vm6932_vm4, %v3125_v23, %v3121_v32  ;;  %v3025_v42 = vmul.f32 %v4942_v39, %v6920_v9  ;;  %4945 = vrcp.f32 %v6945_v33  ;;  %vm2978_vm12 = vweird.f32 %v4940_v34 }
 0x3a8   :  { %3195 = vst [vmem:[%s7053_s9 + $0x20] sm:$0xff] %v3179_v11  ;;  %v3127_v59 = vmul.f32 %v6850_v54, %v3126_v27  ;;  %v3079_v40 = vmul.f32 %v4938_v17, %v3078_v36  ;;  %v2974_v41 = vsub.f32 1.0, %v2973_v38  ;;  %v2984_v54 = vor.u32 1.1754944e-38, %v2983_v37  ;;  %vm2979_vm14 = vmor %vm2977_vm9, %vm2978_vm12 }
 0x3a9   :  { %v3026_v48 = vsub.f32 1.0, %v3025_v42  ;;  %v3241_v53 = vand.u32 2147483647, %v6938_v15  ;;  %4947 = vrcp.f32 %v6964_v43  ;;  %vm3030_vm13 = vweird.f32 %v4942_v39 }
 0x3aa   :  { %3143 = vst [vmem:[%s7053_s9 + $0x18] sm:$0xff] %v3127_v59  ;;  %v3080_v44 = vadd.f32 %v4938_v17, %v3079_v40  ;;  %v2975_v28 = vmul.f32 %v4940_v34, %v2974_v41  ;;  %vm6986_vm0 = vcmp.eq.f32.partialorder %v3033_v3, 8.507059e+37  ;;  %v3036_v45 = vor.u32 1.1754944e-38, %v3035_v49  ;;  %vm3031_vm1 = vmor %vm3029_vm15, %vm3030_vm13 }
 0x3ab   :  { %v4944_v47 = vpop.eup %4943  ;;  %v3027_v56 = vmul.f32 %v4942_v39, %v3026_v48  ;;  %v3243_v5 = vand.u32 2147483648, %v6938_v15  ;;  %vm3237_vm3 = vweird.f32 %v6938_v15  ;;  %vm7001_vm4 = vcmp.eq.f32.partialorder %v3241_v53, 8.507059e+37 }
 0x3ac   :  { %v3084_v50 = vsel %vm3083_vm11, %v4938_v17, %v3080_v44  ;;  %v3233_v51 = vmul.f32 %v4944_v47, %v6938_v15  ;;  %v2976_v55 = vadd.f32 %v4940_v34, %v2975_v28  ;;  %vm3238_vm2 = vweird.f32 %v4944_v47 }
 0x3ad   :  { %v3089_v30 = vsel %vm6952_vm7, %v3088_v19, %v3084_v50  ;;  %v4946_v62 = vpop.eup %4945  ;;  %v3028_v2 = vadd.f32 %v4942_v39, %v3027_v56  ;;  %v6991_v7 = vpop.xlane.xlu1 %3213  ;;  %vm3239_vm5 = vmor %vm3237_vm3, %vm3238_vm2  ;;  %v3244_v20 = vor.u32 1.1754944e-38, %v3243_v5  ;;  %v3139_v21 = vand.u32 2147483648, %v6945_v33 }
 0x3ae   :  { %v3090_v52 = vmul.f32 %v6855_v63, %v3089_v30  ;;  %v3234_v61 = vsub.f32 1.0, %v3233_v51  ;;  %v2980_v57 = vsel %vm2979_vm14, %v4940_v34, %v2976_v55  ;;  %v3129_v9 = vmul.f32 %v4946_v62, %v6945_v33 }
 0x3af   :  { %v2985_v63 = vsel %vm6969_vm10, %v2984_v54, %v2980_v57  ;;  %v3032_v8 = vsel %vm3031_vm1, %v4942_v39, %v3028_v2  ;;  %v4948_v16 = vpop.eup %4947  ;;  %4949 = vrcp.f32 %v6991_v7  ;;  %vm3134_vm6 = vweird.f32 %v4946_v62 }
 0x3b0   :  { %3092 = vst [vmem:[%s7053_s9 + $0x40] sm:$0xff] %v3090_v52  ;;  %v3235_v31 = vmul.f32 %v4944_v47, %v3234_v61  ;;  %v2986_v14 = vmul.f32 %v6859_v6, %v2985_v63  ;;  %v3037_v17 = vsel %vm6986_vm0, %v3036_v45, %v3032_v8  ;;  %v3130_v18 = vsub.f32 1.0, %v3129_v9 }
 0x3b1   :  { %v3038_v6 = vmul.f32 %v6857_v0, %v3037_v17  ;;  %v3181_v22 = vmul.f32 %v4948_v16, %v6964_v43  ;;  %v3137_v15 = vand.u32 2147483647, %v6945_v33  ;;  %vm3133_vm7 = vweird.f32 %v6945_v33 }
 0x3b2   :  { %v3236_v1 = vadd.f32 %v4944_v47, %v3235_v31  ;;  %2988 = vst [vmem:[%s7053_s9 + $0x30] sm:$0xff] %v2986_v14  ;;  %v3131_v60 = vmul.f32 %v4946_v62, %v3130_v18  ;;  %v3191_v34 = vand.u32 2147483648, %v6964_v43  ;;  %vm3135_vm8 = vmor %vm3133_vm7, %vm3134_vm6  ;;  %v3140_v11 = vor.u32 1.1754944e-38, %v3139_v21 }
 0x3b3   :  { %3040 = vst [vmem:[%s7053_s9 + $0x38] sm:$0xff] %v3038_v6  ;;  %v3182_v25 = vsub.f32 1.0, %v3181_v22  ;;  %vm3186_vm9 = vweird.f32 %v4948_v16  ;;  %v3189_v36 = vand.u32 2147483647, %v6964_v43  ;;  %vm3138_vm10 = vcmp.eq.f32.partialorder %v3137_v15, 8.507059e+37 }
 0x3b4   :  { %v3240_v23 = vsel %vm3239_vm5, %v4944_v47, %v3236_v1  ;;  %v3132_v29 = vadd.f32 %v4946_v62, %v3131_v60  ;;  %vm3185_vm11 = vweird.f32 %v6964_v43  ;;  %v3192_v39 = vor.u32 1.1754944e-38, %v3191_v34 }
 0x3b5   :  { %v3245_v24 = vsel %vm7001_vm4, %v3244_v20, %v3240_v23  ;;  %v3183_v32 = vmul.f32 %v4948_v16, %v3182_v25  ;;  %v4950_v37 = vpop.eup %4949  ;;  %vm3187_vm12 = vmor %vm3185_vm11, %vm3186_vm9  ;;  %vm3190_vm13 = vcmp.eq.f32.partialorder %v3189_v36, 8.507059e+37  ;;  %v3228_v41 = vand.u32 2147483648, %v6991_v7 }
 0x3b6   :  { %v3246_v0 = vmul.f32 %v6865_v35, %v3245_v24  ;;  %v3136_v27 = vsel %vm3135_vm8, %v4946_v62, %v3132_v29  ;;  %v3218_v33 = vmul.f32 %v4950_v37, %v6991_v7  ;;  %vm3223_vm14 = vweird.f32 %v4950_v37 }
 0x3b7   :  { %v3141_v26 = vsel %vm3138_vm10, %v3140_v11, %v3136_v27  ;;  %v3184_v35 = vadd.f32 %v4948_v16, %v3183_v32  ;;  %v3226_v43 = vand.u32 2147483647, %v6991_v7  ;;  %vm3222_vm15 = vweird.f32 %v6991_v7 }
 0x3b8   :  { %3248 = vst [vmem:[%s7053_s9 + $0x58] sm:$0xff] %v3246_v0  ;;  %v3142_v38 = vmul.f32 %v6867_v10, %v3141_v26  ;;  %v3219_v40 = vsub.f32 1.0, %v3218_v33  ;;  %vm3224_vm0 = vmor %vm3222_vm15, %vm3223_vm14  ;;  %v3229_v46 = vor.u32 1.1754944e-38, %v3228_v41 }
 0x3b9   :  { %v3188_v59 = vsel %vm3187_vm12, %v4948_v16, %v3184_v35  ;;  %vm3227_vm1 = vcmp.eq.f32.partialorder %v3226_v43, 8.507059e+37 }
 0x3ba   :  { %3144 = vst [vmem:[%s7053_s9 + $0x48] sm:$0xff] %v3142_v38  ;;  %v3193_v19 = vsel %vm3190_vm13, %v3192_v39, %v3188_v59  ;;  %v3220_v44 = vmul.f32 %v4950_v37, %v3219_v40 }
 0x3bb   :  { %v3194_v42 = vmul.f32 %v6869_v12, %v3193_v19 }
 0x3bc   :  { %v3221_v10 = vadd.f32 %v4950_v37, %v3220_v44 }
 0x3bd   :  { %3196 = vst [vmem:[%s7053_s9 + $0x50] sm:$0xff] %v3194_v42 }
 0x3be   :  { %v3225_v54 = vsel %vm3224_vm0, %v4950_v37, %v3221_v10 }
 0x3bf   :  { %v3230_v3 = vsel %vm3227_vm1, %v3229_v46, %v3225_v54 }
 0x3c0   :  { %v3231_v47 = vmul.f32 %v6874_v13, %v3230_v3 }
 0x3c2   :  { %3247 = vst [vmem:[%s7053_s9 + $0x28] sm:$0xff] %v3231_v47 }

</bundles_post_ra>
